<compile_context>
chip_gen: v5e
topology: v5e:2x2
jax: 0.10.0
libtpu: 0.0.40
codegen_flags: <defaults>
</compile_context>

<pallas_src>
import functools
import math

import jax
import jax.numpy as jnp
from jax import lax
from jax.experimental import pallas as pl
from jax.experimental.pallas import tpu as pltpu

_LN_EPS = 1e-5
_BN_EPS = 1e-5
_CHUNK = 64            # the output head's last Linear emits 64 values per query
_NEG_INF = -1e30

_WEIGHT_ORDER = ("patch_w", "enc_w", "enc_w2", "enc_vec",
                 "dec_w", "dec_w2", "dec_vec", "op_w1", "op_w2", "misc")


# ------------------------------ fused kernel --------------------------------

def _ntvit_kernel(
    x_ref,          # (T*Bblk, Cpp) f32   token-major patch rows (CLS rows are zeros)
    tok_ref,        # (T*Bblk + nq*Bblk, E) f32  [patch-embed bias rows ; decoder query rows]
    emask_ref,      # (T*Bblk, T*Bblk)   f32  0 / -1e30 same-sample mask (encoder)
    dmask_ref,      # (nq*Bblk, nq*Bblk) f32  same-sample mask (decoder)
    patch_w_ref,    # (Cpp, E)   bf16
    enc_w_ref,      # (Le, E, 8E)  bf16  [wqkv | wo | w1]
    enc_w2_ref,     # (Le, 4E, E)  bf16
    enc_vec_ref,    # (Le, 8, 4E)  f32   rows: bqkv, bo, b1, b2, ln1g, ln1b, ln2g, ln2b
    dec_w_ref,      # (Ld, E, 10E) bf16  [wqkv | wo | ca_wv | ca_wo | w1]
    dec_w2_ref,     # (Ld, 4E, E)  bf16
    dec_vec_ref,    # (Ld, 12, 4E) f32   rows: bqkv, bo, ca_bv, ca_bo, b1, b2, ln1g..ln3b
    op_w1_ref,      # (E, 2E)  bf16  (eval-mode BatchNorm folded in)
    op_w2_ref,      # (2E, 64) bf16
    misc_ref,       # (4, max(2E,64)) f32  rows: enc_norm_g, enc_norm_b, op_b1, op_b2
    out_ref,        # (Bblk, nq*64 + LAT_W) f32  [fmri chunks | latent padded to 128 lanes]
    *, num_heads, bblk, n_queries,
):
    f32, bf16 = jnp.float32, jnp.bfloat16
    E = patch_w_ref.shape[1]
    H = num_heads
    Dh = E // H
    Bblk = bblk
    nq = n_queries
    TB = x_ref.shape[0]
    NB = nq * Bblk
    LAT_W = out_ref.shape[1] - nq * _CHUNK

    def mm(a, w):     # f32 activations x pre-cast bf16 weights, f32 accumulation
        return jnp.dot(a.astype(bf16), w, preferred_element_type=f32)

    def layer_norm(x, g, b):
        mu = jnp.mean(x, axis=-1, keepdims=True)
        xc = x - mu
        var = jnp.mean(xc * xc, axis=-1, keepdims=True)
        return xc * lax.rsqrt(var + _LN_EPS) * g + b

    def attention(x, wqkv, bqkv, wo, bo, mask):
        # fused QKV -> [H,R,Dh] head stack -> batched scores / P@V -> ONE out-projection
        qkv = mm(x, wqkv) + bqkv                                        # [R, 3E]
        q = jnp.stack([qkv[:,         h * Dh:        h * Dh + Dh] for h in range(H)], 0)
        k = jnp.stack([qkv[:,     E + h * Dh:    E + h * Dh + Dh] for h in range(H)], 0)
        v = jnp.stack([qkv[:, 2 * E + h * Dh: 2 * E + h * Dh + Dh] for h in range(H)], 0)
        # 1/sqrt(Dh) is folded into wq / bq at prepare time; mask keeps samples separate.
        s = jnp.einsum('hqd,hkd->hqk', q.astype(bf16), k.astype(bf16),
                       preferred_element_type=f32) + mask               # [H, R, R]
        s = s - jnp.max(s, axis=-1, keepdims=True)
        p = jnp.exp(s)
        p = p * pl.reciprocal(jnp.sum(p, axis=-1, keepdims=True), approx=True)
        o = jnp.einsum('hqk,hkd->hqd', p.astype(bf16), v.astype(bf16),
                       preferred_element_type=f32)                      # [H, R, Dh]
        oc = jnp.concatenate([o[h] for h in range(H)], axis=-1)         # [R, E]
        return mm(oc, wo) + bo

    def ffn(x, w1, b1, w2, b2):
        h = jnp.maximum(mm(x, w1) + b1, 0.0)
        return mm(h, w2) + b2

    misc = misc_ref[...]
    tok = tok_ref[...]
    emask = emask_ref[...]
    dmask = dmask_ref[...]

    # ------------------------------ ViT encoder ------------------------------
    # Patch-embed Conv2d (kernel == stride == patch) as one [TB,Cpp]@[Cpp,E]
    # matmul.  CLS rows of x are zero, so the per-token bias row
    # (= cls_token + pos_embed[0]) reproduces the CLS token exactly; patch rows
    # get conv-bias + pos_embed folded in via the bias rows.
    x = mm(x_ref[...], patch_w_ref[...]) + tok[0:TB, :]                  # [TB, E]
    for l in range(enc_w_ref.shape[0]):
        w = enc_w_ref[l]                                                 # [E, 8E]
        vec = enc_vec_ref[l]                                             # [8, 4E]
        att = attention(x, w[:, 0:3 * E], vec[0:1, 0:3 * E],
                        w[:, 3 * E:4 * E], vec[1:2, 0:E], emask)
        x = layer_norm(x + att, vec[4:5, 0:E], vec[5:6, 0:E])
        f = ffn(x, w[:, 4 * E:8 * E], vec[2:3, :], enc_w2_ref[l], vec[3:4, 0:E])
        x = layer_norm(x + f, vec[6:7, 0:E], vec[7:8, 0:E])

    # final LayerNorm on the CLS rows (token-major => rows [0:Bblk])
    lat = layer_norm(x[0:Bblk, :], misc[0:1, 0:E], misc[1:2, 0:E])       # [Bblk, E]

    # --------------------------- transformer decoder -------------------------
    latq = jnp.concatenate([lat] * nq, axis=0)                           # latent per query row
    y = tok[TB:TB + NB, :]                                               # fmri_queries (token-major)
    for l in range(dec_w_ref.shape[0]):
        w = dec_w_ref[l]                                                 # [E, 10E]
        vec = dec_vec_ref[l]                                             # [12, 4E]
        sa = attention(y, w[:, 0:3 * E], vec[0:1, 0:3 * E],
                       w[:, 3 * E:4 * E], vec[1:2, 0:E], dmask)
        y = layer_norm(y + sa, vec[6:7, 0:E], vec[7:8, 0:E])
        # Cross-attention over a single memory token: softmax == 1 identically,
        # so it reduces to out_proj(v_proj(latent)) per sample.
        ca = mm(mm(latq, w[:, 4 * E:5 * E]) + vec[2:3, 0:E],
                w[:, 5 * E:6 * E]) + vec[3:4, 0:E]
        y = layer_norm(y + ca, vec[8:9, 0:E], vec[9:10, 0:E])
        f = ffn(y, w[:, 6 * E:10 * E], vec[4:5, :], dec_w2_ref[l], vec[5:6, 0:E])
        y = layer_norm(y + f, vec[10:11, 0:E], vec[11:12, 0:E])

    # Output head: Linear(+folded BN) -> ReLU -> Linear -> Tanh, then pack each
    # sample's nq 64-wide chunks side by side and append the padded latent:
    # a single lane-dense, unmasked store.
    h = jnp.maximum(mm(y, op_w1_ref[...]) + misc[2:3, 0:2 * E], 0.0)     # [NB, 2E]
    chunks = jnp.tanh(mm(h, op_w2_ref[...]) + misc[3:4, 0:_CHUNK])       # [NB, 64]
    packed = jnp.concatenate([chunks[q * Bblk:(q + 1) * Bblk, :] for q in range(nq)],
                             axis=-1)                                    # [Bblk, nq*64]
    if LAT_W > E:
        lat = jnp.concatenate([lat, jnp.zeros((Bblk, LAT_W - E), f32)], axis=-1)
    out_ref[...] = jnp.concatenate([packed, lat], axis=-1)


# ------------------------------ forward wrapper ------------------------------

def ntvit_forward(prep, cfg, mel):
    E = cfg["embed_dim"]
    p = cfg["patch_size"]
    B, C, Hh, Ww = mel.shape
    if Hh != Ww:
        m = max(Hh, Ww)
        mel = jnp.pad(mel, ((0, 0), (0, 0), (0, m - Hh), (0, m - Ww)))
        Hh = Ww = m
    nh, nw = Hh // p, Ww // p
    NP = nh * nw
    T = NP + 1
    Cpp = C * p * p
    nq = prep["dec_queries"].shape[0]

    # Per-block batch: whole batch in one step when small (the grid is a serial
    # loop on v5e/v6e); blocks of 8 for larger batches (>= 2 blocks feed both
    # v7x TensorCores and keep all block sublane dims multiples of 8).
    if B <= 8:
        Bblk, Bpad = B, B
    else:
        Bblk = 8
        Bpad = ((B + 7) // 8) * 8
    nb = Bpad // Bblk
    TB, NB = T * Bblk, nq * Bblk

    x = mel.astype(jnp.float32)
    if Bpad > B:
        x = jnp.pad(x, ((0, Bpad - B), (0, 0), (0, 0), (0, 0)))

    # im2col for the patch-embedding Conv2d (kernel == stride == patch_size),
    # a zero CLS row per sample, then token-major ordering inside each block.
    # TODO(synk): at realistic image sizes fold this transpose into the kernel
    # via the BlockSpec index_map instead of an XLA transpose.
    patches = (x.reshape(Bpad, C, nh, p, nw, p)
                .transpose(0, 2, 4, 1, 3, 5)
                .reshape(Bpad, NP, Cpp))
    patches = jnp.pad(patches, ((0, 0), (1, 0), (0, 0)))                 # [Bpad, T, Cpp]
    x_tok = (patches.reshape(nb, Bblk, T, Cpp)
                    .transpose(0, 2, 1, 3)
                    .reshape(nb * TB, Cpp))                              # row = t*Bblk + b

    tok_rows = jnp.concatenate(
        [jnp.repeat(prep["bias_rows"], Bblk, axis=0),                    # [TB, E]
         jnp.repeat(prep["dec_queries"], Bblk, axis=0)], axis=0)         # [NB, E]

    def same_sample_mask(rows):
        s = jnp.arange(rows, dtype=jnp.int32) % Bblk
        return jnp.where(s[:, None] == s[None, :], 0.0, _NEG_INF).astype(jnp.float32)

    enc_mask = same_sample_mask(TB)
    dec_mask = same_sample_mask(NB)

    LAT_W = ((E + 127) // 128) * 128
    OUT_W = nq * _CHUNK + LAT_W
    weights = [prep[name] for name in _WEIGHT_ORDER]

    def resident(a):   # whole array kept in VMEM, same block for every grid step
        return pl.BlockSpec(a.shape, lambda i, _nd=a.ndim: (0,) * _nd)

    kernel = functools.partial(_ntvit_kernel, num_heads=cfg["num_heads"],
                               bblk=Bblk, n_queries=nq)

    out = pl.pallas_call(
        kernel,
        grid=(nb,),
        in_specs=[pl.BlockSpec((TB, Cpp), lambda i: (i, 0)),
                  resident(tok_rows), resident(enc_mask), resident(dec_mask)]
                 + [resident(w) for w in weights],
        out_specs=pl.BlockSpec((Bblk, OUT_W), lambda i: (i, 0)),
        out_shape=jax.ShapeDtypeStruct((Bpad, OUT_W), jnp.float32),
        compiler_params=pltpu.CompilerParams(dimension_semantics=("parallel",)),
    )(x_tok, tok_rows, enc_mask, dec_mask, *weights)

    fmri = out[:B, :nq * _CHUNK]
    latent = out[:B, nq * _CHUNK:nq * _CHUNK + E]
    out_dim = cfg["fmri_voxels"]
    if fmri.shape[1] < out_dim:            # module zero-pads / truncates the same way
        fmri = jnp.pad(fmri, ((0, 0), (0, out_dim - fmri.shape[1])))
    elif fmri.shape[1] > out_dim:
        fmri = fmri[:, :out_dim]
    return {"translated_fmri": fmri, "latent_representation": latent}


# --------------------------- parameter preparation ---------------------------

def prepare_params(params, cfg):
    """Fold / pack the torch-style parameter tree into the fused-kernel layout (once)."""
    E = cfg["embed_dim"]
    scale = 1.0 / math.sqrt(E // cfg["num_heads"])
    f32 = lambda a: jnp.asarray(a, jnp.float32)
    bf = lambda a: a.astype(jnp.bfloat16)
    enc, dec = params["encoder"], params["decoder"]
    W4 = 4 * E

    def row(v, width):                     # 1-D vector -> zero-padded [1, width] row
        v = f32(v).reshape(1, -1)
        return jnp.pad(v, ((0, 0), (0, width - v.shape[1])))

    def qkv_w(a):                          # [E, 3E]; 1/sqrt(Dh) folded into the Q block
        return jnp.concatenate([f32(a["wq"]) * scale, f32(a["wk"]), f32(a["wv"])], axis=1)

    def qkv_b(a):
        return jnp.concatenate([f32(a["bq"]) * scale, f32(a["bk"]), f32(a["bv"])])

    def enc_wmat(lp):                      # [E, 8E] = [wqkv | wo | w1]
        a = lp["attn"]
        return jnp.concatenate([qkv_w(a), f32(a["wo"]), f32(lp["w1"])], axis=1)

    def enc_vecs(lp):                      # [8, 4E]
        a = lp["attn"]
        rows = [qkv_b(a), a["bo"], lp["b1"], lp["b2"],
                lp["ln1_g"], lp["ln1_b"], lp["ln2_g"], lp["ln2_b"]]
        return jnp.concatenate([row(r, W4) for r in rows], axis=0)

    def dec_wmat(lp):                      # [E, 10E] = [wqkv | wo | ca_wv | ca_wo | w1]
        sa, ca = lp["self_attn"], lp["cross_attn"]
        return jnp.concatenate([qkv_w(sa), f32(sa["wo"]), f32(ca["wv"]),
                                f32(ca["wo"]), f32(lp["w1"])], axis=1)

    def dec_vecs(lp):                      # [12, 4E]
        sa, ca = lp["self_attn"], lp["cross_attn"]
        rows = [qkv_b(sa), sa["bo"], ca["bv"], ca["bo"], lp["b1"], lp["b2"],
                lp["ln1_g"], lp["ln1_b"], lp["ln2_g"], lp["ln2_b"],
                lp["ln3_g"], lp["ln3_b"]]
        return jnp.concatenate([row(r, W4) for r in rows], axis=0)

    # cls token / positional embedding / conv bias folded into per-token bias rows
    pos = f32(enc["pos_embed"][0])
    bias_rows = jnp.concatenate([f32(enc["cls_token"][0]) + pos[0:1],
                                 f32(enc["patch_b"])[None, :] + pos[1:]], axis=0)

    # eval-mode BatchNorm1d folded into the first output-projection Linear
    bn_scale = f32(dec["bn_gamma"]) * lax.rsqrt(f32(dec["bn_var"]) + _BN_EPS)
    bn_shift = f32(dec["bn_beta"]) - f32(dec["bn_mean"]) * bn_scale
    op_w1 = f32(dec["op_w1"]) * bn_scale[None, :]
    op_b1 = f32(dec["op_b1"]) * bn_scale + bn_shift

    MW = max(2 * E, _CHUNK)
    misc = jnp.concatenate([row(enc["norm_g"], MW), row(enc["norm_b"], MW),
                            row(op_b1, MW), row(dec["op_b2"], MW)], axis=0)

    el, dl = enc["layers"], dec["layers"]
    return dict(
        bias_rows=bias_rows,                                     # f32 [T, E]
        dec_queries=f32(dec["queries"][0]),                      # f32 [nq, E]
        patch_w=bf(f32(enc["patch_w"])),
        enc_w=bf(jnp.stack([enc_wmat(lp) for lp in el], 0)),
        enc_w2=bf(jnp.stack([f32(lp["w2"]) for lp in el], 0)),
        enc_vec=jnp.stack([enc_vecs(lp) for lp in el], 0),
        dec_w=bf(jnp.stack([dec_wmat(lp) for lp in dl], 0)),
        dec_w2=bf(jnp.stack([f32(lp["w2"]) for lp in dl], 0)),
        dec_vec=jnp.stack([dec_vecs(lp) for lp in dl], 0),
        op_w1=bf(op_w1),
        op_w2=bf(f32(dec["op_w2"])),
        misc=misc,
    )


# ----------------------------- parameter creation ----------------------------

def init_params(key, cfg):
    """Random init mirroring the PyTorch module's parameter structure."""
    E = cfg["embed_dim"]
    p = cfg["patch_size"]
    in_ch = 3
    mel_bins = cfg["mel_bins"]
    num_patches = (mel_bins // p) * (mel_bins // p)
    nq = cfg["fmri_voxels"] // 64

    keys = iter(jax.random.split(key, 512))

    def nrm(shape, scale=0.02):
        return (scale * jax.random.normal(next(keys), shape)).astype(jnp.float32)

    def mha():
        return dict(wq=nrm((E, E)), bq=nrm((E,)), wk=nrm((E, E)), bk=nrm((E,)),
                    wv=nrm((E, E)), bv=nrm((E,)), wo=nrm((E, E)), bo=nrm((E,)))

    def enc_layer():
        return dict(
            attn=mha(),
            w1=nrm((E, 4 * E)), b1=nrm((4 * E,)),
            w2=nrm((4 * E, E)), b2=nrm((E,)),
            ln1_g=jnp.ones((E,), jnp.float32), ln1_b=jnp.zeros((E,), jnp.float32),
            ln2_g=jnp.ones((E,), jnp.float32), ln2_b=jnp.zeros((E,), jnp.float32))

    def dec_layer():
        return dict(
            self_attn=mha(), cross_attn=mha(),
            w1=nrm((E, 4 * E)), b1=nrm((4 * E,)),
            w2=nrm((4 * E, E)), b2=nrm((E,)),
            ln1_g=jnp.ones((E,), jnp.float32), ln1_b=jnp.zeros((E,), jnp.float32),
            ln2_g=jnp.ones((E,), jnp.float32), ln2_b=jnp.zeros((E,), jnp.float32),
            ln3_g=jnp.ones((E,), jnp.float32), ln3_b=jnp.zeros((E,), jnp.float32))

    encoder = dict(
        patch_w=nrm((in_ch * p * p, E)),
        patch_b=nrm((E,)),
        pos_embed=jnp.zeros((1, num_patches + 1, E), jnp.float32),   # torch: zeros
        cls_token=jnp.zeros((1, 1, E), jnp.float32),                 # torch: zeros
        layers=[enc_layer() for _ in range(cfg["num_layers"])],
        norm_g=jnp.ones((E,), jnp.float32),
        norm_b=jnp.zeros((E,), jnp.float32))

    decoder = dict(
        queries=nrm((1, nq, E), scale=1.0),                          # torch.randn
        layers=[dec_layer() for _ in range(6)],
        op_w1=nrm((E, 2 * E)), op_b1=nrm((2 * E,)),
        bn_gamma=jnp.ones((2 * E,), jnp.float32),
        bn_beta=jnp.zeros((2 * E,), jnp.float32),
        bn_mean=jnp.zeros((2 * E,), jnp.float32),
        bn_var=jnp.ones((2 * E,), jnp.float32),
        op_w2=nrm((2 * E, 64)), op_b2=nrm((64,)))

    return dict(encoder=encoder, decoder=decoder)


# ----------------------------------- main ------------------------------------

if __name__ == "__main__":
    cfg = dict(
        mel_bins=16,       # img_size = (16, 16)
        fmri_voxels=128,   # -> 2 decoder queries of 64 values each
        patch_size=8,      # -> 4 patches (+ CLS = seq len 5)
        embed_dim=32,
        num_heads=4,
        num_layers=2,
    )

    key = jax.random.PRNGKey(0)
    k_params, k_input = jax.random.split(key)
    params = init_params(k_params, cfg)
    prep = prepare_params(params, cfg)   # pack / fold / cast once

    # input: [batch=2, channels=3, height=16, width=16] (NCHW, like PyTorch)
    mel = jax.random.normal(k_input, (2, 3, cfg["mel_bins"], cfg["mel_bins"]),
                            dtype=jnp.float32)

    fwd = jax.jit(lambda prep_, mel_: ntvit_forward(prep_, cfg, mel_))
    out = fwd(prep, mel)
    jax.block_until_ready(out)

    assert out["translated_fmri"].shape == (2, cfg["fmri_voxels"])
    assert out["latent_representation"].shape == (2, cfg["embed_dim"])
    assert bool(jnp.all(jnp.isfinite(out["translated_fmri"])))
    assert bool(jnp.all(jnp.isfinite(out["latent_representation"])))

    print("KERNEL_OK")
</pallas_src>

<mosaic_0001>
module attributes {stable_mosaic.version = 11 : i64} {
  func.func @_ntvit_kernel(%arg0: i32, %arg1: memref<10x192xf32, #tpu.memory_space<vmem>>, %arg2: memref<14x32xf32, #tpu.memory_space<vmem>>, %arg3: memref<10x10xf32, #tpu.memory_space<vmem>>, %arg4: memref<4x4xf32, #tpu.memory_space<vmem>>, %arg5: memref<192x32xbf16, #tpu.memory_space<vmem>>, %arg6: memref<2x32x256xbf16, #tpu.memory_space<vmem>>, %arg7: memref<2x128x32xbf16, #tpu.memory_space<vmem>>, %arg8: memref<2x8x128xf32, #tpu.memory_space<vmem>>, %arg9: memref<6x32x320xbf16, #tpu.memory_space<vmem>>, %arg10: memref<6x128x32xbf16, #tpu.memory_space<vmem>>, %arg11: memref<6x12x128xf32, #tpu.memory_space<vmem>>, %arg12: memref<32x64xbf16, #tpu.memory_space<vmem>>, %arg13: memref<64x64xbf16, #tpu.memory_space<vmem>>, %arg14: memref<4x64xf32, #tpu.memory_space<vmem>>, %arg15: memref<2x256xf32, #tpu.memory_space<vmem>>) attributes {dimension_semantics = [#tpu.dimension_semantics<parallel>], iteration_bounds = array<i64: 1>, scalar_prefetch = 0 : i64, scratch_operands = 0 : i64, tpu.core_type = #tpu.core_type<tc>, window_params = [{transform_indices = @transform_0, window_bounds = array<i64: 10, 192>}, {pipeline_mode = #tpu.pipeline_mode<synchronous>, transform_indices = @transform_1, window_bounds = array<i64: 14, 32>}, {pipeline_mode = #tpu.pipeline_mode<synchronous>, transform_indices = @transform_2, window_bounds = array<i64: 10, 10>}, {pipeline_mode = #tpu.pipeline_mode<synchronous>, transform_indices = @transform_3, window_bounds = array<i64: 4, 4>}, {pipeline_mode = #tpu.pipeline_mode<synchronous>, transform_indices = @transform_4, window_bounds = array<i64: 192, 32>}, {pipeline_mode = #tpu.pipeline_mode<synchronous>, transform_indices = @transform_5, window_bounds = array<i64: 2, 32, 256>}, {pipeline_mode = #tpu.pipeline_mode<synchronous>, transform_indices = @transform_6, window_bounds = array<i64: 2, 128, 32>}, {pipeline_mode = #tpu.pipeline_mode<synchronous>, transform_indices = @transform_7, window_bounds = array<i64: 2, 8, 128>}, {pipeline_mode = #tpu.pipeline_mode<synchronous>, transform_indices = @transform_8, window_bounds = array<i64: 6, 32, 320>}, {pipeline_mode = #tpu.pipeline_mode<synchronous>, transform_indices = @transform_9, window_bounds = array<i64: 6, 128, 32>}, {pipeline_mode = #tpu.pipeline_mode<synchronous>, transform_indices = @transform_10, window_bounds = array<i64: 6, 12, 128>}, {pipeline_mode = #tpu.pipeline_mode<synchronous>, transform_indices = @transform_11, window_bounds = array<i64: 32, 64>}, {pipeline_mode = #tpu.pipeline_mode<synchronous>, transform_indices = @transform_12, window_bounds = array<i64: 64, 64>}, {pipeline_mode = #tpu.pipeline_mode<synchronous>, transform_indices = @transform_13, window_bounds = array<i64: 4, 64>}, {transform_indices = @transform_14, window_bounds = array<i64: 2, 256>}]} {
    %c0 = arith.constant 0 : index
    %c0_0 = arith.constant 0 : index
    %0 = vector.load %arg14[%c0, %c0_0] : memref<4x64xf32, #tpu.memory_space<vmem>>, vector<4x64xf32>
    %c0_1 = arith.constant 0 : index
    %c0_2 = arith.constant 0 : index
    %1 = vector.load %arg2[%c0_1, %c0_2] : memref<14x32xf32, #tpu.memory_space<vmem>>, vector<14x32xf32>
    %c0_3 = arith.constant 0 : index
    %c0_4 = arith.constant 0 : index
    %2 = vector.load %arg3[%c0_3, %c0_4] : memref<10x10xf32, #tpu.memory_space<vmem>>, vector<10x10xf32>
    %c0_5 = arith.constant 0 : index
    %c0_6 = arith.constant 0 : index
    %3 = vector.load %arg4[%c0_5, %c0_6] : memref<4x4xf32, #tpu.memory_space<vmem>>, vector<4x4xf32>
    %c0_7 = arith.constant 0 : index
    %c0_8 = arith.constant 0 : index
    %4 = vector.load %arg1[%c0_7, %c0_8] : memref<10x192xf32, #tpu.memory_space<vmem>>, vector<10x192xf32>
    %c0_9 = arith.constant 0 : index
    %c0_10 = arith.constant 0 : index
    %5 = vector.load %arg5[%c0_9, %c0_10] : memref<192x32xbf16, #tpu.memory_space<vmem>>, vector<192x32xbf16>
    %6 = arith.truncf %4 : vector<10x192xf32> to vector<10x192xbf16>
    %cst = arith.constant dense<0.000000e+00> : vector<10x32xf32>
    %7 = tpu.matmul %6, %5, %cst {dimension_numbers = #tpu.dot_dimension_numbers<[1], [0], [0], [1], [0, 0, 1, 1], [], []>} : vector<10x192xbf16>, vector<192x32xbf16>, vector<10x32xf32> -> vector<10x32xf32>
    %8 = vector.extract_strided_slice %1 {offsets = [0, 0], sizes = [10, 32], strides = [1, 1]} : vector<14x32xf32> to vector<10x32xf32>
    %9 = arith.addf %7, %8 : vector<10x32xf32>
    %c0_11 = arith.constant 0 : index
    %c0_12 = arith.constant 0 : index
    %c0_13 = arith.constant 0 : index
    %10 = vector.load %arg6[%c0_11, %c0_12, %c0_13] : memref<2x32x256xbf16, #tpu.memory_space<vmem>>, vector<1x32x256xbf16>
    %11 = vector.shape_cast %10 : vector<1x32x256xbf16> to vector<32x256xbf16>
    %c0_14 = arith.constant 0 : index
    %c0_15 = arith.constant 0 : index
    %c0_16 = arith.constant 0 : index
    %12 = vector.load %arg8[%c0_14, %c0_15, %c0_16] : memref<2x8x128xf32, #tpu.memory_space<vmem>>, vector<1x8x128xf32>
    %13 = vector.shape_cast %12 : vector<1x8x128xf32> to vector<8x128xf32>
    %14 = vector.extract_strided_slice %11 {offsets = [0, 0], sizes = [32, 96], strides = [1, 1]} : vector<32x256xbf16> to vector<32x96xbf16>
    %15 = vector.extract_strided_slice %13 {offsets = [0, 0], sizes = [1, 96], strides = [1, 1]} : vector<8x128xf32> to vector<1x96xf32>
    %16 = vector.extract_strided_slice %11 {offsets = [0, 96], sizes = [32, 32], strides = [1, 1]} : vector<32x256xbf16> to vector<32x32xbf16>
    %17 = vector.extract_strided_slice %13 {offsets = [1, 0], sizes = [1, 32], strides = [1, 1]} : vector<8x128xf32> to vector<1x32xf32>
    %18 = arith.truncf %9 : vector<10x32xf32> to vector<10x32xbf16>
    %cst_17 = arith.constant dense<0.000000e+00> : vector<10x96xf32>
    %19 = tpu.matmul %18, %14, %cst_17 {dimension_numbers = #tpu.dot_dimension_numbers<[1], [0], [0], [1], [0, 0, 1, 1], [], []>} : vector<10x32xbf16>, vector<32x96xbf16>, vector<10x96xf32> -> vector<10x96xf32>
    %20 = vector.broadcast %15 : vector<1x96xf32> to vector<10x96xf32>
    %21 = arith.addf %19, %20 : vector<10x96xf32>
    %22 = vector.extract_strided_slice %21 {offsets = [0, 0], sizes = [10, 8], strides = [1, 1]} : vector<10x96xf32> to vector<10x8xf32>
    %23 = vector.extract_strided_slice %21 {offsets = [0, 8], sizes = [10, 8], strides = [1, 1]} : vector<10x96xf32> to vector<10x8xf32>
    %24 = vector.extract_strided_slice %21 {offsets = [0, 16], sizes = [10, 8], strides = [1, 1]} : vector<10x96xf32> to vector<10x8xf32>
    %25 = vector.extract_strided_slice %21 {offsets = [0, 24], sizes = [10, 8], strides = [1, 1]} : vector<10x96xf32> to vector<10x8xf32>
    %26 = vector.shape_cast %22 : vector<10x8xf32> to vector<1x10x8xf32>
    %27 = vector.shape_cast %23 : vector<10x8xf32> to vector<1x10x8xf32>
    %28 = vector.shape_cast %24 : vector<10x8xf32> to vector<1x10x8xf32>
    %29 = vector.shape_cast %25 : vector<10x8xf32> to vector<1x10x8xf32>
    %30 = tpu.concatenate %26, %27, %28, %29 in 0 : vector<1x10x8xf32>, vector<1x10x8xf32>, vector<1x10x8xf32>, vector<1x10x8xf32> -> vector<4x10x8xf32>
    %31 = vector.extract_strided_slice %21 {offsets = [0, 32], sizes = [10, 8], strides = [1, 1]} : vector<10x96xf32> to vector<10x8xf32>
    %32 = vector.extract_strided_slice %21 {offsets = [0, 40], sizes = [10, 8], strides = [1, 1]} : vector<10x96xf32> to vector<10x8xf32>
    %33 = vector.extract_strided_slice %21 {offsets = [0, 48], sizes = [10, 8], strides = [1, 1]} : vector<10x96xf32> to vector<10x8xf32>
    %34 = vector.extract_strided_slice %21 {offsets = [0, 56], sizes = [10, 8], strides = [1, 1]} : vector<10x96xf32> to vector<10x8xf32>
    %35 = vector.shape_cast %31 : vector<10x8xf32> to vector<1x10x8xf32>
    %36 = vector.shape_cast %32 : vector<10x8xf32> to vector<1x10x8xf32>
    %37 = vector.shape_cast %33 : vector<10x8xf32> to vector<1x10x8xf32>
    %38 = vector.shape_cast %34 : vector<10x8xf32> to vector<1x10x8xf32>
    %39 = tpu.concatenate %35, %36, %37, %38 in 0 : vector<1x10x8xf32>, vector<1x10x8xf32>, vector<1x10x8xf32>, vector<1x10x8xf32> -> vector<4x10x8xf32>
    %40 = vector.extract_strided_slice %21 {offsets = [0, 64], sizes = [10, 8], strides = [1, 1]} : vector<10x96xf32> to vector<10x8xf32>
    %41 = vector.extract_strided_slice %21 {offsets = [0, 72], sizes = [10, 8], strides = [1, 1]} : vector<10x96xf32> to vector<10x8xf32>
    %42 = vector.extract_strided_slice %21 {offsets = [0, 80], sizes = [10, 8], strides = [1, 1]} : vector<10x96xf32> to vector<10x8xf32>
    %43 = vector.extract_strided_slice %21 {offsets = [0, 88], sizes = [10, 8], strides = [1, 1]} : vector<10x96xf32> to vector<10x8xf32>
    %44 = vector.shape_cast %40 : vector<10x8xf32> to vector<1x10x8xf32>
    %45 = vector.shape_cast %41 : vector<10x8xf32> to vector<1x10x8xf32>
    %46 = vector.shape_cast %42 : vector<10x8xf32> to vector<1x10x8xf32>
    %47 = vector.shape_cast %43 : vector<10x8xf32> to vector<1x10x8xf32>
    %48 = tpu.concatenate %44, %45, %46, %47 in 0 : vector<1x10x8xf32>, vector<1x10x8xf32>, vector<1x10x8xf32>, vector<1x10x8xf32> -> vector<4x10x8xf32>
    %49 = arith.truncf %30 : vector<4x10x8xf32> to vector<4x10x8xbf16>
    %50 = arith.truncf %39 : vector<4x10x8xf32> to vector<4x10x8xbf16>
    "tpu.trace_start"() <{level = 10 : i32, message = "hqd,hkd->hqk"}> : () -> ()
    %cst_18 = arith.constant dense<0.000000e+00> : vector<4x10x10xf32>
    %51 = tpu.matmul %49, %50, %cst_18 {dimension_numbers = #tpu.dot_dimension_numbers<[2], [2], [1], [1], [0, 0, 0, 1, 1, 1], [0], [0]>} : vector<4x10x8xbf16>, vector<4x10x8xbf16>, vector<4x10x10xf32> -> vector<4x10x10xf32>
    "tpu.trace_stop"() : () -> ()
    %52 = vector.shape_cast %2 : vector<10x10xf32> to vector<1x10x10xf32>
    %53 = vector.broadcast %52 : vector<1x10x10xf32> to vector<4x10x10xf32>
    %54 = arith.addf %51, %53 : vector<4x10x10xf32>
    %cst_19 = arith.constant dense<0xFF800000> : vector<4x10xf32>
    %55 = vector.multi_reduction <maximumf>, %54, %cst_19 [2] : vector<4x10x10xf32> to vector<4x10xf32>
    %56 = vector.shape_cast %55 : vector<4x10xf32> to vector<4x10x1xf32>
    %57 = vector.broadcast %56 : vector<4x10x1xf32> to vector<4x10x10xf32>
    %58 = arith.subf %54, %57 : vector<4x10x10xf32>
    %59 = math.exp %58 : vector<4x10x10xf32>
    %cst_20 = arith.constant dense<0.000000e+00> : vector<4x10xf32>
    %60 = vector.multi_reduction <add>, %59, %cst_20 [2] : vector<4x10x10xf32> to vector<4x10xf32>
    %61 = vector.shape_cast %60 : vector<4x10xf32> to vector<4x10x1xf32>
    %62 = tpu.reciprocal %61 {approx = true} : vector<4x10x1xf32> -> vector<4x10x1xf32>
    %63 = vector.broadcast %62 : vector<4x10x1xf32> to vector<4x10x10xf32>
    %64 = arith.mulf %59, %63 : vector<4x10x10xf32>
    %65 = arith.truncf %64 : vector<4x10x10xf32> to vector<4x10x10xbf16>
    %66 = arith.truncf %48 : vector<4x10x8xf32> to vector<4x10x8xbf16>
    "tpu.trace_start"() <{level = 10 : i32, message = "hqk,hkd->hqd"}> : () -> ()
    %cst_21 = arith.constant dense<0.000000e+00> : vector<4x10x8xf32>
    %67 = tpu.matmul %65, %66, %cst_21 {dimension_numbers = #tpu.dot_dimension_numbers<[2], [1], [1], [2], [0, 0, 0, 1, 1, 2], [0], [0]>} : vector<4x10x10xbf16>, vector<4x10x8xbf16>, vector<4x10x8xf32> -> vector<4x10x8xf32>
    "tpu.trace_stop"() : () -> ()
    %68 = vector.extract_strided_slice %67 {offsets = [0, 0, 0], sizes = [1, 10, 8], strides = [1, 1, 1]} : vector<4x10x8xf32> to vector<1x10x8xf32>
    %69 = vector.shape_cast %68 : vector<1x10x8xf32> to vector<10x8xf32>
    %70 = vector.extract_strided_slice %67 {offsets = [1, 0, 0], sizes = [1, 10, 8], strides = [1, 1, 1]} : vector<4x10x8xf32> to vector<1x10x8xf32>
    %71 = vector.shape_cast %70 : vector<1x10x8xf32> to vector<10x8xf32>
    %72 = vector.extract_strided_slice %67 {offsets = [2, 0, 0], sizes = [1, 10, 8], strides = [1, 1, 1]} : vector<4x10x8xf32> to vector<1x10x8xf32>
    %73 = vector.shape_cast %72 : vector<1x10x8xf32> to vector<10x8xf32>
    %74 = vector.extract_strided_slice %67 {offsets = [3, 0, 0], sizes = [1, 10, 8], strides = [1, 1, 1]} : vector<4x10x8xf32> to vector<1x10x8xf32>
    %75 = vector.shape_cast %74 : vector<1x10x8xf32> to vector<10x8xf32>
    %76 = tpu.concatenate %69, %71, %73, %75 in 1 : vector<10x8xf32>, vector<10x8xf32>, vector<10x8xf32>, vector<10x8xf32> -> vector<10x32xf32>
    %77 = arith.truncf %76 : vector<10x32xf32> to vector<10x32xbf16>
    %cst_22 = arith.constant dense<0.000000e+00> : vector<10x32xf32>
    %78 = tpu.matmul %77, %16, %cst_22 {dimension_numbers = #tpu.dot_dimension_numbers<[1], [0], [0], [1], [0, 0, 1, 1], [], []>} : vector<10x32xbf16>, vector<32x32xbf16>, vector<10x32xf32> -> vector<10x32xf32>
    %79 = vector.broadcast %17 : vector<1x32xf32> to vector<10x32xf32>
    %80 = arith.addf %78, %79 : vector<10x32xf32>
    %81 = arith.addf %9, %80 : vector<10x32xf32>
    %82 = vector.extract_strided_slice %13 {offsets = [4, 0], sizes = [1, 32], strides = [1, 1]} : vector<8x128xf32> to vector<1x32xf32>
    %83 = vector.extract_strided_slice %13 {offsets = [5, 0], sizes = [1, 32], strides = [1, 1]} : vector<8x128xf32> to vector<1x32xf32>
    %cst_23 = arith.constant dense<0.000000e+00> : vector<10xf32>
    %84 = vector.multi_reduction <add>, %81, %cst_23 [1] : vector<10x32xf32> to vector<10xf32>
    %85 = vector.shape_cast %84 : vector<10xf32> to vector<10x1xf32>
    %cst_24 = arith.constant 3.200000e+01 : f32
    %86 = vector.broadcast %cst_24 : f32 to vector<10x1xf32>
    %87 = arith.divf %85, %86 : vector<10x1xf32>
    %88 = vector.broadcast %87 : vector<10x1xf32> to vector<10x32xf32>
    %89 = arith.subf %81, %88 : vector<10x32xf32>
    %90 = arith.mulf %89, %89 : vector<10x32xf32>
    %cst_25 = arith.constant dense<0.000000e+00> : vector<10xf32>
    %91 = vector.multi_reduction <add>, %90, %cst_25 [1] : vector<10x32xf32> to vector<10xf32>
    %92 = vector.shape_cast %91 : vector<10xf32> to vector<10x1xf32>
    %cst_26 = arith.constant 3.200000e+01 : f32
    %93 = vector.broadcast %cst_26 : f32 to vector<10x1xf32>
    %94 = arith.divf %92, %93 : vector<10x1xf32>
    %cst_27 = arith.constant 9.99999974E-6 : f32
    %95 = vector.broadcast %cst_27 : f32 to vector<10x1xf32>
    %96 = arith.addf %94, %95 : vector<10x1xf32>
    %97 = math.rsqrt %96 : vector<10x1xf32>
    %98 = vector.broadcast %97 : vector<10x1xf32> to vector<10x32xf32>
    %99 = arith.mulf %89, %98 : vector<10x32xf32>
    %100 = vector.broadcast %82 : vector<1x32xf32> to vector<10x32xf32>
    %101 = arith.mulf %99, %100 : vector<10x32xf32>
    %102 = vector.broadcast %83 : vector<1x32xf32> to vector<10x32xf32>
    %103 = arith.addf %101, %102 : vector<10x32xf32>
    %104 = vector.extract_strided_slice %11 {offsets = [0, 128], sizes = [32, 128], strides = [1, 1]} : vector<32x256xbf16> to vector<32x128xbf16>
    %105 = vector.extract_strided_slice %13 {offsets = [2, 0], sizes = [1, 128], strides = [1, 1]} : vector<8x128xf32> to vector<1x128xf32>
    %c0_28 = arith.constant 0 : index
    %c0_29 = arith.constant 0 : index
    %c0_30 = arith.constant 0 : index
    %106 = vector.load %arg7[%c0_28, %c0_29, %c0_30] : memref<2x128x32xbf16, #tpu.memory_space<vmem>>, vector<1x128x32xbf16>
    %107 = vector.shape_cast %106 : vector<1x128x32xbf16> to vector<128x32xbf16>
    %108 = vector.extract_strided_slice %13 {offsets = [3, 0], sizes = [1, 32], strides = [1, 1]} : vector<8x128xf32> to vector<1x32xf32>
    %109 = arith.truncf %103 : vector<10x32xf32> to vector<10x32xbf16>
    %cst_31 = arith.constant dense<0.000000e+00> : vector<10x128xf32>
    %110 = tpu.matmul %109, %104, %cst_31 {dimension_numbers = #tpu.dot_dimension_numbers<[1], [0], [0], [1], [0, 0, 1, 1], [], []>} : vector<10x32xbf16>, vector<32x128xbf16>, vector<10x128xf32> -> vector<10x128xf32>
    %111 = vector.broadcast %105 : vector<1x128xf32> to vector<10x128xf32>
    %112 = arith.addf %110, %111 : vector<10x128xf32>
    %cst_32 = arith.constant 0.000000e+00 : f32
    %113 = vector.broadcast %cst_32 : f32 to vector<10x128xf32>
    %114 = arith.maximumf %112, %113 : vector<10x128xf32>
    %115 = arith.truncf %114 : vector<10x128xf32> to vector<10x128xbf16>
    %cst_33 = arith.constant dense<0.000000e+00> : vector<10x32xf32>
    %116 = tpu.matmul %115, %107, %cst_33 {dimension_numbers = #tpu.dot_dimension_numbers<[1], [0], [0], [1], [0, 0, 1, 1], [], []>} : vector<10x128xbf16>, vector<128x32xbf16>, vector<10x32xf32> -> vector<10x32xf32>
    %117 = vector.broadcast %108 : vector<1x32xf32> to vector<10x32xf32>
    %118 = arith.addf %116, %117 : vector<10x32xf32>
    %119 = arith.addf %103, %118 : vector<10x32xf32>
    %120 = vector.extract_strided_slice %13 {offsets = [6, 0], sizes = [1, 32], strides = [1, 1]} : vector<8x128xf32> to vector<1x32xf32>
    %121 = vector.extract_strided_slice %13 {offsets = [7, 0], sizes = [1, 32], strides = [1, 1]} : vector<8x128xf32> to vector<1x32xf32>
    %cst_34 = arith.constant dense<0.000000e+00> : vector<10xf32>
    %122 = vector.multi_reduction <add>, %119, %cst_34 [1] : vector<10x32xf32> to vector<10xf32>
    %123 = vector.shape_cast %122 : vector<10xf32> to vector<10x1xf32>
    %cst_35 = arith.constant 3.200000e+01 : f32
    %124 = vector.broadcast %cst_35 : f32 to vector<10x1xf32>
    %125 = arith.divf %123, %124 : vector<10x1xf32>
    %126 = vector.broadcast %125 : vector<10x1xf32> to vector<10x32xf32>
    %127 = arith.subf %119, %126 : vector<10x32xf32>
    %128 = arith.mulf %127, %127 : vector<10x32xf32>
    %cst_36 = arith.constant dense<0.000000e+00> : vector<10xf32>
    %129 = vector.multi_reduction <add>, %128, %cst_36 [1] : vector<10x32xf32> to vector<10xf32>
    %130 = vector.shape_cast %129 : vector<10xf32> to vector<10x1xf32>
    %cst_37 = arith.constant 3.200000e+01 : f32
    %131 = vector.broadcast %cst_37 : f32 to vector<10x1xf32>
    %132 = arith.divf %130, %131 : vector<10x1xf32>
    %cst_38 = arith.constant 9.99999974E-6 : f32
    %133 = vector.broadcast %cst_38 : f32 to vector<10x1xf32>
    %134 = arith.addf %132, %133 : vector<10x1xf32>
    %135 = math.rsqrt %134 : vector<10x1xf32>
    %136 = vector.broadcast %135 : vector<10x1xf32> to vector<10x32xf32>
    %137 = arith.mulf %127, %136 : vector<10x32xf32>
    %138 = vector.broadcast %120 : vector<1x32xf32> to vector<10x32xf32>
    %139 = arith.mulf %137, %138 : vector<10x32xf32>
    %140 = vector.broadcast %121 : vector<1x32xf32> to vector<10x32xf32>
    %141 = arith.addf %139, %140 : vector<10x32xf32>
    %c1 = arith.constant 1 : index
    %c0_39 = arith.constant 0 : index
    %c0_40 = arith.constant 0 : index
    %142 = vector.load %arg6[%c1, %c0_39, %c0_40] : memref<2x32x256xbf16, #tpu.memory_space<vmem>>, vector<1x32x256xbf16>
    %143 = vector.shape_cast %142 : vector<1x32x256xbf16> to vector<32x256xbf16>
    %c1_41 = arith.constant 1 : index
    %c0_42 = arith.constant 0 : index
    %c0_43 = arith.constant 0 : index
    %144 = vector.load %arg8[%c1_41, %c0_42, %c0_43] : memref<2x8x128xf32, #tpu.memory_space<vmem>>, vector<1x8x128xf32>
    %145 = vector.shape_cast %144 : vector<1x8x128xf32> to vector<8x128xf32>
    %146 = vector.extract_strided_slice %143 {offsets = [0, 0], sizes = [32, 96], strides = [1, 1]} : vector<32x256xbf16> to vector<32x96xbf16>
    %147 = vector.extract_strided_slice %145 {offsets = [0, 0], sizes = [1, 96], strides = [1, 1]} : vector<8x128xf32> to vector<1x96xf32>
    %148 = vector.extract_strided_slice %143 {offsets = [0, 96], sizes = [32, 32], strides = [1, 1]} : vector<32x256xbf16> to vector<32x32xbf16>
    %149 = vector.extract_strided_slice %145 {offsets = [1, 0], sizes = [1, 32], strides = [1, 1]} : vector<8x128xf32> to vector<1x32xf32>
    %150 = arith.truncf %141 : vector<10x32xf32> to vector<10x32xbf16>
    %cst_44 = arith.constant dense<0.000000e+00> : vector<10x96xf32>
    %151 = tpu.matmul %150, %146, %cst_44 {dimension_numbers = #tpu.dot_dimension_numbers<[1], [0], [0], [1], [0, 0, 1, 1], [], []>} : vector<10x32xbf16>, vector<32x96xbf16>, vector<10x96xf32> -> vector<10x96xf32>
    %152 = vector.broadcast %147 : vector<1x96xf32> to vector<10x96xf32>
    %153 = arith.addf %151, %152 : vector<10x96xf32>
    %154 = vector.extract_strided_slice %153 {offsets = [0, 0], sizes = [10, 8], strides = [1, 1]} : vector<10x96xf32> to vector<10x8xf32>
    %155 = vector.extract_strided_slice %153 {offsets = [0, 8], sizes = [10, 8], strides = [1, 1]} : vector<10x96xf32> to vector<10x8xf32>
    %156 = vector.extract_strided_slice %153 {offsets = [0, 16], sizes = [10, 8], strides = [1, 1]} : vector<10x96xf32> to vector<10x8xf32>
    %157 = vector.extract_strided_slice %153 {offsets = [0, 24], sizes = [10, 8], strides = [1, 1]} : vector<10x96xf32> to vector<10x8xf32>
    %158 = vector.shape_cast %154 : vector<10x8xf32> to vector<1x10x8xf32>
    %159 = vector.shape_cast %155 : vector<10x8xf32> to vector<1x10x8xf32>
    %160 = vector.shape_cast %156 : vector<10x8xf32> to vector<1x10x8xf32>
    %161 = vector.shape_cast %157 : vector<10x8xf32> to vector<1x10x8xf32>
    %162 = tpu.concatenate %158, %159, %160, %161 in 0 : vector<1x10x8xf32>, vector<1x10x8xf32>, vector<1x10x8xf32>, vector<1x10x8xf32> -> vector<4x10x8xf32>
    %163 = vector.extract_strided_slice %153 {offsets = [0, 32], sizes = [10, 8], strides = [1, 1]} : vector<10x96xf32> to vector<10x8xf32>
    %164 = vector.extract_strided_slice %153 {offsets = [0, 40], sizes = [10, 8], strides = [1, 1]} : vector<10x96xf32> to vector<10x8xf32>
    %165 = vector.extract_strided_slice %153 {offsets = [0, 48], sizes = [10, 8], strides = [1, 1]} : vector<10x96xf32> to vector<10x8xf32>
    %166 = vector.extract_strided_slice %153 {offsets = [0, 56], sizes = [10, 8], strides = [1, 1]} : vector<10x96xf32> to vector<10x8xf32>
    %167 = vector.shape_cast %163 : vector<10x8xf32> to vector<1x10x8xf32>
    %168 = vector.shape_cast %164 : vector<10x8xf32> to vector<1x10x8xf32>
    %169 = vector.shape_cast %165 : vector<10x8xf32> to vector<1x10x8xf32>
    %170 = vector.shape_cast %166 : vector<10x8xf32> to vector<1x10x8xf32>
    %171 = tpu.concatenate %167, %168, %169, %170 in 0 : vector<1x10x8xf32>, vector<1x10x8xf32>, vector<1x10x8xf32>, vector<1x10x8xf32> -> vector<4x10x8xf32>
    %172 = vector.extract_strided_slice %153 {offsets = [0, 64], sizes = [10, 8], strides = [1, 1]} : vector<10x96xf32> to vector<10x8xf32>
    %173 = vector.extract_strided_slice %153 {offsets = [0, 72], sizes = [10, 8], strides = [1, 1]} : vector<10x96xf32> to vector<10x8xf32>
    %174 = vector.extract_strided_slice %153 {offsets = [0, 80], sizes = [10, 8], strides = [1, 1]} : vector<10x96xf32> to vector<10x8xf32>
    %175 = vector.extract_strided_slice %153 {offsets = [0, 88], sizes = [10, 8], strides = [1, 1]} : vector<10x96xf32> to vector<10x8xf32>
    %176 = vector.shape_cast %172 : vector<10x8xf32> to vector<1x10x8xf32>
    %177 = vector.shape_cast %173 : vector<10x8xf32> to vector<1x10x8xf32>
    %178 = vector.shape_cast %174 : vector<10x8xf32> to vector<1x10x8xf32>
    %179 = vector.shape_cast %175 : vector<10x8xf32> to vector<1x10x8xf32>
    %180 = tpu.concatenate %176, %177, %178, %179 in 0 : vector<1x10x8xf32>, vector<1x10x8xf32>, vector<1x10x8xf32>, vector<1x10x8xf32> -> vector<4x10x8xf32>
    %181 = arith.truncf %162 : vector<4x10x8xf32> to vector<4x10x8xbf16>
    %182 = arith.truncf %171 : vector<4x10x8xf32> to vector<4x10x8xbf16>
    "tpu.trace_start"() <{level = 10 : i32, message = "hqd,hkd->hqk"}> : () -> ()
    %cst_45 = arith.constant dense<0.000000e+00> : vector<4x10x10xf32>
    %183 = tpu.matmul %181, %182, %cst_45 {dimension_numbers = #tpu.dot_dimension_numbers<[2], [2], [1], [1], [0, 0, 0, 1, 1, 1], [0], [0]>} : vector<4x10x8xbf16>, vector<4x10x8xbf16>, vector<4x10x10xf32> -> vector<4x10x10xf32>
    "tpu.trace_stop"() : () -> ()
    %184 = vector.shape_cast %2 : vector<10x10xf32> to vector<1x10x10xf32>
    %185 = vector.broadcast %184 : vector<1x10x10xf32> to vector<4x10x10xf32>
    %186 = arith.addf %183, %185 : vector<4x10x10xf32>
    %cst_46 = arith.constant dense<0xFF800000> : vector<4x10xf32>
    %187 = vector.multi_reduction <maximumf>, %186, %cst_46 [2] : vector<4x10x10xf32> to vector<4x10xf32>
    %188 = vector.shape_cast %187 : vector<4x10xf32> to vector<4x10x1xf32>
    %189 = vector.broadcast %188 : vector<4x10x1xf32> to vector<4x10x10xf32>
    %190 = arith.subf %186, %189 : vector<4x10x10xf32>
    %191 = math.exp %190 : vector<4x10x10xf32>
    %cst_47 = arith.constant dense<0.000000e+00> : vector<4x10xf32>
    %192 = vector.multi_reduction <add>, %191, %cst_47 [2] : vector<4x10x10xf32> to vector<4x10xf32>
    %193 = vector.shape_cast %192 : vector<4x10xf32> to vector<4x10x1xf32>
    %194 = tpu.reciprocal %193 {approx = true} : vector<4x10x1xf32> -> vector<4x10x1xf32>
    %195 = vector.broadcast %194 : vector<4x10x1xf32> to vector<4x10x10xf32>
    %196 = arith.mulf %191, %195 : vector<4x10x10xf32>
    %197 = arith.truncf %196 : vector<4x10x10xf32> to vector<4x10x10xbf16>
    %198 = arith.truncf %180 : vector<4x10x8xf32> to vector<4x10x8xbf16>
    "tpu.trace_start"() <{level = 10 : i32, message = "hqk,hkd->hqd"}> : () -> ()
    %cst_48 = arith.constant dense<0.000000e+00> : vector<4x10x8xf32>
    %199 = tpu.matmul %197, %198, %cst_48 {dimension_numbers = #tpu.dot_dimension_numbers<[2], [1], [1], [2], [0, 0, 0, 1, 1, 2], [0], [0]>} : vector<4x10x10xbf16>, vector<4x10x8xbf16>, vector<4x10x8xf32> -> vector<4x10x8xf32>
    "tpu.trace_stop"() : () -> ()
    %200 = vector.extract_strided_slice %199 {offsets = [0, 0, 0], sizes = [1, 10, 8], strides = [1, 1, 1]} : vector<4x10x8xf32> to vector<1x10x8xf32>
    %201 = vector.shape_cast %200 : vector<1x10x8xf32> to vector<10x8xf32>
    %202 = vector.extract_strided_slice %199 {offsets = [1, 0, 0], sizes = [1, 10, 8], strides = [1, 1, 1]} : vector<4x10x8xf32> to vector<1x10x8xf32>
    %203 = vector.shape_cast %202 : vector<1x10x8xf32> to vector<10x8xf32>
    %204 = vector.extract_strided_slice %199 {offsets = [2, 0, 0], sizes = [1, 10, 8], strides = [1, 1, 1]} : vector<4x10x8xf32> to vector<1x10x8xf32>
    %205 = vector.shape_cast %204 : vector<1x10x8xf32> to vector<10x8xf32>
    %206 = vector.extract_strided_slice %199 {offsets = [3, 0, 0], sizes = [1, 10, 8], strides = [1, 1, 1]} : vector<4x10x8xf32> to vector<1x10x8xf32>
    %207 = vector.shape_cast %206 : vector<1x10x8xf32> to vector<10x8xf32>
    %208 = tpu.concatenate %201, %203, %205, %207 in 1 : vector<10x8xf32>, vector<10x8xf32>, vector<10x8xf32>, vector<10x8xf32> -> vector<10x32xf32>
    %209 = arith.truncf %208 : vector<10x32xf32> to vector<10x32xbf16>
    %cst_49 = arith.constant dense<0.000000e+00> : vector<10x32xf32>
    %210 = tpu.matmul %209, %148, %cst_49 {dimension_numbers = #tpu.dot_dimension_numbers<[1], [0], [0], [1], [0, 0, 1, 1], [], []>} : vector<10x32xbf16>, vector<32x32xbf16>, vector<10x32xf32> -> vector<10x32xf32>
    %211 = vector.broadcast %149 : vector<1x32xf32> to vector<10x32xf32>
    %212 = arith.addf %210, %211 : vector<10x32xf32>
    %213 = arith.addf %141, %212 : vector<10x32xf32>
    %214 = vector.extract_strided_slice %145 {offsets = [4, 0], sizes = [1, 32], strides = [1, 1]} : vector<8x128xf32> to vector<1x32xf32>
    %215 = vector.extract_strided_slice %145 {offsets = [5, 0], sizes = [1, 32], strides = [1, 1]} : vector<8x128xf32> to vector<1x32xf32>
    %cst_50 = arith.constant dense<0.000000e+00> : vector<10xf32>
    %216 = vector.multi_reduction <add>, %213, %cst_50 [1] : vector<10x32xf32> to vector<10xf32>
    %217 = vector.shape_cast %216 : vector<10xf32> to vector<10x1xf32>
    %cst_51 = arith.constant 3.200000e+01 : f32
    %218 = vector.broadcast %cst_51 : f32 to vector<10x1xf32>
    %219 = arith.divf %217, %218 : vector<10x1xf32>
    %220 = vector.broadcast %219 : vector<10x1xf32> to vector<10x32xf32>
    %221 = arith.subf %213, %220 : vector<10x32xf32>
    %222 = arith.mulf %221, %221 : vector<10x32xf32>
    %cst_52 = arith.constant dense<0.000000e+00> : vector<10xf32>
    %223 = vector.multi_reduction <add>, %222, %cst_52 [1] : vector<10x32xf32> to vector<10xf32>
    %224 = vector.shape_cast %223 : vector<10xf32> to vector<10x1xf32>
    %cst_53 = arith.constant 3.200000e+01 : f32
    %225 = vector.broadcast %cst_53 : f32 to vector<10x1xf32>
    %226 = arith.divf %224, %225 : vector<10x1xf32>
    %cst_54 = arith.constant 9.99999974E-6 : f32
    %227 = vector.broadcast %cst_54 : f32 to vector<10x1xf32>
    %228 = arith.addf %226, %227 : vector<10x1xf32>
    %229 = math.rsqrt %228 : vector<10x1xf32>
    %230 = vector.broadcast %229 : vector<10x1xf32> to vector<10x32xf32>
    %231 = arith.mulf %221, %230 : vector<10x32xf32>
    %232 = vector.broadcast %214 : vector<1x32xf32> to vector<10x32xf32>
    %233 = arith.mulf %231, %232 : vector<10x32xf32>
    %234 = vector.broadcast %215 : vector<1x32xf32> to vector<10x32xf32>
    %235 = arith.addf %233, %234 : vector<10x32xf32>
    %236 = vector.extract_strided_slice %143 {offsets = [0, 128], sizes = [32, 128], strides = [1, 1]} : vector<32x256xbf16> to vector<32x128xbf16>
    %237 = vector.extract_strided_slice %145 {offsets = [2, 0], sizes = [1, 128], strides = [1, 1]} : vector<8x128xf32> to vector<1x128xf32>
    %c1_55 = arith.constant 1 : index
    %c0_56 = arith.constant 0 : index
    %c0_57 = arith.constant 0 : index
    %238 = vector.load %arg7[%c1_55, %c0_56, %c0_57] : memref<2x128x32xbf16, #tpu.memory_space<vmem>>, vector<1x128x32xbf16>
    %239 = vector.shape_cast %238 : vector<1x128x32xbf16> to vector<128x32xbf16>
    %240 = vector.extract_strided_slice %145 {offsets = [3, 0], sizes = [1, 32], strides = [1, 1]} : vector<8x128xf32> to vector<1x32xf32>
    %241 = arith.truncf %235 : vector<10x32xf32> to vector<10x32xbf16>
    %cst_58 = arith.constant dense<0.000000e+00> : vector<10x128xf32>
    %242 = tpu.matmul %241, %236, %cst_58 {dimension_numbers = #tpu.dot_dimension_numbers<[1], [0], [0], [1], [0, 0, 1, 1], [], []>} : vector<10x32xbf16>, vector<32x128xbf16>, vector<10x128xf32> -> vector<10x128xf32>
    %243 = vector.broadcast %237 : vector<1x128xf32> to vector<10x128xf32>
    %244 = arith.addf %242, %243 : vector<10x128xf32>
    %cst_59 = arith.constant 0.000000e+00 : f32
    %245 = vector.broadcast %cst_59 : f32 to vector<10x128xf32>
    %246 = arith.maximumf %244, %245 : vector<10x128xf32>
    %247 = arith.truncf %246 : vector<10x128xf32> to vector<10x128xbf16>
    %cst_60 = arith.constant dense<0.000000e+00> : vector<10x32xf32>
    %248 = tpu.matmul %247, %239, %cst_60 {dimension_numbers = #tpu.dot_dimension_numbers<[1], [0], [0], [1], [0, 0, 1, 1], [], []>} : vector<10x128xbf16>, vector<128x32xbf16>, vector<10x32xf32> -> vector<10x32xf32>
    %249 = vector.broadcast %240 : vector<1x32xf32> to vector<10x32xf32>
    %250 = arith.addf %248, %249 : vector<10x32xf32>
    %251 = arith.addf %235, %250 : vector<10x32xf32>
    %252 = vector.extract_strided_slice %145 {offsets = [6, 0], sizes = [1, 32], strides = [1, 1]} : vector<8x128xf32> to vector<1x32xf32>
    %253 = vector.extract_strided_slice %145 {offsets = [7, 0], sizes = [1, 32], strides = [1, 1]} : vector<8x128xf32> to vector<1x32xf32>
    %cst_61 = arith.constant dense<0.000000e+00> : vector<10xf32>
    %254 = vector.multi_reduction <add>, %251, %cst_61 [1] : vector<10x32xf32> to vector<10xf32>
    %255 = vector.shape_cast %254 : vector<10xf32> to vector<10x1xf32>
    %cst_62 = arith.constant 3.200000e+01 : f32
    %256 = vector.broadcast %cst_62 : f32 to vector<10x1xf32>
    %257 = arith.divf %255, %256 : vector<10x1xf32>
    %258 = vector.broadcast %257 : vector<10x1xf32> to vector<10x32xf32>
    %259 = arith.subf %251, %258 : vector<10x32xf32>
    %260 = arith.mulf %259, %259 : vector<10x32xf32>
    %cst_63 = arith.constant dense<0.000000e+00> : vector<10xf32>
    %261 = vector.multi_reduction <add>, %260, %cst_63 [1] : vector<10x32xf32> to vector<10xf32>
    %262 = vector.shape_cast %261 : vector<10xf32> to vector<10x1xf32>
    %cst_64 = arith.constant 3.200000e+01 : f32
    %263 = vector.broadcast %cst_64 : f32 to vector<10x1xf32>
    %264 = arith.divf %262, %263 : vector<10x1xf32>
    %cst_65 = arith.constant 9.99999974E-6 : f32
    %265 = vector.broadcast %cst_65 : f32 to vector<10x1xf32>
    %266 = arith.addf %264, %265 : vector<10x1xf32>
    %267 = math.rsqrt %266 : vector<10x1xf32>
    %268 = vector.broadcast %267 : vector<10x1xf32> to vector<10x32xf32>
    %269 = arith.mulf %259, %268 : vector<10x32xf32>
    %270 = vector.broadcast %252 : vector<1x32xf32> to vector<10x32xf32>
    %271 = arith.mulf %269, %270 : vector<10x32xf32>
    %272 = vector.broadcast %253 : vector<1x32xf32> to vector<10x32xf32>
    %273 = arith.addf %271, %272 : vector<10x32xf32>
    %274 = vector.extract_strided_slice %273 {offsets = [0, 0], sizes = [2, 32], strides = [1, 1]} : vector<10x32xf32> to vector<2x32xf32>
    %275 = vector.extract_strided_slice %0 {offsets = [0, 0], sizes = [1, 32], strides = [1, 1]} : vector<4x64xf32> to vector<1x32xf32>
    %276 = vector.extract_strided_slice %0 {offsets = [1, 0], sizes = [1, 32], strides = [1, 1]} : vector<4x64xf32> to vector<1x32xf32>
    %cst_66 = arith.constant dense<0.000000e+00> : vector<2xf32>
    %277 = vector.multi_reduction <add>, %274, %cst_66 [1] : vector<2x32xf32> to vector<2xf32>
    %278 = vector.shape_cast %277 : vector<2xf32> to vector<2x1xf32>
    %cst_67 = arith.constant 3.200000e+01 : f32
    %279 = vector.broadcast %cst_67 : f32 to vector<2x1xf32>
    %280 = arith.divf %278, %279 : vector<2x1xf32>
    %281 = vector.broadcast %280 : vector<2x1xf32> to vector<2x32xf32>
    %282 = arith.subf %274, %281 : vector<2x32xf32>
    %283 = arith.mulf %282, %282 : vector<2x32xf32>
    %cst_68 = arith.constant dense<0.000000e+00> : vector<2xf32>
    %284 = vector.multi_reduction <add>, %283, %cst_68 [1] : vector<2x32xf32> to vector<2xf32>
    %285 = vector.shape_cast %284 : vector<2xf32> to vector<2x1xf32>
    %cst_69 = arith.constant 3.200000e+01 : f32
    %286 = vector.broadcast %cst_69 : f32 to vector<2x1xf32>
    %287 = arith.divf %285, %286 : vector<2x1xf32>
    %cst_70 = arith.constant 9.99999974E-6 : f32
    %288 = vector.broadcast %cst_70 : f32 to vector<2x1xf32>
    %289 = arith.addf %287, %288 : vector<2x1xf32>
    %290 = math.rsqrt %289 : vector<2x1xf32>
    %291 = vector.broadcast %290 : vector<2x1xf32> to vector<2x32xf32>
    %292 = arith.mulf %282, %291 : vector<2x32xf32>
    %293 = vector.broadcast %275 : vector<1x32xf32> to vector<2x32xf32>
    %294 = arith.mulf %292, %293 : vector<2x32xf32>
    %295 = vector.broadcast %276 : vector<1x32xf32> to vector<2x32xf32>
    %296 = arith.addf %294, %295 : vector<2x32xf32>
    %297 = tpu.concatenate %296, %296 in 0 : vector<2x32xf32>, vector<2x32xf32> -> vector<4x32xf32>
    %298 = vector.extract_strided_slice %1 {offsets = [10, 0], sizes = [4, 32], strides = [1, 1]} : vector<14x32xf32> to vector<4x32xf32>
    %c0_71 = arith.constant 0 : index
    %c0_72 = arith.constant 0 : index
    %c0_73 = arith.constant 0 : index
    %299 = vector.load %arg9[%c0_71, %c0_72, %c0_73] : memref<6x32x320xbf16, #tpu.memory_space<vmem>>, vector<1x32x320xbf16>
    %300 = vector.shape_cast %299 : vector<1x32x320xbf16> to vector<32x320xbf16>
    %c0_74 = arith.constant 0 : index
    %c0_75 = arith.constant 0 : index
    %c0_76 = arith.constant 0 : index
    %301 = vector.load %arg11[%c0_74, %c0_75, %c0_76] : memref<6x12x128xf32, #tpu.memory_space<vmem>>, vector<1x12x128xf32>
    %302 = vector.shape_cast %301 : vector<1x12x128xf32> to vector<12x128xf32>
    %303 = vector.extract_strided_slice %300 {offsets = [0, 0], sizes = [32, 96], strides = [1, 1]} : vector<32x320xbf16> to vector<32x96xbf16>
    %304 = vector.extract_strided_slice %302 {offsets = [0, 0], sizes = [1, 96], strides = [1, 1]} : vector<12x128xf32> to vector<1x96xf32>
    %305 = vector.extract_strided_slice %300 {offsets = [0, 96], sizes = [32, 32], strides = [1, 1]} : vector<32x320xbf16> to vector<32x32xbf16>
    %306 = vector.extract_strided_slice %302 {offsets = [1, 0], sizes = [1, 32], strides = [1, 1]} : vector<12x128xf32> to vector<1x32xf32>
    %307 = arith.truncf %298 : vector<4x32xf32> to vector<4x32xbf16>
    %cst_77 = arith.constant dense<0.000000e+00> : vector<4x96xf32>
    %308 = tpu.matmul %307, %303, %cst_77 {dimension_numbers = #tpu.dot_dimension_numbers<[1], [0], [0], [1], [0, 0, 1, 1], [], []>} : vector<4x32xbf16>, vector<32x96xbf16>, vector<4x96xf32> -> vector<4x96xf32>
    %309 = vector.broadcast %304 : vector<1x96xf32> to vector<4x96xf32>
    %310 = arith.addf %308, %309 : vector<4x96xf32>
    %311 = vector.extract_strided_slice %310 {offsets = [0, 0], sizes = [4, 8], strides = [1, 1]} : vector<4x96xf32> to vector<4x8xf32>
    %312 = vector.extract_strided_slice %310 {offsets = [0, 8], sizes = [4, 8], strides = [1, 1]} : vector<4x96xf32> to vector<4x8xf32>
    %313 = vector.extract_strided_slice %310 {offsets = [0, 16], sizes = [4, 8], strides = [1, 1]} : vector<4x96xf32> to vector<4x8xf32>
    %314 = vector.extract_strided_slice %310 {offsets = [0, 24], sizes = [4, 8], strides = [1, 1]} : vector<4x96xf32> to vector<4x8xf32>
    %315 = vector.shape_cast %311 : vector<4x8xf32> to vector<1x4x8xf32>
    %316 = vector.shape_cast %312 : vector<4x8xf32> to vector<1x4x8xf32>
    %317 = vector.shape_cast %313 : vector<4x8xf32> to vector<1x4x8xf32>
    %318 = vector.shape_cast %314 : vector<4x8xf32> to vector<1x4x8xf32>
    %319 = tpu.concatenate %315, %316, %317, %318 in 0 : vector<1x4x8xf32>, vector<1x4x8xf32>, vector<1x4x8xf32>, vector<1x4x8xf32> -> vector<4x4x8xf32>
    %320 = vector.extract_strided_slice %310 {offsets = [0, 32], sizes = [4, 8], strides = [1, 1]} : vector<4x96xf32> to vector<4x8xf32>
    %321 = vector.extract_strided_slice %310 {offsets = [0, 40], sizes = [4, 8], strides = [1, 1]} : vector<4x96xf32> to vector<4x8xf32>
    %322 = vector.extract_strided_slice %310 {offsets = [0, 48], sizes = [4, 8], strides = [1, 1]} : vector<4x96xf32> to vector<4x8xf32>
    %323 = vector.extract_strided_slice %310 {offsets = [0, 56], sizes = [4, 8], strides = [1, 1]} : vector<4x96xf32> to vector<4x8xf32>
    %324 = vector.shape_cast %320 : vector<4x8xf32> to vector<1x4x8xf32>
    %325 = vector.shape_cast %321 : vector<4x8xf32> to vector<1x4x8xf32>
    %326 = vector.shape_cast %322 : vector<4x8xf32> to vector<1x4x8xf32>
    %327 = vector.shape_cast %323 : vector<4x8xf32> to vector<1x4x8xf32>
    %328 = tpu.concatenate %324, %325, %326, %327 in 0 : vector<1x4x8xf32>, vector<1x4x8xf32>, vector<1x4x8xf32>, vector<1x4x8xf32> -> vector<4x4x8xf32>
    %329 = vector.extract_strided_slice %310 {offsets = [0, 64], sizes = [4, 8], strides = [1, 1]} : vector<4x96xf32> to vector<4x8xf32>
    %330 = vector.extract_strided_slice %310 {offsets = [0, 72], sizes = [4, 8], strides = [1, 1]} : vector<4x96xf32> to vector<4x8xf32>
    %331 = vector.extract_strided_slice %310 {offsets = [0, 80], sizes = [4, 8], strides = [1, 1]} : vector<4x96xf32> to vector<4x8xf32>
    %332 = vector.extract_strided_slice %310 {offsets = [0, 88], sizes = [4, 8], strides = [1, 1]} : vector<4x96xf32> to vector<4x8xf32>
    %333 = vector.shape_cast %329 : vector<4x8xf32> to vector<1x4x8xf32>
    %334 = vector.shape_cast %330 : vector<4x8xf32> to vector<1x4x8xf32>
    %335 = vector.shape_cast %331 : vector<4x8xf32> to vector<1x4x8xf32>
    %336 = vector.shape_cast %332 : vector<4x8xf32> to vector<1x4x8xf32>
    %337 = tpu.concatenate %333, %334, %335, %336 in 0 : vector<1x4x8xf32>, vector<1x4x8xf32>, vector<1x4x8xf32>, vector<1x4x8xf32> -> vector<4x4x8xf32>
    %338 = arith.truncf %319 : vector<4x4x8xf32> to vector<4x4x8xbf16>
    %339 = arith.truncf %328 : vector<4x4x8xf32> to vector<4x4x8xbf16>
    "tpu.trace_start"() <{level = 10 : i32, message = "hqd,hkd->hqk"}> : () -> ()
    %cst_78 = arith.constant dense<0.000000e+00> : vector<4x4x4xf32>
    %340 = tpu.matmul %338, %339, %cst_78 {dimension_numbers = #tpu.dot_dimension_numbers<[2], [2], [1], [1], [0, 0, 0, 1, 1, 1], [0], [0]>} : vector<4x4x8xbf16>, vector<4x4x8xbf16>, vector<4x4x4xf32> -> vector<4x4x4xf32>
    "tpu.trace_stop"() : () -> ()
    %341 = vector.shape_cast %3 : vector<4x4xf32> to vector<1x4x4xf32>
    %342 = vector.broadcast %341 : vector<1x4x4xf32> to vector<4x4x4xf32>
    %343 = arith.addf %340, %342 : vector<4x4x4xf32>
    %cst_79 = arith.constant dense<0xFF800000> : vector<4x4xf32>
    %344 = vector.multi_reduction <maximumf>, %343, %cst_79 [2] : vector<4x4x4xf32> to vector<4x4xf32>
    %345 = vector.shape_cast %344 : vector<4x4xf32> to vector<4x4x1xf32>
    %346 = vector.broadcast %345 : vector<4x4x1xf32> to vector<4x4x4xf32>
    %347 = arith.subf %343, %346 : vector<4x4x4xf32>
    %348 = math.exp %347 : vector<4x4x4xf32>
    %cst_80 = arith.constant dense<0.000000e+00> : vector<4x4xf32>
    %349 = vector.multi_reduction <add>, %348, %cst_80 [2] : vector<4x4x4xf32> to vector<4x4xf32>
    %350 = vector.shape_cast %349 : vector<4x4xf32> to vector<4x4x1xf32>
    %351 = tpu.reciprocal %350 {approx = true} : vector<4x4x1xf32> -> vector<4x4x1xf32>
    %352 = vector.broadcast %351 : vector<4x4x1xf32> to vector<4x4x4xf32>
    %353 = arith.mulf %348, %352 : vector<4x4x4xf32>
    %354 = arith.truncf %353 : vector<4x4x4xf32> to vector<4x4x4xbf16>
    %355 = arith.truncf %337 : vector<4x4x8xf32> to vector<4x4x8xbf16>
    "tpu.trace_start"() <{level = 10 : i32, message = "hqk,hkd->hqd"}> : () -> ()
    %cst_81 = arith.constant dense<0.000000e+00> : vector<4x4x8xf32>
    %356 = tpu.matmul %354, %355, %cst_81 {dimension_numbers = #tpu.dot_dimension_numbers<[2], [1], [1], [2], [0, 0, 0, 1, 1, 2], [0], [0]>} : vector<4x4x4xbf16>, vector<4x4x8xbf16>, vector<4x4x8xf32> -> vector<4x4x8xf32>
    "tpu.trace_stop"() : () -> ()
    %357 = vector.extract_strided_slice %356 {offsets = [0, 0, 0], sizes = [1, 4, 8], strides = [1, 1, 1]} : vector<4x4x8xf32> to vector<1x4x8xf32>
    %358 = vector.shape_cast %357 : vector<1x4x8xf32> to vector<4x8xf32>
    %359 = vector.extract_strided_slice %356 {offsets = [1, 0, 0], sizes = [1, 4, 8], strides = [1, 1, 1]} : vector<4x4x8xf32> to vector<1x4x8xf32>
    %360 = vector.shape_cast %359 : vector<1x4x8xf32> to vector<4x8xf32>
    %361 = vector.extract_strided_slice %356 {offsets = [2, 0, 0], sizes = [1, 4, 8], strides = [1, 1, 1]} : vector<4x4x8xf32> to vector<1x4x8xf32>
    %362 = vector.shape_cast %361 : vector<1x4x8xf32> to vector<4x8xf32>
    %363 = vector.extract_strided_slice %356 {offsets = [3, 0, 0], sizes = [1, 4, 8], strides = [1, 1, 1]} : vector<4x4x8xf32> to vector<1x4x8xf32>
    %364 = vector.shape_cast %363 : vector<1x4x8xf32> to vector<4x8xf32>
    %365 = tpu.concatenate %358, %360, %362, %364 in 1 : vector<4x8xf32>, vector<4x8xf32>, vector<4x8xf32>, vector<4x8xf32> -> vector<4x32xf32>
    %366 = arith.truncf %365 : vector<4x32xf32> to vector<4x32xbf16>
    %cst_82 = arith.constant dense<0.000000e+00> : vector<4x32xf32>
    %367 = tpu.matmul %366, %305, %cst_82 {dimension_numbers = #tpu.dot_dimension_numbers<[1], [0], [0], [1], [0, 0, 1, 1], [], []>} : vector<4x32xbf16>, vector<32x32xbf16>, vector<4x32xf32> -> vector<4x32xf32>
    %368 = vector.broadcast %306 : vector<1x32xf32> to vector<4x32xf32>
    %369 = arith.addf %367, %368 : vector<4x32xf32>
    %370 = arith.addf %298, %369 : vector<4x32xf32>
    %371 = vector.extract_strided_slice %302 {offsets = [6, 0], sizes = [1, 32], strides = [1, 1]} : vector<12x128xf32> to vector<1x32xf32>
    %372 = vector.extract_strided_slice %302 {offsets = [7, 0], sizes = [1, 32], strides = [1, 1]} : vector<12x128xf32> to vector<1x32xf32>
    %cst_83 = arith.constant dense<0.000000e+00> : vector<4xf32>
    %373 = vector.multi_reduction <add>, %370, %cst_83 [1] : vector<4x32xf32> to vector<4xf32>
    %374 = vector.shape_cast %373 : vector<4xf32> to vector<4x1xf32>
    %cst_84 = arith.constant 3.200000e+01 : f32
    %375 = vector.broadcast %cst_84 : f32 to vector<4x1xf32>
    %376 = arith.divf %374, %375 : vector<4x1xf32>
    %377 = vector.broadcast %376 : vector<4x1xf32> to vector<4x32xf32>
    %378 = arith.subf %370, %377 : vector<4x32xf32>
    %379 = arith.mulf %378, %378 : vector<4x32xf32>
    %cst_85 = arith.constant dense<0.000000e+00> : vector<4xf32>
    %380 = vector.multi_reduction <add>, %379, %cst_85 [1] : vector<4x32xf32> to vector<4xf32>
    %381 = vector.shape_cast %380 : vector<4xf32> to vector<4x1xf32>
    %cst_86 = arith.constant 3.200000e+01 : f32
    %382 = vector.broadcast %cst_86 : f32 to vector<4x1xf32>
    %383 = arith.divf %381, %382 : vector<4x1xf32>
    %cst_87 = arith.constant 9.99999974E-6 : f32
    %384 = vector.broadcast %cst_87 : f32 to vector<4x1xf32>
    %385 = arith.addf %383, %384 : vector<4x1xf32>
    %386 = math.rsqrt %385 : vector<4x1xf32>
    %387 = vector.broadcast %386 : vector<4x1xf32> to vector<4x32xf32>
    %388 = arith.mulf %378, %387 : vector<4x32xf32>
    %389 = vector.broadcast %371 : vector<1x32xf32> to vector<4x32xf32>
    %390 = arith.mulf %388, %389 : vector<4x32xf32>
    %391 = vector.broadcast %372 : vector<1x32xf32> to vector<4x32xf32>
    %392 = arith.addf %390, %391 : vector<4x32xf32>
    %393 = vector.extract_strided_slice %300 {offsets = [0, 128], sizes = [32, 32], strides = [1, 1]} : vector<32x320xbf16> to vector<32x32xbf16>
    %394 = arith.truncf %297 : vector<4x32xf32> to vector<4x32xbf16>
    %cst_88 = arith.constant dense<0.000000e+00> : vector<4x32xf32>
    %395 = tpu.matmul %394, %393, %cst_88 {dimension_numbers = #tpu.dot_dimension_numbers<[1], [0], [0], [1], [0, 0, 1, 1], [], []>} : vector<4x32xbf16>, vector<32x32xbf16>, vector<4x32xf32> -> vector<4x32xf32>
    %396 = vector.extract_strided_slice %302 {offsets = [2, 0], sizes = [1, 32], strides = [1, 1]} : vector<12x128xf32> to vector<1x32xf32>
    %397 = vector.broadcast %396 : vector<1x32xf32> to vector<4x32xf32>
    %398 = arith.addf %395, %397 : vector<4x32xf32>
    %399 = vector.extract_strided_slice %300 {offsets = [0, 160], sizes = [32, 32], strides = [1, 1]} : vector<32x320xbf16> to vector<32x32xbf16>
    %400 = arith.truncf %398 : vector<4x32xf32> to vector<4x32xbf16>
    %cst_89 = arith.constant dense<0.000000e+00> : vector<4x32xf32>
    %401 = tpu.matmul %400, %399, %cst_89 {dimension_numbers = #tpu.dot_dimension_numbers<[1], [0], [0], [1], [0, 0, 1, 1], [], []>} : vector<4x32xbf16>, vector<32x32xbf16>, vector<4x32xf32> -> vector<4x32xf32>
    %402 = vector.extract_strided_slice %302 {offsets = [3, 0], sizes = [1, 32], strides = [1, 1]} : vector<12x128xf32> to vector<1x32xf32>
    %403 = vector.broadcast %402 : vector<1x32xf32> to vector<4x32xf32>
    %404 = arith.addf %401, %403 : vector<4x32xf32>
    %405 = arith.addf %392, %404 : vector<4x32xf32>
    %406 = vector.extract_strided_slice %302 {offsets = [8, 0], sizes = [1, 32], strides = [1, 1]} : vector<12x128xf32> to vector<1x32xf32>
    %407 = vector.extract_strided_slice %302 {offsets = [9, 0], sizes = [1, 32], strides = [1, 1]} : vector<12x128xf32> to vector<1x32xf32>
    %cst_90 = arith.constant dense<0.000000e+00> : vector<4xf32>
    %408 = vector.multi_reduction <add>, %405, %cst_90 [1] : vector<4x32xf32> to vector<4xf32>
    %409 = vector.shape_cast %408 : vector<4xf32> to vector<4x1xf32>
    %cst_91 = arith.constant 3.200000e+01 : f32
    %410 = vector.broadcast %cst_91 : f32 to vector<4x1xf32>
    %411 = arith.divf %409, %410 : vector<4x1xf32>
    %412 = vector.broadcast %411 : vector<4x1xf32> to vector<4x32xf32>
    %413 = arith.subf %405, %412 : vector<4x32xf32>
    %414 = arith.mulf %413, %413 : vector<4x32xf32>
    %cst_92 = arith.constant dense<0.000000e+00> : vector<4xf32>
    %415 = vector.multi_reduction <add>, %414, %cst_92 [1] : vector<4x32xf32> to vector<4xf32>
    %416 = vector.shape_cast %415 : vector<4xf32> to vector<4x1xf32>
    %cst_93 = arith.constant 3.200000e+01 : f32
    %417 = vector.broadcast %cst_93 : f32 to vector<4x1xf32>
    %418 = arith.divf %416, %417 : vector<4x1xf32>
    %cst_94 = arith.constant 9.99999974E-6 : f32
    %419 = vector.broadcast %cst_94 : f32 to vector<4x1xf32>
    %420 = arith.addf %418, %419 : vector<4x1xf32>
    %421 = math.rsqrt %420 : vector<4x1xf32>
    %422 = vector.broadcast %421 : vector<4x1xf32> to vector<4x32xf32>
    %423 = arith.mulf %413, %422 : vector<4x32xf32>
    %424 = vector.broadcast %406 : vector<1x32xf32> to vector<4x32xf32>
    %425 = arith.mulf %423, %424 : vector<4x32xf32>
    %426 = vector.broadcast %407 : vector<1x32xf32> to vector<4x32xf32>
    %427 = arith.addf %425, %426 : vector<4x32xf32>
    %428 = vector.extract_strided_slice %300 {offsets = [0, 192], sizes = [32, 128], strides = [1, 1]} : vector<32x320xbf16> to vector<32x128xbf16>
    %429 = vector.extract_strided_slice %302 {offsets = [4, 0], sizes = [1, 128], strides = [1, 1]} : vector<12x128xf32> to vector<1x128xf32>
    %c0_95 = arith.constant 0 : index
    %c0_96 = arith.constant 0 : index
    %c0_97 = arith.constant 0 : index
    %430 = vector.load %arg10[%c0_95, %c0_96, %c0_97] : memref<6x128x32xbf16, #tpu.memory_space<vmem>>, vector<1x128x32xbf16>
    %431 = vector.shape_cast %430 : vector<1x128x32xbf16> to vector<128x32xbf16>
    %432 = vector.extract_strided_slice %302 {offsets = [5, 0], sizes = [1, 32], strides = [1, 1]} : vector<12x128xf32> to vector<1x32xf32>
    %433 = arith.truncf %427 : vector<4x32xf32> to vector<4x32xbf16>
    %cst_98 = arith.constant dense<0.000000e+00> : vector<4x128xf32>
    %434 = tpu.matmul %433, %428, %cst_98 {dimension_numbers = #tpu.dot_dimension_numbers<[1], [0], [0], [1], [0, 0, 1, 1], [], []>} : vector<4x32xbf16>, vector<32x128xbf16>, vector<4x128xf32> -> vector<4x128xf32>
    %435 = vector.broadcast %429 : vector<1x128xf32> to vector<4x128xf32>
    %436 = arith.addf %434, %435 : vector<4x128xf32>
    %cst_99 = arith.constant 0.000000e+00 : f32
    %437 = vector.broadcast %cst_99 : f32 to vector<4x128xf32>
    %438 = arith.maximumf %436, %437 : vector<4x128xf32>
    %439 = arith.truncf %438 : vector<4x128xf32> to vector<4x128xbf16>
    %cst_100 = arith.constant dense<0.000000e+00> : vector<4x32xf32>
    %440 = tpu.matmul %439, %431, %cst_100 {dimension_numbers = #tpu.dot_dimension_numbers<[1], [0], [0], [1], [0, 0, 1, 1], [], []>} : vector<4x128xbf16>, vector<128x32xbf16>, vector<4x32xf32> -> vector<4x32xf32>
    %441 = vector.broadcast %432 : vector<1x32xf32> to vector<4x32xf32>
    %442 = arith.addf %440, %441 : vector<4x32xf32>
    %443 = arith.addf %427, %442 : vector<4x32xf32>
    %444 = vector.extract_strided_slice %302 {offsets = [10, 0], sizes = [1, 32], strides = [1, 1]} : vector<12x128xf32> to vector<1x32xf32>
    %445 = vector.extract_strided_slice %302 {offsets = [11, 0], sizes = [1, 32], strides = [1, 1]} : vector<12x128xf32> to vector<1x32xf32>
    %cst_101 = arith.constant dense<0.000000e+00> : vector<4xf32>
    %446 = vector.multi_reduction <add>, %443, %cst_101 [1] : vector<4x32xf32> to vector<4xf32>
    %447 = vector.shape_cast %446 : vector<4xf32> to vector<4x1xf32>
    %cst_102 = arith.constant 3.200000e+01 : f32
    %448 = vector.broadcast %cst_102 : f32 to vector<4x1xf32>
    %449 = arith.divf %447, %448 : vector<4x1xf32>
    %450 = vector.broadcast %449 : vector<4x1xf32> to vector<4x32xf32>
    %451 = arith.subf %443, %450 : vector<4x32xf32>
    %452 = arith.mulf %451, %451 : vector<4x32xf32>
    %cst_103 = arith.constant dense<0.000000e+00> : vector<4xf32>
    %453 = vector.multi_reduction <add>, %452, %cst_103 [1] : vector<4x32xf32> to vector<4xf32>
    %454 = vector.shape_cast %453 : vector<4xf32> to vector<4x1xf32>
    %cst_104 = arith.constant 3.200000e+01 : f32
    %455 = vector.broadcast %cst_104 : f32 to vector<4x1xf32>
    %456 = arith.divf %454, %455 : vector<4x1xf32>
    %cst_105 = arith.constant 9.99999974E-6 : f32
    %457 = vector.broadcast %cst_105 : f32 to vector<4x1xf32>
    %458 = arith.addf %456, %457 : vector<4x1xf32>
    %459 = math.rsqrt %458 : vector<4x1xf32>
    %460 = vector.broadcast %459 : vector<4x1xf32> to vector<4x32xf32>
    %461 = arith.mulf %451, %460 : vector<4x32xf32>
    %462 = vector.broadcast %444 : vector<1x32xf32> to vector<4x32xf32>
    %463 = arith.mulf %461, %462 : vector<4x32xf32>
    %464 = vector.broadcast %445 : vector<1x32xf32> to vector<4x32xf32>
    %465 = arith.addf %463, %464 : vector<4x32xf32>
    %c1_106 = arith.constant 1 : index
    %c0_107 = arith.constant 0 : index
    %c0_108 = arith.constant 0 : index
    %466 = vector.load %arg9[%c1_106, %c0_107, %c0_108] : memref<6x32x320xbf16, #tpu.memory_space<vmem>>, vector<1x32x320xbf16>
    %467 = vector.shape_cast %466 : vector<1x32x320xbf16> to vector<32x320xbf16>
    %c1_109 = arith.constant 1 : index
    %c0_110 = arith.constant 0 : index
    %c0_111 = arith.constant 0 : index
    %468 = vector.load %arg11[%c1_109, %c0_110, %c0_111] : memref<6x12x128xf32, #tpu.memory_space<vmem>>, vector<1x12x128xf32>
    %469 = vector.shape_cast %468 : vector<1x12x128xf32> to vector<12x128xf32>
    %470 = vector.extract_strided_slice %467 {offsets = [0, 0], sizes = [32, 96], strides = [1, 1]} : vector<32x320xbf16> to vector<32x96xbf16>
    %471 = vector.extract_strided_slice %469 {offsets = [0, 0], sizes = [1, 96], strides = [1, 1]} : vector<12x128xf32> to vector<1x96xf32>
    %472 = vector.extract_strided_slice %467 {offsets = [0, 96], sizes = [32, 32], strides = [1, 1]} : vector<32x320xbf16> to vector<32x32xbf16>
    %473 = vector.extract_strided_slice %469 {offsets = [1, 0], sizes = [1, 32], strides = [1, 1]} : vector<12x128xf32> to vector<1x32xf32>
    %474 = arith.truncf %465 : vector<4x32xf32> to vector<4x32xbf16>
    %cst_112 = arith.constant dense<0.000000e+00> : vector<4x96xf32>
    %475 = tpu.matmul %474, %470, %cst_112 {dimension_numbers = #tpu.dot_dimension_numbers<[1], [0], [0], [1], [0, 0, 1, 1], [], []>} : vector<4x32xbf16>, vector<32x96xbf16>, vector<4x96xf32> -> vector<4x96xf32>
    %476 = vector.broadcast %471 : vector<1x96xf32> to vector<4x96xf32>
    %477 = arith.addf %475, %476 : vector<4x96xf32>
    %478 = vector.extract_strided_slice %477 {offsets = [0, 0], sizes = [4, 8], strides = [1, 1]} : vector<4x96xf32> to vector<4x8xf32>
    %479 = vector.extract_strided_slice %477 {offsets = [0, 8], sizes = [4, 8], strides = [1, 1]} : vector<4x96xf32> to vector<4x8xf32>
    %480 = vector.extract_strided_slice %477 {offsets = [0, 16], sizes = [4, 8], strides = [1, 1]} : vector<4x96xf32> to vector<4x8xf32>
    %481 = vector.extract_strided_slice %477 {offsets = [0, 24], sizes = [4, 8], strides = [1, 1]} : vector<4x96xf32> to vector<4x8xf32>
    %482 = vector.shape_cast %478 : vector<4x8xf32> to vector<1x4x8xf32>
    %483 = vector.shape_cast %479 : vector<4x8xf32> to vector<1x4x8xf32>
    %484 = vector.shape_cast %480 : vector<4x8xf32> to vector<1x4x8xf32>
    %485 = vector.shape_cast %481 : vector<4x8xf32> to vector<1x4x8xf32>
    %486 = tpu.concatenate %482, %483, %484, %485 in 0 : vector<1x4x8xf32>, vector<1x4x8xf32>, vector<1x4x8xf32>, vector<1x4x8xf32> -> vector<4x4x8xf32>
    %487 = vector.extract_strided_slice %477 {offsets = [0, 32], sizes = [4, 8], strides = [1, 1]} : vector<4x96xf32> to vector<4x8xf32>
    %488 = vector.extract_strided_slice %477 {offsets = [0, 40], sizes = [4, 8], strides = [1, 1]} : vector<4x96xf32> to vector<4x8xf32>
    %489 = vector.extract_strided_slice %477 {offsets = [0, 48], sizes = [4, 8], strides = [1, 1]} : vector<4x96xf32> to vector<4x8xf32>
    %490 = vector.extract_strided_slice %477 {offsets = [0, 56], sizes = [4, 8], strides = [1, 1]} : vector<4x96xf32> to vector<4x8xf32>
    %491 = vector.shape_cast %487 : vector<4x8xf32> to vector<1x4x8xf32>
    %492 = vector.shape_cast %488 : vector<4x8xf32> to vector<1x4x8xf32>
    %493 = vector.shape_cast %489 : vector<4x8xf32> to vector<1x4x8xf32>
    %494 = vector.shape_cast %490 : vector<4x8xf32> to vector<1x4x8xf32>
    %495 = tpu.concatenate %491, %492, %493, %494 in 0 : vector<1x4x8xf32>, vector<1x4x8xf32>, vector<1x4x8xf32>, vector<1x4x8xf32> -> vector<4x4x8xf32>
    %496 = vector.extract_strided_slice %477 {offsets = [0, 64], sizes = [4, 8], strides = [1, 1]} : vector<4x96xf32> to vector<4x8xf32>
    %497 = vector.extract_strided_slice %477 {offsets = [0, 72], sizes = [4, 8], strides = [1, 1]} : vector<4x96xf32> to vector<4x8xf32>
    %498 = vector.extract_strided_slice %477 {offsets = [0, 80], sizes = [4, 8], strides = [1, 1]} : vector<4x96xf32> to vector<4x8xf32>
    %499 = vector.extract_strided_slice %477 {offsets = [0, 88], sizes = [4, 8], strides = [1, 1]} : vector<4x96xf32> to vector<4x8xf32>
    %500 = vector.shape_cast %496 : vector<4x8xf32> to vector<1x4x8xf32>
    %501 = vector.shape_cast %497 : vector<4x8xf32> to vector<1x4x8xf32>
    %502 = vector.shape_cast %498 : vector<4x8xf32> to vector<1x4x8xf32>
    %503 = vector.shape_cast %499 : vector<4x8xf32> to vector<1x4x8xf32>
    %504 = tpu.concatenate %500, %501, %502, %503 in 0 : vector<1x4x8xf32>, vector<1x4x8xf32>, vector<1x4x8xf32>, vector<1x4x8xf32> -> vector<4x4x8xf32>
    %505 = arith.truncf %486 : vector<4x4x8xf32> to vector<4x4x8xbf16>
    %506 = arith.truncf %495 : vector<4x4x8xf32> to vector<4x4x8xbf16>
    "tpu.trace_start"() <{level = 10 : i32, message = "hqd,hkd->hqk"}> : () -> ()
    %cst_113 = arith.constant dense<0.000000e+00> : vector<4x4x4xf32>
    %507 = tpu.matmul %505, %506, %cst_113 {dimension_numbers = #tpu.dot_dimension_numbers<[2], [2], [1], [1], [0, 0, 0, 1, 1, 1], [0], [0]>} : vector<4x4x8xbf16>, vector<4x4x8xbf16>, vector<4x4x4xf32> -> vector<4x4x4xf32>
    "tpu.trace_stop"() : () -> ()
    %508 = vector.shape_cast %3 : vector<4x4xf32> to vector<1x4x4xf32>
    %509 = vector.broadcast %508 : vector<1x4x4xf32> to vector<4x4x4xf32>
    %510 = arith.addf %507, %509 : vector<4x4x4xf32>
    %cst_114 = arith.constant dense<0xFF800000> : vector<4x4xf32>
    %511 = vector.multi_reduction <maximumf>, %510, %cst_114 [2] : vector<4x4x4xf32> to vector<4x4xf32>
    %512 = vector.shape_cast %511 : vector<4x4xf32> to vector<4x4x1xf32>
    %513 = vector.broadcast %512 : vector<4x4x1xf32> to vector<4x4x4xf32>
    %514 = arith.subf %510, %513 : vector<4x4x4xf32>
    %515 = math.exp %514 : vector<4x4x4xf32>
    %cst_115 = arith.constant dense<0.000000e+00> : vector<4x4xf32>
    %516 = vector.multi_reduction <add>, %515, %cst_115 [2] : vector<4x4x4xf32> to vector<4x4xf32>
    %517 = vector.shape_cast %516 : vector<4x4xf32> to vector<4x4x1xf32>
    %518 = tpu.reciprocal %517 {approx = true} : vector<4x4x1xf32> -> vector<4x4x1xf32>
    %519 = vector.broadcast %518 : vector<4x4x1xf32> to vector<4x4x4xf32>
    %520 = arith.mulf %515, %519 : vector<4x4x4xf32>
    %521 = arith.truncf %520 : vector<4x4x4xf32> to vector<4x4x4xbf16>
    %522 = arith.truncf %504 : vector<4x4x8xf32> to vector<4x4x8xbf16>
    "tpu.trace_start"() <{level = 10 : i32, message = "hqk,hkd->hqd"}> : () -> ()
    %cst_116 = arith.constant dense<0.000000e+00> : vector<4x4x8xf32>
    %523 = tpu.matmul %521, %522, %cst_116 {dimension_numbers = #tpu.dot_dimension_numbers<[2], [1], [1], [2], [0, 0, 0, 1, 1, 2], [0], [0]>} : vector<4x4x4xbf16>, vector<4x4x8xbf16>, vector<4x4x8xf32> -> vector<4x4x8xf32>
    "tpu.trace_stop"() : () -> ()
    %524 = vector.extract_strided_slice %523 {offsets = [0, 0, 0], sizes = [1, 4, 8], strides = [1, 1, 1]} : vector<4x4x8xf32> to vector<1x4x8xf32>
    %525 = vector.shape_cast %524 : vector<1x4x8xf32> to vector<4x8xf32>
    %526 = vector.extract_strided_slice %523 {offsets = [1, 0, 0], sizes = [1, 4, 8], strides = [1, 1, 1]} : vector<4x4x8xf32> to vector<1x4x8xf32>
    %527 = vector.shape_cast %526 : vector<1x4x8xf32> to vector<4x8xf32>
    %528 = vector.extract_strided_slice %523 {offsets = [2, 0, 0], sizes = [1, 4, 8], strides = [1, 1, 1]} : vector<4x4x8xf32> to vector<1x4x8xf32>
    %529 = vector.shape_cast %528 : vector<1x4x8xf32> to vector<4x8xf32>
    %530 = vector.extract_strided_slice %523 {offsets = [3, 0, 0], sizes = [1, 4, 8], strides = [1, 1, 1]} : vector<4x4x8xf32> to vector<1x4x8xf32>
    %531 = vector.shape_cast %530 : vector<1x4x8xf32> to vector<4x8xf32>
    %532 = tpu.concatenate %525, %527, %529, %531 in 1 : vector<4x8xf32>, vector<4x8xf32>, vector<4x8xf32>, vector<4x8xf32> -> vector<4x32xf32>
    %533 = arith.truncf %532 : vector<4x32xf32> to vector<4x32xbf16>
    %cst_117 = arith.constant dense<0.000000e+00> : vector<4x32xf32>
    %534 = tpu.matmul %533, %472, %cst_117 {dimension_numbers = #tpu.dot_dimension_numbers<[1], [0], [0], [1], [0, 0, 1, 1], [], []>} : vector<4x32xbf16>, vector<32x32xbf16>, vector<4x32xf32> -> vector<4x32xf32>
    %535 = vector.broadcast %473 : vector<1x32xf32> to vector<4x32xf32>
    %536 = arith.addf %534, %535 : vector<4x32xf32>
    %537 = arith.addf %465, %536 : vector<4x32xf32>
    %538 = vector.extract_strided_slice %469 {offsets = [6, 0], sizes = [1, 32], strides = [1, 1]} : vector<12x128xf32> to vector<1x32xf32>
    %539 = vector.extract_strided_slice %469 {offsets = [7, 0], sizes = [1, 32], strides = [1, 1]} : vector<12x128xf32> to vector<1x32xf32>
    %cst_118 = arith.constant dense<0.000000e+00> : vector<4xf32>
    %540 = vector.multi_reduction <add>, %537, %cst_118 [1] : vector<4x32xf32> to vector<4xf32>
    %541 = vector.shape_cast %540 : vector<4xf32> to vector<4x1xf32>
    %cst_119 = arith.constant 3.200000e+01 : f32
    %542 = vector.broadcast %cst_119 : f32 to vector<4x1xf32>
    %543 = arith.divf %541, %542 : vector<4x1xf32>
    %544 = vector.broadcast %543 : vector<4x1xf32> to vector<4x32xf32>
    %545 = arith.subf %537, %544 : vector<4x32xf32>
    %546 = arith.mulf %545, %545 : vector<4x32xf32>
    %cst_120 = arith.constant dense<0.000000e+00> : vector<4xf32>
    %547 = vector.multi_reduction <add>, %546, %cst_120 [1] : vector<4x32xf32> to vector<4xf32>
    %548 = vector.shape_cast %547 : vector<4xf32> to vector<4x1xf32>
    %cst_121 = arith.constant 3.200000e+01 : f32
    %549 = vector.broadcast %cst_121 : f32 to vector<4x1xf32>
    %550 = arith.divf %548, %549 : vector<4x1xf32>
    %cst_122 = arith.constant 9.99999974E-6 : f32
    %551 = vector.broadcast %cst_122 : f32 to vector<4x1xf32>
    %552 = arith.addf %550, %551 : vector<4x1xf32>
    %553 = math.rsqrt %552 : vector<4x1xf32>
    %554 = vector.broadcast %553 : vector<4x1xf32> to vector<4x32xf32>
    %555 = arith.mulf %545, %554 : vector<4x32xf32>
    %556 = vector.broadcast %538 : vector<1x32xf32> to vector<4x32xf32>
    %557 = arith.mulf %555, %556 : vector<4x32xf32>
    %558 = vector.broadcast %539 : vector<1x32xf32> to vector<4x32xf32>
    %559 = arith.addf %557, %558 : vector<4x32xf32>
    %560 = vector.extract_strided_slice %467 {offsets = [0, 128], sizes = [32, 32], strides = [1, 1]} : vector<32x320xbf16> to vector<32x32xbf16>
    %561 = arith.truncf %297 : vector<4x32xf32> to vector<4x32xbf16>
    %cst_123 = arith.constant dense<0.000000e+00> : vector<4x32xf32>
    %562 = tpu.matmul %561, %560, %cst_123 {dimension_numbers = #tpu.dot_dimension_numbers<[1], [0], [0], [1], [0, 0, 1, 1], [], []>} : vector<4x32xbf16>, vector<32x32xbf16>, vector<4x32xf32> -> vector<4x32xf32>
    %563 = vector.extract_strided_slice %469 {offsets = [2, 0], sizes = [1, 32], strides = [1, 1]} : vector<12x128xf32> to vector<1x32xf32>
    %564 = vector.broadcast %563 : vector<1x32xf32> to vector<4x32xf32>
    %565 = arith.addf %562, %564 : vector<4x32xf32>
    %566 = vector.extract_strided_slice %467 {offsets = [0, 160], sizes = [32, 32], strides = [1, 1]} : vector<32x320xbf16> to vector<32x32xbf16>
    %567 = arith.truncf %565 : vector<4x32xf32> to vector<4x32xbf16>
    %cst_124 = arith.constant dense<0.000000e+00> : vector<4x32xf32>
    %568 = tpu.matmul %567, %566, %cst_124 {dimension_numbers = #tpu.dot_dimension_numbers<[1], [0], [0], [1], [0, 0, 1, 1], [], []>} : vector<4x32xbf16>, vector<32x32xbf16>, vector<4x32xf32> -> vector<4x32xf32>
    %569 = vector.extract_strided_slice %469 {offsets = [3, 0], sizes = [1, 32], strides = [1, 1]} : vector<12x128xf32> to vector<1x32xf32>
    %570 = vector.broadcast %569 : vector<1x32xf32> to vector<4x32xf32>
    %571 = arith.addf %568, %570 : vector<4x32xf32>
    %572 = arith.addf %559, %571 : vector<4x32xf32>
    %573 = vector.extract_strided_slice %469 {offsets = [8, 0], sizes = [1, 32], strides = [1, 1]} : vector<12x128xf32> to vector<1x32xf32>
    %574 = vector.extract_strided_slice %469 {offsets = [9, 0], sizes = [1, 32], strides = [1, 1]} : vector<12x128xf32> to vector<1x32xf32>
    %cst_125 = arith.constant dense<0.000000e+00> : vector<4xf32>
    %575 = vector.multi_reduction <add>, %572, %cst_125 [1] : vector<4x32xf32> to vector<4xf32>
    %576 = vector.shape_cast %575 : vector<4xf32> to vector<4x1xf32>
    %cst_126 = arith.constant 3.200000e+01 : f32
    %577 = vector.broadcast %cst_126 : f32 to vector<4x1xf32>
    %578 = arith.divf %576, %577 : vector<4x1xf32>
    %579 = vector.broadcast %578 : vector<4x1xf32> to vector<4x32xf32>
    %580 = arith.subf %572, %579 : vector<4x32xf32>
    %581 = arith.mulf %580, %580 : vector<4x32xf32>
    %cst_127 = arith.constant dense<0.000000e+00> : vector<4xf32>
    %582 = vector.multi_reduction <add>, %581, %cst_127 [1] : vector<4x32xf32> to vector<4xf32>
    %583 = vector.shape_cast %582 : vector<4xf32> to vector<4x1xf32>
    %cst_128 = arith.constant 3.200000e+01 : f32
    %584 = vector.broadcast %cst_128 : f32 to vector<4x1xf32>
    %585 = arith.divf %583, %584 : vector<4x1xf32>
    %cst_129 = arith.constant 9.99999974E-6 : f32
    %586 = vector.broadcast %cst_129 : f32 to vector<4x1xf32>
    %587 = arith.addf %585, %586 : vector<4x1xf32>
    %588 = math.rsqrt %587 : vector<4x1xf32>
    %589 = vector.broadcast %588 : vector<4x1xf32> to vector<4x32xf32>
    %590 = arith.mulf %580, %589 : vector<4x32xf32>
    %591 = vector.broadcast %573 : vector<1x32xf32> to vector<4x32xf32>
    %592 = arith.mulf %590, %591 : vector<4x32xf32>
    %593 = vector.broadcast %574 : vector<1x32xf32> to vector<4x32xf32>
    %594 = arith.addf %592, %593 : vector<4x32xf32>
    %595 = vector.extract_strided_slice %467 {offsets = [0, 192], sizes = [32, 128], strides = [1, 1]} : vector<32x320xbf16> to vector<32x128xbf16>
    %596 = vector.extract_strided_slice %469 {offsets = [4, 0], sizes = [1, 128], strides = [1, 1]} : vector<12x128xf32> to vector<1x128xf32>
    %c1_130 = arith.constant 1 : index
    %c0_131 = arith.constant 0 : index
    %c0_132 = arith.constant 0 : index
    %597 = vector.load %arg10[%c1_130, %c0_131, %c0_132] : memref<6x128x32xbf16, #tpu.memory_space<vmem>>, vector<1x128x32xbf16>
    %598 = vector.shape_cast %597 : vector<1x128x32xbf16> to vector<128x32xbf16>
    %599 = vector.extract_strided_slice %469 {offsets = [5, 0], sizes = [1, 32], strides = [1, 1]} : vector<12x128xf32> to vector<1x32xf32>
    %600 = arith.truncf %594 : vector<4x32xf32> to vector<4x32xbf16>
    %cst_133 = arith.constant dense<0.000000e+00> : vector<4x128xf32>
    %601 = tpu.matmul %600, %595, %cst_133 {dimension_numbers = #tpu.dot_dimension_numbers<[1], [0], [0], [1], [0, 0, 1, 1], [], []>} : vector<4x32xbf16>, vector<32x128xbf16>, vector<4x128xf32> -> vector<4x128xf32>
    %602 = vector.broadcast %596 : vector<1x128xf32> to vector<4x128xf32>
    %603 = arith.addf %601, %602 : vector<4x128xf32>
    %cst_134 = arith.constant 0.000000e+00 : f32
    %604 = vector.broadcast %cst_134 : f32 to vector<4x128xf32>
    %605 = arith.maximumf %603, %604 : vector<4x128xf32>
    %606 = arith.truncf %605 : vector<4x128xf32> to vector<4x128xbf16>
    %cst_135 = arith.constant dense<0.000000e+00> : vector<4x32xf32>
    %607 = tpu.matmul %606, %598, %cst_135 {dimension_numbers = #tpu.dot_dimension_numbers<[1], [0], [0], [1], [0, 0, 1, 1], [], []>} : vector<4x128xbf16>, vector<128x32xbf16>, vector<4x32xf32> -> vector<4x32xf32>
    %608 = vector.broadcast %599 : vector<1x32xf32> to vector<4x32xf32>
    %609 = arith.addf %607, %608 : vector<4x32xf32>
    %610 = arith.addf %594, %609 : vector<4x32xf32>
    %611 = vector.extract_strided_slice %469 {offsets = [10, 0], sizes = [1, 32], strides = [1, 1]} : vector<12x128xf32> to vector<1x32xf32>
    %612 = vector.extract_strided_slice %469 {offsets = [11, 0], sizes = [1, 32], strides = [1, 1]} : vector<12x128xf32> to vector<1x32xf32>
    %cst_136 = arith.constant dense<0.000000e+00> : vector<4xf32>
    %613 = vector.multi_reduction <add>, %610, %cst_136 [1] : vector<4x32xf32> to vector<4xf32>
    %614 = vector.shape_cast %613 : vector<4xf32> to vector<4x1xf32>
    %cst_137 = arith.constant 3.200000e+01 : f32
    %615 = vector.broadcast %cst_137 : f32 to vector<4x1xf32>
    %616 = arith.divf %614, %615 : vector<4x1xf32>
    %617 = vector.broadcast %616 : vector<4x1xf32> to vector<4x32xf32>
    %618 = arith.subf %610, %617 : vector<4x32xf32>
    %619 = arith.mulf %618, %618 : vector<4x32xf32>
    %cst_138 = arith.constant dense<0.000000e+00> : vector<4xf32>
    %620 = vector.multi_reduction <add>, %619, %cst_138 [1] : vector<4x32xf32> to vector<4xf32>
    %621 = vector.shape_cast %620 : vector<4xf32> to vector<4x1xf32>
    %cst_139 = arith.constant 3.200000e+01 : f32
    %622 = vector.broadcast %cst_139 : f32 to vector<4x1xf32>
    %623 = arith.divf %621, %622 : vector<4x1xf32>
    %cst_140 = arith.constant 9.99999974E-6 : f32
    %624 = vector.broadcast %cst_140 : f32 to vector<4x1xf32>
    %625 = arith.addf %623, %624 : vector<4x1xf32>
    %626 = math.rsqrt %625 : vector<4x1xf32>
    %627 = vector.broadcast %626 : vector<4x1xf32> to vector<4x32xf32>
    %628 = arith.mulf %618, %627 : vector<4x32xf32>
    %629 = vector.broadcast %611 : vector<1x32xf32> to vector<4x32xf32>
    %630 = arith.mulf %628, %629 : vector<4x32xf32>
    %631 = vector.broadcast %612 : vector<1x32xf32> to vector<4x32xf32>
    %632 = arith.addf %630, %631 : vector<4x32xf32>
    %c2 = arith.constant 2 : index
    %c0_141 = arith.constant 0 : index
    %c0_142 = arith.constant 0 : index
    %633 = vector.load %arg9[%c2, %c0_141, %c0_142] : memref<6x32x320xbf16, #tpu.memory_space<vmem>>, vector<1x32x320xbf16>
    %634 = vector.shape_cast %633 : vector<1x32x320xbf16> to vector<32x320xbf16>
    %c2_143 = arith.constant 2 : index
    %c0_144 = arith.constant 0 : index
    %c0_145 = arith.constant 0 : index
    %635 = vector.load %arg11[%c2_143, %c0_144, %c0_145] : memref<6x12x128xf32, #tpu.memory_space<vmem>>, vector<1x12x128xf32>
    %636 = vector.shape_cast %635 : vector<1x12x128xf32> to vector<12x128xf32>
    %637 = vector.extract_strided_slice %634 {offsets = [0, 0], sizes = [32, 96], strides = [1, 1]} : vector<32x320xbf16> to vector<32x96xbf16>
    %638 = vector.extract_strided_slice %636 {offsets = [0, 0], sizes = [1, 96], strides = [1, 1]} : vector<12x128xf32> to vector<1x96xf32>
    %639 = vector.extract_strided_slice %634 {offsets = [0, 96], sizes = [32, 32], strides = [1, 1]} : vector<32x320xbf16> to vector<32x32xbf16>
    %640 = vector.extract_strided_slice %636 {offsets = [1, 0], sizes = [1, 32], strides = [1, 1]} : vector<12x128xf32> to vector<1x32xf32>
    %641 = arith.truncf %632 : vector<4x32xf32> to vector<4x32xbf16>
    %cst_146 = arith.constant dense<0.000000e+00> : vector<4x96xf32>
    %642 = tpu.matmul %641, %637, %cst_146 {dimension_numbers = #tpu.dot_dimension_numbers<[1], [0], [0], [1], [0, 0, 1, 1], [], []>} : vector<4x32xbf16>, vector<32x96xbf16>, vector<4x96xf32> -> vector<4x96xf32>
    %643 = vector.broadcast %638 : vector<1x96xf32> to vector<4x96xf32>
    %644 = arith.addf %642, %643 : vector<4x96xf32>
    %645 = vector.extract_strided_slice %644 {offsets = [0, 0], sizes = [4, 8], strides = [1, 1]} : vector<4x96xf32> to vector<4x8xf32>
    %646 = vector.extract_strided_slice %644 {offsets = [0, 8], sizes = [4, 8], strides = [1, 1]} : vector<4x96xf32> to vector<4x8xf32>
    %647 = vector.extract_strided_slice %644 {offsets = [0, 16], sizes = [4, 8], strides = [1, 1]} : vector<4x96xf32> to vector<4x8xf32>
    %648 = vector.extract_strided_slice %644 {offsets = [0, 24], sizes = [4, 8], strides = [1, 1]} : vector<4x96xf32> to vector<4x8xf32>
    %649 = vector.shape_cast %645 : vector<4x8xf32> to vector<1x4x8xf32>
    %650 = vector.shape_cast %646 : vector<4x8xf32> to vector<1x4x8xf32>
    %651 = vector.shape_cast %647 : vector<4x8xf32> to vector<1x4x8xf32>
    %652 = vector.shape_cast %648 : vector<4x8xf32> to vector<1x4x8xf32>
    %653 = tpu.concatenate %649, %650, %651, %652 in 0 : vector<1x4x8xf32>, vector<1x4x8xf32>, vector<1x4x8xf32>, vector<1x4x8xf32> -> vector<4x4x8xf32>
    %654 = vector.extract_strided_slice %644 {offsets = [0, 32], sizes = [4, 8], strides = [1, 1]} : vector<4x96xf32> to vector<4x8xf32>
    %655 = vector.extract_strided_slice %644 {offsets = [0, 40], sizes = [4, 8], strides = [1, 1]} : vector<4x96xf32> to vector<4x8xf32>
    %656 = vector.extract_strided_slice %644 {offsets = [0, 48], sizes = [4, 8], strides = [1, 1]} : vector<4x96xf32> to vector<4x8xf32>
    %657 = vector.extract_strided_slice %644 {offsets = [0, 56], sizes = [4, 8], strides = [1, 1]} : vector<4x96xf32> to vector<4x8xf32>
    %658 = vector.shape_cast %654 : vector<4x8xf32> to vector<1x4x8xf32>
    %659 = vector.shape_cast %655 : vector<4x8xf32> to vector<1x4x8xf32>
    %660 = vector.shape_cast %656 : vector<4x8xf32> to vector<1x4x8xf32>
    %661 = vector.shape_cast %657 : vector<4x8xf32> to vector<1x4x8xf32>
    %662 = tpu.concatenate %658, %659, %660, %661 in 0 : vector<1x4x8xf32>, vector<1x4x8xf32>, vector<1x4x8xf32>, vector<1x4x8xf32> -> vector<4x4x8xf32>
    %663 = vector.extract_strided_slice %644 {offsets = [0, 64], sizes = [4, 8], strides = [1, 1]} : vector<4x96xf32> to vector<4x8xf32>
    %664 = vector.extract_strided_slice %644 {offsets = [0, 72], sizes = [4, 8], strides = [1, 1]} : vector<4x96xf32> to vector<4x8xf32>
    %665 = vector.extract_strided_slice %644 {offsets = [0, 80], sizes = [4, 8], strides = [1, 1]} : vector<4x96xf32> to vector<4x8xf32>
    %666 = vector.extract_strided_slice %644 {offsets = [0, 88], sizes = [4, 8], strides = [1, 1]} : vector<4x96xf32> to vector<4x8xf32>
    %667 = vector.shape_cast %663 : vector<4x8xf32> to vector<1x4x8xf32>
    %668 = vector.shape_cast %664 : vector<4x8xf32> to vector<1x4x8xf32>
    %669 = vector.shape_cast %665 : vector<4x8xf32> to vector<1x4x8xf32>
    %670 = vector.shape_cast %666 : vector<4x8xf32> to vector<1x4x8xf32>
    %671 = tpu.concatenate %667, %668, %669, %670 in 0 : vector<1x4x8xf32>, vector<1x4x8xf32>, vector<1x4x8xf32>, vector<1x4x8xf32> -> vector<4x4x8xf32>
    %672 = arith.truncf %653 : vector<4x4x8xf32> to vector<4x4x8xbf16>
    %673 = arith.truncf %662 : vector<4x4x8xf32> to vector<4x4x8xbf16>
    "tpu.trace_start"() <{level = 10 : i32, message = "hqd,hkd->hqk"}> : () -> ()
    %cst_147 = arith.constant dense<0.000000e+00> : vector<4x4x4xf32>
    %674 = tpu.matmul %672, %673, %cst_147 {dimension_numbers = #tpu.dot_dimension_numbers<[2], [2], [1], [1], [0, 0, 0, 1, 1, 1], [0], [0]>} : vector<4x4x8xbf16>, vector<4x4x8xbf16>, vector<4x4x4xf32> -> vector<4x4x4xf32>
    "tpu.trace_stop"() : () -> ()
    %675 = vector.shape_cast %3 : vector<4x4xf32> to vector<1x4x4xf32>
    %676 = vector.broadcast %675 : vector<1x4x4xf32> to vector<4x4x4xf32>
    %677 = arith.addf %674, %676 : vector<4x4x4xf32>
    %cst_148 = arith.constant dense<0xFF800000> : vector<4x4xf32>
    %678 = vector.multi_reduction <maximumf>, %677, %cst_148 [2] : vector<4x4x4xf32> to vector<4x4xf32>
    %679 = vector.shape_cast %678 : vector<4x4xf32> to vector<4x4x1xf32>
    %680 = vector.broadcast %679 : vector<4x4x1xf32> to vector<4x4x4xf32>
    %681 = arith.subf %677, %680 : vector<4x4x4xf32>
    %682 = math.exp %681 : vector<4x4x4xf32>
    %cst_149 = arith.constant dense<0.000000e+00> : vector<4x4xf32>
    %683 = vector.multi_reduction <add>, %682, %cst_149 [2] : vector<4x4x4xf32> to vector<4x4xf32>
    %684 = vector.shape_cast %683 : vector<4x4xf32> to vector<4x4x1xf32>
    %685 = tpu.reciprocal %684 {approx = true} : vector<4x4x1xf32> -> vector<4x4x1xf32>
    %686 = vector.broadcast %685 : vector<4x4x1xf32> to vector<4x4x4xf32>
    %687 = arith.mulf %682, %686 : vector<4x4x4xf32>
    %688 = arith.truncf %687 : vector<4x4x4xf32> to vector<4x4x4xbf16>
    %689 = arith.truncf %671 : vector<4x4x8xf32> to vector<4x4x8xbf16>
    "tpu.trace_start"() <{level = 10 : i32, message = "hqk,hkd->hqd"}> : () -> ()
    %cst_150 = arith.constant dense<0.000000e+00> : vector<4x4x8xf32>
    %690 = tpu.matmul %688, %689, %cst_150 {dimension_numbers = #tpu.dot_dimension_numbers<[2], [1], [1], [2], [0, 0, 0, 1, 1, 2], [0], [0]>} : vector<4x4x4xbf16>, vector<4x4x8xbf16>, vector<4x4x8xf32> -> vector<4x4x8xf32>
    "tpu.trace_stop"() : () -> ()
    %691 = vector.extract_strided_slice %690 {offsets = [0, 0, 0], sizes = [1, 4, 8], strides = [1, 1, 1]} : vector<4x4x8xf32> to vector<1x4x8xf32>
    %692 = vector.shape_cast %691 : vector<1x4x8xf32> to vector<4x8xf32>
    %693 = vector.extract_strided_slice %690 {offsets = [1, 0, 0], sizes = [1, 4, 8], strides = [1, 1, 1]} : vector<4x4x8xf32> to vector<1x4x8xf32>
    %694 = vector.shape_cast %693 : vector<1x4x8xf32> to vector<4x8xf32>
    %695 = vector.extract_strided_slice %690 {offsets = [2, 0, 0], sizes = [1, 4, 8], strides = [1, 1, 1]} : vector<4x4x8xf32> to vector<1x4x8xf32>
    %696 = vector.shape_cast %695 : vector<1x4x8xf32> to vector<4x8xf32>
    %697 = vector.extract_strided_slice %690 {offsets = [3, 0, 0], sizes = [1, 4, 8], strides = [1, 1, 1]} : vector<4x4x8xf32> to vector<1x4x8xf32>
    %698 = vector.shape_cast %697 : vector<1x4x8xf32> to vector<4x8xf32>
    %699 = tpu.concatenate %692, %694, %696, %698 in 1 : vector<4x8xf32>, vector<4x8xf32>, vector<4x8xf32>, vector<4x8xf32> -> vector<4x32xf32>
    %700 = arith.truncf %699 : vector<4x32xf32> to vector<4x32xbf16>
    %cst_151 = arith.constant dense<0.000000e+00> : vector<4x32xf32>
    %701 = tpu.matmul %700, %639, %cst_151 {dimension_numbers = #tpu.dot_dimension_numbers<[1], [0], [0], [1], [0, 0, 1, 1], [], []>} : vector<4x32xbf16>, vector<32x32xbf16>, vector<4x32xf32> -> vector<4x32xf32>
    %702 = vector.broadcast %640 : vector<1x32xf32> to vector<4x32xf32>
    %703 = arith.addf %701, %702 : vector<4x32xf32>
    %704 = arith.addf %632, %703 : vector<4x32xf32>
    %705 = vector.extract_strided_slice %636 {offsets = [6, 0], sizes = [1, 32], strides = [1, 1]} : vector<12x128xf32> to vector<1x32xf32>
    %706 = vector.extract_strided_slice %636 {offsets = [7, 0], sizes = [1, 32], strides = [1, 1]} : vector<12x128xf32> to vector<1x32xf32>
    %cst_152 = arith.constant dense<0.000000e+00> : vector<4xf32>
    %707 = vector.multi_reduction <add>, %704, %cst_152 [1] : vector<4x32xf32> to vector<4xf32>
    %708 = vector.shape_cast %707 : vector<4xf32> to vector<4x1xf32>
    %cst_153 = arith.constant 3.200000e+01 : f32
    %709 = vector.broadcast %cst_153 : f32 to vector<4x1xf32>
    %710 = arith.divf %708, %709 : vector<4x1xf32>
    %711 = vector.broadcast %710 : vector<4x1xf32> to vector<4x32xf32>
    %712 = arith.subf %704, %711 : vector<4x32xf32>
    %713 = arith.mulf %712, %712 : vector<4x32xf32>
    %cst_154 = arith.constant dense<0.000000e+00> : vector<4xf32>
    %714 = vector.multi_reduction <add>, %713, %cst_154 [1] : vector<4x32xf32> to vector<4xf32>
    %715 = vector.shape_cast %714 : vector<4xf32> to vector<4x1xf32>
    %cst_155 = arith.constant 3.200000e+01 : f32
    %716 = vector.broadcast %cst_155 : f32 to vector<4x1xf32>
    %717 = arith.divf %715, %716 : vector<4x1xf32>
    %cst_156 = arith.constant 9.99999974E-6 : f32
    %718 = vector.broadcast %cst_156 : f32 to vector<4x1xf32>
    %719 = arith.addf %717, %718 : vector<4x1xf32>
    %720 = math.rsqrt %719 : vector<4x1xf32>
    %721 = vector.broadcast %720 : vector<4x1xf32> to vector<4x32xf32>
    %722 = arith.mulf %712, %721 : vector<4x32xf32>
    %723 = vector.broadcast %705 : vector<1x32xf32> to vector<4x32xf32>
    %724 = arith.mulf %722, %723 : vector<4x32xf32>
    %725 = vector.broadcast %706 : vector<1x32xf32> to vector<4x32xf32>
    %726 = arith.addf %724, %725 : vector<4x32xf32>
    %727 = vector.extract_strided_slice %634 {offsets = [0, 128], sizes = [32, 32], strides = [1, 1]} : vector<32x320xbf16> to vector<32x32xbf16>
    %728 = arith.truncf %297 : vector<4x32xf32> to vector<4x32xbf16>
    %cst_157 = arith.constant dense<0.000000e+00> : vector<4x32xf32>
    %729 = tpu.matmul %728, %727, %cst_157 {dimension_numbers = #tpu.dot_dimension_numbers<[1], [0], [0], [1], [0, 0, 1, 1], [], []>} : vector<4x32xbf16>, vector<32x32xbf16>, vector<4x32xf32> -> vector<4x32xf32>
    %730 = vector.extract_strided_slice %636 {offsets = [2, 0], sizes = [1, 32], strides = [1, 1]} : vector<12x128xf32> to vector<1x32xf32>
    %731 = vector.broadcast %730 : vector<1x32xf32> to vector<4x32xf32>
    %732 = arith.addf %729, %731 : vector<4x32xf32>
    %733 = vector.extract_strided_slice %634 {offsets = [0, 160], sizes = [32, 32], strides = [1, 1]} : vector<32x320xbf16> to vector<32x32xbf16>
    %734 = arith.truncf %732 : vector<4x32xf32> to vector<4x32xbf16>
    %cst_158 = arith.constant dense<0.000000e+00> : vector<4x32xf32>
    %735 = tpu.matmul %734, %733, %cst_158 {dimension_numbers = #tpu.dot_dimension_numbers<[1], [0], [0], [1], [0, 0, 1, 1], [], []>} : vector<4x32xbf16>, vector<32x32xbf16>, vector<4x32xf32> -> vector<4x32xf32>
    %736 = vector.extract_strided_slice %636 {offsets = [3, 0], sizes = [1, 32], strides = [1, 1]} : vector<12x128xf32> to vector<1x32xf32>
    %737 = vector.broadcast %736 : vector<1x32xf32> to vector<4x32xf32>
    %738 = arith.addf %735, %737 : vector<4x32xf32>
    %739 = arith.addf %726, %738 : vector<4x32xf32>
    %740 = vector.extract_strided_slice %636 {offsets = [8, 0], sizes = [1, 32], strides = [1, 1]} : vector<12x128xf32> to vector<1x32xf32>
    %741 = vector.extract_strided_slice %636 {offsets = [9, 0], sizes = [1, 32], strides = [1, 1]} : vector<12x128xf32> to vector<1x32xf32>
    %cst_159 = arith.constant dense<0.000000e+00> : vector<4xf32>
    %742 = vector.multi_reduction <add>, %739, %cst_159 [1] : vector<4x32xf32> to vector<4xf32>
    %743 = vector.shape_cast %742 : vector<4xf32> to vector<4x1xf32>
    %cst_160 = arith.constant 3.200000e+01 : f32
    %744 = vector.broadcast %cst_160 : f32 to vector<4x1xf32>
    %745 = arith.divf %743, %744 : vector<4x1xf32>
    %746 = vector.broadcast %745 : vector<4x1xf32> to vector<4x32xf32>
    %747 = arith.subf %739, %746 : vector<4x32xf32>
    %748 = arith.mulf %747, %747 : vector<4x32xf32>
    %cst_161 = arith.constant dense<0.000000e+00> : vector<4xf32>
    %749 = vector.multi_reduction <add>, %748, %cst_161 [1] : vector<4x32xf32> to vector<4xf32>
    %750 = vector.shape_cast %749 : vector<4xf32> to vector<4x1xf32>
    %cst_162 = arith.constant 3.200000e+01 : f32
    %751 = vector.broadcast %cst_162 : f32 to vector<4x1xf32>
    %752 = arith.divf %750, %751 : vector<4x1xf32>
    %cst_163 = arith.constant 9.99999974E-6 : f32
    %753 = vector.broadcast %cst_163 : f32 to vector<4x1xf32>
    %754 = arith.addf %752, %753 : vector<4x1xf32>
    %755 = math.rsqrt %754 : vector<4x1xf32>
    %756 = vector.broadcast %755 : vector<4x1xf32> to vector<4x32xf32>
    %757 = arith.mulf %747, %756 : vector<4x32xf32>
    %758 = vector.broadcast %740 : vector<1x32xf32> to vector<4x32xf32>
    %759 = arith.mulf %757, %758 : vector<4x32xf32>
    %760 = vector.broadcast %741 : vector<1x32xf32> to vector<4x32xf32>
    %761 = arith.addf %759, %760 : vector<4x32xf32>
    %762 = vector.extract_strided_slice %634 {offsets = [0, 192], sizes = [32, 128], strides = [1, 1]} : vector<32x320xbf16> to vector<32x128xbf16>
    %763 = vector.extract_strided_slice %636 {offsets = [4, 0], sizes = [1, 128], strides = [1, 1]} : vector<12x128xf32> to vector<1x128xf32>
    %c2_164 = arith.constant 2 : index
    %c0_165 = arith.constant 0 : index
    %c0_166 = arith.constant 0 : index
    %764 = vector.load %arg10[%c2_164, %c0_165, %c0_166] : memref<6x128x32xbf16, #tpu.memory_space<vmem>>, vector<1x128x32xbf16>
    %765 = vector.shape_cast %764 : vector<1x128x32xbf16> to vector<128x32xbf16>
    %766 = vector.extract_strided_slice %636 {offsets = [5, 0], sizes = [1, 32], strides = [1, 1]} : vector<12x128xf32> to vector<1x32xf32>
    %767 = arith.truncf %761 : vector<4x32xf32> to vector<4x32xbf16>
    %cst_167 = arith.constant dense<0.000000e+00> : vector<4x128xf32>
    %768 = tpu.matmul %767, %762, %cst_167 {dimension_numbers = #tpu.dot_dimension_numbers<[1], [0], [0], [1], [0, 0, 1, 1], [], []>} : vector<4x32xbf16>, vector<32x128xbf16>, vector<4x128xf32> -> vector<4x128xf32>
    %769 = vector.broadcast %763 : vector<1x128xf32> to vector<4x128xf32>
    %770 = arith.addf %768, %769 : vector<4x128xf32>
    %cst_168 = arith.constant 0.000000e+00 : f32
    %771 = vector.broadcast %cst_168 : f32 to vector<4x128xf32>
    %772 = arith.maximumf %770, %771 : vector<4x128xf32>
    %773 = arith.truncf %772 : vector<4x128xf32> to vector<4x128xbf16>
    %cst_169 = arith.constant dense<0.000000e+00> : vector<4x32xf32>
    %774 = tpu.matmul %773, %765, %cst_169 {dimension_numbers = #tpu.dot_dimension_numbers<[1], [0], [0], [1], [0, 0, 1, 1], [], []>} : vector<4x128xbf16>, vector<128x32xbf16>, vector<4x32xf32> -> vector<4x32xf32>
    %775 = vector.broadcast %766 : vector<1x32xf32> to vector<4x32xf32>
    %776 = arith.addf %774, %775 : vector<4x32xf32>
    %777 = arith.addf %761, %776 : vector<4x32xf32>
    %778 = vector.extract_strided_slice %636 {offsets = [10, 0], sizes = [1, 32], strides = [1, 1]} : vector<12x128xf32> to vector<1x32xf32>
    %779 = vector.extract_strided_slice %636 {offsets = [11, 0], sizes = [1, 32], strides = [1, 1]} : vector<12x128xf32> to vector<1x32xf32>
    %cst_170 = arith.constant dense<0.000000e+00> : vector<4xf32>
    %780 = vector.multi_reduction <add>, %777, %cst_170 [1] : vector<4x32xf32> to vector<4xf32>
    %781 = vector.shape_cast %780 : vector<4xf32> to vector<4x1xf32>
    %cst_171 = arith.constant 3.200000e+01 : f32
    %782 = vector.broadcast %cst_171 : f32 to vector<4x1xf32>
    %783 = arith.divf %781, %782 : vector<4x1xf32>
    %784 = vector.broadcast %783 : vector<4x1xf32> to vector<4x32xf32>
    %785 = arith.subf %777, %784 : vector<4x32xf32>
    %786 = arith.mulf %785, %785 : vector<4x32xf32>
    %cst_172 = arith.constant dense<0.000000e+00> : vector<4xf32>
    %787 = vector.multi_reduction <add>, %786, %cst_172 [1] : vector<4x32xf32> to vector<4xf32>
    %788 = vector.shape_cast %787 : vector<4xf32> to vector<4x1xf32>
    %cst_173 = arith.constant 3.200000e+01 : f32
    %789 = vector.broadcast %cst_173 : f32 to vector<4x1xf32>
    %790 = arith.divf %788, %789 : vector<4x1xf32>
    %cst_174 = arith.constant 9.99999974E-6 : f32
    %791 = vector.broadcast %cst_174 : f32 to vector<4x1xf32>
    %792 = arith.addf %790, %791 : vector<4x1xf32>
    %793 = math.rsqrt %792 : vector<4x1xf32>
    %794 = vector.broadcast %793 : vector<4x1xf32> to vector<4x32xf32>
    %795 = arith.mulf %785, %794 : vector<4x32xf32>
    %796 = vector.broadcast %778 : vector<1x32xf32> to vector<4x32xf32>
    %797 = arith.mulf %795, %796 : vector<4x32xf32>
    %798 = vector.broadcast %779 : vector<1x32xf32> to vector<4x32xf32>
    %799 = arith.addf %797, %798 : vector<4x32xf32>
    %c3 = arith.constant 3 : index
    %c0_175 = arith.constant 0 : index
    %c0_176 = arith.constant 0 : index
    %800 = vector.load %arg9[%c3, %c0_175, %c0_176] : memref<6x32x320xbf16, #tpu.memory_space<vmem>>, vector<1x32x320xbf16>
    %801 = vector.shape_cast %800 : vector<1x32x320xbf16> to vector<32x320xbf16>
    %c3_177 = arith.constant 3 : index
    %c0_178 = arith.constant 0 : index
    %c0_179 = arith.constant 0 : index
    %802 = vector.load %arg11[%c3_177, %c0_178, %c0_179] : memref<6x12x128xf32, #tpu.memory_space<vmem>>, vector<1x12x128xf32>
    %803 = vector.shape_cast %802 : vector<1x12x128xf32> to vector<12x128xf32>
    %804 = vector.extract_strided_slice %801 {offsets = [0, 0], sizes = [32, 96], strides = [1, 1]} : vector<32x320xbf16> to vector<32x96xbf16>
    %805 = vector.extract_strided_slice %803 {offsets = [0, 0], sizes = [1, 96], strides = [1, 1]} : vector<12x128xf32> to vector<1x96xf32>
    %806 = vector.extract_strided_slice %801 {offsets = [0, 96], sizes = [32, 32], strides = [1, 1]} : vector<32x320xbf16> to vector<32x32xbf16>
    %807 = vector.extract_strided_slice %803 {offsets = [1, 0], sizes = [1, 32], strides = [1, 1]} : vector<12x128xf32> to vector<1x32xf32>
    %808 = arith.truncf %799 : vector<4x32xf32> to vector<4x32xbf16>
    %cst_180 = arith.constant dense<0.000000e+00> : vector<4x96xf32>
    %809 = tpu.matmul %808, %804, %cst_180 {dimension_numbers = #tpu.dot_dimension_numbers<[1], [0], [0], [1], [0, 0, 1, 1], [], []>} : vector<4x32xbf16>, vector<32x96xbf16>, vector<4x96xf32> -> vector<4x96xf32>
    %810 = vector.broadcast %805 : vector<1x96xf32> to vector<4x96xf32>
    %811 = arith.addf %809, %810 : vector<4x96xf32>
    %812 = vector.extract_strided_slice %811 {offsets = [0, 0], sizes = [4, 8], strides = [1, 1]} : vector<4x96xf32> to vector<4x8xf32>
    %813 = vector.extract_strided_slice %811 {offsets = [0, 8], sizes = [4, 8], strides = [1, 1]} : vector<4x96xf32> to vector<4x8xf32>
    %814 = vector.extract_strided_slice %811 {offsets = [0, 16], sizes = [4, 8], strides = [1, 1]} : vector<4x96xf32> to vector<4x8xf32>
    %815 = vector.extract_strided_slice %811 {offsets = [0, 24], sizes = [4, 8], strides = [1, 1]} : vector<4x96xf32> to vector<4x8xf32>
    %816 = vector.shape_cast %812 : vector<4x8xf32> to vector<1x4x8xf32>
    %817 = vector.shape_cast %813 : vector<4x8xf32> to vector<1x4x8xf32>
    %818 = vector.shape_cast %814 : vector<4x8xf32> to vector<1x4x8xf32>
    %819 = vector.shape_cast %815 : vector<4x8xf32> to vector<1x4x8xf32>
    %820 = tpu.concatenate %816, %817, %818, %819 in 0 : vector<1x4x8xf32>, vector<1x4x8xf32>, vector<1x4x8xf32>, vector<1x4x8xf32> -> vector<4x4x8xf32>
    %821 = vector.extract_strided_slice %811 {offsets = [0, 32], sizes = [4, 8], strides = [1, 1]} : vector<4x96xf32> to vector<4x8xf32>
    %822 = vector.extract_strided_slice %811 {offsets = [0, 40], sizes = [4, 8], strides = [1, 1]} : vector<4x96xf32> to vector<4x8xf32>
    %823 = vector.extract_strided_slice %811 {offsets = [0, 48], sizes = [4, 8], strides = [1, 1]} : vector<4x96xf32> to vector<4x8xf32>
    %824 = vector.extract_strided_slice %811 {offsets = [0, 56], sizes = [4, 8], strides = [1, 1]} : vector<4x96xf32> to vector<4x8xf32>
    %825 = vector.shape_cast %821 : vector<4x8xf32> to vector<1x4x8xf32>
    %826 = vector.shape_cast %822 : vector<4x8xf32> to vector<1x4x8xf32>
    %827 = vector.shape_cast %823 : vector<4x8xf32> to vector<1x4x8xf32>
    %828 = vector.shape_cast %824 : vector<4x8xf32> to vector<1x4x8xf32>
    %829 = tpu.concatenate %825, %826, %827, %828 in 0 : vector<1x4x8xf32>, vector<1x4x8xf32>, vector<1x4x8xf32>, vector<1x4x8xf32> -> vector<4x4x8xf32>
    %830 = vector.extract_strided_slice %811 {offsets = [0, 64], sizes = [4, 8], strides = [1, 1]} : vector<4x96xf32> to vector<4x8xf32>
    %831 = vector.extract_strided_slice %811 {offsets = [0, 72], sizes = [4, 8], strides = [1, 1]} : vector<4x96xf32> to vector<4x8xf32>
    %832 = vector.extract_strided_slice %811 {offsets = [0, 80], sizes = [4, 8], strides = [1, 1]} : vector<4x96xf32> to vector<4x8xf32>
    %833 = vector.extract_strided_slice %811 {offsets = [0, 88], sizes = [4, 8], strides = [1, 1]} : vector<4x96xf32> to vector<4x8xf32>
    %834 = vector.shape_cast %830 : vector<4x8xf32> to vector<1x4x8xf32>
    %835 = vector.shape_cast %831 : vector<4x8xf32> to vector<1x4x8xf32>
    %836 = vector.shape_cast %832 : vector<4x8xf32> to vector<1x4x8xf32>
    %837 = vector.shape_cast %833 : vector<4x8xf32> to vector<1x4x8xf32>
    %838 = tpu.concatenate %834, %835, %836, %837 in 0 : vector<1x4x8xf32>, vector<1x4x8xf32>, vector<1x4x8xf32>, vector<1x4x8xf32> -> vector<4x4x8xf32>
    %839 = arith.truncf %820 : vector<4x4x8xf32> to vector<4x4x8xbf16>
    %840 = arith.truncf %829 : vector<4x4x8xf32> to vector<4x4x8xbf16>
    "tpu.trace_start"() <{level = 10 : i32, message = "hqd,hkd->hqk"}> : () -> ()
    %cst_181 = arith.constant dense<0.000000e+00> : vector<4x4x4xf32>
    %841 = tpu.matmul %839, %840, %cst_181 {dimension_numbers = #tpu.dot_dimension_numbers<[2], [2], [1], [1], [0, 0, 0, 1, 1, 1], [0], [0]>} : vector<4x4x8xbf16>, vector<4x4x8xbf16>, vector<4x4x4xf32> -> vector<4x4x4xf32>
    "tpu.trace_stop"() : () -> ()
    %842 = vector.shape_cast %3 : vector<4x4xf32> to vector<1x4x4xf32>
    %843 = vector.broadcast %842 : vector<1x4x4xf32> to vector<4x4x4xf32>
    %844 = arith.addf %841, %843 : vector<4x4x4xf32>
    %cst_182 = arith.constant dense<0xFF800000> : vector<4x4xf32>
    %845 = vector.multi_reduction <maximumf>, %844, %cst_182 [2] : vector<4x4x4xf32> to vector<4x4xf32>
    %846 = vector.shape_cast %845 : vector<4x4xf32> to vector<4x4x1xf32>
    %847 = vector.broadcast %846 : vector<4x4x1xf32> to vector<4x4x4xf32>
    %848 = arith.subf %844, %847 : vector<4x4x4xf32>
    %849 = math.exp %848 : vector<4x4x4xf32>
    %cst_183 = arith.constant dense<0.000000e+00> : vector<4x4xf32>
    %850 = vector.multi_reduction <add>, %849, %cst_183 [2] : vector<4x4x4xf32> to vector<4x4xf32>
    %851 = vector.shape_cast %850 : vector<4x4xf32> to vector<4x4x1xf32>
    %852 = tpu.reciprocal %851 {approx = true} : vector<4x4x1xf32> -> vector<4x4x1xf32>
    %853 = vector.broadcast %852 : vector<4x4x1xf32> to vector<4x4x4xf32>
    %854 = arith.mulf %849, %853 : vector<4x4x4xf32>
    %855 = arith.truncf %854 : vector<4x4x4xf32> to vector<4x4x4xbf16>
    %856 = arith.truncf %838 : vector<4x4x8xf32> to vector<4x4x8xbf16>
    "tpu.trace_start"() <{level = 10 : i32, message = "hqk,hkd->hqd"}> : () -> ()
    %cst_184 = arith.constant dense<0.000000e+00> : vector<4x4x8xf32>
    %857 = tpu.matmul %855, %856, %cst_184 {dimension_numbers = #tpu.dot_dimension_numbers<[2], [1], [1], [2], [0, 0, 0, 1, 1, 2], [0], [0]>} : vector<4x4x4xbf16>, vector<4x4x8xbf16>, vector<4x4x8xf32> -> vector<4x4x8xf32>
    "tpu.trace_stop"() : () -> ()
    %858 = vector.extract_strided_slice %857 {offsets = [0, 0, 0], sizes = [1, 4, 8], strides = [1, 1, 1]} : vector<4x4x8xf32> to vector<1x4x8xf32>
    %859 = vector.shape_cast %858 : vector<1x4x8xf32> to vector<4x8xf32>
    %860 = vector.extract_strided_slice %857 {offsets = [1, 0, 0], sizes = [1, 4, 8], strides = [1, 1, 1]} : vector<4x4x8xf32> to vector<1x4x8xf32>
    %861 = vector.shape_cast %860 : vector<1x4x8xf32> to vector<4x8xf32>
    %862 = vector.extract_strided_slice %857 {offsets = [2, 0, 0], sizes = [1, 4, 8], strides = [1, 1, 1]} : vector<4x4x8xf32> to vector<1x4x8xf32>
    %863 = vector.shape_cast %862 : vector<1x4x8xf32> to vector<4x8xf32>
    %864 = vector.extract_strided_slice %857 {offsets = [3, 0, 0], sizes = [1, 4, 8], strides = [1, 1, 1]} : vector<4x4x8xf32> to vector<1x4x8xf32>
    %865 = vector.shape_cast %864 : vector<1x4x8xf32> to vector<4x8xf32>
    %866 = tpu.concatenate %859, %861, %863, %865 in 1 : vector<4x8xf32>, vector<4x8xf32>, vector<4x8xf32>, vector<4x8xf32> -> vector<4x32xf32>
    %867 = arith.truncf %866 : vector<4x32xf32> to vector<4x32xbf16>
    %cst_185 = arith.constant dense<0.000000e+00> : vector<4x32xf32>
    %868 = tpu.matmul %867, %806, %cst_185 {dimension_numbers = #tpu.dot_dimension_numbers<[1], [0], [0], [1], [0, 0, 1, 1], [], []>} : vector<4x32xbf16>, vector<32x32xbf16>, vector<4x32xf32> -> vector<4x32xf32>
    %869 = vector.broadcast %807 : vector<1x32xf32> to vector<4x32xf32>
    %870 = arith.addf %868, %869 : vector<4x32xf32>
    %871 = arith.addf %799, %870 : vector<4x32xf32>
    %872 = vector.extract_strided_slice %803 {offsets = [6, 0], sizes = [1, 32], strides = [1, 1]} : vector<12x128xf32> to vector<1x32xf32>
    %873 = vector.extract_strided_slice %803 {offsets = [7, 0], sizes = [1, 32], strides = [1, 1]} : vector<12x128xf32> to vector<1x32xf32>
    %cst_186 = arith.constant dense<0.000000e+00> : vector<4xf32>
    %874 = vector.multi_reduction <add>, %871, %cst_186 [1] : vector<4x32xf32> to vector<4xf32>
    %875 = vector.shape_cast %874 : vector<4xf32> to vector<4x1xf32>
    %cst_187 = arith.constant 3.200000e+01 : f32
    %876 = vector.broadcast %cst_187 : f32 to vector<4x1xf32>
    %877 = arith.divf %875, %876 : vector<4x1xf32>
    %878 = vector.broadcast %877 : vector<4x1xf32> to vector<4x32xf32>
    %879 = arith.subf %871, %878 : vector<4x32xf32>
    %880 = arith.mulf %879, %879 : vector<4x32xf32>
    %cst_188 = arith.constant dense<0.000000e+00> : vector<4xf32>
    %881 = vector.multi_reduction <add>, %880, %cst_188 [1] : vector<4x32xf32> to vector<4xf32>
    %882 = vector.shape_cast %881 : vector<4xf32> to vector<4x1xf32>
    %cst_189 = arith.constant 3.200000e+01 : f32
    %883 = vector.broadcast %cst_189 : f32 to vector<4x1xf32>
    %884 = arith.divf %882, %883 : vector<4x1xf32>
    %cst_190 = arith.constant 9.99999974E-6 : f32
    %885 = vector.broadcast %cst_190 : f32 to vector<4x1xf32>
    %886 = arith.addf %884, %885 : vector<4x1xf32>
    %887 = math.rsqrt %886 : vector<4x1xf32>
    %888 = vector.broadcast %887 : vector<4x1xf32> to vector<4x32xf32>
    %889 = arith.mulf %879, %888 : vector<4x32xf32>
    %890 = vector.broadcast %872 : vector<1x32xf32> to vector<4x32xf32>
    %891 = arith.mulf %889, %890 : vector<4x32xf32>
    %892 = vector.broadcast %873 : vector<1x32xf32> to vector<4x32xf32>
    %893 = arith.addf %891, %892 : vector<4x32xf32>
    %894 = vector.extract_strided_slice %801 {offsets = [0, 128], sizes = [32, 32], strides = [1, 1]} : vector<32x320xbf16> to vector<32x32xbf16>
    %895 = arith.truncf %297 : vector<4x32xf32> to vector<4x32xbf16>
    %cst_191 = arith.constant dense<0.000000e+00> : vector<4x32xf32>
    %896 = tpu.matmul %895, %894, %cst_191 {dimension_numbers = #tpu.dot_dimension_numbers<[1], [0], [0], [1], [0, 0, 1, 1], [], []>} : vector<4x32xbf16>, vector<32x32xbf16>, vector<4x32xf32> -> vector<4x32xf32>
    %897 = vector.extract_strided_slice %803 {offsets = [2, 0], sizes = [1, 32], strides = [1, 1]} : vector<12x128xf32> to vector<1x32xf32>
    %898 = vector.broadcast %897 : vector<1x32xf32> to vector<4x32xf32>
    %899 = arith.addf %896, %898 : vector<4x32xf32>
    %900 = vector.extract_strided_slice %801 {offsets = [0, 160], sizes = [32, 32], strides = [1, 1]} : vector<32x320xbf16> to vector<32x32xbf16>
    %901 = arith.truncf %899 : vector<4x32xf32> to vector<4x32xbf16>
    %cst_192 = arith.constant dense<0.000000e+00> : vector<4x32xf32>
    %902 = tpu.matmul %901, %900, %cst_192 {dimension_numbers = #tpu.dot_dimension_numbers<[1], [0], [0], [1], [0, 0, 1, 1], [], []>} : vector<4x32xbf16>, vector<32x32xbf16>, vector<4x32xf32> -> vector<4x32xf32>
    %903 = vector.extract_strided_slice %803 {offsets = [3, 0], sizes = [1, 32], strides = [1, 1]} : vector<12x128xf32> to vector<1x32xf32>
    %904 = vector.broadcast %903 : vector<1x32xf32> to vector<4x32xf32>
    %905 = arith.addf %902, %904 : vector<4x32xf32>
    %906 = arith.addf %893, %905 : vector<4x32xf32>
    %907 = vector.extract_strided_slice %803 {offsets = [8, 0], sizes = [1, 32], strides = [1, 1]} : vector<12x128xf32> to vector<1x32xf32>
    %908 = vector.extract_strided_slice %803 {offsets = [9, 0], sizes = [1, 32], strides = [1, 1]} : vector<12x128xf32> to vector<1x32xf32>
    %cst_193 = arith.constant dense<0.000000e+00> : vector<4xf32>
    %909 = vector.multi_reduction <add>, %906, %cst_193 [1] : vector<4x32xf32> to vector<4xf32>
    %910 = vector.shape_cast %909 : vector<4xf32> to vector<4x1xf32>
    %cst_194 = arith.constant 3.200000e+01 : f32
    %911 = vector.broadcast %cst_194 : f32 to vector<4x1xf32>
    %912 = arith.divf %910, %911 : vector<4x1xf32>
    %913 = vector.broadcast %912 : vector<4x1xf32> to vector<4x32xf32>
    %914 = arith.subf %906, %913 : vector<4x32xf32>
    %915 = arith.mulf %914, %914 : vector<4x32xf32>
    %cst_195 = arith.constant dense<0.000000e+00> : vector<4xf32>
    %916 = vector.multi_reduction <add>, %915, %cst_195 [1] : vector<4x32xf32> to vector<4xf32>
    %917 = vector.shape_cast %916 : vector<4xf32> to vector<4x1xf32>
    %cst_196 = arith.constant 3.200000e+01 : f32
    %918 = vector.broadcast %cst_196 : f32 to vector<4x1xf32>
    %919 = arith.divf %917, %918 : vector<4x1xf32>
    %cst_197 = arith.constant 9.99999974E-6 : f32
    %920 = vector.broadcast %cst_197 : f32 to vector<4x1xf32>
    %921 = arith.addf %919, %920 : vector<4x1xf32>
    %922 = math.rsqrt %921 : vector<4x1xf32>
    %923 = vector.broadcast %922 : vector<4x1xf32> to vector<4x32xf32>
    %924 = arith.mulf %914, %923 : vector<4x32xf32>
    %925 = vector.broadcast %907 : vector<1x32xf32> to vector<4x32xf32>
    %926 = arith.mulf %924, %925 : vector<4x32xf32>
    %927 = vector.broadcast %908 : vector<1x32xf32> to vector<4x32xf32>
    %928 = arith.addf %926, %927 : vector<4x32xf32>
    %929 = vector.extract_strided_slice %801 {offsets = [0, 192], sizes = [32, 128], strides = [1, 1]} : vector<32x320xbf16> to vector<32x128xbf16>
    %930 = vector.extract_strided_slice %803 {offsets = [4, 0], sizes = [1, 128], strides = [1, 1]} : vector<12x128xf32> to vector<1x128xf32>
    %c3_198 = arith.constant 3 : index
    %c0_199 = arith.constant 0 : index
    %c0_200 = arith.constant 0 : index
    %931 = vector.load %arg10[%c3_198, %c0_199, %c0_200] : memref<6x128x32xbf16, #tpu.memory_space<vmem>>, vector<1x128x32xbf16>
    %932 = vector.shape_cast %931 : vector<1x128x32xbf16> to vector<128x32xbf16>
    %933 = vector.extract_strided_slice %803 {offsets = [5, 0], sizes = [1, 32], strides = [1, 1]} : vector<12x128xf32> to vector<1x32xf32>
    %934 = arith.truncf %928 : vector<4x32xf32> to vector<4x32xbf16>
    %cst_201 = arith.constant dense<0.000000e+00> : vector<4x128xf32>
    %935 = tpu.matmul %934, %929, %cst_201 {dimension_numbers = #tpu.dot_dimension_numbers<[1], [0], [0], [1], [0, 0, 1, 1], [], []>} : vector<4x32xbf16>, vector<32x128xbf16>, vector<4x128xf32> -> vector<4x128xf32>
    %936 = vector.broadcast %930 : vector<1x128xf32> to vector<4x128xf32>
    %937 = arith.addf %935, %936 : vector<4x128xf32>
    %cst_202 = arith.constant 0.000000e+00 : f32
    %938 = vector.broadcast %cst_202 : f32 to vector<4x128xf32>
    %939 = arith.maximumf %937, %938 : vector<4x128xf32>
    %940 = arith.truncf %939 : vector<4x128xf32> to vector<4x128xbf16>
    %cst_203 = arith.constant dense<0.000000e+00> : vector<4x32xf32>
    %941 = tpu.matmul %940, %932, %cst_203 {dimension_numbers = #tpu.dot_dimension_numbers<[1], [0], [0], [1], [0, 0, 1, 1], [], []>} : vector<4x128xbf16>, vector<128x32xbf16>, vector<4x32xf32> -> vector<4x32xf32>
    %942 = vector.broadcast %933 : vector<1x32xf32> to vector<4x32xf32>
    %943 = arith.addf %941, %942 : vector<4x32xf32>
    %944 = arith.addf %928, %943 : vector<4x32xf32>
    %945 = vector.extract_strided_slice %803 {offsets = [10, 0], sizes = [1, 32], strides = [1, 1]} : vector<12x128xf32> to vector<1x32xf32>
    %946 = vector.extract_strided_slice %803 {offsets = [11, 0], sizes = [1, 32], strides = [1, 1]} : vector<12x128xf32> to vector<1x32xf32>
    %cst_204 = arith.constant dense<0.000000e+00> : vector<4xf32>
    %947 = vector.multi_reduction <add>, %944, %cst_204 [1] : vector<4x32xf32> to vector<4xf32>
    %948 = vector.shape_cast %947 : vector<4xf32> to vector<4x1xf32>
    %cst_205 = arith.constant 3.200000e+01 : f32
    %949 = vector.broadcast %cst_205 : f32 to vector<4x1xf32>
    %950 = arith.divf %948, %949 : vector<4x1xf32>
    %951 = vector.broadcast %950 : vector<4x1xf32> to vector<4x32xf32>
    %952 = arith.subf %944, %951 : vector<4x32xf32>
    %953 = arith.mulf %952, %952 : vector<4x32xf32>
    %cst_206 = arith.constant dense<0.000000e+00> : vector<4xf32>
    %954 = vector.multi_reduction <add>, %953, %cst_206 [1] : vector<4x32xf32> to vector<4xf32>
    %955 = vector.shape_cast %954 : vector<4xf32> to vector<4x1xf32>
    %cst_207 = arith.constant 3.200000e+01 : f32
    %956 = vector.broadcast %cst_207 : f32 to vector<4x1xf32>
    %957 = arith.divf %955, %956 : vector<4x1xf32>
    %cst_208 = arith.constant 9.99999974E-6 : f32
    %958 = vector.broadcast %cst_208 : f32 to vector<4x1xf32>
    %959 = arith.addf %957, %958 : vector<4x1xf32>
    %960 = math.rsqrt %959 : vector<4x1xf32>
    %961 = vector.broadcast %960 : vector<4x1xf32> to vector<4x32xf32>
    %962 = arith.mulf %952, %961 : vector<4x32xf32>
    %963 = vector.broadcast %945 : vector<1x32xf32> to vector<4x32xf32>
    %964 = arith.mulf %962, %963 : vector<4x32xf32>
    %965 = vector.broadcast %946 : vector<1x32xf32> to vector<4x32xf32>
    %966 = arith.addf %964, %965 : vector<4x32xf32>
    %c4 = arith.constant 4 : index
    %c0_209 = arith.constant 0 : index
    %c0_210 = arith.constant 0 : index
    %967 = vector.load %arg9[%c4, %c0_209, %c0_210] : memref<6x32x320xbf16, #tpu.memory_space<vmem>>, vector<1x32x320xbf16>
    %968 = vector.shape_cast %967 : vector<1x32x320xbf16> to vector<32x320xbf16>
    %c4_211 = arith.constant 4 : index
    %c0_212 = arith.constant 0 : index
    %c0_213 = arith.constant 0 : index
    %969 = vector.load %arg11[%c4_211, %c0_212, %c0_213] : memref<6x12x128xf32, #tpu.memory_space<vmem>>, vector<1x12x128xf32>
    %970 = vector.shape_cast %969 : vector<1x12x128xf32> to vector<12x128xf32>
    %971 = vector.extract_strided_slice %968 {offsets = [0, 0], sizes = [32, 96], strides = [1, 1]} : vector<32x320xbf16> to vector<32x96xbf16>
    %972 = vector.extract_strided_slice %970 {offsets = [0, 0], sizes = [1, 96], strides = [1, 1]} : vector<12x128xf32> to vector<1x96xf32>
    %973 = vector.extract_strided_slice %968 {offsets = [0, 96], sizes = [32, 32], strides = [1, 1]} : vector<32x320xbf16> to vector<32x32xbf16>
    %974 = vector.extract_strided_slice %970 {offsets = [1, 0], sizes = [1, 32], strides = [1, 1]} : vector<12x128xf32> to vector<1x32xf32>
    %975 = arith.truncf %966 : vector<4x32xf32> to vector<4x32xbf16>
    %cst_214 = arith.constant dense<0.000000e+00> : vector<4x96xf32>
    %976 = tpu.matmul %975, %971, %cst_214 {dimension_numbers = #tpu.dot_dimension_numbers<[1], [0], [0], [1], [0, 0, 1, 1], [], []>} : vector<4x32xbf16>, vector<32x96xbf16>, vector<4x96xf32> -> vector<4x96xf32>
    %977 = vector.broadcast %972 : vector<1x96xf32> to vector<4x96xf32>
    %978 = arith.addf %976, %977 : vector<4x96xf32>
    %979 = vector.extract_strided_slice %978 {offsets = [0, 0], sizes = [4, 8], strides = [1, 1]} : vector<4x96xf32> to vector<4x8xf32>
    %980 = vector.extract_strided_slice %978 {offsets = [0, 8], sizes = [4, 8], strides = [1, 1]} : vector<4x96xf32> to vector<4x8xf32>
    %981 = vector.extract_strided_slice %978 {offsets = [0, 16], sizes = [4, 8], strides = [1, 1]} : vector<4x96xf32> to vector<4x8xf32>
    %982 = vector.extract_strided_slice %978 {offsets = [0, 24], sizes = [4, 8], strides = [1, 1]} : vector<4x96xf32> to vector<4x8xf32>
    %983 = vector.shape_cast %979 : vector<4x8xf32> to vector<1x4x8xf32>
    %984 = vector.shape_cast %980 : vector<4x8xf32> to vector<1x4x8xf32>
    %985 = vector.shape_cast %981 : vector<4x8xf32> to vector<1x4x8xf32>
    %986 = vector.shape_cast %982 : vector<4x8xf32> to vector<1x4x8xf32>
    %987 = tpu.concatenate %983, %984, %985, %986 in 0 : vector<1x4x8xf32>, vector<1x4x8xf32>, vector<1x4x8xf32>, vector<1x4x8xf32> -> vector<4x4x8xf32>
    %988 = vector.extract_strided_slice %978 {offsets = [0, 32], sizes = [4, 8], strides = [1, 1]} : vector<4x96xf32> to vector<4x8xf32>
    %989 = vector.extract_strided_slice %978 {offsets = [0, 40], sizes = [4, 8], strides = [1, 1]} : vector<4x96xf32> to vector<4x8xf32>
    %990 = vector.extract_strided_slice %978 {offsets = [0, 48], sizes = [4, 8], strides = [1, 1]} : vector<4x96xf32> to vector<4x8xf32>
    %991 = vector.extract_strided_slice %978 {offsets = [0, 56], sizes = [4, 8], strides = [1, 1]} : vector<4x96xf32> to vector<4x8xf32>
    %992 = vector.shape_cast %988 : vector<4x8xf32> to vector<1x4x8xf32>
    %993 = vector.shape_cast %989 : vector<4x8xf32> to vector<1x4x8xf32>
    %994 = vector.shape_cast %990 : vector<4x8xf32> to vector<1x4x8xf32>
    %995 = vector.shape_cast %991 : vector<4x8xf32> to vector<1x4x8xf32>
    %996 = tpu.concatenate %992, %993, %994, %995 in 0 : vector<1x4x8xf32>, vector<1x4x8xf32>, vector<1x4x8xf32>, vector<1x4x8xf32> -> vector<4x4x8xf32>
    %997 = vector.extract_strided_slice %978 {offsets = [0, 64], sizes = [4, 8], strides = [1, 1]} : vector<4x96xf32> to vector<4x8xf32>
    %998 = vector.extract_strided_slice %978 {offsets = [0, 72], sizes = [4, 8], strides = [1, 1]} : vector<4x96xf32> to vector<4x8xf32>
    %999 = vector.extract_strided_slice %978 {offsets = [0, 80], sizes = [4, 8], strides = [1, 1]} : vector<4x96xf32> to vector<4x8xf32>
    %1000 = vector.extract_strided_slice %978 {offsets = [0, 88], sizes = [4, 8], strides = [1, 1]} : vector<4x96xf32> to vector<4x8xf32>
    %1001 = vector.shape_cast %997 : vector<4x8xf32> to vector<1x4x8xf32>
    %1002 = vector.shape_cast %998 : vector<4x8xf32> to vector<1x4x8xf32>
    %1003 = vector.shape_cast %999 : vector<4x8xf32> to vector<1x4x8xf32>
    %1004 = vector.shape_cast %1000 : vector<4x8xf32> to vector<1x4x8xf32>
    %1005 = tpu.concatenate %1001, %1002, %1003, %1004 in 0 : vector<1x4x8xf32>, vector<1x4x8xf32>, vector<1x4x8xf32>, vector<1x4x8xf32> -> vector<4x4x8xf32>
    %1006 = arith.truncf %987 : vector<4x4x8xf32> to vector<4x4x8xbf16>
    %1007 = arith.truncf %996 : vector<4x4x8xf32> to vector<4x4x8xbf16>
    "tpu.trace_start"() <{level = 10 : i32, message = "hqd,hkd->hqk"}> : () -> ()
    %cst_215 = arith.constant dense<0.000000e+00> : vector<4x4x4xf32>
    %1008 = tpu.matmul %1006, %1007, %cst_215 {dimension_numbers = #tpu.dot_dimension_numbers<[2], [2], [1], [1], [0, 0, 0, 1, 1, 1], [0], [0]>} : vector<4x4x8xbf16>, vector<4x4x8xbf16>, vector<4x4x4xf32> -> vector<4x4x4xf32>
    "tpu.trace_stop"() : () -> ()
    %1009 = vector.shape_cast %3 : vector<4x4xf32> to vector<1x4x4xf32>
    %1010 = vector.broadcast %1009 : vector<1x4x4xf32> to vector<4x4x4xf32>
    %1011 = arith.addf %1008, %1010 : vector<4x4x4xf32>
    %cst_216 = arith.constant dense<0xFF800000> : vector<4x4xf32>
    %1012 = vector.multi_reduction <maximumf>, %1011, %cst_216 [2] : vector<4x4x4xf32> to vector<4x4xf32>
    %1013 = vector.shape_cast %1012 : vector<4x4xf32> to vector<4x4x1xf32>
    %1014 = vector.broadcast %1013 : vector<4x4x1xf32> to vector<4x4x4xf32>
    %1015 = arith.subf %1011, %1014 : vector<4x4x4xf32>
    %1016 = math.exp %1015 : vector<4x4x4xf32>
    %cst_217 = arith.constant dense<0.000000e+00> : vector<4x4xf32>
    %1017 = vector.multi_reduction <add>, %1016, %cst_217 [2] : vector<4x4x4xf32> to vector<4x4xf32>
    %1018 = vector.shape_cast %1017 : vector<4x4xf32> to vector<4x4x1xf32>
    %1019 = tpu.reciprocal %1018 {approx = true} : vector<4x4x1xf32> -> vector<4x4x1xf32>
    %1020 = vector.broadcast %1019 : vector<4x4x1xf32> to vector<4x4x4xf32>
    %1021 = arith.mulf %1016, %1020 : vector<4x4x4xf32>
    %1022 = arith.truncf %1021 : vector<4x4x4xf32> to vector<4x4x4xbf16>
    %1023 = arith.truncf %1005 : vector<4x4x8xf32> to vector<4x4x8xbf16>
    "tpu.trace_start"() <{level = 10 : i32, message = "hqk,hkd->hqd"}> : () -> ()
    %cst_218 = arith.constant dense<0.000000e+00> : vector<4x4x8xf32>
    %1024 = tpu.matmul %1022, %1023, %cst_218 {dimension_numbers = #tpu.dot_dimension_numbers<[2], [1], [1], [2], [0, 0, 0, 1, 1, 2], [0], [0]>} : vector<4x4x4xbf16>, vector<4x4x8xbf16>, vector<4x4x8xf32> -> vector<4x4x8xf32>
    "tpu.trace_stop"() : () -> ()
    %1025 = vector.extract_strided_slice %1024 {offsets = [0, 0, 0], sizes = [1, 4, 8], strides = [1, 1, 1]} : vector<4x4x8xf32> to vector<1x4x8xf32>
    %1026 = vector.shape_cast %1025 : vector<1x4x8xf32> to vector<4x8xf32>
    %1027 = vector.extract_strided_slice %1024 {offsets = [1, 0, 0], sizes = [1, 4, 8], strides = [1, 1, 1]} : vector<4x4x8xf32> to vector<1x4x8xf32>
    %1028 = vector.shape_cast %1027 : vector<1x4x8xf32> to vector<4x8xf32>
    %1029 = vector.extract_strided_slice %1024 {offsets = [2, 0, 0], sizes = [1, 4, 8], strides = [1, 1, 1]} : vector<4x4x8xf32> to vector<1x4x8xf32>
    %1030 = vector.shape_cast %1029 : vector<1x4x8xf32> to vector<4x8xf32>
    %1031 = vector.extract_strided_slice %1024 {offsets = [3, 0, 0], sizes = [1, 4, 8], strides = [1, 1, 1]} : vector<4x4x8xf32> to vector<1x4x8xf32>
    %1032 = vector.shape_cast %1031 : vector<1x4x8xf32> to vector<4x8xf32>
    %1033 = tpu.concatenate %1026, %1028, %1030, %1032 in 1 : vector<4x8xf32>, vector<4x8xf32>, vector<4x8xf32>, vector<4x8xf32> -> vector<4x32xf32>
    %1034 = arith.truncf %1033 : vector<4x32xf32> to vector<4x32xbf16>
    %cst_219 = arith.constant dense<0.000000e+00> : vector<4x32xf32>
    %1035 = tpu.matmul %1034, %973, %cst_219 {dimension_numbers = #tpu.dot_dimension_numbers<[1], [0], [0], [1], [0, 0, 1, 1], [], []>} : vector<4x32xbf16>, vector<32x32xbf16>, vector<4x32xf32> -> vector<4x32xf32>
    %1036 = vector.broadcast %974 : vector<1x32xf32> to vector<4x32xf32>
    %1037 = arith.addf %1035, %1036 : vector<4x32xf32>
    %1038 = arith.addf %966, %1037 : vector<4x32xf32>
    %1039 = vector.extract_strided_slice %970 {offsets = [6, 0], sizes = [1, 32], strides = [1, 1]} : vector<12x128xf32> to vector<1x32xf32>
    %1040 = vector.extract_strided_slice %970 {offsets = [7, 0], sizes = [1, 32], strides = [1, 1]} : vector<12x128xf32> to vector<1x32xf32>
    %cst_220 = arith.constant dense<0.000000e+00> : vector<4xf32>
    %1041 = vector.multi_reduction <add>, %1038, %cst_220 [1] : vector<4x32xf32> to vector<4xf32>
    %1042 = vector.shape_cast %1041 : vector<4xf32> to vector<4x1xf32>
    %cst_221 = arith.constant 3.200000e+01 : f32
    %1043 = vector.broadcast %cst_221 : f32 to vector<4x1xf32>
    %1044 = arith.divf %1042, %1043 : vector<4x1xf32>
    %1045 = vector.broadcast %1044 : vector<4x1xf32> to vector<4x32xf32>
    %1046 = arith.subf %1038, %1045 : vector<4x32xf32>
    %1047 = arith.mulf %1046, %1046 : vector<4x32xf32>
    %cst_222 = arith.constant dense<0.000000e+00> : vector<4xf32>
    %1048 = vector.multi_reduction <add>, %1047, %cst_222 [1] : vector<4x32xf32> to vector<4xf32>
    %1049 = vector.shape_cast %1048 : vector<4xf32> to vector<4x1xf32>
    %cst_223 = arith.constant 3.200000e+01 : f32
    %1050 = vector.broadcast %cst_223 : f32 to vector<4x1xf32>
    %1051 = arith.divf %1049, %1050 : vector<4x1xf32>
    %cst_224 = arith.constant 9.99999974E-6 : f32
    %1052 = vector.broadcast %cst_224 : f32 to vector<4x1xf32>
    %1053 = arith.addf %1051, %1052 : vector<4x1xf32>
    %1054 = math.rsqrt %1053 : vector<4x1xf32>
    %1055 = vector.broadcast %1054 : vector<4x1xf32> to vector<4x32xf32>
    %1056 = arith.mulf %1046, %1055 : vector<4x32xf32>
    %1057 = vector.broadcast %1039 : vector<1x32xf32> to vector<4x32xf32>
    %1058 = arith.mulf %1056, %1057 : vector<4x32xf32>
    %1059 = vector.broadcast %1040 : vector<1x32xf32> to vector<4x32xf32>
    %1060 = arith.addf %1058, %1059 : vector<4x32xf32>
    %1061 = vector.extract_strided_slice %968 {offsets = [0, 128], sizes = [32, 32], strides = [1, 1]} : vector<32x320xbf16> to vector<32x32xbf16>
    %1062 = arith.truncf %297 : vector<4x32xf32> to vector<4x32xbf16>
    %cst_225 = arith.constant dense<0.000000e+00> : vector<4x32xf32>
    %1063 = tpu.matmul %1062, %1061, %cst_225 {dimension_numbers = #tpu.dot_dimension_numbers<[1], [0], [0], [1], [0, 0, 1, 1], [], []>} : vector<4x32xbf16>, vector<32x32xbf16>, vector<4x32xf32> -> vector<4x32xf32>
    %1064 = vector.extract_strided_slice %970 {offsets = [2, 0], sizes = [1, 32], strides = [1, 1]} : vector<12x128xf32> to vector<1x32xf32>
    %1065 = vector.broadcast %1064 : vector<1x32xf32> to vector<4x32xf32>
    %1066 = arith.addf %1063, %1065 : vector<4x32xf32>
    %1067 = vector.extract_strided_slice %968 {offsets = [0, 160], sizes = [32, 32], strides = [1, 1]} : vector<32x320xbf16> to vector<32x32xbf16>
    %1068 = arith.truncf %1066 : vector<4x32xf32> to vector<4x32xbf16>
    %cst_226 = arith.constant dense<0.000000e+00> : vector<4x32xf32>
    %1069 = tpu.matmul %1068, %1067, %cst_226 {dimension_numbers = #tpu.dot_dimension_numbers<[1], [0], [0], [1], [0, 0, 1, 1], [], []>} : vector<4x32xbf16>, vector<32x32xbf16>, vector<4x32xf32> -> vector<4x32xf32>
    %1070 = vector.extract_strided_slice %970 {offsets = [3, 0], sizes = [1, 32], strides = [1, 1]} : vector<12x128xf32> to vector<1x32xf32>
    %1071 = vector.broadcast %1070 : vector<1x32xf32> to vector<4x32xf32>
    %1072 = arith.addf %1069, %1071 : vector<4x32xf32>
    %1073 = arith.addf %1060, %1072 : vector<4x32xf32>
    %1074 = vector.extract_strided_slice %970 {offsets = [8, 0], sizes = [1, 32], strides = [1, 1]} : vector<12x128xf32> to vector<1x32xf32>
    %1075 = vector.extract_strided_slice %970 {offsets = [9, 0], sizes = [1, 32], strides = [1, 1]} : vector<12x128xf32> to vector<1x32xf32>
    %cst_227 = arith.constant dense<0.000000e+00> : vector<4xf32>
    %1076 = vector.multi_reduction <add>, %1073, %cst_227 [1] : vector<4x32xf32> to vector<4xf32>
    %1077 = vector.shape_cast %1076 : vector<4xf32> to vector<4x1xf32>
    %cst_228 = arith.constant 3.200000e+01 : f32
    %1078 = vector.broadcast %cst_228 : f32 to vector<4x1xf32>
    %1079 = arith.divf %1077, %1078 : vector<4x1xf32>
    %1080 = vector.broadcast %1079 : vector<4x1xf32> to vector<4x32xf32>
    %1081 = arith.subf %1073, %1080 : vector<4x32xf32>
    %1082 = arith.mulf %1081, %1081 : vector<4x32xf32>
    %cst_229 = arith.constant dense<0.000000e+00> : vector<4xf32>
    %1083 = vector.multi_reduction <add>, %1082, %cst_229 [1] : vector<4x32xf32> to vector<4xf32>
    %1084 = vector.shape_cast %1083 : vector<4xf32> to vector<4x1xf32>
    %cst_230 = arith.constant 3.200000e+01 : f32
    %1085 = vector.broadcast %cst_230 : f32 to vector<4x1xf32>
    %1086 = arith.divf %1084, %1085 : vector<4x1xf32>
    %cst_231 = arith.constant 9.99999974E-6 : f32
    %1087 = vector.broadcast %cst_231 : f32 to vector<4x1xf32>
    %1088 = arith.addf %1086, %1087 : vector<4x1xf32>
    %1089 = math.rsqrt %1088 : vector<4x1xf32>
    %1090 = vector.broadcast %1089 : vector<4x1xf32> to vector<4x32xf32>
    %1091 = arith.mulf %1081, %1090 : vector<4x32xf32>
    %1092 = vector.broadcast %1074 : vector<1x32xf32> to vector<4x32xf32>
    %1093 = arith.mulf %1091, %1092 : vector<4x32xf32>
    %1094 = vector.broadcast %1075 : vector<1x32xf32> to vector<4x32xf32>
    %1095 = arith.addf %1093, %1094 : vector<4x32xf32>
    %1096 = vector.extract_strided_slice %968 {offsets = [0, 192], sizes = [32, 128], strides = [1, 1]} : vector<32x320xbf16> to vector<32x128xbf16>
    %1097 = vector.extract_strided_slice %970 {offsets = [4, 0], sizes = [1, 128], strides = [1, 1]} : vector<12x128xf32> to vector<1x128xf32>
    %c4_232 = arith.constant 4 : index
    %c0_233 = arith.constant 0 : index
    %c0_234 = arith.constant 0 : index
    %1098 = vector.load %arg10[%c4_232, %c0_233, %c0_234] : memref<6x128x32xbf16, #tpu.memory_space<vmem>>, vector<1x128x32xbf16>
    %1099 = vector.shape_cast %1098 : vector<1x128x32xbf16> to vector<128x32xbf16>
    %1100 = vector.extract_strided_slice %970 {offsets = [5, 0], sizes = [1, 32], strides = [1, 1]} : vector<12x128xf32> to vector<1x32xf32>
    %1101 = arith.truncf %1095 : vector<4x32xf32> to vector<4x32xbf16>
    %cst_235 = arith.constant dense<0.000000e+00> : vector<4x128xf32>
    %1102 = tpu.matmul %1101, %1096, %cst_235 {dimension_numbers = #tpu.dot_dimension_numbers<[1], [0], [0], [1], [0, 0, 1, 1], [], []>} : vector<4x32xbf16>, vector<32x128xbf16>, vector<4x128xf32> -> vector<4x128xf32>
    %1103 = vector.broadcast %1097 : vector<1x128xf32> to vector<4x128xf32>
    %1104 = arith.addf %1102, %1103 : vector<4x128xf32>
    %cst_236 = arith.constant 0.000000e+00 : f32
    %1105 = vector.broadcast %cst_236 : f32 to vector<4x128xf32>
    %1106 = arith.maximumf %1104, %1105 : vector<4x128xf32>
    %1107 = arith.truncf %1106 : vector<4x128xf32> to vector<4x128xbf16>
    %cst_237 = arith.constant dense<0.000000e+00> : vector<4x32xf32>
    %1108 = tpu.matmul %1107, %1099, %cst_237 {dimension_numbers = #tpu.dot_dimension_numbers<[1], [0], [0], [1], [0, 0, 1, 1], [], []>} : vector<4x128xbf16>, vector<128x32xbf16>, vector<4x32xf32> -> vector<4x32xf32>
    %1109 = vector.broadcast %1100 : vector<1x32xf32> to vector<4x32xf32>
    %1110 = arith.addf %1108, %1109 : vector<4x32xf32>
    %1111 = arith.addf %1095, %1110 : vector<4x32xf32>
    %1112 = vector.extract_strided_slice %970 {offsets = [10, 0], sizes = [1, 32], strides = [1, 1]} : vector<12x128xf32> to vector<1x32xf32>
    %1113 = vector.extract_strided_slice %970 {offsets = [11, 0], sizes = [1, 32], strides = [1, 1]} : vector<12x128xf32> to vector<1x32xf32>
    %cst_238 = arith.constant dense<0.000000e+00> : vector<4xf32>
    %1114 = vector.multi_reduction <add>, %1111, %cst_238 [1] : vector<4x32xf32> to vector<4xf32>
    %1115 = vector.shape_cast %1114 : vector<4xf32> to vector<4x1xf32>
    %cst_239 = arith.constant 3.200000e+01 : f32
    %1116 = vector.broadcast %cst_239 : f32 to vector<4x1xf32>
    %1117 = arith.divf %1115, %1116 : vector<4x1xf32>
    %1118 = vector.broadcast %1117 : vector<4x1xf32> to vector<4x32xf32>
    %1119 = arith.subf %1111, %1118 : vector<4x32xf32>
    %1120 = arith.mulf %1119, %1119 : vector<4x32xf32>
    %cst_240 = arith.constant dense<0.000000e+00> : vector<4xf32>
    %1121 = vector.multi_reduction <add>, %1120, %cst_240 [1] : vector<4x32xf32> to vector<4xf32>
    %1122 = vector.shape_cast %1121 : vector<4xf32> to vector<4x1xf32>
    %cst_241 = arith.constant 3.200000e+01 : f32
    %1123 = vector.broadcast %cst_241 : f32 to vector<4x1xf32>
    %1124 = arith.divf %1122, %1123 : vector<4x1xf32>
    %cst_242 = arith.constant 9.99999974E-6 : f32
    %1125 = vector.broadcast %cst_242 : f32 to vector<4x1xf32>
    %1126 = arith.addf %1124, %1125 : vector<4x1xf32>
    %1127 = math.rsqrt %1126 : vector<4x1xf32>
    %1128 = vector.broadcast %1127 : vector<4x1xf32> to vector<4x32xf32>
    %1129 = arith.mulf %1119, %1128 : vector<4x32xf32>
    %1130 = vector.broadcast %1112 : vector<1x32xf32> to vector<4x32xf32>
    %1131 = arith.mulf %1129, %1130 : vector<4x32xf32>
    %1132 = vector.broadcast %1113 : vector<1x32xf32> to vector<4x32xf32>
    %1133 = arith.addf %1131, %1132 : vector<4x32xf32>
    %c5 = arith.constant 5 : index
    %c0_243 = arith.constant 0 : index
    %c0_244 = arith.constant 0 : index
    %1134 = vector.load %arg9[%c5, %c0_243, %c0_244] : memref<6x32x320xbf16, #tpu.memory_space<vmem>>, vector<1x32x320xbf16>
    %1135 = vector.shape_cast %1134 : vector<1x32x320xbf16> to vector<32x320xbf16>
    %c5_245 = arith.constant 5 : index
    %c0_246 = arith.constant 0 : index
    %c0_247 = arith.constant 0 : index
    %1136 = vector.load %arg11[%c5_245, %c0_246, %c0_247] : memref<6x12x128xf32, #tpu.memory_space<vmem>>, vector<1x12x128xf32>
    %1137 = vector.shape_cast %1136 : vector<1x12x128xf32> to vector<12x128xf32>
    %1138 = vector.extract_strided_slice %1135 {offsets = [0, 0], sizes = [32, 96], strides = [1, 1]} : vector<32x320xbf16> to vector<32x96xbf16>
    %1139 = vector.extract_strided_slice %1137 {offsets = [0, 0], sizes = [1, 96], strides = [1, 1]} : vector<12x128xf32> to vector<1x96xf32>
    %1140 = vector.extract_strided_slice %1135 {offsets = [0, 96], sizes = [32, 32], strides = [1, 1]} : vector<32x320xbf16> to vector<32x32xbf16>
    %1141 = vector.extract_strided_slice %1137 {offsets = [1, 0], sizes = [1, 32], strides = [1, 1]} : vector<12x128xf32> to vector<1x32xf32>
    %1142 = arith.truncf %1133 : vector<4x32xf32> to vector<4x32xbf16>
    %cst_248 = arith.constant dense<0.000000e+00> : vector<4x96xf32>
    %1143 = tpu.matmul %1142, %1138, %cst_248 {dimension_numbers = #tpu.dot_dimension_numbers<[1], [0], [0], [1], [0, 0, 1, 1], [], []>} : vector<4x32xbf16>, vector<32x96xbf16>, vector<4x96xf32> -> vector<4x96xf32>
    %1144 = vector.broadcast %1139 : vector<1x96xf32> to vector<4x96xf32>
    %1145 = arith.addf %1143, %1144 : vector<4x96xf32>
    %1146 = vector.extract_strided_slice %1145 {offsets = [0, 0], sizes = [4, 8], strides = [1, 1]} : vector<4x96xf32> to vector<4x8xf32>
    %1147 = vector.extract_strided_slice %1145 {offsets = [0, 8], sizes = [4, 8], strides = [1, 1]} : vector<4x96xf32> to vector<4x8xf32>
    %1148 = vector.extract_strided_slice %1145 {offsets = [0, 16], sizes = [4, 8], strides = [1, 1]} : vector<4x96xf32> to vector<4x8xf32>
    %1149 = vector.extract_strided_slice %1145 {offsets = [0, 24], sizes = [4, 8], strides = [1, 1]} : vector<4x96xf32> to vector<4x8xf32>
    %1150 = vector.shape_cast %1146 : vector<4x8xf32> to vector<1x4x8xf32>
    %1151 = vector.shape_cast %1147 : vector<4x8xf32> to vector<1x4x8xf32>
    %1152 = vector.shape_cast %1148 : vector<4x8xf32> to vector<1x4x8xf32>
    %1153 = vector.shape_cast %1149 : vector<4x8xf32> to vector<1x4x8xf32>
    %1154 = tpu.concatenate %1150, %1151, %1152, %1153 in 0 : vector<1x4x8xf32>, vector<1x4x8xf32>, vector<1x4x8xf32>, vector<1x4x8xf32> -> vector<4x4x8xf32>
    %1155 = vector.extract_strided_slice %1145 {offsets = [0, 32], sizes = [4, 8], strides = [1, 1]} : vector<4x96xf32> to vector<4x8xf32>
    %1156 = vector.extract_strided_slice %1145 {offsets = [0, 40], sizes = [4, 8], strides = [1, 1]} : vector<4x96xf32> to vector<4x8xf32>
    %1157 = vector.extract_strided_slice %1145 {offsets = [0, 48], sizes = [4, 8], strides = [1, 1]} : vector<4x96xf32> to vector<4x8xf32>
    %1158 = vector.extract_strided_slice %1145 {offsets = [0, 56], sizes = [4, 8], strides = [1, 1]} : vector<4x96xf32> to vector<4x8xf32>
    %1159 = vector.shape_cast %1155 : vector<4x8xf32> to vector<1x4x8xf32>
    %1160 = vector.shape_cast %1156 : vector<4x8xf32> to vector<1x4x8xf32>
    %1161 = vector.shape_cast %1157 : vector<4x8xf32> to vector<1x4x8xf32>
    %1162 = vector.shape_cast %1158 : vector<4x8xf32> to vector<1x4x8xf32>
    %1163 = tpu.concatenate %1159, %1160, %1161, %1162 in 0 : vector<1x4x8xf32>, vector<1x4x8xf32>, vector<1x4x8xf32>, vector<1x4x8xf32> -> vector<4x4x8xf32>
    %1164 = vector.extract_strided_slice %1145 {offsets = [0, 64], sizes = [4, 8], strides = [1, 1]} : vector<4x96xf32> to vector<4x8xf32>
    %1165 = vector.extract_strided_slice %1145 {offsets = [0, 72], sizes = [4, 8], strides = [1, 1]} : vector<4x96xf32> to vector<4x8xf32>
    %1166 = vector.extract_strided_slice %1145 {offsets = [0, 80], sizes = [4, 8], strides = [1, 1]} : vector<4x96xf32> to vector<4x8xf32>
    %1167 = vector.extract_strided_slice %1145 {offsets = [0, 88], sizes = [4, 8], strides = [1, 1]} : vector<4x96xf32> to vector<4x8xf32>
    %1168 = vector.shape_cast %1164 : vector<4x8xf32> to vector<1x4x8xf32>
    %1169 = vector.shape_cast %1165 : vector<4x8xf32> to vector<1x4x8xf32>
    %1170 = vector.shape_cast %1166 : vector<4x8xf32> to vector<1x4x8xf32>
    %1171 = vector.shape_cast %1167 : vector<4x8xf32> to vector<1x4x8xf32>
    %1172 = tpu.concatenate %1168, %1169, %1170, %1171 in 0 : vector<1x4x8xf32>, vector<1x4x8xf32>, vector<1x4x8xf32>, vector<1x4x8xf32> -> vector<4x4x8xf32>
    %1173 = arith.truncf %1154 : vector<4x4x8xf32> to vector<4x4x8xbf16>
    %1174 = arith.truncf %1163 : vector<4x4x8xf32> to vector<4x4x8xbf16>
    "tpu.trace_start"() <{level = 10 : i32, message = "hqd,hkd->hqk"}> : () -> ()
    %cst_249 = arith.constant dense<0.000000e+00> : vector<4x4x4xf32>
    %1175 = tpu.matmul %1173, %1174, %cst_249 {dimension_numbers = #tpu.dot_dimension_numbers<[2], [2], [1], [1], [0, 0, 0, 1, 1, 1], [0], [0]>} : vector<4x4x8xbf16>, vector<4x4x8xbf16>, vector<4x4x4xf32> -> vector<4x4x4xf32>
    "tpu.trace_stop"() : () -> ()
    %1176 = vector.shape_cast %3 : vector<4x4xf32> to vector<1x4x4xf32>
    %1177 = vector.broadcast %1176 : vector<1x4x4xf32> to vector<4x4x4xf32>
    %1178 = arith.addf %1175, %1177 : vector<4x4x4xf32>
    %cst_250 = arith.constant dense<0xFF800000> : vector<4x4xf32>
    %1179 = vector.multi_reduction <maximumf>, %1178, %cst_250 [2] : vector<4x4x4xf32> to vector<4x4xf32>
    %1180 = vector.shape_cast %1179 : vector<4x4xf32> to vector<4x4x1xf32>
    %1181 = vector.broadcast %1180 : vector<4x4x1xf32> to vector<4x4x4xf32>
    %1182 = arith.subf %1178, %1181 : vector<4x4x4xf32>
    %1183 = math.exp %1182 : vector<4x4x4xf32>
    %cst_251 = arith.constant dense<0.000000e+00> : vector<4x4xf32>
    %1184 = vector.multi_reduction <add>, %1183, %cst_251 [2] : vector<4x4x4xf32> to vector<4x4xf32>
    %1185 = vector.shape_cast %1184 : vector<4x4xf32> to vector<4x4x1xf32>
    %1186 = tpu.reciprocal %1185 {approx = true} : vector<4x4x1xf32> -> vector<4x4x1xf32>
    %1187 = vector.broadcast %1186 : vector<4x4x1xf32> to vector<4x4x4xf32>
    %1188 = arith.mulf %1183, %1187 : vector<4x4x4xf32>
    %1189 = arith.truncf %1188 : vector<4x4x4xf32> to vector<4x4x4xbf16>
    %1190 = arith.truncf %1172 : vector<4x4x8xf32> to vector<4x4x8xbf16>
    "tpu.trace_start"() <{level = 10 : i32, message = "hqk,hkd->hqd"}> : () -> ()
    %cst_252 = arith.constant dense<0.000000e+00> : vector<4x4x8xf32>
    %1191 = tpu.matmul %1189, %1190, %cst_252 {dimension_numbers = #tpu.dot_dimension_numbers<[2], [1], [1], [2], [0, 0, 0, 1, 1, 2], [0], [0]>} : vector<4x4x4xbf16>, vector<4x4x8xbf16>, vector<4x4x8xf32> -> vector<4x4x8xf32>
    "tpu.trace_stop"() : () -> ()
    %1192 = vector.extract_strided_slice %1191 {offsets = [0, 0, 0], sizes = [1, 4, 8], strides = [1, 1, 1]} : vector<4x4x8xf32> to vector<1x4x8xf32>
    %1193 = vector.shape_cast %1192 : vector<1x4x8xf32> to vector<4x8xf32>
    %1194 = vector.extract_strided_slice %1191 {offsets = [1, 0, 0], sizes = [1, 4, 8], strides = [1, 1, 1]} : vector<4x4x8xf32> to vector<1x4x8xf32>
    %1195 = vector.shape_cast %1194 : vector<1x4x8xf32> to vector<4x8xf32>
    %1196 = vector.extract_strided_slice %1191 {offsets = [2, 0, 0], sizes = [1, 4, 8], strides = [1, 1, 1]} : vector<4x4x8xf32> to vector<1x4x8xf32>
    %1197 = vector.shape_cast %1196 : vector<1x4x8xf32> to vector<4x8xf32>
    %1198 = vector.extract_strided_slice %1191 {offsets = [3, 0, 0], sizes = [1, 4, 8], strides = [1, 1, 1]} : vector<4x4x8xf32> to vector<1x4x8xf32>
    %1199 = vector.shape_cast %1198 : vector<1x4x8xf32> to vector<4x8xf32>
    %1200 = tpu.concatenate %1193, %1195, %1197, %1199 in 1 : vector<4x8xf32>, vector<4x8xf32>, vector<4x8xf32>, vector<4x8xf32> -> vector<4x32xf32>
    %1201 = arith.truncf %1200 : vector<4x32xf32> to vector<4x32xbf16>
    %cst_253 = arith.constant dense<0.000000e+00> : vector<4x32xf32>
    %1202 = tpu.matmul %1201, %1140, %cst_253 {dimension_numbers = #tpu.dot_dimension_numbers<[1], [0], [0], [1], [0, 0, 1, 1], [], []>} : vector<4x32xbf16>, vector<32x32xbf16>, vector<4x32xf32> -> vector<4x32xf32>
    %1203 = vector.broadcast %1141 : vector<1x32xf32> to vector<4x32xf32>
    %1204 = arith.addf %1202, %1203 : vector<4x32xf32>
    %1205 = arith.addf %1133, %1204 : vector<4x32xf32>
    %1206 = vector.extract_strided_slice %1137 {offsets = [6, 0], sizes = [1, 32], strides = [1, 1]} : vector<12x128xf32> to vector<1x32xf32>
    %1207 = vector.extract_strided_slice %1137 {offsets = [7, 0], sizes = [1, 32], strides = [1, 1]} : vector<12x128xf32> to vector<1x32xf32>
    %cst_254 = arith.constant dense<0.000000e+00> : vector<4xf32>
    %1208 = vector.multi_reduction <add>, %1205, %cst_254 [1] : vector<4x32xf32> to vector<4xf32>
    %1209 = vector.shape_cast %1208 : vector<4xf32> to vector<4x1xf32>
    %cst_255 = arith.constant 3.200000e+01 : f32
    %1210 = vector.broadcast %cst_255 : f32 to vector<4x1xf32>
    %1211 = arith.divf %1209, %1210 : vector<4x1xf32>
    %1212 = vector.broadcast %1211 : vector<4x1xf32> to vector<4x32xf32>
    %1213 = arith.subf %1205, %1212 : vector<4x32xf32>
    %1214 = arith.mulf %1213, %1213 : vector<4x32xf32>
    %cst_256 = arith.constant dense<0.000000e+00> : vector<4xf32>
    %1215 = vector.multi_reduction <add>, %1214, %cst_256 [1] : vector<4x32xf32> to vector<4xf32>
    %1216 = vector.shape_cast %1215 : vector<4xf32> to vector<4x1xf32>
    %cst_257 = arith.constant 3.200000e+01 : f32
    %1217 = vector.broadcast %cst_257 : f32 to vector<4x1xf32>
    %1218 = arith.divf %1216, %1217 : vector<4x1xf32>
    %cst_258 = arith.constant 9.99999974E-6 : f32
    %1219 = vector.broadcast %cst_258 : f32 to vector<4x1xf32>
    %1220 = arith.addf %1218, %1219 : vector<4x1xf32>
    %1221 = math.rsqrt %1220 : vector<4x1xf32>
    %1222 = vector.broadcast %1221 : vector<4x1xf32> to vector<4x32xf32>
    %1223 = arith.mulf %1213, %1222 : vector<4x32xf32>
    %1224 = vector.broadcast %1206 : vector<1x32xf32> to vector<4x32xf32>
    %1225 = arith.mulf %1223, %1224 : vector<4x32xf32>
    %1226 = vector.broadcast %1207 : vector<1x32xf32> to vector<4x32xf32>
    %1227 = arith.addf %1225, %1226 : vector<4x32xf32>
    %1228 = vector.extract_strided_slice %1135 {offsets = [0, 128], sizes = [32, 32], strides = [1, 1]} : vector<32x320xbf16> to vector<32x32xbf16>
    %1229 = arith.truncf %297 : vector<4x32xf32> to vector<4x32xbf16>
    %cst_259 = arith.constant dense<0.000000e+00> : vector<4x32xf32>
    %1230 = tpu.matmul %1229, %1228, %cst_259 {dimension_numbers = #tpu.dot_dimension_numbers<[1], [0], [0], [1], [0, 0, 1, 1], [], []>} : vector<4x32xbf16>, vector<32x32xbf16>, vector<4x32xf32> -> vector<4x32xf32>
    %1231 = vector.extract_strided_slice %1137 {offsets = [2, 0], sizes = [1, 32], strides = [1, 1]} : vector<12x128xf32> to vector<1x32xf32>
    %1232 = vector.broadcast %1231 : vector<1x32xf32> to vector<4x32xf32>
    %1233 = arith.addf %1230, %1232 : vector<4x32xf32>
    %1234 = vector.extract_strided_slice %1135 {offsets = [0, 160], sizes = [32, 32], strides = [1, 1]} : vector<32x320xbf16> to vector<32x32xbf16>
    %1235 = arith.truncf %1233 : vector<4x32xf32> to vector<4x32xbf16>
    %cst_260 = arith.constant dense<0.000000e+00> : vector<4x32xf32>
    %1236 = tpu.matmul %1235, %1234, %cst_260 {dimension_numbers = #tpu.dot_dimension_numbers<[1], [0], [0], [1], [0, 0, 1, 1], [], []>} : vector<4x32xbf16>, vector<32x32xbf16>, vector<4x32xf32> -> vector<4x32xf32>
    %1237 = vector.extract_strided_slice %1137 {offsets = [3, 0], sizes = [1, 32], strides = [1, 1]} : vector<12x128xf32> to vector<1x32xf32>
    %1238 = vector.broadcast %1237 : vector<1x32xf32> to vector<4x32xf32>
    %1239 = arith.addf %1236, %1238 : vector<4x32xf32>
    %1240 = arith.addf %1227, %1239 : vector<4x32xf32>
    %1241 = vector.extract_strided_slice %1137 {offsets = [8, 0], sizes = [1, 32], strides = [1, 1]} : vector<12x128xf32> to vector<1x32xf32>
    %1242 = vector.extract_strided_slice %1137 {offsets = [9, 0], sizes = [1, 32], strides = [1, 1]} : vector<12x128xf32> to vector<1x32xf32>
    %cst_261 = arith.constant dense<0.000000e+00> : vector<4xf32>
    %1243 = vector.multi_reduction <add>, %1240, %cst_261 [1] : vector<4x32xf32> to vector<4xf32>
    %1244 = vector.shape_cast %1243 : vector<4xf32> to vector<4x1xf32>
    %cst_262 = arith.constant 3.200000e+01 : f32
    %1245 = vector.broadcast %cst_262 : f32 to vector<4x1xf32>
    %1246 = arith.divf %1244, %1245 : vector<4x1xf32>
    %1247 = vector.broadcast %1246 : vector<4x1xf32> to vector<4x32xf32>
    %1248 = arith.subf %1240, %1247 : vector<4x32xf32>
    %1249 = arith.mulf %1248, %1248 : vector<4x32xf32>
    %cst_263 = arith.constant dense<0.000000e+00> : vector<4xf32>
    %1250 = vector.multi_reduction <add>, %1249, %cst_263 [1] : vector<4x32xf32> to vector<4xf32>
    %1251 = vector.shape_cast %1250 : vector<4xf32> to vector<4x1xf32>
    %cst_264 = arith.constant 3.200000e+01 : f32
    %1252 = vector.broadcast %cst_264 : f32 to vector<4x1xf32>
    %1253 = arith.divf %1251, %1252 : vector<4x1xf32>
    %cst_265 = arith.constant 9.99999974E-6 : f32
    %1254 = vector.broadcast %cst_265 : f32 to vector<4x1xf32>
    %1255 = arith.addf %1253, %1254 : vector<4x1xf32>
    %1256 = math.rsqrt %1255 : vector<4x1xf32>
    %1257 = vector.broadcast %1256 : vector<4x1xf32> to vector<4x32xf32>
    %1258 = arith.mulf %1248, %1257 : vector<4x32xf32>
    %1259 = vector.broadcast %1241 : vector<1x32xf32> to vector<4x32xf32>
    %1260 = arith.mulf %1258, %1259 : vector<4x32xf32>
    %1261 = vector.broadcast %1242 : vector<1x32xf32> to vector<4x32xf32>
    %1262 = arith.addf %1260, %1261 : vector<4x32xf32>
    %1263 = vector.extract_strided_slice %1135 {offsets = [0, 192], sizes = [32, 128], strides = [1, 1]} : vector<32x320xbf16> to vector<32x128xbf16>
    %1264 = vector.extract_strided_slice %1137 {offsets = [4, 0], sizes = [1, 128], strides = [1, 1]} : vector<12x128xf32> to vector<1x128xf32>
    %c5_266 = arith.constant 5 : index
    %c0_267 = arith.constant 0 : index
    %c0_268 = arith.constant 0 : index
    %1265 = vector.load %arg10[%c5_266, %c0_267, %c0_268] : memref<6x128x32xbf16, #tpu.memory_space<vmem>>, vector<1x128x32xbf16>
    %1266 = vector.shape_cast %1265 : vector<1x128x32xbf16> to vector<128x32xbf16>
    %1267 = vector.extract_strided_slice %1137 {offsets = [5, 0], sizes = [1, 32], strides = [1, 1]} : vector<12x128xf32> to vector<1x32xf32>
    %1268 = arith.truncf %1262 : vector<4x32xf32> to vector<4x32xbf16>
    %cst_269 = arith.constant dense<0.000000e+00> : vector<4x128xf32>
    %1269 = tpu.matmul %1268, %1263, %cst_269 {dimension_numbers = #tpu.dot_dimension_numbers<[1], [0], [0], [1], [0, 0, 1, 1], [], []>} : vector<4x32xbf16>, vector<32x128xbf16>, vector<4x128xf32> -> vector<4x128xf32>
    %1270 = vector.broadcast %1264 : vector<1x128xf32> to vector<4x128xf32>
    %1271 = arith.addf %1269, %1270 : vector<4x128xf32>
    %cst_270 = arith.constant 0.000000e+00 : f32
    %1272 = vector.broadcast %cst_270 : f32 to vector<4x128xf32>
    %1273 = arith.maximumf %1271, %1272 : vector<4x128xf32>
    %1274 = arith.truncf %1273 : vector<4x128xf32> to vector<4x128xbf16>
    %cst_271 = arith.constant dense<0.000000e+00> : vector<4x32xf32>
    %1275 = tpu.matmul %1274, %1266, %cst_271 {dimension_numbers = #tpu.dot_dimension_numbers<[1], [0], [0], [1], [0, 0, 1, 1], [], []>} : vector<4x128xbf16>, vector<128x32xbf16>, vector<4x32xf32> -> vector<4x32xf32>
    %1276 = vector.broadcast %1267 : vector<1x32xf32> to vector<4x32xf32>
    %1277 = arith.addf %1275, %1276 : vector<4x32xf32>
    %1278 = arith.addf %1262, %1277 : vector<4x32xf32>
    %1279 = vector.extract_strided_slice %1137 {offsets = [10, 0], sizes = [1, 32], strides = [1, 1]} : vector<12x128xf32> to vector<1x32xf32>
    %1280 = vector.extract_strided_slice %1137 {offsets = [11, 0], sizes = [1, 32], strides = [1, 1]} : vector<12x128xf32> to vector<1x32xf32>
    %cst_272 = arith.constant dense<0.000000e+00> : vector<4xf32>
    %1281 = vector.multi_reduction <add>, %1278, %cst_272 [1] : vector<4x32xf32> to vector<4xf32>
    %1282 = vector.shape_cast %1281 : vector<4xf32> to vector<4x1xf32>
    %cst_273 = arith.constant 3.200000e+01 : f32
    %1283 = vector.broadcast %cst_273 : f32 to vector<4x1xf32>
    %1284 = arith.divf %1282, %1283 : vector<4x1xf32>
    %1285 = vector.broadcast %1284 : vector<4x1xf32> to vector<4x32xf32>
    %1286 = arith.subf %1278, %1285 : vector<4x32xf32>
    %1287 = arith.mulf %1286, %1286 : vector<4x32xf32>
    %cst_274 = arith.constant dense<0.000000e+00> : vector<4xf32>
    %1288 = vector.multi_reduction <add>, %1287, %cst_274 [1] : vector<4x32xf32> to vector<4xf32>
    %1289 = vector.shape_cast %1288 : vector<4xf32> to vector<4x1xf32>
    %cst_275 = arith.constant 3.200000e+01 : f32
    %1290 = vector.broadcast %cst_275 : f32 to vector<4x1xf32>
    %1291 = arith.divf %1289, %1290 : vector<4x1xf32>
    %cst_276 = arith.constant 9.99999974E-6 : f32
    %1292 = vector.broadcast %cst_276 : f32 to vector<4x1xf32>
    %1293 = arith.addf %1291, %1292 : vector<4x1xf32>
    %1294 = math.rsqrt %1293 : vector<4x1xf32>
    %1295 = vector.broadcast %1294 : vector<4x1xf32> to vector<4x32xf32>
    %1296 = arith.mulf %1286, %1295 : vector<4x32xf32>
    %1297 = vector.broadcast %1279 : vector<1x32xf32> to vector<4x32xf32>
    %1298 = arith.mulf %1296, %1297 : vector<4x32xf32>
    %1299 = vector.broadcast %1280 : vector<1x32xf32> to vector<4x32xf32>
    %1300 = arith.addf %1298, %1299 : vector<4x32xf32>
    %c0_277 = arith.constant 0 : index
    %c0_278 = arith.constant 0 : index
    %1301 = vector.load %arg12[%c0_277, %c0_278] : memref<32x64xbf16, #tpu.memory_space<vmem>>, vector<32x64xbf16>
    %1302 = arith.truncf %1300 : vector<4x32xf32> to vector<4x32xbf16>
    %cst_279 = arith.constant dense<0.000000e+00> : vector<4x64xf32>
    %1303 = tpu.matmul %1302, %1301, %cst_279 {dimension_numbers = #tpu.dot_dimension_numbers<[1], [0], [0], [1], [0, 0, 1, 1], [], []>} : vector<4x32xbf16>, vector<32x64xbf16>, vector<4x64xf32> -> vector<4x64xf32>
    %1304 = vector.extract_strided_slice %0 {offsets = [2, 0], sizes = [1, 64], strides = [1, 1]} : vector<4x64xf32> to vector<1x64xf32>
    %1305 = vector.broadcast %1304 : vector<1x64xf32> to vector<4x64xf32>
    %1306 = arith.addf %1303, %1305 : vector<4x64xf32>
    %cst_280 = arith.constant 0.000000e+00 : f32
    %1307 = vector.broadcast %cst_280 : f32 to vector<4x64xf32>
    %1308 = arith.maximumf %1306, %1307 : vector<4x64xf32>
    %c0_281 = arith.constant 0 : index
    %c0_282 = arith.constant 0 : index
    %1309 = vector.load %arg13[%c0_281, %c0_282] : memref<64x64xbf16, #tpu.memory_space<vmem>>, vector<64x64xbf16>
    %1310 = arith.truncf %1308 : vector<4x64xf32> to vector<4x64xbf16>
    %cst_283 = arith.constant dense<0.000000e+00> : vector<4x64xf32>
    %1311 = tpu.matmul %1310, %1309, %cst_283 {dimension_numbers = #tpu.dot_dimension_numbers<[1], [0], [0], [1], [0, 0, 1, 1], [], []>} : vector<4x64xbf16>, vector<64x64xbf16>, vector<4x64xf32> -> vector<4x64xf32>
    %1312 = vector.extract_strided_slice %0 {offsets = [3, 0], sizes = [1, 64], strides = [1, 1]} : vector<4x64xf32> to vector<1x64xf32>
    %1313 = vector.broadcast %1312 : vector<1x64xf32> to vector<4x64xf32>
    %1314 = arith.addf %1311, %1313 : vector<4x64xf32>
    %1315 = math.tanh %1314 : vector<4x64xf32>
    %1316 = vector.extract_strided_slice %1315 {offsets = [0, 0], sizes = [2, 64], strides = [1, 1]} : vector<4x64xf32> to vector<2x64xf32>
    %1317 = vector.extract_strided_slice %1315 {offsets = [2, 0], sizes = [2, 64], strides = [1, 1]} : vector<4x64xf32> to vector<2x64xf32>
    %1318 = tpu.concatenate %1316, %1317 in 1 : vector<2x64xf32>, vector<2x64xf32> -> vector<2x128xf32>
    %cst_284 = arith.constant 0.000000e+00 : f32
    %1319 = vector.broadcast %cst_284 : f32 to vector<2x96xf32>
    %1320 = tpu.concatenate %296, %1319 in 1 : vector<2x32xf32>, vector<2x96xf32> -> vector<2x128xf32>
    %1321 = tpu.concatenate %1318, %1320 in 1 : vector<2x128xf32>, vector<2x128xf32> -> vector<2x256xf32>
    %c0_285 = arith.constant 0 : index
    %c0_286 = arith.constant 0 : index
    %1322 = vector.load %arg15[%c0_285, %c0_286] : memref<2x256xf32, #tpu.memory_space<vmem>>, vector<2x256xf32>
    tpu.vector_store %arg15[%c0_285, %c0_286], %1321 {strides = array<i32>} : memref<2x256xf32, #tpu.memory_space<vmem>>, vector<2x256xf32>,
    return
  }
  func.func @transform_0(%arg0: i32) -> (i32, i32) {
    %c0_i32 = arith.constant 0 : i32
    %c0_i32_0 = arith.constant 0 : i32
    return %arg0, %c0_i32 : i32, i32
  }
  func.func @transform_1(%arg0: i32) -> (i32, i32) {
    %c0_i32 = arith.constant 0 : i32
    %c0_i32_0 = arith.constant 0 : i32
    %c0_i32_1 = arith.constant 0 : i32
    return %c0_i32, %c0_i32_0 : i32, i32
  }
  func.func @transform_2(%arg0: i32) -> (i32, i32) {
    %c0_i32 = arith.constant 0 : i32
    %c0_i32_0 = arith.constant 0 : i32
    %c0_i32_1 = arith.constant 0 : i32
    return %c0_i32, %c0_i32_0 : i32, i32
  }
  func.func @transform_3(%arg0: i32) -> (i32, i32) {
    %c0_i32 = arith.constant 0 : i32
    %c0_i32_0 = arith.constant 0 : i32
    %c0_i32_1 = arith.constant 0 : i32
    return %c0_i32, %c0_i32_0 : i32, i32
  }
  func.func @transform_4(%arg0: i32) -> (i32, i32) {
    %c0_i32 = arith.constant 0 : i32
    %c0_i32_0 = arith.constant 0 : i32
    %c0_i32_1 = arith.constant 0 : i32
    return %c0_i32, %c0_i32_0 : i32, i32
  }
  func.func @transform_5(%arg0: i32) -> (i32, i32, i32) {
    %c0_i32 = arith.constant 0 : i32
    %c0_i32_0 = arith.constant 0 : i32
    %c0_i32_1 = arith.constant 0 : i32
    %c0_i32_2 = arith.constant 0 : i32
    return %c0_i32, %c0_i32_0, %c0_i32_1 : i32, i32, i32
  }
  func.func @transform_6(%arg0: i32) -> (i32, i32, i32) {
    %c0_i32 = arith.constant 0 : i32
    %c0_i32_0 = arith.constant 0 : i32
    %c0_i32_1 = arith.constant 0 : i32
    %c0_i32_2 = arith.constant 0 : i32
    return %c0_i32, %c0_i32_0, %c0_i32_1 : i32, i32, i32
  }
  func.func @transform_7(%arg0: i32) -> (i32, i32, i32) {
    %c0_i32 = arith.constant 0 : i32
    %c0_i32_0 = arith.constant 0 : i32
    %c0_i32_1 = arith.constant 0 : i32
    %c0_i32_2 = arith.constant 0 : i32
    return %c0_i32, %c0_i32_0, %c0_i32_1 : i32, i32, i32
  }
  func.func @transform_8(%arg0: i32) -> (i32, i32, i32) {
    %c0_i32 = arith.constant 0 : i32
    %c0_i32_0 = arith.constant 0 : i32
    %c0_i32_1 = arith.constant 0 : i32
    %c0_i32_2 = arith.constant 0 : i32
    return %c0_i32, %c0_i32_0, %c0_i32_1 : i32, i32, i32
  }
  func.func @transform_9(%arg0: i32) -> (i32, i32, i32) {
    %c0_i32 = arith.constant 0 : i32
    %c0_i32_0 = arith.constant 0 : i32
    %c0_i32_1 = arith.constant 0 : i32
    %c0_i32_2 = arith.constant 0 : i32
    return %c0_i32, %c0_i32_0, %c0_i32_1 : i32, i32, i32
  }
  func.func @transform_10(%arg0: i32) -> (i32, i32, i32) {
    %c0_i32 = arith.constant 0 : i32
    %c0_i32_0 = arith.constant 0 : i32
    %c0_i32_1 = arith.constant 0 : i32
    %c0_i32_2 = arith.constant 0 : i32
    return %c0_i32, %c0_i32_0, %c0_i32_1 : i32, i32, i32
  }
  func.func @transform_11(%arg0: i32) -> (i32, i32) {
    %c0_i32 = arith.constant 0 : i32
    %c0_i32_0 = arith.constant 0 : i32
    %c0_i32_1 = arith.constant 0 : i32
    return %c0_i32, %c0_i32_0 : i32, i32
  }
  func.func @transform_12(%arg0: i32) -> (i32, i32) {
    %c0_i32 = arith.constant 0 : i32
    %c0_i32_0 = arith.constant 0 : i32
    %c0_i32_1 = arith.constant 0 : i32
    return %c0_i32, %c0_i32_0 : i32, i32
  }
  func.func @transform_13(%arg0: i32) -> (i32, i32) {
    %c0_i32 = arith.constant 0 : i32
    %c0_i32_0 = arith.constant 0 : i32
    %c0_i32_1 = arith.constant 0 : i32
    return %c0_i32, %c0_i32_0 : i32, i32
  }
  func.func @transform_14(%arg0: i32) -> (i32, i32) {
    %c0_i32 = arith.constant 0 : i32
    %c0_i32_0 = arith.constant 0 : i32
    return %arg0, %c0_i32 : i32, i32
  }
}

</mosaic_0001>

<bundles_post_ra>
// kernel: _lambda_.1
= control target key start
LH: loop header
LB: loop body
LE: loop exit
PB: predicated region body
PF: predicated region fallthrough
CT: control target
= control target key end

     0   :  { %vm156_vm0 = vcmask 523264   ;;  %vm207_vm1 = vcmask 261120   ;;  %s6289_s25 = smov 104   ;;  %s6290_s26 = smov 120   ;;  %vm260_vm2 = vcmask 64512   ;;  %vm362_vm3 = vcmask 80896   ;;  %s8055_s4 = inlined_call_operand.vmem [shape: bf16[192,32], index: 4, kind: input, shape index: {}]   ;;  %s8056_s0 = inlined_call_operand.vmem [shape: f32[10,192], index: 0, kind: input, shape index: {}]   ;;  %s8057_s5 = inlined_call_operand.vmem [shape: bf16[2,32,256], index: 5, kind: input, shape index: {}]   ;;  %s8058_s1 = inlined_call_operand.vmem [shape: f32[14,32], index: 1, kind: input, shape index: {}]   ;;  %s8059_s7 = inlined_call_operand.vmem [shape: f32[2,8,128], index: 7, kind: input, shape index: {}]   ;;  %s8060_s2 = inlined_call_operand.vmem [shape: f32[10,10], index: 2, kind: input, shape index: {}]   ;;  %s8061_s6 = inlined_call_operand.vmem [shape: bf16[2,128,32], index: 6, kind: input, shape index: {}]   ;;  %s8062_s8 = inlined_call_operand.vmem [shape: bf16[6,32,320], index: 8, kind: input, shape index: {}]   ;;  %s8063_s10 = inlined_call_operand.vmem [shape: f32[6,12,128], index: 10, kind: input, shape index: {}]   ;;  %s8064_s3 = inlined_call_operand.vmem [shape: f32[4,4], index: 3, kind: input, shape index: {}]   ;;  %s8065_s13 = inlined_call_operand.vmem [shape: f32[4,64], index: 13, kind: input, shape index: {}]   ;;  %s8066_s9 = inlined_call_operand.vmem [shape: bf16[6,128,32], index: 9, kind: input, shape index: {}]   ;;  %s8067_s11 = inlined_call_operand.vmem [shape: bf16[32,64], index: 11, kind: input, shape index: {}]   ;;  %s8068_s12 = inlined_call_operand.vmem [shape: bf16[64,64], index: 12, kind: input, shape index: {}]   ;;  %s8069_s14 = inlined_call_operand.vmem [shape: f32[2,256], index: 14, kind: output, shape index: {}]  }
   0x1   :  { %v5878_v0 = vld [vmem:[%s8055_s4 + $0x38] sm:$0xff]  ;;  %v5877_v2 = vld [vmem:[%s8055_s4 + $0x30] sm:$0xff]  ;;  %v5876_v4 = vld [vmem:[%s8055_s4 + $0x28] sm:$0xff]  ;;  %s6291_s27 = smov 112   ;;  %s6292_s28 = smov 96   ;;  %vm366_vm4 = vcmask 74752  }
   0x2   :  { %v5882_v1 = vld [vmem:[%s8055_s4 + $0x58] sm:$0xff]  ;;  %160 = vmatpush.bf16.msra.mxu0 %v5878_v0  ;;  %v5881_v3 = vld [vmem:[%s8055_s4 + $0x50] sm:$0xff]  ;;  %v5880_v5 = vld [vmem:[%s8055_s4 + $0x48] sm:$0xff]  ;;  %vm470_vm5 = vcmask 1044480   ;;  %s6295_s17 = smov 16   ;;  %s6297_s18 = smov 24  }
   0x3   :  { %178 = vmatpush.bf16.msra.mxu1 %v5882_v1  ;;  %v5875_v6 = vld [vmem:[%s8055_s4 + $0x20] sm:$0xff]  ;;  %v55_v8 = vld [vmem:[%s8056_s0 + $0x8] sm:$0xff]  ;;  %v57_v9 = vld [vmem:[%s8056_s0 + $0x18] sm:$0x3]  ;;  %vm595_vm6 = vcmask 130048   ;;  %vm598_vm7 = vcmask 195584  }
   0x4   :  { %v5879_v7 = vld [vmem:[%s8055_s4 + $0x40] sm:$0xff]  ;;  %v5874_v10 = vld [vmem:[%s8055_s4 + $0x18] sm:$0xff]  ;;  %v83_v11 = vpack.c.bf16 %v57_v9, %v55_v8  ;;  %v5873_v12 = vld [vmem:[%s8055_s4 + $0x10] sm:$0xff]  ;;  %vm631_vm8 = vcmask 254976  }
   0x5   :  { %v5872_v13 = vld [vmem:[%s8055_s4 + $0x8] sm:$0xff]  ;;  %v5871_v14 = vld [vmem:[%s8055_s4] sm:$0xff]  ;;  %v56_v16 = vld [vmem:[%s8056_s0 + $0x10] sm:$0x3]  ;;  %s6294_s4 = smov 32  }
   0x6   :  { %161 = vmatpush.bf16.msra.mxu0 %v5877_v2  ;;  %v54_v15 = vld [vmem:[%s8056_s0] sm:$0xff]  ;;  %v5168_v18 = vld [vmem:[%s8057_s5 + $0x10] sm:$0xf]  ;;  %v5886_v19 = vld [vmem:[%s8057_s5 + $0x14] sm:$0xf0]  ;;  %s6296_s0 = smov 8  }
   0x7   :  { %179 = vmatpush.bf16.msra.mxu1 %v5881_v3  ;;  %v82_v17 = vpack.c.bf16 %v56_v16, %v54_v15  ;;  %v6429_v20 = vor.u32 %v5886_v19, %v5168_v18  ;;  %v5164_v21 = vld [vmem:[%s8057_s5] sm:$0xf]  ;;  %v5884_v22 = vld [vmem:[%s8057_s5 + $0x4] sm:$0xf0] }
   0x8   :  { %v6438_v23 = vor.u32 %v5884_v22, %v5164_v21  ;;  %v49_v26 = vld [vmem:[%s8058_s1] sm:$0xff]  ;;  %v50_v27 = vld [vmem:[%s8058_s1 + $0x8] sm:$0x3f] }
   0x9   :  { %217 = vmatpush.bf16.msra.mxu2 %v6429_v20  ;;  %v6457_v36 = vld [vmem:[%s8059_s7] sm:$0xff] }
   0xa   :  { %162 = vmatpush.bf16.msra.mxu0 %v5876_v4  ;;  %v194_v37 = vperm.slane %v6457_v36, 0  ;;  %v6494_v16 = vld [vmem:[%s8060_s2] sm:$0xff] }
   0xb   :  { %180 = vmatpush.bf16.msra.mxu1 %v5880_v5 }
   0xd   :  { %218 = vmatpush.bf16.msra.mxu2 %v6438_v23 }
   0xe   :  { %163 = vmatpush.bf16.msra.mxu0 %v5875_v6 }
   0xf   :  { %181 = vmatpush.bf16.msra.mxu1 %v5879_v7 }
  0x12   :  { %164 = vmatpush.bf16.msra.mxu0 %v5874_v10  ;;  %5161 = vmatmul.msk.bf16.vlgmr.msra.gmra.mxu1 %vm156_vm0, %v83_v11 }
  0x16   :  { %165 = vmatpush.bf16.msra.mxu0 %v5873_v12 }
  0x1a   :  { %166 = vmatpush.bf16.msra.mxu0 %v5872_v13 }
  0x1e   :  { %167 = vmatpush.bf16.msra.mxu0 %v5871_v14 }
  0x21   :  { %168 = vmatmul.bf16.vlgmr.msra.gmra.mxu0 %v82_v17 }
  0x8f   :  { %v183_v24 = vpop.f32.mrf.mxu1 }
  0x97   :  { %v185_v31 = vpop.f32.mrf.mxu1 }
  0x9e   :  { %v169_v25 = vpop.f32.mrf.mxu0 }
  0x9f   :  { %v170_v28 = vadd.f32 %v169_v25, %v49_v26 }
  0xa1   :  { %v6447_v32 = vadd.f32 %v183_v24, %v170_v28 }
  0xa6   :  { %v171_v29 = vpop.f32.mrf.mxu0 }
  0xa7   :  { %v172_v30 = vadd.f32 %v171_v29, %v50_v27 }
  0xa9   :  { %v6449_v33 = vadd.f32 %v185_v31, %v172_v30  ;;  %v6510_v31 = vld [vmem:[%s8060_s2 + $0x8] sm:$0x3]  ;;  %s6293_s2 = smov 64  }
  0xab   :  { %v193_v34 = vpack.c.bf16 %v6449_v33, %v6447_v32 }
  0xad   :  { %5170 = vmatmul.msk.bf16.vlgmr.msra.gmra.mxu2 %vm207_vm1, %v193_v34 }
 0x130   :  { %v220_v35 = vpop.f32.mrf.mxu2 }
 0x131   :  { %v221_v39 = vadd.f32 %v220_v35, %v194_v37 }
 0x133   :  { %v245_v43 = vpack.c.bf16 %v221_v39, %v221_v39 }
 0x135   :  { %v255_v45 = vunpack.c.l.b16 %v245_v43 }
 0x138   :  { %v222_v38 = vpop.f32.mrf.mxu2 }
 0x139   :  { %v223_v40 = vadd.f32 %v222_v38, %v194_v37 }
 0x13b   :  { %v6017_v41 = vpack.i.bf16 %v223_v40, %v221_v39  ;;  %v246_v42 = vpack.c.bf16 %v223_v40, %v223_v40 }
 0x13d   :  { %6018 = vrot.lane.b32.xlu1 %v6017_v41, %s6289_s25  ;;  %6008 = vrot.lane.b32.xlu0 %v6017_v41, %s6290_s26  ;;  %v256_v44 = vunpack.c.l.b16 %v246_v42 }
 0x13f   :  { %v6462_v46 = vpack.c.b16 %v256_v44, %v255_v45 }
 0x145   :  { %6013 = vrot.lane.b32.xlu0 %v6017_v41, %s6291_s27  ;;  %258 = vrot.lane.b32.xlu1 %v6462_v46, %s6292_s28 }
 0x1af   :  { %v6019_v47 = vpop.permute.xlu1 %6018  ;;  %v6009_v48 = vpop.permute.xlu0 %6008 }
 0x1b0   :  { %v6021_v49 = vunpack.i.h.bf16 %v6019_v47  ;;  %v6020_v50 = vunpack.i.l.bf16 %v6019_v47  ;;  %v6011_v51 = vunpack.i.h.bf16 %v6009_v48  ;;  %v6010_v52 = vunpack.i.l.bf16 %v6009_v48 }
 0x1b2   :  { %v252_v53 = vpack.c.bf16 %v6021_v49, %v6021_v49  ;;  %v251_v54 = vpack.c.bf16 %v6020_v50, %v6020_v50  ;;  %v248_v55 = vpack.c.bf16 %v6011_v51, %v6011_v51  ;;  %v247_v56 = vpack.c.bf16 %v6010_v52, %v6010_v52 }
 0x1b4   :  { %v338_v57 = vunpack.c.l.b16 %v252_v53  ;;  %v337_v58 = vunpack.c.l.b16 %v251_v54  ;;  %v284_v59 = vunpack.c.l.b16 %v248_v55  ;;  %v283_v60 = vunpack.c.l.b16 %v247_v56 }
 0x1b6   :  { %v6467_v61 = vpack.c.b16 %v338_v57, %v337_v58  ;;  %v6469_v62 = vpack.c.b16 %v284_v59, %v283_v60 }
 0x1b7   :  { %v6014_v63 = vpop.permute.xlu0 %6013  ;;  %v259_v0 = vpop.permute.xlu1 %258 }
 0x1b8   :  { %v6016_v1 = vunpack.i.h.bf16 %v6014_v63  ;;  %v6015_v2 = vunpack.i.l.bf16 %v6014_v63  ;;  %340 = vrot.lane.b32.xlu0 %v6467_v61, %s6292_s28  ;;  %286 = vrot.lane.b32.xlu2 %v6469_v62, %s6292_s28  ;;  %v265_v3 = vsel %vm260_vm2, %v259_v0, 0 }
 0x1b9   :  { %274 = vmatpush.bf16.xpose.msra.mxu3 %v265_v3 }
 0x1ba   :  { %v250_v4 = vpack.c.bf16 %v6016_v1, %v6016_v1  ;;  %v249_v5 = vpack.c.bf16 %v6015_v2, %v6015_v2 }
 0x1bc   :  { %v311_v6 = vunpack.c.l.b16 %v250_v4  ;;  %v310_v7 = vunpack.c.l.b16 %v249_v5 }
 0x1be   :  { %v6476_v8 = vpack.c.b16 %v311_v6, %v310_v7 }
 0x1c0   :  { %313 = vrot.lane.b32.xlu2 %v6476_v8, %s6292_s28  ;;  %5171 = vmatmul.msk.bf16.vlgmr.msra.gmra.mxu3 %vm260_vm2, %v6462_v46 }
 0x212   :  { %v287_v9 = vpop.permute.xlu2 %286 }
 0x213   :  { %v292_v10 = vsel %vm260_vm2, %v287_v9, 0 }
 0x214   :  { %301 = vmatpush.bf16.xpose.msrb.mxu2 %v292_v10 }
 0x21a   :  { %v314_v11 = vpop.permute.xlu2 %313 }
 0x21b   :  { %5172 = vmatmul.msk.bf16.vlgmr.msrb.gmra.mxu2 %vm260_vm2, %v6469_v62  ;;  %v319_v12 = vsel %vm260_vm2, %v314_v11, 0 }
 0x21c   :  { %328 = vmatpush.bf16.xpose.msrb.mxu3 %v319_v12 }
 0x223   :  { %5173 = vmatmul.msk.bf16.vlgmr.msrb.gmra.mxu3 %vm260_vm2, %v6476_v8 }
 0x22a   :  { %v341_v13 = vpop.permute.xlu0 %340 }
 0x22b   :  { %v346_v14 = vsel %vm260_vm2, %v341_v13, 0 }
 0x22c   :  { %355 = vmatpush.bf16.xpose.msrb.mxu1 %v346_v14 }
 0x233   :  { %5174 = vmatmul.msk.bf16.vlgmr.msrb.gmra.mxu1 %vm260_vm2, %v6467_v61 }
 0x243   :  { %v276_v15 = vpop.f32.mrf.mxu3 }
 0x244   :  { %v6501_v26 = vadd.f32 %v276_v15, %v6494_v16 }
 0x246   :  { %v363_v29 = vsel %vm362_vm3, %v6501_v26, -inf }
 0x24b   :  { %v278_v17 = vpop.f32.mrf.mxu3 }
 0x24c   :  { %v6513_v34 = vadd.f32 %v278_v17, %v6510_v31 }
 0x24e   :  { %v367_v39 = vsel %vm366_vm4, %v6513_v34, -inf }
 0x29e   :  { %v303_v18 = vpop.f32.mrf.mxu2 }
 0x29f   :  { %v304_v19 = vadd.f32 %v303_v18, %v6494_v16 }
 0x2a1   :  { %v370_v21 = vsel %vm362_vm3, %v304_v19, -inf }
 0x2a2   :  { %371 = vmax.xlane.f32.xlu1 %v370_v21 }
 0x2a6   :  { %v330_v22 = vpop.f32.mrf.mxu3  ;;  %v305_v40 = vpop.f32.mrf.mxu2 }
 0x2a7   :  { %v331_v24 = vadd.f32 %v330_v22, %v6494_v16  ;;  %v306_v41 = vadd.f32 %v305_v40, %v6510_v31 }
 0x2a9   :  { %v376_v25 = vsel %vm362_vm3, %v331_v24, -inf  ;;  %v373_v42 = vsel %vm366_vm4, %v306_v41, -inf }
 0x2aa   :  { %377 = vmax.xlane.f32.xlu0 %v376_v25 }
 0x2ae   :  { %v332_v43 = vpop.f32.mrf.mxu3 }
 0x2af   :  { %v333_v44 = vadd.f32 %v332_v43, %v6510_v31 }
 0x2b0   :  { %v357_v27 = vpop.f32.mrf.mxu1 }
 0x2b1   :  { %v358_v28 = vadd.f32 %v357_v27, %v6494_v16  ;;  %v379_v45 = vsel %vm366_vm4, %v333_v44, -inf }
 0x2b2   :  { %364 = vmax.xlane.f32.xlu0 %v363_v29 }
 0x2b3   :  { %v382_v30 = vsel %vm362_vm3, %v358_v28, -inf }
 0x2b4   :  { %383 = vmax.xlane.f32.xlu1 %v382_v30 }
 0x2b8   :  { %v359_v35 = vpop.f32.mrf.mxu1 }
 0x2b9   :  { %v360_v37 = vadd.f32 %v359_v35, %v6510_v31 }
 0x2bb   :  { %v385_v38 = vsel %vm366_vm4, %v360_v37, -inf }
 0x2bc   :  { %386 = vmax.xlane.f32.xlu2 %v385_v38  ;;  %368 = vmax.xlane.f32.xlu1 %v367_v39 }
 0x2c4   :  { %374 = vmax.xlane.f32.xlu2 %v373_v42 }
 0x2cc   :  { %380 = vmax.xlane.f32.xlu2 %v379_v45 }
 0x315   :  { %v372_v47 = vpop.xlane.xlu1 %371 }
 0x316   :  { %v390_v48 = vsub.f32 %v304_v19, %v372_v47 }
 0x318   :  { %v400_v49 = vmul.f32 1.442695, %v390_v48 }
 0x31a   :  { %6067 = vpow2.f32 %v400_v49 }
 0x31d   :  { %v378_v50 = vpop.xlane.xlu0 %377 }
 0x31e   :  { %v392_v51 = vsub.f32 %v331_v24, %v378_v50 }
 0x320   :  { %v6523_v52 = vpop.eup %6067  ;;  %v404_v53 = vmul.f32 1.442695, %v392_v51 }
 0x321   :  { %v418_v54 = vsel %vm362_vm3, %v6523_v52, 0.0 }
 0x322   :  { %6069 = vpow2.f32 %v404_v53  ;;  %419 = vadd.xlane.f32.xlu2 %v418_v54 }
 0x325   :  { %v365_v17 = vpop.xlane.xlu0 %364 }
 0x326   :  { %v388_v18 = vsub.f32 %v6501_v26, %v365_v17 }
 0x327   :  { %v384_v55 = vpop.xlane.xlu1 %383 }
 0x328   :  { %v6527_v56 = vpop.eup %6069  ;;  %v394_v57 = vsub.f32 %v358_v28, %v384_v55  ;;  %v396_v19 = vmul.f32 1.442695, %v388_v18 }
 0x329   :  { %v424_v58 = vsel %vm362_vm3, %v6527_v56, 0.0 }
 0x32a   :  { %v408_v59 = vmul.f32 1.442695, %v394_v57  ;;  %425 = vadd.xlane.f32.xlu1 %v424_v58 }
 0x32c   :  { %6071 = vpow2.f32 %v408_v59 }
 0x32f   :  { %v387_v60 = vpop.xlane.xlu2 %386  ;;  %v369_v21 = vpop.xlane.xlu1 %368 }
 0x330   :  { %v395_v63 = vsub.f32 %v360_v37, %v387_v60  ;;  %v389_v22 = vsub.f32 %v6513_v34, %v369_v21 }
 0x332   :  { %v6072_v0 = vpop.eup %6071  ;;  %v410_v1 = vmul.f32 1.442695, %v395_v63 }
 0x333   :  { %v430_v2 = vsel %vm362_vm3, %v6072_v0, 0.0 }
 0x334   :  { %6073 = vpow2.f32 %v410_v1  ;;  %431 = vadd.xlane.f32.xlu0 %v430_v2 }
 0x337   :  { %v375_v3 = vpop.xlane.xlu2 %374 }
 0x338   :  { %v391_v4 = vsub.f32 %v306_v41, %v375_v3 }
 0x33a   :  { %v6074_v5 = vpop.eup %6073  ;;  %v402_v6 = vmul.f32 1.442695, %v391_v4 }
 0x33b   :  { %v433_v7 = vsel %vm366_vm4, %v6074_v5, 0.0 }
 0x33c   :  { %6075 = vpow2.f32 %v402_v6  ;;  %434 = vadd.xlane.f32.xlu1 %v433_v7 }
 0x33f   :  { %v381_v9 = vpop.xlane.xlu2 %380 }
 0x340   :  { %v393_v10 = vsub.f32 %v333_v44, %v381_v9 }
 0x342   :  { %v6076_v11 = vpop.eup %6075  ;;  %v406_v12 = vmul.f32 1.442695, %v393_v10 }
 0x343   :  { %v421_v13 = vsel %vm366_vm4, %v6076_v11, 0.0 }
 0x344   :  { %6077 = vpow2.f32 %v406_v12  ;;  %422 = vadd.xlane.f32.xlu0 %v421_v13 }
 0x345   :  { %6079 = vpow2.f32 %v396_v19 }
 0x34a   :  { %v6078_v14 = vpop.eup %6077 }
 0x34b   :  { %v427_v15 = vsel %vm366_vm4, %v6078_v14, 0.0  ;;  %v6545_v24 = vpop.eup %6079 }
 0x34c   :  { %428 = vadd.xlane.f32.xlu2 %v427_v15 }
 0x355   :  { %547 = vrot.lane.b32.xlu1 %v6467_v61, %s6293_s2  ;;  %v398_v61 = vmul.f32 1.442695, %v389_v22 }
 0x357   :  { %6081 = vpow2.f32 %v398_v61 }
 0x358   :  { %520 = vrot.lane.b32.xlu0 %v6476_v8, %s6293_s2  ;;  %v412_v8 = vsel %vm362_vm3, %v6545_v24, 0.0 }
 0x35d   :  { %465 = vrot.lane.b32.xlu1 %v6462_v46, %s6293_s2  ;;  %v6549_v46 = vpop.eup %6081 }
 0x364   :  { %493 = vrot.lane.b32.xlu2 %v6469_v62, %s6293_s2  ;;  %v415_v62 = vsel %vm366_vm4, %v6549_v46, 0.0 }
 0x365   :  { %605 = vrot.lane.b32.xlu1 %v6429_v20, %s6294_s4 }
 0x382   :  { %413 = vadd.xlane.f32.xlu0 %v412_v8 }
 0x38d   :  { %416 = vadd.xlane.f32.xlu2 %v415_v62 }
 0x395   :  { %v420_v27 = vpop.xlane.xlu2 %419 }
 0x396   :  { %6083 = vrcp.f32 %v420_v27  ;;  %603 = vrot.lane.b32.xlu0 %v6438_v23, %s6294_s4 }
 0x39c   :  { %v6084_v30 = vpop.eup %6083 }
 0x39d   :  { %v426_v25 = vpop.xlane.xlu1 %425  ;;  %v446_v42 = vmul.f32 %v6084_v30, %v6523_v52 }
 0x39f   :  { %v454_v48 = vpack.c.bf16 %v446_v42, %v446_v42 }
 0x3a1   :  { %v490_v59 = vunpack.c.l.b16 %v454_v48 }
 0x3a7   :  { %v432_v26 = vpop.xlane.xlu0 %431 }
 0x3af   :  { %v435_v28 = vpop.xlane.xlu1 %434 }
 0x3b0   :  { %6085 = vrcp.f32 %v435_v28 }
 0x3b1   :  { %6087 = vrcp.f32 %v432_v26 }
 0x3b6   :  { %v6086_v34 = vpop.eup %6085 }
 0x3b7   :  { %v423_v29 = vpop.xlane.xlu0 %422  ;;  %v6088_v35 = vpop.eup %6087  ;;  %v451_v38 = vmul.f32 %v6086_v34, %v6074_v5 }
 0x3b8   :  { %6089 = vrcp.f32 %v423_v29  ;;  %v450_v43 = vmul.f32 %v6088_v35, %v6072_v0 }
 0x3b9   :  { %6091 = vrcp.f32 %v426_v25  ;;  %v459_v47 = vpack.c.bf16 %v451_v38, %v451_v38 }
 0x3ba   :  { %v458_v49 = vpack.c.bf16 %v450_v43, %v450_v43 }
 0x3bb   :  { %v545_v54 = vunpack.c.l.b16 %v459_v47 }
 0x3bc   :  { %v544_v63 = vunpack.c.l.b16 %v458_v49 }
 0x3be   :  { %v6090_v37 = vpop.eup %6089  ;;  %v546_v2 = vpack.c.b16 %v545_v54, %v544_v63 }
 0x3bf   :  { %v447_v39 = vmul.f32 %v6090_v37, %v6076_v11  ;;  %v429_v40 = vpop.xlane.xlu2 %428  ;;  %v6092_v41 = vpop.eup %6091 }
 0x3c0   :  { %6093 = vrcp.f32 %v429_v40  ;;  %v448_v45 = vmul.f32 %v6092_v41, %v6527_v56 }
 0x3c1   :  { %v455_v44 = vpack.c.bf16 %v447_v39, %v447_v39 }
 0x3c2   :  { %v456_v53 = vpack.c.bf16 %v448_v45, %v448_v45 }
 0x3c3   :  { %v491_v51 = vunpack.c.l.b16 %v455_v44 }
 0x3c4   :  { %v517_v4 = vunpack.c.l.b16 %v456_v53  ;;  %v602_v53 = vperm.slane %v6457_v36, 1 }
 0x3c5   :  { %v492_v56 = vpack.c.b16 %v491_v51, %v490_v59 }
 0x3c6   :  { %v6094_v50 = vpop.eup %6093 }
 0x3c7   :  { %v449_v55 = vmul.f32 %v6094_v50, %v6078_v14  ;;  %v494_v57 = vpop.permute.xlu2 %493  ;;  %v548_v58 = vpop.permute.xlu1 %547 }
 0x3c8   :  { %v499_v60 = vsel %vm470_vm5, %v494_v57, 0  ;;  %v553_v52 = vsel %vm470_vm5, %v548_v58, 0 }
 0x3c9   :  { %v457_v0 = vpack.c.bf16 %v449_v55, %v449_v55  ;;  %508 = vmatpush.bf16.msra.mxu3 %v499_v60  ;;  %562 = vmatpush.bf16.msra.mxu1 %v553_v52 }
 0x3ca   :  { %v521_v1 = vpop.permute.xlu0 %520 }
 0x3cb   :  { %v526_v3 = vsel %vm470_vm5, %v521_v1, 0  ;;  %v518_v5 = vunpack.c.l.b16 %v457_v0  ;;  %v6298_v0 = vmov 32.0  }
 0x3cc   :  { %5176 = vmatmul.msk.bf16.vlgmr.msra.gmra.mxu3 %vm362_vm3, %v492_v56  ;;  %535 = vmatpush.bf16.msrb.mxu0 %v526_v3 }
 0x3cd   :  { %5178 = vmatmul.msk.bf16.vlgmr.msra.gmra.mxu1 %vm362_vm3, %v546_v2  ;;  %v519_v6 = vpack.c.b16 %v518_v5, %v517_v4 }
 0x3cf   :  { %5177 = vmatmul.msk.bf16.vlgmr.msrb.gmra.mxu0 %vm362_vm3, %v519_v6  ;;  %v466_v7 = vpop.permute.xlu1 %465 }
 0x3d0   :  { %v472_v9 = vsel %vm470_vm5, %v466_v7, 0 }
 0x3d1   :  { %481 = vmatpush.bf16.msra.mxu2 %v472_v9 }
 0x3d7   :  { %v606_v27 = vpop.permute.xlu1 %605 }
 0x3d8   :  { %618 = vmatpush.bf16.msrb.mxu2 %v606_v27 }
 0x3f5   :  { %v414_v10 = vpop.xlane.xlu0 %413 }
 0x3f6   :  { %6095 = vrcp.f32 %v414_v10 }
 0x3fc   :  { %v6096_v12 = vpop.eup %6095 }
 0x3fd   :  { %v444_v13 = vmul.f32 %v6096_v12, %v6545_v24 }
 0x3ff   :  { %v452_v15 = vpack.c.bf16 %v444_v13, %v444_v13 }
 0x400   :  { %v417_v11 = vpop.xlane.xlu2 %416 }
 0x401   :  { %6097 = vrcp.f32 %v417_v11  ;;  %v462_v18 = vunpack.c.l.b16 %v452_v15  ;;  %v5885_v15 = vld [vmem:[%s8057_s5 + $0x14] sm:$0xf] }
 0x402   :  { %6099 = vrcp.f32 %v6298_v0  ;;  %v703_v0 = vperm.slane %v6457_v36, 2 }
 0x407   :  { %v6098_v14 = vpop.eup %6097 }
 0x408   :  { %v445_v20 = vmul.f32 %v6098_v14, %v6549_v46  ;;  %v604_v28 = vpop.permute.xlu0 %603  ;;  %v6100_v56 = vpop.eup %6099 }
 0x409   :  { %619 = vmatpush.bf16.msrb.mxu2 %v604_v28  ;;  %v636_v1 = vmul.f32 32.0, %v6100_v56  ;;  %vm640_vm9 = vweird.f32 %v6100_v56  ;;  %v5892_v28 = vld [vmem:[%s8061_s6 + $0x28] sm:$0xff] }
 0x40a   :  { %v453_v17 = vpack.c.bf16 %v445_v20, %v445_v20  ;;  %v5184_v20 = vld [vmem:[%s8057_s5 + $0x18] sm:$0xf0] }
 0x40b   :  { %v637_v2 = vsub.f32 1.0, %v636_v1 }
 0x40c   :  { %v463_v23 = vunpack.c.l.b16 %v453_v17  ;;  %v5187_v17 = vor.u32 %v5885_v15, %v5184_v20 }
 0x40d   :  { %v638_v3 = vmul.f32 %v6100_v56, %v637_v2 }
 0x40e   :  { %v464_v19 = vpack.c.b16 %v463_v23, %v462_v18  ;;  %721 = vmatpush.bf16.msrb.mxu3 %v5187_v17 }
 0x40f   :  { %v639_v4 = vadd.f32 %v6100_v56, %v638_v3 }
 0x410   :  { %5175 = vmatmul.msk.bf16.vlgmr.msra.gmra.mxu2 %vm362_vm3, %v464_v19  ;;  %v5883_v19 = vld [vmem:[%s8057_s5 + $0x4] sm:$0xf] }
 0x44a   :  { %v564_v62 = vpop.f32.mrf.mxu1 }
 0x44c   :  { %v537_v21 = vpop.f32.mrf.mxu0 }
 0x44f   :  { %v510_v22 = vpop.f32.mrf.mxu3 }
 0x452   :  { %v566_v46 = vpop.f32.mrf.mxu1 }
 0x453   :  { %v6032_v26 = vpack.i.bf16 %v566_v46, %v564_v62 }
 0x454   :  { %v539_v61 = vpop.f32.mrf.mxu0 }
 0x455   :  { %v6022_v8 = vpack.i.bf16 %v539_v61, %v537_v21  ;;  %v5180_v21 = vld [vmem:[%s8057_s5 + $0x8] sm:$0xf0] }
 0x457   :  { %6023 = vrot.lane.b32.xlu1 %v6022_v8, %s6295_s17  ;;  %v512_v25 = vpop.f32.mrf.mxu3  ;;  %v5894_v8 = vld [vmem:[%s8061_s6 + $0x38] sm:$0xff] }
 0x458   :  { %v6027_v24 = vpack.i.bf16 %v512_v25, %v510_v22  ;;  %v5183_v22 = vor.u32 %v5883_v19, %v5180_v21  ;;  %781 = vmatpush.bf16.msra.mxu0 %v5894_v8 }
 0x45a   :  { %722 = vmatpush.bf16.msrb.mxu3 %v5183_v22 }
 0x45f   :  { %6028 = vrot.lane.b32.xlu1 %v6027_v24, %s6296_s0  ;;  %v5893_v24 = vld [vmem:[%s8061_s6 + $0x30] sm:$0xff] }
 0x460   :  { %782 = vmatpush.bf16.msra.mxu0 %v5893_v24 }
 0x464   :  { %783 = vmatpush.bf16.msra.mxu0 %v5892_v28  ;;  %v5896_v28 = vld [vmem:[%s8057_s5 + $0x24] sm:$0xf0] }
 0x467   :  { %6033 = vrot.lane.b32.xlu1 %v6032_v26, %s6297_s18 }
 0x493   :  { %v483_v30 = vpop.f32.mrf.mxu2 }
 0x49b   :  { %v485_v38 = vpop.f32.mrf.mxu2 }
 0x4c9   :  { %v6024_v29 = vpop.permute.xlu1 %6023 }
 0x4ca   :  { %v6026_v41 = vunpack.i.h.bf16 %v6024_v29  ;;  %v6025_v42 = vunpack.i.l.bf16 %v6024_v29 }
 0x4d1   :  { %v6029_v34 = vpop.permute.xlu1 %6028 }
 0x4d2   :  { %v6031_v35 = vunpack.i.h.bf16 %v6029_v34  ;;  %v6030_v37 = vunpack.i.l.bf16 %v6029_v34  ;;  %v5891_v34 = vld [vmem:[%s8061_s6 + $0x20] sm:$0xff] }
 0x4d3   :  { %784 = vmatpush.bf16.msra.mxu0 %v5891_v34 }
 0x4d4   :  { %v594_v39 = vsel %vm260_vm2, %v485_v38, %v6031_v35  ;;  %v593_v40 = vsel %vm260_vm2, %v483_v30, %v6030_v37 }
 0x4d5   :  { %v596_v47 = vsel %vm595_vm6, %v593_v40, %v6025_v42  ;;  %v597_v48 = vsel %vm595_vm6, %v594_v39, %v6026_v41 }
 0x4d9   :  { %v6034_v43 = vpop.permute.xlu1 %6033 }
 0x4da   :  { %v6036_v44 = vunpack.i.h.bf16 %v6034_v43  ;;  %v6035_v45 = vunpack.i.l.bf16 %v6034_v43 }
 0x4dc   :  { %v599_v49 = vsel %vm598_vm7, %v596_v47, %v6035_v45  ;;  %v600_v50 = vsel %vm598_vm7, %v597_v48, %v6036_v44  ;;  %v680_v44 = vperm.slane %v6457_v36, 4 }
 0x4dd   :  { %v601_v51 = vpack.c.bf16 %v600_v50, %v599_v49 }
 0x4df   :  { %5179 = vmatmul.msk.bf16.vlgmr.msrb.gmra.mxu2 %vm207_vm1, %v601_v51  ;;  %v683_v51 = vperm.slane %v6457_v36, 5 }
 0x562   :  { %v621_v54 = vpop.f32.mrf.mxu2 }
 0x563   :  { %v622_v55 = vadd.f32 %v621_v54, %v602_v53 }
 0x565   :  { %v626_v57 = vadd.f32 %v622_v55, %v6447_v32  ;;  %v6584_v32 = vsel %vm640_vm9, %v6100_v56, %v639_v4 }
 0x567   :  { %v628_v58 = vsel %vm207_vm1, %v626_v57, 0.0 }
 0x568   :  { %629 = vadd.xlane.f32.xlu2 %v628_v58  ;;  %v5890_v58 = vld [vmem:[%s8061_s6 + $0x18] sm:$0xff] }
 0x569   :  { %785 = vmatpush.bf16.msra.mxu0 %v5890_v58 }
 0x56a   :  { %v623_v59 = vpop.f32.mrf.mxu2 }
 0x56b   :  { %v624_v60 = vadd.f32 %v623_v59, %v602_v53  ;;  %v5889_v59 = vld [vmem:[%s8061_s6 + $0x10] sm:$0xff] }
 0x56d   :  { %v627_v52 = vadd.f32 %v624_v60, %v6449_v33  ;;  %786 = vmatpush.bf16.msra.mxu0 %v5889_v59  ;;  %v5888_v60 = vld [vmem:[%s8061_s6 + $0x8] sm:$0xff]  ;;  %v844_v59 = vperm.slane %v6457_v36, 7 }
 0x56f   :  { %v632_v63 = vsel %vm631_vm8, %v627_v52, 0.0 }
 0x570   :  { %633 = vadd.xlane.f32.xlu1 %v632_v63 }
 0x571   :  { %787 = vmatpush.bf16.msra.mxu0 %v5888_v60 }
 0x5db   :  { %v630_v5 = vpop.xlane.xlu2 %629 }
 0x5dc   :  { %v642_v6 = vmul.f32 %v6584_v32, %v630_v5 }
 0x5de   :  { %v644_v7 = vsub.f32 %v626_v57, %v642_v6  ;;  %v732_v6 = vperm.slane %v6457_v36, 3 }
 0x5e0   :  { %v646_v9 = vmul.f32 %v644_v7, %v644_v7 }
 0x5e2   :  { %v648_v33 = vsel %vm207_vm1, %v646_v9, 0.0 }
 0x5e3   :  { %v634_v10 = vpop.xlane.xlu1 %633  ;;  %649 = vadd.xlane.f32.xlu2 %v648_v33 }
 0x5e4   :  { %v643_v11 = vmul.f32 %v6584_v32, %v634_v10 }
 0x5e6   :  { %v645_v12 = vsub.f32 %v627_v52, %v643_v11  ;;  %v5887_v52 = vld [vmem:[%s8061_s6] sm:$0xff] }
 0x5e7   :  { %788 = vmatpush.bf16.msra.mxu0 %v5887_v52 }
 0x5e8   :  { %v647_v13 = vmul.f32 %v645_v12, %v645_v12 }
 0x5ea   :  { %v651_v14 = vsel %vm631_vm8, %v647_v13, 0.0 }
 0x5eb   :  { %652 = vadd.xlane.f32.xlu2 %v651_v14 }
 0x656   :  { %v650_v18 = vpop.xlane.xlu2 %649 }
 0x657   :  { %v654_v23 = vmul.f32 %v650_v18, %v6584_v32 }
 0x659   :  { %v656_v61 = vadd.f32 1e-05, %v654_v23 }
 0x65b   :  { %6101 = vrsqrt.f32 %v656_v61  ;;  %vm664_vm11 = vweird.f32 %v656_v61 }
 0x65e   :  { %v653_v62 = vpop.xlane.xlu2 %652 }
 0x65f   :  { %v655_v25 = vmul.f32 %v653_v62, %v6584_v32  ;;  %v5232_v62 = vld [vmem:[%s8057_s5 + $0x30] sm:$0xf] }
 0x661   :  { %v6102_v46 = vpop.eup %6101  ;;  %v657_v26 = vadd.f32 1e-05, %v655_v25  ;;  %v5898_v25 = vld [vmem:[%s8057_s5 + $0x34] sm:$0xf0] }
 0x662   :  { %v659_v27 = vmul.f32 %v6102_v46, %v656_v61  ;;  %vm665_vm10 = vweird.f32 %v6102_v46  ;;  %v6645_v24 = vor.u32 %v5898_v25, %v5232_v62 }
 0x663   :  { %6103 = vrsqrt.f32 %v657_v26  ;;  %vm666_vm12 = vmor %vm664_vm11, %vm665_vm10  ;;  %vm674_vm14 = vweird.f32 %v657_v26 }
 0x664   :  { %v660_v29 = vmul.f32 %v6102_v46, %v659_v27  ;;  %877 = vmatpush.bf16.msrb.mxu1 %v6645_v24  ;;  %v5228_v27 = vld [vmem:[%s8057_s5 + $0x20] sm:$0xf] }
 0x666   :  { %v661_v30 = vmul.f32 0.5, %v660_v29  ;;  %v6655_v29 = vor.u32 %v5896_v28, %v5228_v27 }
 0x668   :  { %v662_v35 = vsub.f32 1.5, %v661_v30  ;;  %878 = vmatpush.bf16.msrb.mxu1 %v6655_v29 }
 0x669   :  { %v6104_v37 = vpop.eup %6103 }
 0x66a   :  { %v663_v38 = vmul.f32 %v6102_v46, %v662_v35  ;;  %v669_v39 = vmul.f32 %v6104_v37, %v657_v26  ;;  %vm675_vm13 = vweird.f32 %v6104_v37 }
 0x66b   :  { %vm676_vm15 = vmor %vm674_vm14, %vm675_vm13 }
 0x66c   :  { %v670_v40 = vmul.f32 %v6104_v37, %v669_v39  ;;  %v667_v41 = vsel %vm666_vm12, %v6102_v46, %v663_v38 }
 0x66d   :  { %v678_v45 = vmul.f32 %v667_v41, %v644_v7 }
 0x66e   :  { %v671_v42 = vmul.f32 0.5, %v670_v40 }
 0x66f   :  { %v681_v49 = vmul.f32 %v680_v44, %v678_v45 }
 0x670   :  { %v672_v43 = vsub.f32 1.5, %v671_v42 }
 0x671   :  { %v684_v54 = vadd.f32 %v683_v51, %v681_v49 }
 0x672   :  { %v673_v47 = vmul.f32 %v6104_v37, %v672_v43 }
 0x674   :  { %v677_v48 = vsel %vm676_vm15, %v6104_v37, %v673_v47 }
 0x675   :  { %v679_v50 = vmul.f32 %v677_v48, %v645_v12 }
 0x677   :  { %v682_v53 = vmul.f32 %v680_v44, %v679_v50 }
 0x679   :  { %v685_v55 = vadd.f32 %v683_v51, %v682_v53  ;;  %v841_v51 = vperm.slane %v6457_v36, 6 }
 0x67b   :  { %v702_v57 = vpack.c.bf16 %v685_v55, %v684_v54 }
 0x67d   :  { %5188 = vmatmul.msk.bf16.vlgmr.msrb.gmra.mxu3 %vm207_vm1, %v702_v57 }
 0x700   :  { %v724_v63 = vpop.f32.mrf.mxu3 }
 0x701   :  { %v725_v56 = vadd.f32 %v724_v63, %v703_v0 }
 0x703   :  { %v729_v3 = vmax.f32 %v725_v56, 0.0 }
 0x708   :  { %v726_v1 = vpop.f32.mrf.mxu3 }
 0x709   :  { %v727_v2 = vadd.f32 %v726_v1, %v703_v0  ;;  %v6671_v1 = vld [vmem:[%s8059_s7 + $0x8] sm:$0xff] }
 0x70b   :  { %v730_v4 = vmax.f32 %v727_v2, 0.0  ;;  %v855_v2 = vperm.slane %v6671_v1, 0 }
 0x70d   :  { %v731_v5 = vpack.c.bf16 %v730_v4, %v729_v3 }
 0x70f   :  { %789 = vmatmul.bf16.vlgmr.msra.gmra.mxu0 %v731_v5 }
 0x78c   :  { %v790_v7 = vpop.f32.mrf.mxu0 }
 0x78d   :  { %v791_v9 = vadd.f32 %v790_v7, %v732_v6 }
 0x78f   :  { %v795_v33 = vadd.f32 %v791_v9, %v684_v54 }
 0x791   :  { %v797_v10 = vsel %vm207_vm1, %v795_v33, 0.0 }
 0x792   :  { %798 = vadd.xlane.f32.xlu0 %v797_v10 }
 0x794   :  { %v792_v11 = vpop.f32.mrf.mxu0 }
 0x795   :  { %v793_v12 = vadd.f32 %v792_v11, %v732_v6 }
 0x797   :  { %v796_v13 = vadd.f32 %v793_v12, %v685_v55 }
 0x799   :  { %v800_v14 = vsel %vm631_vm8, %v796_v13, 0.0 }
 0x79a   :  { %801 = vadd.xlane.f32.xlu2 %v800_v14 }
 0x805   :  { %v799_v15 = vpop.xlane.xlu0 %798 }
 0x806   :  { %v803_v20 = vmul.f32 %v799_v15, %v6584_v32 }
 0x808   :  { %v805_v17 = vsub.f32 %v795_v33, %v803_v20 }
 0x80a   :  { %v807_v18 = vmul.f32 %v805_v17, %v805_v17 }
 0x80c   :  { %v809_v23 = vsel %vm207_vm1, %v807_v18, 0.0 }
 0x80d   :  { %v802_v19 = vpop.xlane.xlu2 %801  ;;  %810 = vadd.xlane.f32.xlu2 %v809_v23 }
 0x80e   :  { %v804_v21 = vmul.f32 %v802_v19, %v6584_v32 }
 0x810   :  { %v806_v22 = vsub.f32 %v796_v13, %v804_v21 }
 0x812   :  { %v808_v61 = vmul.f32 %v806_v22, %v806_v22 }
 0x814   :  { %v812_v8 = vsel %vm631_vm8, %v808_v61, 0.0 }
 0x815   :  { %813 = vadd.xlane.f32.xlu2 %v812_v8 }
 0x880   :  { %v811_v46 = vpop.xlane.xlu2 %810 }
 0x881   :  { %v815_v26 = vmul.f32 %v811_v46, %v6584_v32 }
 0x883   :  { %v817_v30 = vadd.f32 1e-05, %v815_v26 }
 0x885   :  { %6105 = vrsqrt.f32 %v817_v30  ;;  %vm825_vm10 = vweird.f32 %v817_v30 }
 0x888   :  { %v814_v34 = vpop.xlane.xlu2 %813 }
 0x889   :  { %v816_v35 = vmul.f32 %v814_v34, %v6584_v32 }
 0x88b   :  { %v6106_v37 = vpop.eup %6105  ;;  %v818_v38 = vadd.f32 1e-05, %v816_v35 }
 0x88c   :  { %v820_v39 = vmul.f32 %v6106_v37, %v817_v30  ;;  %vm826_vm9 = vweird.f32 %v6106_v37 }
 0x88d   :  { %6107 = vrsqrt.f32 %v818_v38  ;;  %vm827_vm11 = vmor %vm825_vm10, %vm826_vm9  ;;  %vm835_vm13 = vweird.f32 %v818_v38 }
 0x88e   :  { %v821_v40 = vmul.f32 %v6106_v37, %v820_v39 }
 0x890   :  { %v822_v41 = vmul.f32 0.5, %v821_v40 }
 0x892   :  { %v823_v42 = vsub.f32 1.5, %v822_v41 }
 0x893   :  { %v6108_v43 = vpop.eup %6107 }
 0x894   :  { %v824_v44 = vmul.f32 %v6106_v37, %v823_v42  ;;  %v830_v45 = vmul.f32 %v6108_v43, %v818_v38  ;;  %vm836_vm12 = vweird.f32 %v6108_v43 }
 0x895   :  { %vm837_vm14 = vmor %vm835_vm13, %vm836_vm12  ;;  %vm1497_vm12 = vcmask 1041408   ;;  %vm1702_vm13 = vcmask 31744  }
 0x896   :  { %v831_v47 = vmul.f32 %v6108_v43, %v830_v45  ;;  %v828_v48 = vsel %vm827_vm11, %v6106_v37, %v824_v44 }
 0x897   :  { %v839_v53 = vmul.f32 %v828_v48, %v805_v17 }
 0x898   :  { %v832_v49 = vmul.f32 0.5, %v831_v47 }
 0x899   :  { %v842_v57 = vmul.f32 %v841_v51, %v839_v53 }
 0x89a   :  { %v833_v50 = vsub.f32 1.5, %v832_v49 }
 0x89b   :  { %v6661_v52 = vadd.f32 %v844_v59, %v842_v57 }
 0x89c   :  { %v834_v54 = vmul.f32 %v6108_v43, %v833_v50 }
 0x89e   :  { %v838_v55 = vsel %vm837_vm14, %v6108_v43, %v834_v54 }
 0x89f   :  { %v840_v58 = vmul.f32 %v838_v55, %v806_v22 }
 0x8a1   :  { %v843_v60 = vmul.f32 %v841_v51, %v840_v58 }
 0x8a3   :  { %v6663_v63 = vadd.f32 %v844_v59, %v843_v60 }
 0x8a5   :  { %v854_v0 = vpack.c.bf16 %v6663_v63, %v6661_v52 }
 0x8a7   :  { %5234 = vmatmul.msk.bf16.vlgmr.msrb.gmra.mxu1 %vm207_vm1, %v854_v0 }
 0x924   :  { %v880_v56 = vpop.f32.mrf.mxu1 }
 0x925   :  { %v881_v36 = vadd.f32 %v880_v56, %v855_v2 }
 0x927   :  { %v905_v7 = vpack.c.bf16 %v881_v36, %v881_v36 }
 0x929   :  { %v915_v33 = vunpack.c.l.b16 %v905_v7 }
 0x92c   :  { %v882_v3 = vpop.f32.mrf.mxu1 }
 0x92d   :  { %v883_v4 = vadd.f32 %v882_v3, %v855_v2 }
 0x92f   :  { %v6047_v5 = vpack.i.bf16 %v883_v4, %v881_v36  ;;  %v906_v6 = vpack.c.bf16 %v883_v4, %v883_v4 }
 0x931   :  { %6048 = vrot.lane.b32.xlu0 %v6047_v5, %s6291_s27  ;;  %6043 = vrot.lane.b32.xlu2 %v6047_v5, %s6290_s26  ;;  %v916_v9 = vunpack.c.l.b16 %v906_v6 }
 0x932   :  { %6038 = vrot.lane.b32.xlu1 %v6047_v5, %s6289_s25 }
 0x933   :  { %v6677_v10 = vpack.c.b16 %v916_v9, %v915_v33 }
 0x93a   :  { %918 = vrot.lane.b32.xlu1 %v6677_v10, %s6292_s28 }
 0x98b   :  { %v6044_v11 = vpop.permute.xlu2 %6043 }
 0x98c   :  { %v6046_v12 = vunpack.i.h.bf16 %v6044_v11  ;;  %v6045_v13 = vunpack.i.l.bf16 %v6044_v11 }
 0x98e   :  { %v908_v14 = vpack.c.bf16 %v6046_v12, %v6046_v12  ;;  %v907_v15 = vpack.c.bf16 %v6045_v13, %v6045_v13 }
 0x990   :  { %v943_v20 = vunpack.c.l.b16 %v908_v14  ;;  %v942_v17 = vunpack.c.l.b16 %v907_v15 }
 0x992   :  { %v6681_v18 = vpack.c.b16 %v943_v20, %v942_v17 }
 0x994   :  { %945 = vrot.lane.b32.xlu1 %v6681_v18, %s6292_s28 }
 0x9a3   :  { %v6049_v23 = vpop.permute.xlu0 %6048 }
 0x9a4   :  { %v6051_v19 = vunpack.i.h.bf16 %v6049_v23  ;;  %v6050_v21 = vunpack.i.l.bf16 %v6049_v23  ;;  %v6039_v22 = vpop.permute.xlu1 %6038 }
 0x9a5   :  { %v6041_v61 = vunpack.i.h.bf16 %v6039_v22  ;;  %v6040_v8 = vunpack.i.l.bf16 %v6039_v22 }
 0x9a6   :  { %v910_v62 = vpack.c.bf16 %v6051_v19, %v6051_v19  ;;  %v909_v25 = vpack.c.bf16 %v6050_v21, %v6050_v21 }
 0x9a7   :  { %v912_v46 = vpack.c.bf16 %v6041_v61, %v6041_v61  ;;  %v911_v26 = vpack.c.bf16 %v6040_v8, %v6040_v8 }
 0x9a8   :  { %v970_v27 = vunpack.c.l.b16 %v910_v62  ;;  %v969_v28 = vunpack.c.l.b16 %v909_v25 }
 0x9a9   :  { %v997_v30 = vunpack.c.l.b16 %v912_v46  ;;  %v996_v34 = vunpack.c.l.b16 %v911_v26 }
 0x9aa   :  { %v6685_v35 = vpack.c.b16 %v970_v27, %v969_v28 }
 0x9ab   :  { %v6687_v37 = vpack.c.b16 %v997_v30, %v996_v34 }
 0x9ac   :  { %v919_v38 = vpop.permute.xlu1 %918  ;;  %972 = vrot.lane.b32.xlu0 %v6685_v35, %s6292_s28 }
 0x9ad   :  { %v924_v39 = vsel %vm260_vm2, %v919_v38, 0  ;;  %999 = vrot.lane.b32.xlu2 %v6687_v37, %s6292_s28 }
 0x9ae   :  { %933 = vmatpush.bf16.xpose.msra.mxu2 %v924_v39 }
 0x9b5   :  { %5235 = vmatmul.msk.bf16.vlgmr.msra.gmra.mxu2 %vm260_vm2, %v6677_v10 }
 0xa06   :  { %v946_v40 = vpop.permute.xlu1 %945 }
 0xa07   :  { %v1000_v41 = vpop.permute.xlu2 %999  ;;  %v951_v42 = vsel %vm260_vm2, %v946_v40, 0 }
 0xa08   :  { %v1005_v43 = vsel %vm260_vm2, %v1000_v41, 0  ;;  %960 = vmatpush.bf16.xpose.msra.mxu3 %v951_v42 }
 0xa09   :  { %1014 = vmatpush.bf16.xpose.msrb.mxu2 %v1005_v43 }
 0xa0f   :  { %5236 = vmatmul.msk.bf16.vlgmr.msra.gmra.mxu3 %vm260_vm2, %v6681_v18 }
 0xa10   :  { %5238 = vmatmul.msk.bf16.vlgmr.msrb.gmra.mxu2 %vm260_vm2, %v6687_v37 }
 0xa1e   :  { %v973_v44 = vpop.permute.xlu0 %972 }
 0xa1f   :  { %v978_v45 = vsel %vm260_vm2, %v973_v44, 0 }
 0xa20   :  { %987 = vmatpush.bf16.xpose.msra.mxu1 %v978_v45 }
 0xa27   :  { %5237 = vmatmul.msk.bf16.vlgmr.msra.gmra.mxu1 %vm260_vm2, %v6685_v35 }
 0xa38   :  { %v935_v47 = vpop.f32.mrf.mxu2 }
 0xa39   :  { %v6710_v57 = vadd.f32 %v935_v47, %v6494_v16 }
 0xa3b   :  { %v1021_v2 = vsel %vm362_vm3, %v6710_v57, -inf }
 0xa40   :  { %v937_v48 = vpop.f32.mrf.mxu2 }
 0xa41   :  { %v938_v6 = vadd.f32 %v937_v48, %v6510_v31 }
 0xa43   :  { %v1024_v33 = vsel %vm366_vm4, %v938_v6, -inf }
 0xa92   :  { %v962_v49 = vpop.f32.mrf.mxu3 }
 0xa93   :  { %v963_v50 = vadd.f32 %v962_v49, %v6494_v16  ;;  %v1016_v51 = vpop.f32.mrf.mxu2 }
 0xa94   :  { %v1017_v53 = vadd.f32 %v1016_v51, %v6494_v16 }
 0xa95   :  { %v1027_v54 = vsel %vm362_vm3, %v963_v50, -inf }
 0xa96   :  { %v1039_v55 = vsel %vm362_vm3, %v1017_v53, -inf  ;;  %1028 = vmax.xlane.f32.xlu0 %v1027_v54 }
 0xa97   :  { %1040 = vmax.xlane.f32.xlu2 %v1039_v55 }
 0xa9a   :  { %v964_v58 = vpop.f32.mrf.mxu3 }
 0xa9b   :  { %v965_v59 = vadd.f32 %v964_v58, %v6510_v31  ;;  %v1018_v60 = vpop.f32.mrf.mxu2 }
 0xa9c   :  { %v1019_v0 = vadd.f32 %v1018_v60, %v6510_v31  ;;  %v5911_v60 = vld [vmem:[%s8062_s8 + $0x20] sm:$0xf0] }
 0xa9d   :  { %v1030_v56 = vsel %vm366_vm4, %v965_v59, -inf }
 0xa9e   :  { %v1042_v3 = vsel %vm366_vm4, %v1019_v0, -inf  ;;  %1022 = vmax.xlane.f32.xlu0 %v1021_v2  ;;  %v5908_v2 = vld [vmem:[%s8062_s8 + $0x8] sm:$0xf0] }
 0xa9f   :  { %1043 = vmax.xlane.f32.xlu1 %v1042_v3  ;;  %1031 = vmax.xlane.f32.xlu2 %v1030_v56 }
 0xaa4   :  { %v989_v36 = vpop.f32.mrf.mxu1 }
 0xaa5   :  { %v990_v4 = vadd.f32 %v989_v36, %v6494_v16 }
 0xaa7   :  { %v1033_v5 = vsel %vm362_vm3, %v990_v4, -inf }
 0xaa8   :  { %1034 = vmax.xlane.f32.xlu1 %v1033_v5 }
 0xaac   :  { %v991_v7 = vpop.f32.mrf.mxu1 }
 0xaad   :  { %v992_v9 = vadd.f32 %v991_v7, %v6510_v31 }
 0xaaf   :  { %v1036_v11 = vsel %vm366_vm4, %v992_v9, -inf }
 0xab0   :  { %1025 = vmax.xlane.f32.xlu1 %v1024_v33  ;;  %1037 = vmax.xlane.f32.xlu2 %v1036_v11 }
 0xb09   :  { %v1029_v12 = vpop.xlane.xlu0 %1028 }
 0xb0a   :  { %v1041_v13 = vpop.xlane.xlu2 %1040  ;;  %v1047_v14 = vsub.f32 %v963_v50, %v1029_v12 }
 0xb0b   :  { %v1051_v15 = vsub.f32 %v1017_v53, %v1041_v13 }
 0xb0c   :  { %v1057_v20 = vmul.f32 1.442695, %v1047_v14 }
 0xb0d   :  { %v1065_v16 = vmul.f32 1.442695, %v1051_v15 }
 0xb0e   :  { %6109 = vpow2.f32 %v1057_v20 }
 0xb0f   :  { %6111 = vpow2.f32 %v1065_v16 }
 0xb11   :  { %v1023_v50 = vpop.xlane.xlu0 %1022 }
 0xb12   :  { %v1032_v17 = vpop.xlane.xlu2 %1031  ;;  %v1044_v19 = vpop.xlane.xlu1 %1043 }
 0xb13   :  { %v1048_v23 = vsub.f32 %v965_v59, %v1032_v17  ;;  %v1052_v26 = vsub.f32 %v1019_v0, %v1044_v19  ;;  %v5307_v59 = vld [vmem:[%s8062_s8 + $0x18] sm:$0xf] }
 0xb14   :  { %v6724_v21 = vpop.eup %6109  ;;  %v6773_v0 = vor.u32 %v5911_v60, %v5307_v59  ;;  %v6810_v60 = vld [vmem:[%s8063_s10] sm:$0xff] }
 0xb15   :  { %v6726_v31 = vpop.eup %6111  ;;  %v1059_v22 = vmul.f32 1.442695, %v1048_v23  ;;  %v1075_v61 = vsel %vm362_vm3, %v6724_v21, 0.0  ;;  %v1067_v30 = vmul.f32 1.442695, %v1052_v26 }
 0xb16   :  { %v1087_v8 = vsel %vm362_vm3, %v6726_v31, 0.0  ;;  %1076 = vadd.xlane.f32.xlu1 %v1075_v61 }
 0xb17   :  { %6113 = vpow2.f32 %v1059_v22  ;;  %1088 = vadd.xlane.f32.xlu2 %v1087_v8 }
 0xb1b   :  { %v1035_v62 = vpop.xlane.xlu1 %1034 }
 0xb1c   :  { %v1049_v25 = vsub.f32 %v990_v4, %v1035_v62 }
 0xb1d   :  { %v6732_v46 = vpop.eup %6113 }
 0xb1e   :  { %v1061_v27 = vmul.f32 1.442695, %v1049_v25  ;;  %v1078_v28 = vsel %vm366_vm4, %v6732_v46, 0.0 }
 0xb1f   :  { %1079 = vadd.xlane.f32.xlu2 %v1078_v28 }
 0xb20   :  { %6115 = vpow2.f32 %v1061_v27 }
 0xb21   :  { %6117 = vpow2.f32 %v1067_v30 }
 0xb23   :  { %v1038_v34 = vpop.xlane.xlu2 %1037  ;;  %v1026_v47 = vpop.xlane.xlu1 %1025 }
 0xb24   :  { %v1050_v38 = vsub.f32 %v992_v9, %v1038_v34  ;;  %v1046_v48 = vsub.f32 %v938_v6, %v1026_v47  ;;  %v6795_v34 = vld [vmem:[%s8058_s1 + $0x8] sm:$0x3f] }
 0xb26   :  { %v6736_v39 = vpop.eup %6115  ;;  %v1063_v40 = vmul.f32 1.442695, %v1050_v38  ;;  %v1055_v49 = vmul.f32 1.442695, %v1046_v48  ;;  %v1509_v38 = vpack.c.bf16 %v6795_v34, %v6795_v34 }
 0xb27   :  { %v1081_v41 = vsel %vm362_vm3, %v6736_v39, 0.0  ;;  %v6118_v42 = vpop.eup %6117 }
 0xb28   :  { %6119 = vpow2.f32 %v1063_v40  ;;  %1082 = vadd.xlane.f32.xlu0 %v1081_v41  ;;  %v1090_v45 = vsel %vm366_vm4, %v6118_v42, 0.0 }
 0xb29   :  { %6121 = vpow2.f32 %v1055_v49 }
 0xb2e   :  { %v6740_v43 = vpop.eup %6119 }
 0xb2f   :  { %v1084_v44 = vsel %vm366_vm4, %v6740_v43, 0.0  ;;  %v6755_v51 = vpop.eup %6121 }
 0xb30   :  { %1085 = vadd.xlane.f32.xlu1 %v1084_v44  ;;  %1091 = vadd.xlane.f32.xlu0 %v1090_v45 }
 0xb37   :  { %1203 = vrot.lane.b32.xlu2 %v6687_v37, %s6293_s2  ;;  %v1045_v37 = vsub.f32 %v6710_v57, %v1023_v50 }
 0xb39   :  { %v1053_v53 = vmul.f32 1.442695, %v1045_v37 }
 0xb3b   :  { %6123 = vpow2.f32 %v1053_v53 }
 0xb44   :  { %1149 = vrot.lane.b32.xlu0 %v6681_v18, %s6293_s2  ;;  %v1072_v18 = vsel %vm366_vm4, %v6755_v51, 0.0 }
 0xb49   :  { %1176 = vrot.lane.b32.xlu1 %v6685_v35, %s6293_s2  ;;  %v6760_v35 = vpop.eup %6123 }
 0xb51   :  { %1122 = vrot.lane.b32.xlu1 %v6677_v10, %s6293_s2  ;;  %v1069_v10 = vsel %vm362_vm3, %v6760_v35, 0.0 }
 0xb59   :  { %1259 = vrot.lane.b32.xlu1 %v6645_v24, %s6294_s4 }
 0xb60   :  { %1073 = vadd.xlane.f32.xlu2 %v1072_v18 }
 0xb6e   :  { %1070 = vadd.xlane.f32.xlu0 %v1069_v10 }
 0xb82   :  { %1257 = vrot.lane.b32.xlu0 %v6655_v29, %s6294_s4  ;;  %v5303_v29 = vld [vmem:[%s8062_s8] sm:$0xf] }
 0xb83   :  { %v6782_v3 = vor.u32 %v5908_v2, %v5303_v29 }
 0xb89   :  { %v1077_v56 = vpop.xlane.xlu1 %1076 }
 0xb8a   :  { %v1089_v24 = vpop.xlane.xlu2 %1088 }
 0xb8b   :  { %6125 = vrcp.f32 %v1089_v24 }
 0xb91   :  { %v6126_v4 = vpop.eup %6125 }
 0xb92   :  { %v1080_v54 = vpop.xlane.xlu2 %1079  ;;  %v1107_v6 = vmul.f32 %v6126_v4, %v6726_v31 }
 0xb93   :  { %6127 = vrcp.f32 %v1080_v54 }
 0xb94   :  { %v1115_v33 = vpack.c.bf16 %v1107_v6, %v1107_v6 }
 0xb96   :  { %v1200_v20 = vunpack.c.l.b16 %v1115_v33 }
 0xb99   :  { %v6128_v7 = vpop.eup %6127 }
 0xb9a   :  { %v1204_v55 = vpop.permute.xlu2 %1203  ;;  %v1104_v13 = vmul.f32 %v6128_v7, %v6732_v46 }
 0xb9b   :  { %v1209_v57 = vsel %vm470_vm5, %v1204_v55, 0  ;;  %v1083_v58 = vpop.xlane.xlu0 %1082 }
 0xb9c   :  { %1218 = vmatpush.bf16.msra.mxu2 %v1209_v57  ;;  %v1112_v19 = vpack.c.bf16 %v1104_v13, %v1104_v13 }
 0xb9e   :  { %v1147_v62 = vunpack.c.l.b16 %v1112_v19 }
 0xba0   :  { %1534 = vmatpush.bf16.msrb.mxu2 %v6773_v0 }
 0xba3   :  { %v1092_v36 = vpop.xlane.xlu0 %1091  ;;  %v1086_v5 = vpop.xlane.xlu1 %1085 }
 0xba4   :  { %1535 = vmatpush.bf16.msrb.mxu2 %v6782_v3  ;;  %6129 = vrcp.f32 %v1092_v36 }
 0xba5   :  { %6131 = vrcp.f32 %v1077_v56 }
 0xba6   :  { %6133 = vrcp.f32 %v1086_v5 }
 0xba7   :  { %6135 = vrcp.f32 %v1083_v58 }
 0xbaa   :  { %v6130_v9 = vpop.eup %6129 }
 0xbab   :  { %v1108_v11 = vmul.f32 %v6130_v9, %v6118_v42  ;;  %v6132_v12 = vpop.eup %6131 }
 0xbac   :  { %v6134_v15 = vpop.eup %6133  ;;  %v1103_v16 = vmul.f32 %v6132_v12, %v6724_v21 }
 0xbad   :  { %v1116_v14 = vpack.c.bf16 %v1108_v11, %v1108_v11  ;;  %v6136_v23 = vpop.eup %6135  ;;  %v1106_v31 = vmul.f32 %v6134_v15, %v6740_v43  ;;  %v1512_v43 = vrot.slane %v1509_v38, 1 }
 0xbae   :  { %v1111_v61 = vpack.c.bf16 %v1103_v16, %v1103_v16  ;;  %v1105_v8 = vmul.f32 %v6136_v23, %v6736_v39 }
 0xbaf   :  { %v1201_v17 = vunpack.c.l.b16 %v1116_v14  ;;  %v1114_v25 = vpack.c.bf16 %v1106_v31, %v1106_v31 }
 0xbb0   :  { %v1146_v46 = vunpack.c.l.b16 %v1111_v61  ;;  %v1113_v28 = vpack.c.bf16 %v1105_v8, %v1105_v8 }
 0xbb1   :  { %v1202_v22 = vpack.c.b16 %v1201_v17, %v1200_v20  ;;  %v1174_v30 = vunpack.c.l.b16 %v1114_v25 }
 0xbb2   :  { %v1148_v21 = vpack.c.b16 %v1147_v62, %v1146_v46  ;;  %v1173_v40 = vunpack.c.l.b16 %v1113_v28 }
 0xbb3   :  { %5242 = vmatmul.msk.bf16.vlgmr.msra.gmra.mxu2 %vm362_vm3, %v1202_v22 }
 0xbb4   :  { %v1175_v42 = vpack.c.b16 %v1174_v30, %v1173_v40 }
 0xbb6   :  { %v1150_v26 = vpop.permute.xlu0 %1149 }
 0xbb7   :  { %v1155_v27 = vsel %vm470_vm5, %v1150_v26, 0 }
 0xbb8   :  { %1164 = vmatpush.bf16.msrb.mxu0 %v1155_v27 }
 0xbbb   :  { %5240 = vmatmul.msk.bf16.vlgmr.msrb.gmra.mxu0 %vm362_vm3, %v1148_v21  ;;  %v1177_v39 = vpop.permute.xlu1 %1176 }
 0xbbc   :  { %v1182_v41 = vsel %vm470_vm5, %v1177_v39, 0 }
 0xbbd   :  { %1191 = vmatpush.bf16.msrb.mxu1 %v1182_v41 }
 0xbc0   :  { %5241 = vmatmul.msk.bf16.vlgmr.msrb.gmra.mxu1 %vm362_vm3, %v1175_v42 }
 0xbc3   :  { %5309 = vmatmul.msk.bf16.vlgmr.msrb.gmra.mxu2 %vm207_vm1, %v1512_v43  ;;  %v1123_v44 = vpop.permute.xlu1 %1122 }
 0xbc4   :  { %v1128_v45 = vsel %vm470_vm5, %v1123_v44, 0 }
 0xbc5   :  { %1137 = vmatpush.bf16.msrb.mxu3 %v1128_v45 }
 0xbcb   :  { %v1260_v9 = vpop.permute.xlu1 %1259 }
 0xbcc   :  { %1272 = vmatpush.bf16.msra.mxu3 %v1260_v9 }
 0xbd3   :  { %v1074_v47 = vpop.xlane.xlu2 %1073 }
 0xbd4   :  { %6137 = vrcp.f32 %v1074_v47  ;;  %v1256_v47 = vperm.slane %v6671_v1, 1 }
 0xbda   :  { %v6138_v49 = vpop.eup %6137 }
 0xbdb   :  { %v1102_v50 = vmul.f32 %v6138_v49, %v6755_v51  ;;  %v1510_v51 = vperm.slane %v6810_v60, 0 }
 0xbdd   :  { %v1110_v18 = vpack.c.bf16 %v1102_v50, %v1102_v50 }
 0xbdf   :  { %v1120_v24 = vunpack.c.l.b16 %v1110_v18 }
 0xbe1   :  { %v1071_v48 = vpop.xlane.xlu0 %1070 }
 0xbe2   :  { %6139 = vrcp.f32 %v1071_v48 }
 0xbe8   :  { %v6140_v37 = vpop.eup %6139 }
 0xbe9   :  { %v1101_v53 = vmul.f32 %v6140_v37, %v6760_v35 }
 0xbeb   :  { %v1109_v10 = vpack.c.bf16 %v1101_v53, %v1101_v53 }
 0xbed   :  { %v1119_v54 = vunpack.c.l.b16 %v1109_v10 }
 0xbef   :  { %v1121_v55 = vpack.c.b16 %v1120_v24, %v1119_v54  ;;  %v6851_v54 = vld [vmem:[%s8064_s3] sm:$0xf] }
 0xbf1   :  { %5239 = vmatmul.msk.bf16.vlgmr.msrb.gmra.mxu3 %vm362_vm3, %v1121_v55  ;;  %vm1651_vm3 = vcmask 27648  }
 0xbf4   :  { %v1258_v12 = vpop.permute.xlu0 %1257 }
 0xbf5   :  { %1273 = vmatpush.bf16.msra.mxu3 %v1258_v12 }
 0xc36   :  { %v1220_v57 = vpop.f32.mrf.mxu2 }
 0xc38   :  { %v1166_v56 = vpop.f32.mrf.mxu0 }
 0xc3d   :  { %v1193_v58 = vpop.f32.mrf.mxu1 }
 0xc3e   :  { %v1222_v59 = vpop.f32.mrf.mxu2 }
 0xc3f   :  { %v6062_v7 = vpack.i.bf16 %v1222_v59, %v1220_v57 }
 0xc40   :  { %v1168_v4 = vpop.f32.mrf.mxu0 }
 0xc41   :  { %v6057_v5 = vpack.i.bf16 %v1168_v4, %v1166_v56 }
 0xc45   :  { %v1195_v29 = vpop.f32.mrf.mxu1 }
 0xc46   :  { %v6052_v2 = vpack.i.bf16 %v1195_v29, %v1193_v58  ;;  %v1537_v35 = vpop.f32.mrf.mxu2 }
 0xc47   :  { %v6813_v36 = vadd.f32 %v1537_v35, %v1510_v51 }
 0xc48   :  { %6053 = vrot.lane.b32.xlu1 %v6052_v2, %s6295_s17 }
 0xc49   :  { %1545 = vrot.lane.b32.xlu0 %v6813_v36, %s6291_s27  ;;  %v1551_v33 = vpack.c.bf16 %v6813_v36, %v6813_v36 }
 0xc4b   :  { %v1556_v11 = vunpack.c.l.b16 %v1551_v33 }
 0xc4d   :  { %v6824_v13 = vpack.c.b16 %v1556_v11, %v1556_v11 }
 0xc4e   :  { %v1539_v6 = vpop.f32.mrf.mxu2 }
 0xc50   :  { %6058 = vrot.lane.b32.xlu1 %v6057_v5, %s6296_s0 }
 0xc51   :  { %1542 = vrot.lane.b32.xlu0 %v6813_v36, %s6290_s26 }
 0xc58   :  { %6063 = vrot.lane.b32.xlu1 %v6062_v7, %s6297_s18 }
 0xc59   :  { %1558 = vrot.lane.b32.xlu0 %v6824_v13, %s6292_s28 }
 0xc74   :  { %v1139_v16 = vpop.f32.mrf.mxu3 }
 0xc7c   :  { %v1141_v61 = vpop.f32.mrf.mxu3 }
 0xcba   :  { %v6054_v14 = vpop.permute.xlu1 %6053 }
 0xcbb   :  { %v1546_v15 = vpop.permute.xlu0 %1545  ;;  %v6056_v25 = vunpack.i.h.bf16 %v6054_v14  ;;  %v6055_v26 = vunpack.i.l.bf16 %v6054_v14 }
 0xcbc   :  { %v1553_v20 = vpack.c.bf16 %v1546_v15, %v1546_v15 }
 0xcbe   :  { %v1604_v17 = vunpack.c.l.b16 %v1553_v20 }
 0xcc0   :  { %v6828_v23 = vpack.c.b16 %v1604_v17, %v1604_v17  ;;  %v5264_v17 = vld [vmem:[%s8057_s5 + $0x38] sm:$0xf0] }
 0xcc2   :  { %1606 = vrot.lane.b32.xlu0 %v6828_v23, %s6292_s28  ;;  %v6059_v19 = vpop.permute.xlu1 %6058 }
 0xcc3   :  { %v6061_v22 = vunpack.i.h.bf16 %v6059_v19  ;;  %v6060_v31 = vunpack.i.l.bf16 %v6059_v19  ;;  %v1543_v27 = vpop.permute.xlu0 %1542  ;;  %v5895_v19 = vld [vmem:[%s8057_s5 + $0x24] sm:$0xf] }
 0xcc5   :  { %v1250_v8 = vsel %vm260_vm2, %v1141_v61, %v6061_v22  ;;  %v1249_v62 = vsel %vm260_vm2, %v1139_v16, %v6060_v31  ;;  %v5897_v16 = vld [vmem:[%s8057_s5 + $0x34] sm:$0xf]  ;;  %v5260_v22 = vld [vmem:[%s8057_s5 + $0x28] sm:$0xf0] }
 0xcc6   :  { %v1251_v30 = vsel %vm595_vm6, %v1249_v62, %v6055_v26  ;;  %v1252_v38 = vsel %vm595_vm6, %v1250_v8, %v6056_v25  ;;  %v5263_v31 = vor.u32 %v5895_v19, %v5260_v22 }
 0xcca   :  { %v6064_v46 = vpop.permute.xlu1 %6063 }
 0xccb   :  { %v6066_v28 = vunpack.i.h.bf16 %v6064_v46  ;;  %v6065_v21 = vunpack.i.l.bf16 %v6064_v46  ;;  %v1559_v42 = vpop.permute.xlu0 %1558 }
 0xccc   :  { %v1564_v43 = vsel %vm260_vm2, %v1559_v42, 0 }
 0xccd   :  { %v1253_v39 = vsel %vm598_vm7, %v1251_v30, %v6065_v21  ;;  %v1254_v40 = vsel %vm598_vm7, %v1252_v38, %v6066_v28  ;;  %1573 = vmatpush.bf16.xpose.msrb.mxu3 %v1564_v43 }
 0xcce   :  { %v1255_v41 = vpack.c.bf16 %v1254_v40, %v1253_v39 }
 0xcd0   :  { %5243 = vmatmul.msk.bf16.vlgmr.msra.gmra.mxu3 %vm207_vm1, %v1255_v41 }
 0xce0   :  { %5310 = vmatmul.msk.bf16.vlgmr.msrb.gmra.mxu3 %vm260_vm2, %v1551_v33  ;;  %v6869_v33 = vpack.c.bf16 %v1543_v27, %v1543_v27 }
 0xce2   :  { %v1580_v11 = vunpack.c.l.b16 %v6869_v33 }
 0xce4   :  { %v6874_v12 = vpack.c.b16 %v1580_v11, %v1580_v11 }
 0xd34   :  { %v1607_v44 = vpop.permute.xlu0 %1606 }
 0xd35   :  { %v1612_v45 = vsel %vm260_vm2, %v1607_v44, 0 }
 0xd36   :  { %1621 = vmatpush.bf16.xpose.msra.mxu2 %v1612_v45 }
 0xd3d   :  { %5312 = vmatmul.msk.bf16.vlgmr.msra.gmra.mxu2 %vm260_vm2, %v1553_v20 }
 0xd53   :  { %v1275_v48 = vpop.f32.mrf.mxu3 }
 0xd54   :  { %v1276_v49 = vadd.f32 %v1275_v48, %v1256_v47 }
 0xd56   :  { %v1280_v50 = vadd.f32 %v1276_v49, %v6661_v52 }
 0xd58   :  { %v1282_v37 = vsel %vm207_vm1, %v1280_v50, 0.0 }
 0xd59   :  { %1283 = vadd.xlane.f32.xlu2 %v1282_v37 }
 0xd5b   :  { %v1277_v18 = vpop.f32.mrf.mxu3 }
 0xd5c   :  { %v1278_v53 = vadd.f32 %v1277_v18, %v1256_v47 }
 0xd5e   :  { %v1281_v10 = vadd.f32 %v1278_v53, %v6663_v63 }
 0xd60   :  { %v1285_v24 = vsel %vm631_vm8, %v1281_v10, 0.0 }
 0xd61   :  { %1286 = vadd.xlane.f32.xlu1 %v1285_v24  ;;  %v1326_v24 = vperm.slane %v6671_v1, 4 }
 0xd63   :  { %v6861_v35 = vpop.f32.mrf.mxu3 }
 0xd6b   :  { %v1577_v9 = vpop.f32.mrf.mxu3 }
 0xd6c   :  { %v5902_v9 = vld [vmem:[%s8061_s6 + $0x58] sm:$0xff] }
 0xdc0   :  { %v1623_v55 = vpop.f32.mrf.mxu2 }
 0xdc1   :  { %v1624_v57 = vadd.f32 %v1623_v55, %v6851_v54 }
 0xdc3   :  { %v1658_v52 = vsel %vm1651_vm3, %v1624_v57, -inf }
 0xdc4   :  { %1659 = vmax.xlane.f32.xlu0 %v1658_v52 }
 0xdc8   :  { %v1625_v58 = vpop.f32.mrf.mxu2 }
 0xdcc   :  { %v1284_v59 = vpop.xlane.xlu2 %1283 }
 0xdcd   :  { %v1288_v56 = vmul.f32 %v1284_v59, %v6584_v32 }
 0xdcf   :  { %v6856_v63 = vsub.f32 %v1280_v50, %v1288_v56  ;;  %v1329_v56 = vperm.slane %v6671_v1, 5 }
 0xdd1   :  { %v1292_v51 = vmul.f32 %v6856_v63, %v6856_v63 }
 0xdd3   :  { %v1294_v29 = vsel %vm207_vm1, %v1292_v51, 0.0 }
 0xdd4   :  { %v1287_v2 = vpop.xlane.xlu1 %1286  ;;  %1295 = vadd.xlane.f32.xlu2 %v1294_v29 }
 0xdd5   :  { %v1289_v4 = vmul.f32 %v1287_v2, %v6584_v32 }
 0xdd7   :  { %v6864_v5 = vsub.f32 %v1281_v10, %v1289_v4 }
 0xdd9   :  { %v1293_v6 = vmul.f32 %v6864_v5, %v6864_v5 }
 0xddb   :  { %v1297_v7 = vsel %vm631_vm8, %v1293_v6, 0.0  ;;  %v5904_v6 = vld [vmem:[%s8061_s6 + $0x68] sm:$0xff] }
 0xddc   :  { %1298 = vadd.xlane.f32.xlu2 %v1297_v7  ;;  %v5903_v7 = vld [vmem:[%s8061_s6 + $0x60] sm:$0xff] }
 0xdf4   :  { %1548 = vrot.lane.b32.xlu2 %v6813_v36, %s6289_s25  ;;  %v5267_v36 = vor.u32 %v5897_v16, %v5264_v17  ;;  %v1350_v17 = vperm.slane %v6671_v1, 2 }
 0xdf6   :  { %1368 = vmatpush.bf16.msra.mxu0 %v5267_v36 }
 0xdfa   :  { %1369 = vmatpush.bf16.msra.mxu0 %v5263_v31 }
 0xdfc   :  { %1582 = vrot.lane.b32.xlu2 %v6874_v12, %s6292_s28 }
 0xe37   :  { %v1660_v14 = vpop.xlane.xlu0 %1659 }
 0xe38   :  { %v1666_v15 = vsub.f32 %v1624_v57, %v1660_v14 }
 0xe3a   :  { %v1672_v20 = vmul.f32 1.442695, %v1666_v15  ;;  %v5900_v15 = vld [vmem:[%s8061_s6 + $0x48] sm:$0xff] }
 0xe3c   :  { %6141 = vpow2.f32 %v1672_v20  ;;  %v5899_v20 = vld [vmem:[%s8061_s6 + $0x40] sm:$0xff] }
 0xe42   :  { %v6890_v61 = vpop.eup %6141 }
 0xe43   :  { %v1682_v8 = vsel %vm1651_vm3, %v6890_v61, 0.0 }
 0xe44   :  { %1683 = vadd.xlane.f32.xlu0 %v1682_v8 }
 0xe47   :  { %v1296_v62 = vpop.xlane.xlu2 %1295 }
 0xe48   :  { %v1300_v25 = vmul.f32 %v1296_v62, %v6584_v32 }
 0xe4a   :  { %v1302_v26 = vadd.f32 1e-05, %v1300_v25 }
 0xe4c   :  { %6143 = vrsqrt.f32 %v1302_v26  ;;  %vm1310_vm5 = vweird.f32 %v1302_v26 }
 0xe4f   :  { %v1299_v46 = vpop.xlane.xlu2 %1298 }
 0xe50   :  { %v1301_v27 = vmul.f32 %v1299_v46, %v6584_v32 }
 0xe52   :  { %v6144_v28 = vpop.eup %6143  ;;  %v1303_v21 = vadd.f32 1e-05, %v1301_v27 }
 0xe53   :  { %v1305_v30 = vmul.f32 %v6144_v28, %v1302_v26  ;;  %vm1311_vm4 = vweird.f32 %v6144_v28 }
 0xe54   :  { %6145 = vrsqrt.f32 %v1303_v21  ;;  %vm1312_vm15 = vmor %vm1310_vm5, %vm1311_vm4  ;;  %vm1320_vm10 = vweird.f32 %v1303_v21 }
 0xe55   :  { %v1306_v38 = vmul.f32 %v6144_v28, %v1305_v30 }
 0xe57   :  { %v1307_v39 = vmul.f32 0.5, %v1306_v38  ;;  %v1549_v40 = vpop.permute.xlu2 %1548  ;;  %v1576_v38 = vadd.f32 %v6861_v35, %v6851_v54 }
 0xe58   :  { %v1554_v41 = vpack.c.bf16 %v1549_v40, %v1549_v40 }
 0xe59   :  { %v1308_v42 = vsub.f32 1.5, %v1307_v39  ;;  %v1652_v40 = vsel %vm1651_vm3, %v1576_v38, -inf }
 0xe5a   :  { %v6146_v43 = vpop.eup %6145  ;;  %v1628_v44 = vunpack.c.l.b16 %v1554_v41 }
 0xe5b   :  { %v1309_v45 = vmul.f32 %v6144_v28, %v1308_v42  ;;  %v1315_v47 = vmul.f32 %v6146_v43, %v1303_v21  ;;  %vm1321_vm9 = vweird.f32 %v6146_v43 }
 0xe5c   :  { %v1629_v48 = vpack.c.b16 %v1628_v44, %v1628_v44  ;;  %vm1322_vm11 = vmor %vm1320_vm10, %vm1321_vm9  ;;  %vm1828_vm10 = vcmask 259074  }
 0xe5d   :  { %v1316_v49 = vmul.f32 %v6146_v43, %v1315_v47  ;;  %v1313_v50 = vsel %vm1312_vm15, %v6144_v28, %v1309_v45 }
 0xe5e   :  { %1630 = vrot.lane.b32.xlu1 %v1629_v48, %s6292_s28  ;;  %v1324_v55 = vmul.f32 %v1313_v50, %v6856_v63  ;;  %v5906_v63 = vld [vmem:[%s8061_s6 + $0x78] sm:$0xff] }
 0xe5f   :  { %v1317_v37 = vmul.f32 0.5, %v1316_v49  ;;  %v1583_v18 = vpop.permute.xlu2 %1582  ;;  %1428 = vmatpush.bf16.msra.mxu1 %v5906_v63 }
 0xe60   :  { %v1588_v53 = vsel %vm260_vm2, %v1583_v18, 0  ;;  %v1327_v58 = vmul.f32 %v1326_v24, %v1324_v55 }
 0xe61   :  { %v1318_v10 = vsub.f32 1.5, %v1317_v37  ;;  %1597 = vmatpush.bf16.xpose.msrb.mxu0 %v1588_v53 }
 0xe62   :  { %v1330_v29 = vadd.f32 %v1329_v56, %v1327_v58 }
 0xe63   :  { %v1319_v57 = vmul.f32 %v6146_v43, %v1318_v10 }
 0xe65   :  { %v1323_v52 = vsel %vm1322_vm11, %v6146_v43, %v1319_v57  ;;  %v1379_v43 = vperm.slane %v6671_v1, 3 }
 0xe66   :  { %v1325_v59 = vmul.f32 %v1323_v52, %v6864_v5  ;;  %v5905_v5 = vld [vmem:[%s8061_s6 + $0x70] sm:$0xff] }
 0xe67   :  { %1429 = vmatpush.bf16.msra.mxu1 %v5905_v5 }
 0xe68   :  { %v1328_v51 = vmul.f32 %v1326_v24, %v1325_v59 }
 0xe6a   :  { %v1331_v2 = vadd.f32 %v1329_v56, %v1328_v51 }
 0xe6b   :  { %1430 = vmatpush.bf16.msra.mxu1 %v5904_v6 }
 0xe6c   :  { %v1349_v4 = vpack.c.bf16 %v1331_v2, %v1330_v29 }
 0xe6e   :  { %5268 = vmatmul.msk.bf16.vlgmr.msra.gmra.mxu0 %vm207_vm1, %v1349_v4 }
 0xe6f   :  { %1431 = vmatpush.bf16.msra.mxu1 %v5903_v7 }
 0xe73   :  { %1432 = vmatpush.bf16.msra.mxu1 %v5902_v9 }
 0xe7e   :  { %5311 = vmatmul.msk.bf16.vlgmr.msrb.gmra.mxu0 %vm260_vm2, %v6869_v33  ;;  %v5901_v33 = vld [vmem:[%s8061_s6 + $0x50] sm:$0xff] }
 0xe7f   :  { %1433 = vmatpush.bf16.msra.mxu1 %v5901_v33 }
 0xe83   :  { %1434 = vmatpush.bf16.msra.mxu1 %v5900_v15 }
 0xe87   :  { %1435 = vmatpush.bf16.msra.mxu1 %v5899_v20 }
 0xeb7   :  { %v1684_v58 = vpop.xlane.xlu0 %1683 }
 0xed0   :  { %v1631_v11 = vpop.permute.xlu1 %1630 }
 0xed1   :  { %v1636_v14 = vsel %vm260_vm2, %v1631_v11, 0 }
 0xed2   :  { %1645 = vmatpush.bf16.xpose.msra.mxu3 %v1636_v14 }
 0xed9   :  { %5313 = vmatmul.msk.bf16.vlgmr.msra.gmra.mxu3 %vm260_vm2, %v1554_v41 }
 0xeeb   :  { %v1371_v16 = vpop.f32.mrf.mxu0 }
 0xeec   :  { %v1372_v36 = vadd.f32 %v1371_v16, %v1350_v17 }
 0xeee   :  { %v1376_v31 = vmax.f32 %v1372_v36, 0.0 }
 0xef3   :  { %v1373_v19 = vpop.f32.mrf.mxu0 }
 0xef4   :  { %v1374_v22 = vadd.f32 %v1373_v19, %v1350_v17 }
 0xef6   :  { %v1377_v8 = vmax.f32 %v1374_v22, 0.0 }
 0xef8   :  { %v1378_v62 = vpack.c.bf16 %v1377_v8, %v1376_v31 }
 0xefa   :  { %1436 = vmatmul.bf16.vlgmr.msra.gmra.mxu1 %v1378_v62 }
 0xefb   :  { %v1599_v25 = vpop.f32.mrf.mxu0 }
 0xefc   :  { %v1600_v26 = vadd.f32 %v1599_v25, %v6851_v54 }
 0xefe   :  { %v1655_v46 = vsel %vm1651_vm3, %v1600_v26, -inf }
 0xeff   :  { %1656 = vmax.xlane.f32.xlu1 %v1655_v46 }
 0xf03   :  { %v1601_v27 = vpop.f32.mrf.mxu0 }
 0xf18   :  { %1764 = vrot.lane.b32.xlu1 %v1629_v48, %s6293_s2 }
 0xf20   :  { %1700 = vrot.lane.b32.xlu1 %v6824_v13, %s6293_s2 }
 0xf5c   :  { %v1647_v28 = vpop.f32.mrf.mxu3 }
 0xf5d   :  { %v1648_v21 = vadd.f32 %v1647_v28, %v6851_v54 }
 0xf5f   :  { %v1661_v30 = vsel %vm1651_vm3, %v1648_v21, -inf }
 0xf60   :  { %1662 = vmax.xlane.f32.xlu2 %v1661_v30  ;;  %v6284_v30 = vld [vmem:[%s8059_s7 + $0x8] sm:$0xff] }
 0xf64   :  { %v1649_v39 = vpop.f32.mrf.mxu3 }
 0xf68   :  { %1653 = vmax.xlane.f32.xlu2 %v1652_v40 }
 0xf72   :  { %v1657_v41 = vpop.xlane.xlu1 %1656 }
 0xf73   :  { %v1665_v42 = vsub.f32 %v1600_v26, %v1657_v41  ;;  %v1466_v41 = vperm.slane %v6284_v30, 7 }
 0xf75   :  { %v1670_v44 = vmul.f32 1.442695, %v1665_v42 }
 0xf77   :  { %v1437_v45 = vpop.f32.mrf.mxu1  ;;  %6147 = vpow2.f32 %v1670_v44 }
 0xf78   :  { %v1438_v13 = vadd.f32 %v1437_v45, %v1379_v43 }
 0xf7a   :  { %v1441_v47 = vadd.f32 %v1438_v13, %v1330_v29 }
 0xf7c   :  { %v1442_v48 = vsel %vm207_vm1, %v1441_v47, 0.0 }
 0xf7d   :  { %1443 = vadd.xlane.f32.xlu0 %v1442_v48  ;;  %v6148_v50 = vpop.eup %6147 }
 0xf7e   :  { %v1679_v35 = vsel %vm1651_vm3, %v6148_v50, 0.0 }
 0xf7f   :  { %v1439_v49 = vpop.f32.mrf.mxu1 }
 0xf85   :  { %1680 = vadd.xlane.f32.xlu0 %v1679_v35 }
 0xf8a   :  { %v1765_v37 = vpop.permute.xlu1 %1764 }
 0xf8b   :  { %v1770_v18 = vsel %vm1497_vm12, %v1765_v37, 0 }
 0xf8c   :  { %1779 = vmatpush.bf16.msrb.mxu3 %v1770_v18 }
 0xf92   :  { %v1701_v53 = vpop.permute.xlu1 %1700 }
 0xf93   :  { %v1707_v1 = vsel %vm1497_vm12, %v1701_v53, 0 }
 0xf94   :  { %1716 = vmatpush.bf16.msra.mxu0 %v1707_v1 }
 0xf99   :  { %1722 = vrot.lane.b32.xlu0 %v6874_v12, %s6293_s2 }
 0xfd3   :  { %v1663_v10 = vpop.xlane.xlu2 %1662 }
 0xfd4   :  { %v1667_v24 = vsub.f32 %v1648_v21, %v1663_v10 }
 0xfd6   :  { %v1674_v55 = vmul.f32 1.442695, %v1667_v24 }
 0xfd8   :  { %6149 = vpow2.f32 %v1674_v55 }
 0xfdb   :  { %v1654_v6 = vpop.xlane.xlu2 %1653 }
 0xfdc   :  { %v1664_v33 = vsub.f32 %v1576_v38, %v1654_v6  ;;  %v1464_v38 = vperm.slane %v6284_v30, 6 }
 0xfde   :  { %v6150_v57 = vpop.eup %6149  ;;  %v1668_v11 = vmul.f32 1.442695, %v1664_v33 }
 0xfdf   :  { %v1685_v52 = vsel %vm1651_vm3, %v6150_v57, 0.0 }
 0xfe0   :  { %1686 = vadd.xlane.f32.xlu2 %v1685_v52 }
 0xff0   :  { %v1444_v59 = vpop.xlane.xlu0 %1443 }
 0xff1   :  { %v1445_v56 = vmul.f32 %v1444_v59, %v6584_v32 }
 0xff3   :  { %v1446_v51 = vsub.f32 %v1441_v47, %v1445_v56  ;;  %v5910_v56 = vld [vmem:[%s8062_s8 + $0x1c] sm:$0xf] }
 0xff5   :  { %v1447_v29 = vmul.f32 %v1446_v51, %v1446_v51 }
 0xff7   :  { %v1448_v2 = vsel %vm207_vm1, %v1447_v29, 0.0 }
 0xff8   :  { %1449 = vadd.xlane.f32.xlu0 %v1448_v2  ;;  %1743 = vrot.lane.b32.xlu2 %v6828_v23, %s6293_s2  ;;  %v1681_v12 = vpop.xlane.xlu0 %1680  ;;  %v5319_v2 = vld [vmem:[%s8062_s8 + $0xc] sm:$0xf0] }
 0xff9   :  { %6151 = vrcp.f32 %v1681_v12 }
 0xffa   :  { %6153 = vpow2.f32 %v1668_v11  ;;  %v48_v11 = vld [vmem:[%s8065_s13] sm:$0xf] }
 0xffb   :  { %6155 = vrcp.f32 %v1684_v58 }
 0xfff   :  { %v6152_v4 = vpop.eup %6151 }
0x1000   :  { %v1693_v63 = vmul.f32 %v6152_v4, %v6148_v50  ;;  %v6154_v14 = vpop.eup %6153 }
0x1001   :  { %v1676_v15 = vsel %vm1651_vm3, %v6154_v14, 0.0  ;;  %v6156_v20 = vpop.eup %6155 }
0x1002   :  { %v1697_v9 = vpack.c.bf16 %v1693_v63, %v1693_v63  ;;  %v1694_v17 = vmul.f32 %v6156_v20, %v6890_v61 }
0x1004   :  { %v1698_v8 = vpack.c.bf16 %v1694_v17, %v1694_v17 }
0x100b   :  { %v1723_v5 = vpop.permute.xlu0 %1722 }
0x100c   :  { %v1728_v7 = vsel %vm1497_vm12, %v1723_v5, 0 }
0x100d   :  { %1737 = vmatpush.bf16.msrb.mxu1 %v1728_v7 }
0x1010   :  { %5315 = vmatmul.msk.bf16.vlgmr.msrb.gmra.mxu1 %vm1702_vm13, %v1697_v9 }
0x1021   :  { %1677 = vadd.xlane.f32.xlu2 %v1676_v15 }
0x1039   :  { %1804 = vrot.lane.b32.xlu2 %v6773_v0, %s6294_s4 }
0x1053   :  { %v1687_v23 = vpop.xlane.xlu2 %1686 }
0x1054   :  { %6157 = vrcp.f32 %v1687_v23 }
0x105a   :  { %v6158_v16 = vpop.eup %6157 }
0x105b   :  { %v1695_v36 = vmul.f32 %v6158_v16, %v6150_v57  ;;  %v1744_v19 = vpop.permute.xlu2 %1743  ;;  %v1490_v16 = vperm.slane %v48_v11, 0 }
0x105c   :  { %v1749_v22 = vsel %vm1497_vm12, %v1744_v19, 0  ;;  %v1492_v19 = vperm.slane %v48_v11, 1 }
0x105d   :  { %v1699_v31 = vpack.c.bf16 %v1695_v36, %v1695_v36  ;;  %1758 = vmatpush.bf16.msrb.mxu2 %v1749_v22 }
0x105f   :  { %5317 = vmatmul.msk.bf16.vlgmr.msrb.gmra.mxu3 %vm1702_vm13, %v1699_v31 }
0x1060   :  { %5316 = vmatmul.msk.bf16.vlgmr.msrb.gmra.mxu2 %vm1702_vm13, %v1698_v8 }
0x106b   :  { %v1450_v62 = vpop.xlane.xlu0 %1449 }
0x106c   :  { %v1451_v0 = vmul.f32 %v1450_v62, %v6584_v32 }
0x106e   :  { %v1452_v25 = vadd.f32 1e-05, %v1451_v0 }
0x1070   :  { %6159 = vrsqrt.f32 %v1452_v25  ;;  %vm1459_vm4 = vweird.f32 %v1452_v25 }
0x1076   :  { %v6160_v26 = vpop.eup %6159 }
0x1077   :  { %v1454_v46 = vmul.f32 %v6160_v26, %v1452_v25  ;;  %vm1460_vm14 = vweird.f32 %v6160_v26 }
0x1078   :  { %vm1461_vm5 = vmor %vm1459_vm4, %vm1460_vm14 }
0x1079   :  { %v1455_v27 = vmul.f32 %v6160_v26, %v1454_v46 }
0x107b   :  { %v1456_v61 = vmul.f32 0.5, %v1455_v27 }
0x107d   :  { %v1457_v28 = vsub.f32 1.5, %v1456_v61 }
0x107f   :  { %v1458_v21 = vmul.f32 %v6160_v26, %v1457_v28 }
0x1081   :  { %v1462_v39 = vsel %vm1461_vm5, %v6160_v26, %v1458_v21 }
0x1082   :  { %v1463_v40 = vmul.f32 %v1462_v39, %v1446_v51  ;;  %v5323_v51 = vld [vmem:[%s8062_s8 + $0x24] sm:$0xf0] }
0x1083   :  { %v6982_v29 = vor.u32 %v5910_v56, %v5323_v51  ;;  %v1882_v51 = vperm.slane %v6810_v60, 3 }
0x1084   :  { %v1465_v42 = vmul.f32 %v1464_v38, %v1463_v40  ;;  %v1801_v38 = vperm.slane %v6810_v60, 1  ;;  %v1856_v40 = vperm.slane %v6810_v60, 2 }
0x1085   :  { %1874 = vmatpush.bf16.msra.mxu1 %v6982_v29 }
0x1086   :  { %v1467_v43 = vadd.f32 %v1466_v41, %v1465_v42 }
0x1088   :  { %v1468_v44 = vsel %vm631_vm8, %v1467_v43, 0.0 }
0x1089   :  { %1469 = vadd.xlane.f32.xlu1 %v1468_v44 }
0x108d   :  { %v1739_v45 = vpop.f32.mrf.mxu1 }
0x1094   :  { %v1678_v13 = vpop.xlane.xlu2 %1677 }
0x1095   :  { %6161 = vrcp.f32 %v1678_v13  ;;  %v1741_v47 = vpop.f32.mrf.mxu1 }
0x109b   :  { %v6162_v48 = vpop.eup %6161 }
0x109c   :  { %v1692_v49 = vmul.f32 %v6162_v48, %v6154_v14  ;;  %v1805_v52 = vpop.permute.xlu2 %1804 }
0x109d   :  { %1817 = vmatpush.bf16.msrb.mxu0 %v1805_v52 }
0x109e   :  { %v1696_v50 = vpack.c.bf16 %v1692_v49, %v1692_v49 }
0x10a0   :  { %5314 = vmatmul.msk.bf16.vlgmr.msra.gmra.mxu0 %vm1702_vm13, %v1696_v50 }
0x10e2   :  { %v1781_v35 = vpop.f32.mrf.mxu3 }
0x10e3   :  { %1794 = vrot.lane.b32.xlu2 %v1781_v35, %s6297_s18  ;;  %v1760_v37 = vpop.f32.mrf.mxu2 }
0x10e4   :  { %1790 = vrot.lane.b32.xlu1 %v1760_v37, %s6295_s17 }
0x10ea   :  { %v1783_v18 = vpop.f32.mrf.mxu3 }
0x10eb   :  { %v1762_v53 = vpop.f32.mrf.mxu2  ;;  %1885 = vrot.lane.b32.xlu2 %v6982_v29, %s6292_s28 }
0x10fc   :  { %v1470_v1 = vpop.xlane.xlu1 %1469 }
0x10fd   :  { %v1471_v10 = vmul.f32 %v1470_v1, %v6584_v32 }
0x10ff   :  { %v1472_v24 = vsub.f32 %v1467_v43, %v1471_v10 }
0x1101   :  { %v1473_v55 = vmul.f32 %v1472_v24, %v1472_v24 }
0x1103   :  { %v1474_v57 = vsel %vm631_vm8, %v1473_v55, 0.0 }
0x1104   :  { %1475 = vadd.xlane.f32.xlu0 %v1474_v57 }
0x1118   :  { %1786 = vrot.lane.b32.xlu0 %v1739_v45, %s6296_s0 }
0x111d   :  { %v1718_v58 = vpop.f32.mrf.mxu0 }
0x1120   :  { %1802 = vrot.lane.b32.xlu0 %v6782_v3, %s6294_s4  ;;  %v5907_v3 = vld [vmem:[%s8062_s8 + $0x4] sm:$0xf] }
0x1121   :  { %v6993_v12 = vor.u32 %v5907_v3, %v5319_v2  ;;  %v1851_v2 = vperm.slane %v6810_v60, 6 }
0x1123   :  { %1875 = vmatpush.bf16.msra.mxu1 %v6993_v12 }
0x1125   :  { %v1720_v59 = vpop.f32.mrf.mxu0 }
0x1128   :  { %1883 = vrot.lane.b32.xlu0 %v6993_v12, %s6292_s28 }
0x113d   :  { %v1795_v8 = vpop.permute.xlu2 %1794 }
0x1145   :  { %v1886_v21 = vpop.permute.xlu2 %1885 }
0x1146   :  { %1898 = vmatpush.bf16.msra.mxu2 %v1886_v21 }
0x1156   :  { %v1791_v17 = vpop.permute.xlu1 %1790 }
0x1177   :  { %v1476_v4 = vpop.xlane.xlu0 %1475 }
0x1178   :  { %v1477_v63 = vmul.f32 %v1476_v4, %v6584_v32 }
0x117a   :  { %v1478_v5 = vadd.f32 1e-05, %v1477_v63 }
0x117c   :  { %6163 = vrsqrt.f32 %v1478_v5  ;;  %vm1485_vm15 = vweird.f32 %v1478_v5 }
0x1182   :  { %v6164_v6 = vpop.eup %6163 }
0x1183   :  { %v1480_v7 = vmul.f32 %v6164_v6, %v1478_v5  ;;  %vm1486_vm8 = vweird.f32 %v6164_v6  ;;  %v1853_v5 = vperm.slane %v6810_v60, 7 }
0x1184   :  { %vm1487_vm9 = vmor %vm1485_vm15, %vm1486_vm8 }
0x1185   :  { %v1481_v9 = vmul.f32 %v6164_v6, %v1480_v7 }
0x1187   :  { %v1482_v33 = vmul.f32 0.5, %v1481_v9 }
0x1189   :  { %v1483_v14 = vsub.f32 1.5, %v1482_v33 }
0x118a   :  { %v1787_v15 = vpop.permute.xlu0 %1786 }
0x118b   :  { %v1484_v23 = vmul.f32 %v6164_v6, %v1483_v14  ;;  %v1797_v20 = vsel %vm260_vm2, %v1718_v58, %v1787_v15  ;;  %v5335_v14 = vld [vmem:[%s8062_s8 + $0x20] sm:$0xf]  ;;  %v5912_v15 = vld [vmem:[%s8062_s8 + $0x28] sm:$0xf0] }
0x118c   :  { %v1798_v31 = vsel %vm595_vm6, %v1797_v20, %v1791_v17  ;;  %v5331_v17 = vld [vmem:[%s8062_s8 + $0x8] sm:$0xf] }
0x118d   :  { %v1488_v36 = vsel %vm1487_vm9, %v6164_v6, %v1484_v23  ;;  %v1799_v0 = vsel %vm598_vm7, %v1798_v31, %v1795_v8  ;;  %v5336_v23 = vor.u32 %v5912_v15, %v5335_v14 }
0x118e   :  { %v1489_v22 = vmul.f32 %v1488_v36, %v1472_v24  ;;  %v1800_v27 = vpack.c.bf16 %v1799_v0, %v1799_v0  ;;  %v5909_v36 = vld [vmem:[%s8062_s8 + $0x10] sm:$0xf0] }
0x1190   :  { %v1491_v62 = vmul.f32 %v1490_v16, %v1489_v22 }
0x1192   :  { %v7005_v25 = vadd.f32 %v1492_v19, %v1491_v62  ;;  %v1803_v26 = vpop.permute.xlu0 %1802  ;;  %v5332_v19 = vor.u32 %v5909_v36, %v5331_v17  ;;  %v5922_v17 = vld [vmem:[%s8062_s8 + $0x38] sm:$0xf0] }
0x1193   :  { %1818 = vmatpush.bf16.msrb.mxu0 %v1803_v26 }
0x1194   :  { %v1495_v46 = vrot.slane %v7005_v25, 6 }
0x1196   :  { %5318 = vmatmul.msk.bf16.vlgmr.msrb.gmra.mxu0 %vm207_vm1, %v1800_v27  ;;  %v1498_v61 = vsel %vm1497_vm12, %v7005_v25, %v1495_v46 }
0x1197   :  { %v7011_v28 = vpack.c.bf16 %v1498_v61, %v1498_v61  ;;  %v5920_v61 = vld [vmem:[%s8066_s9 + $0x38] sm:$0xff] }
0x1198   :  { %2045 = vmatpush.bf16.msra.mxu0 %v5920_v61 }
0x1199   :  { %5327 = vmatmul.msk.bf16.vlgmr.msra.gmra.mxu1 %vm207_vm1, %v7011_v28 }
0x119a   :  { %v1884_v30 = vpop.permute.xlu0 %1883 }
0x119b   :  { %1899 = vmatpush.bf16.msra.mxu2 %v1884_v30  ;;  %v5919_v30 = vld [vmem:[%s8066_s9 + $0x30] sm:$0xff] }
0x119c   :  { %2046 = vmatpush.bf16.msra.mxu0 %v5919_v30 }
0x1213   :  { %v1820_v39 = vpop.f32.mrf.mxu0 }
0x1214   :  { %v1821_v41 = vadd.f32 %v1820_v39, %v1801_v38  ;;  %v5917_v39 = vld [vmem:[%s8066_s9 + $0x20] sm:$0xff] }
0x1216   :  { %v1825_v42 = vrot.slane %v1821_v41, 6  ;;  %v1877_v43 = vpop.f32.mrf.mxu1 }
0x1217   :  { %v1878_v44 = vadd.f32 %v1877_v43, %v1856_v40 }
0x1218   :  { %v1827_v45 = vadd.f32 %v6795_v34, %v1825_v42  ;;  %v5916_v42 = vld [vmem:[%s8066_s9 + $0x18] sm:$0xff] }
0x1219   :  { %v1881_v13 = vpack.c.bf16 %v1878_v44, %v1878_v44  ;;  %v7067_v44 = vld [vmem:[%s8063_s10 + $0x8] sm:$0xf] }
0x121a   :  { %v1829_v47 = vsel %vm1828_vm10, %v1827_v45, 0.0  ;;  %v2084_v61 = vperm.slane %v7067_v44, 2 }
0x121b   :  { %v1822_v48 = vpop.f32.mrf.mxu0  ;;  %1830 = vadd.xlane.f32.xlu1 %v1829_v47  ;;  %5328 = vmatmul.msk.bf16.vlgmr.msra.gmra.mxu2 %vm207_vm1, %v1881_v13  ;;  %v5915_v13 = vld [vmem:[%s8066_s9 + $0x10] sm:$0xff] }
0x121c   :  { %v1931_v48 = vperm.slane %v7067_v44, 0 }
0x121e   :  { %v1879_v49 = vpop.f32.mrf.mxu1 }
0x128e   :  { %v1831_v50 = vpop.xlane.xlu1 %1830 }
0x128f   :  { %v1832_v35 = vmul.f32 %v1831_v50, %v6584_v32 }
0x1291   :  { %v1833_v37 = vsub.f32 %v1827_v45, %v1832_v35 }
0x1293   :  { %v1834_v18 = vmul.f32 %v1833_v37, %v1833_v37 }
0x1295   :  { %v1835_v53 = vsel %vm1828_vm10, %v1834_v18, 0.0 }
0x1296   :  { %1836 = vadd.xlane.f32.xlu2 %v1835_v53 }
0x129e   :  { %v1901_v1 = vpop.f32.mrf.mxu2 }
0x12a6   :  { %v1903_v10 = vpop.f32.mrf.mxu2 }
0x12ae   :  { %1969 = vrot.lane.b32.xlu2 %v6982_v29, %s6293_s2  ;;  %v1902_v29 = vadd.f32 %v1901_v1, %v1882_v51 }
0x12b0   :  { %v1906_v7 = vrot.slane %v1902_v29, 6 }
0x12b6   :  { %1967 = vrot.lane.b32.xlu2 %v5332_v19, %s6293_s2 }
0x1309   :  { %v1837_v34 = vpop.xlane.xlu2 %1836 }
0x130a   :  { %v1838_v24 = vmul.f32 %v1837_v34, %v6584_v32 }
0x130c   :  { %v1839_v55 = vadd.f32 1e-05, %v1838_v24 }
0x130e   :  { %6165 = vrsqrt.f32 %v1839_v55  ;;  %vm1846_vm14 = vweird.f32 %v1839_v55 }
0x1311   :  { %v1970_v0 = vpop.permute.xlu2 %1969 }
0x1314   :  { %v6166_v57 = vpop.eup %6165 }
0x1315   :  { %v1841_v52 = vmul.f32 %v6166_v57, %v1839_v55  ;;  %vm1847_vm11 = vweird.f32 %v6166_v57  ;;  %v5914_v55 = vld [vmem:[%s8066_s9 + $0x8] sm:$0xff] }
0x1316   :  { %vm1848_vm4 = vmor %vm1846_vm14, %vm1847_vm11 }
0x1317   :  { %v1842_v58 = vmul.f32 %v6166_v57, %v1841_v52  ;;  %v1952_v52 = vperm.slane %v6810_v60, 4 }
0x1319   :  { %v1843_v59 = vmul.f32 0.5, %v1842_v58  ;;  %v1968_v50 = vpop.permute.xlu2 %1967 }
0x131b   :  { %v1844_v56 = vsub.f32 1.5, %v1843_v59 }
0x131d   :  { %v1845_v3 = vmul.f32 %v6166_v57, %v1844_v56 }
0x131f   :  { %v1849_v4 = vsel %vm1848_vm4, %v6166_v57, %v1845_v3  ;;  %v5913_v57 = vld [vmem:[%s8066_s9] sm:$0xff] }
0x1320   :  { %v1850_v63 = vmul.f32 %v1849_v4, %v1833_v37  ;;  %v1933_v37 = vperm.slane %v7067_v44, 1 }
0x1322   :  { %v1852_v6 = vmul.f32 %v1851_v2, %v1850_v63  ;;  %v1996_v2 = vperm.slane %v6810_v60, 5  ;;  %v5386_v60 = vld [vmem:[%s8062_s8 + $0x48] sm:$0xf] }
0x1324   :  { %v1854_v9 = vadd.f32 %v1853_v5, %v1852_v6 }
0x1326   :  { %v1908_v33 = vadd.f32 %v1906_v7, %v1854_v9 }
0x1328   :  { %v1909_v11 = vsel %vm1828_vm10, %v1908_v33, 0.0 }
0x1329   :  { %1910 = vadd.xlane.f32.xlu0 %v1909_v11 }
0x133d   :  { %1971 = vrot.lane.b32.xlu0 %v5336_v23, %s6293_s2  ;;  %v5925_v23 = vld [vmem:[%s8062_s8 + $0x50] sm:$0xf0] }
0x139c   :  { %v1911_v20 = vpop.xlane.xlu0 %1910 }
0x139d   :  { %v1912_v16 = vmul.f32 %v1911_v20, %v6584_v32  ;;  %v5382_v20 = vld [vmem:[%s8062_s8 + $0x30] sm:$0xf] }
0x139e   :  { %v7102_v36 = vor.u32 %v5922_v17, %v5382_v20 }
0x139f   :  { %v1913_v22 = vsub.f32 %v1908_v33, %v1912_v16  ;;  %v7096_v16 = vor.u32 %v5925_v23, %v5386_v60  ;;  %v7150_v60 = vld [vmem:[%s8064_s3] sm:$0xf] }
0x13a1   :  { %v1914_v31 = vmul.f32 %v1913_v22, %v1913_v22  ;;  %2125 = vmatpush.bf16.msrb.mxu1 %v7096_v16 }
0x13a3   :  { %v1915_v8 = vsel %vm1828_vm10, %v1914_v31, 0.0 }
0x13a4   :  { %1916 = vadd.xlane.f32.xlu1 %v1915_v8 }
0x13a5   :  { %2126 = vmatpush.bf16.msrb.mxu1 %v7102_v36 }
0x13af   :  { %v1972_v62 = vpop.permute.xlu0 %1971 }
0x13b0   :  { %v1975_v26 = vsel %vm156_vm0, %v1970_v0, %v1972_v62 }
0x13b1   :  { %1987 = vmatpush.bf16.msra.mxu3 %v1975_v26 }
0x13bd   :  { %1965 = vrot.lane.b32.xlu1 %v6993_v12, %s6293_s2  ;;  %v5918_v12 = vld [vmem:[%s8066_s9 + $0x28] sm:$0xff] }
0x13be   :  { %2047 = vmatpush.bf16.msra.mxu0 %v5918_v12  ;;  %v2086_v12 = vperm.slane %v7067_v44, 3 }
0x13c2   :  { %2048 = vmatpush.bf16.msra.mxu0 %v5917_v39 }
0x13c6   :  { %2049 = vmatpush.bf16.msra.mxu0 %v5916_v42  ;;  %v7116_v42 = vld [vmem:[%s8063_s10 + $0x10] sm:$0xff] }
0x13ca   :  { %2050 = vmatpush.bf16.msra.mxu0 %v5915_v13 }
0x13ce   :  { %2051 = vmatpush.bf16.msra.mxu0 %v5914_v55 }
0x13d2   :  { %2052 = vmatpush.bf16.msra.mxu0 %v5913_v57 }
0x1417   :  { %v1917_v46 = vpop.xlane.xlu1 %1916 }
0x1418   :  { %v1918_v27 = vmul.f32 %v1917_v46, %v6584_v32 }
0x141a   :  { %v1919_v21 = vadd.f32 1e-05, %v1918_v27 }
0x141c   :  { %6167 = vrsqrt.f32 %v1919_v21  ;;  %vm1926_vm8 = vweird.f32 %v1919_v21 }
0x1422   :  { %v6168_v38 = vpop.eup %6167 }
0x1423   :  { %v1921_v40 = vmul.f32 %v6168_v38, %v1919_v21  ;;  %vm1927_vm5 = vweird.f32 %v6168_v38 }
0x1424   :  { %vm1928_vm15 = vmor %vm1926_vm8, %vm1927_vm5 }
0x1425   :  { %v1922_v41 = vmul.f32 %v6168_v38, %v1921_v40 }
0x1427   :  { %v1923_v43 = vmul.f32 0.5, %v1922_v41 }
0x1429   :  { %v1924_v45 = vsub.f32 1.5, %v1923_v43  ;;  %v2101_v43 = vperm.slane %v7116_v42, 0 }
0x142b   :  { %v1925_v47 = vmul.f32 %v6168_v38, %v1924_v45 }
0x142d   :  { %v1929_v49 = vsel %vm1928_vm15, %v6168_v38, %v1925_v47 }
0x142e   :  { %v1930_v35 = vmul.f32 %v1929_v49, %v1913_v22 }
0x142f   :  { %v1966_v18 = vpop.permute.xlu1 %1965 }
0x1430   :  { %v1932_v53 = vmul.f32 %v1931_v48, %v1930_v35  ;;  %v1974_v1 = vsel %vm156_vm0, %v1966_v18, %v1968_v50 }
0x1431   :  { %1988 = vmatpush.bf16.msra.mxu3 %v1974_v1 }
0x1432   :  { %v1934_v10 = vadd.f32 %v1933_v37, %v1932_v53 }
0x1434   :  { %v1951_v34 = vpack.c.bf16 %v1934_v10, %v1934_v10 }
0x1436   :  { %v1954_v24 = vrot.slane %v1951_v34, 1 }
0x1438   :  { %5337 = vmatmul.msk.bf16.vlgmr.msra.gmra.mxu3 %vm207_vm1, %v1954_v24 }
0x14bb   :  { %v1990_v58 = vpop.f32.mrf.mxu3 }
0x14bc   :  { %v1991_v59 = vadd.f32 %v1990_v58, %v1952_v52 }
0x14be   :  { %v1994_v56 = vmax.f32 %v1991_v59, 0.0 }
0x14c0   :  { %v1995_v51 = vpack.c.bf16 %v1994_v56, %v1994_v56 }
0x14c2   :  { %2053 = vmatmul.bf16.vlgmr.msra.gmra.mxu0 %v1995_v51 }
0x14c3   :  { %v1992_v3 = vpop.f32.mrf.mxu3 }
0x153f   :  { %v2054_v4 = vpop.f32.mrf.mxu0 }
0x1540   :  { %v2055_v29 = vadd.f32 %v2054_v4, %v1996_v2 }
0x1542   :  { %v2059_v63 = vrot.slane %v2055_v29, 6 }
0x1544   :  { %v2061_v5 = vadd.f32 %v2059_v63, %v1934_v10 }
0x1546   :  { %v2062_v6 = vsel %vm1828_vm10, %v2061_v5, 0.0 }
0x1547   :  { %v2056_v7 = vpop.f32.mrf.mxu0  ;;  %2063 = vadd.xlane.f32.xlu0 %v2062_v6 }
0x15ba   :  { %v2064_v9 = vpop.xlane.xlu0 %2063 }
0x15bb   :  { %v2065_v33 = vmul.f32 %v2064_v9, %v6584_v32 }
0x15bd   :  { %v2066_v11 = vsub.f32 %v2061_v5, %v2065_v33 }
0x15bf   :  { %v2067_v14 = vmul.f32 %v2066_v11, %v2066_v11 }
0x15c1   :  { %v2068_v15 = vsel %vm1828_vm10, %v2067_v14, 0.0 }
0x15c2   :  { %2069 = vadd.xlane.f32.xlu1 %v2068_v15 }
0x1635   :  { %v2070_v19 = vpop.xlane.xlu1 %2069 }
0x1636   :  { %v2071_v22 = vmul.f32 %v2070_v19, %v6584_v32 }
0x1638   :  { %v2072_v31 = vadd.f32 1e-05, %v2071_v22 }
0x163a   :  { %6169 = vrsqrt.f32 %v2072_v31  ;;  %vm2079_vm11 = vweird.f32 %v2072_v31 }
0x1640   :  { %v6170_v8 = vpop.eup %6169 }
0x1641   :  { %v2074_v62 = vmul.f32 %v6170_v8, %v2072_v31  ;;  %vm2080_vm9 = vweird.f32 %v6170_v8 }
0x1642   :  { %vm2081_vm14 = vmor %vm2079_vm11, %vm2080_vm9 }
0x1643   :  { %v2075_v0 = vmul.f32 %v6170_v8, %v2074_v62 }
0x1645   :  { %v2076_v26 = vmul.f32 0.5, %v2075_v0 }
0x1647   :  { %v2077_v46 = vsub.f32 1.5, %v2076_v26 }
0x1649   :  { %v2078_v27 = vmul.f32 %v6170_v8, %v2077_v46 }
0x164b   :  { %v2082_v21 = vsel %vm2081_vm14, %v6170_v8, %v2078_v27 }
0x164c   :  { %v2083_v30 = vmul.f32 %v2082_v21, %v2066_v11 }
0x164e   :  { %v2085_v38 = vmul.f32 %v2084_v61, %v2083_v30 }
0x1650   :  { %v7108_v39 = vadd.f32 %v2086_v12, %v2085_v38 }
0x1652   :  { %v2100_v40 = vpack.c.bf16 %v7108_v39, %v7108_v39 }
0x1654   :  { %v2103_v41 = vrot.slane %v2100_v40, 1 }
0x1656   :  { %5388 = vmatmul.msk.bf16.vlgmr.msrb.gmra.mxu1 %vm207_vm1, %v2103_v41 }
0x16d3   :  { %v2128_v45 = vpop.f32.mrf.mxu1 }
0x16d4   :  { %v2129_v13 = vadd.f32 %v2128_v45, %v2101_v43 }
0x16d6   :  { %2139 = vrot.lane.b32.xlu2 %v2129_v13, %s6289_s25  ;;  %v2142_v47 = vpack.c.bf16 %v2129_v13, %v2129_v13 }
0x16d8   :  { %v2147_v48 = vunpack.c.l.b16 %v2142_v47 }
0x16da   :  { %v7122_v49 = vpack.c.b16 %v2147_v48, %v2147_v48 }
0x16db   :  { %v2130_v44 = vpop.f32.mrf.mxu1 }
0x16de   :  { %2133 = vrot.lane.b32.xlu2 %v2129_v13, %s6290_s26 }
0x16e6   :  { %2136 = vrot.lane.b32.xlu2 %v2129_v13, %s6291_s27 }
0x16ee   :  { %2149 = vrot.lane.b32.xlu2 %v7122_v49, %s6292_s28 }
0x1730   :  { %v2140_v50 = vpop.permute.xlu2 %2139 }
0x1731   :  { %v2145_v35 = vpack.c.bf16 %v2140_v50, %v2140_v50 }
0x1733   :  { %v2219_v37 = vunpack.c.l.b16 %v2145_v35 }
0x1735   :  { %v7126_v18 = vpack.c.b16 %v2219_v37, %v2219_v37 }
0x1737   :  { %2221 = vrot.lane.b32.xlu2 %v7126_v18, %s6292_s28 }
0x1738   :  { %v2134_v53 = vpop.permute.xlu2 %2133 }
0x1739   :  { %v2143_v1 = vpack.c.bf16 %v2134_v53, %v2134_v53 }
0x173b   :  { %v2171_v10 = vunpack.c.l.b16 %v2143_v1 }
0x173d   :  { %v7130_v34 = vpack.c.b16 %v2171_v10, %v2171_v10 }
0x173f   :  { %2173 = vrot.lane.b32.xlu0 %v7130_v34, %s6292_s28 }
0x1740   :  { %v2137_v24 = vpop.permute.xlu2 %2136 }
0x1741   :  { %v2144_v55 = vpack.c.bf16 %v2137_v24, %v2137_v24 }
0x1743   :  { %v2195_v57 = vunpack.c.l.b16 %v2144_v55 }
0x1745   :  { %v2196_v52 = vpack.c.b16 %v2195_v57, %v2195_v57 }
0x1747   :  { %2197 = vrot.lane.b32.xlu1 %v2196_v52, %s6292_s28 }
0x1748   :  { %v2150_v58 = vpop.permute.xlu2 %2149 }
0x1749   :  { %v2155_v59 = vsel %vm260_vm2, %v2150_v58, 0 }
0x174a   :  { %2164 = vmatpush.bf16.xpose.msrb.mxu2 %v2155_v59 }
0x1751   :  { %5389 = vmatmul.msk.bf16.vlgmr.msrb.gmra.mxu2 %vm260_vm2, %v2142_v47 }
0x1791   :  { %v2222_v56 = vpop.permute.xlu2 %2221 }
0x1792   :  { %v2227_v51 = vsel %vm260_vm2, %v2222_v56, 0 }
0x1793   :  { %2236 = vmatpush.bf16.xpose.msra.mxu2 %v2227_v51  ;;  %v5921_v51 = vld [vmem:[%s8062_s8 + $0x34] sm:$0xf] }
0x179a   :  { %5392 = vmatmul.msk.bf16.vlgmr.msra.gmra.mxu2 %vm260_vm2, %v2145_v35 }
0x17b1   :  { %v2174_v3 = vpop.permute.xlu0 %2173 }
0x17b2   :  { %v2179_v2 = vsel %vm260_vm2, %v2174_v3, 0  ;;  %v5398_v3 = vld [vmem:[%s8062_s8 + $0x3c] sm:$0xf0] }
0x17b3   :  { %2188 = vmatpush.bf16.xpose.msrb.mxu3 %v2179_v2 }
0x17b9   :  { %v2198_v4 = vpop.permute.xlu1 %2197 }
0x17ba   :  { %v2203_v29 = vsel %vm260_vm2, %v2198_v4, 0  ;;  %5390 = vmatmul.msk.bf16.vlgmr.msrb.gmra.mxu3 %vm260_vm2, %v2143_v1 }
0x17bb   :  { %2212 = vmatpush.bf16.xpose.msra.mxu1 %v2203_v29 }
0x17c2   :  { %5391 = vmatmul.msk.bf16.vlgmr.msra.gmra.mxu1 %vm260_vm2, %v2144_v55  ;;  %v5402_v55 = vld [vmem:[%s8062_s8 + $0x54] sm:$0xf0] }
0x17d4   :  { %v2166_v63 = vpop.f32.mrf.mxu2 }
0x17d5   :  { %v2167_v33 = vadd.f32 %v2166_v63, %v6851_v54 }
0x17d7   :  { %v2242_v14 = vsel %vm1651_vm3, %v2167_v33, -inf }
0x17dc   :  { %v2168_v5 = vpop.f32.mrf.mxu2 }
0x17dd   :  { %v7188_v5 = vor.u32 %v5921_v51, %v5398_v3 }
0x181d   :  { %v2238_v6 = vpop.f32.mrf.mxu2 }
0x181e   :  { %v2239_v7 = vadd.f32 %v2238_v6, %v6851_v54 }
0x1820   :  { %v2251_v9 = vsel %vm1651_vm3, %v2239_v7, -inf }
0x1821   :  { %2252 = vmax.xlane.f32.xlu2 %v2251_v9 }
0x1825   :  { %v2240_v11 = vpop.f32.mrf.mxu2 }
0x1829   :  { %2243 = vmax.xlane.f32.xlu2 %v2242_v14 }
0x183d   :  { %v2190_v15 = vpop.f32.mrf.mxu3 }
0x183e   :  { %v2191_v23 = vadd.f32 %v7150_v60, %v2190_v15 }
0x183f   :  { %v2214_v20 = vpop.f32.mrf.mxu1 }
0x1840   :  { %v2215_v17 = vadd.f32 %v7150_v60, %v2214_v20  ;;  %v2245_v19 = vsel %vm1651_vm3, %v2191_v23, -inf }
0x1841   :  { %2246 = vmax.xlane.f32.xlu0 %v2245_v19 }
0x1842   :  { %v2248_v54 = vsel %vm1651_vm3, %v2215_v17, -inf }
0x1843   :  { %2249 = vmax.xlane.f32.xlu1 %v2248_v54 }
0x1845   :  { %v2192_v22 = vpop.f32.mrf.mxu3 }
0x1847   :  { %v2216_v31 = vpop.f32.mrf.mxu1 }
0x185c   :  { %2332 = vrot.lane.b32.xlu1 %v2196_v52, %s6293_s2 }
0x1864   :  { %2393 = vrot.lane.b32.xlu1 %v7096_v16, %s6294_s4 }
0x1894   :  { %v2253_v0 = vpop.xlane.xlu2 %2252 }
0x1895   :  { %v2257_v61 = vsub.f32 %v2239_v7, %v2253_v0 }
0x1897   :  { %v2264_v30 = vmul.f32 1.442695, %v2257_v61 }
0x189c   :  { %v2244_v44 = vpop.xlane.xlu2 %2243 }
0x189d   :  { %v2254_v47 = vsub.f32 %v2167_v33, %v2244_v44 }
0x189f   :  { %v2258_v48 = vmul.f32 1.442695, %v2254_v47 }
0x18b4   :  { %v2247_v8 = vpop.xlane.xlu0 %2246 }
0x18b5   :  { %v2255_v62 = vsub.f32 %v2191_v23, %v2247_v8 }
0x18b6   :  { %v2250_v26 = vpop.xlane.xlu1 %2249 }
0x18b7   :  { %v2260_v46 = vmul.f32 1.442695, %v2255_v62  ;;  %v2256_v27 = vsub.f32 %v2215_v17, %v2250_v26 }
0x18b9   :  { %6171 = vpow2.f32 %v2260_v46  ;;  %v2262_v21 = vmul.f32 1.442695, %v2256_v27 }
0x18bb   :  { %6173 = vpow2.f32 %v2262_v21 }
0x18bc   :  { %6175 = vpow2.f32 %v2264_v30 }
0x18bd   :  { %6177 = vpow2.f32 %v2258_v48 }
0x18bf   :  { %v6172_v12 = vpop.eup %6171 }
0x18c0   :  { %v2269_v38 = vsel %vm1651_vm3, %v6172_v12, 0.0 }
0x18c1   :  { %v6174_v40 = vpop.eup %6173  ;;  %2270 = vadd.xlane.f32.xlu0 %v2269_v38 }
0x18c2   :  { %v2272_v41 = vsel %vm1651_vm3, %v6174_v40, 0.0  ;;  %v6176_v16 = vpop.eup %6175 }
0x18c3   :  { %2273 = vadd.xlane.f32.xlu2 %v2272_v41  ;;  %v2275_v43 = vsel %vm1651_vm3, %v6176_v16, 0.0  ;;  %v6178_v50 = vpop.eup %6177 }
0x18c4   :  { %v2266_v35 = vsel %vm1651_vm3, %v6178_v50, 0.0 }
0x18cb   :  { %2276 = vadd.xlane.f32.xlu2 %v2275_v43 }
0x18ce   :  { %v2333_v45 = vpop.permute.xlu1 %2332 }
0x18cf   :  { %v2338_v13 = vsel %vm1497_vm12, %v2333_v45, 0 }
0x18d0   :  { %2347 = vmatpush.bf16.msrb.mxu1 %v2338_v13  ;;  %v2390_v13 = vperm.slane %v7116_v42, 1 }
0x18d5   :  { %2353 = vrot.lane.b32.xlu0 %v7126_v18, %s6293_s2 }
0x18d6   :  { %v2394_v0 = vpop.permute.xlu1 %2393 }
0x18e3   :  { %2311 = vrot.lane.b32.xlu2 %v7130_v34, %s6293_s2 }
0x18eb   :  { %2290 = vrot.lane.b32.xlu2 %v7122_v49, %s6293_s2  ;;  %v5924_v49 = vld [vmem:[%s8062_s8 + $0x4c] sm:$0xf] }
0x18ec   :  { %v7177_v58 = vor.u32 %v5924_v49, %v5402_v55 }
0x18ff   :  { %2267 = vadd.xlane.f32.xlu0 %v2266_v35 }
0x1934   :  { %v2271_v53 = vpop.xlane.xlu0 %2270 }
0x1936   :  { %v2274_v37 = vpop.xlane.xlu2 %2273 }
0x1937   :  { %6179 = vrcp.f32 %v2274_v37 }
0x1938   :  { %6181 = vrcp.f32 %v2271_v53 }
0x193d   :  { %v6180_v1 = vpop.eup %6179 }
0x193e   :  { %v2284_v18 = vmul.f32 %v6180_v1, %v6174_v40  ;;  %v2277_v10 = vpop.xlane.xlu2 %2276  ;;  %v6182_v24 = vpop.eup %6181  ;;  %v2443_v40 = vperm.slane %v7116_v42, 2 }
0x193f   :  { %6183 = vrcp.f32 %v2277_v10  ;;  %v2283_v52 = vmul.f32 %v6182_v24, %v6172_v12 }
0x1940   :  { %v2288_v34 = vpack.c.bf16 %v2284_v18, %v2284_v18 }
0x1941   :  { %v2287_v63 = vpack.c.bf16 %v2283_v52, %v2283_v52 }
0x1942   :  { %5395 = vmatmul.msk.bf16.vlgmr.msrb.gmra.mxu1 %vm1702_vm13, %v2288_v34 }
0x1945   :  { %v6184_v57 = vpop.eup %6183 }
0x1946   :  { %v2285_v59 = vmul.f32 %v6184_v57, %v6176_v16  ;;  %v2312_v56 = vpop.permute.xlu2 %2311 }
0x1947   :  { %v2317_v2 = vsel %vm1497_vm12, %v2312_v56, 0  ;;  %v2354_v4 = vpop.permute.xlu0 %2353 }
0x1948   :  { %v2359_v29 = vsel %vm1497_vm12, %v2354_v4, 0  ;;  %2326 = vmatpush.bf16.msrb.mxu0 %v2317_v2  ;;  %v2289_v6 = vpack.c.bf16 %v2285_v59, %v2285_v59  ;;  %v2466_v2 = vperm.slane %v7116_v42, 3 }
0x1949   :  { %2368 = vmatpush.bf16.msrb.mxu2 %v2359_v29  ;;  %v5430_v29 = vld [vmem:[%s8062_s8 + $0x50] sm:$0xf] }
0x194b   :  { %5394 = vmatmul.msk.bf16.vlgmr.msrb.gmra.mxu0 %vm1702_vm13, %v2287_v63  ;;  %v5926_v63 = vld [vmem:[%s8062_s8 + $0x58] sm:$0xf0] }
0x194c   :  { %2458 = vmatpush.bf16.msra.mxu0 %v7177_v58  ;;  %5396 = vmatmul.msk.bf16.vlgmr.msrb.gmra.mxu2 %vm1702_vm13, %v2289_v6  ;;  %v2439_v6 = vperm.slane %v7116_v42, 6 }
0x194e   :  { %v2291_v7 = vpop.permute.xlu2 %2290 }
0x194f   :  { %v2296_v9 = vsel %vm1497_vm12, %v2291_v7, 0  ;;  %v5431_v7 = vor.u32 %v5926_v63, %v5430_v29  ;;  %v2580_v29 = vperm.slane %v7116_v42, 5 }
0x1950   :  { %2459 = vmatpush.bf16.msra.mxu0 %v7188_v5  ;;  %2305 = vmatpush.bf16.msra.mxu3 %v2296_v9 }
0x1954   :  { %2406 = vmatpush.bf16.msrb.mxu3 %v2394_v0 }
0x195b   :  { %5406 = vmatmul.msk.bf16.vlgmr.msra.gmra.mxu0 %vm207_vm1, %v7011_v28 }
0x1972   :  { %v2268_v33 = vpop.xlane.xlu0 %2267 }
0x1973   :  { %6185 = vrcp.f32 %v2268_v33 }
0x1979   :  { %v6186_v11 = vpop.eup %6185 }
0x197a   :  { %v2282_v14 = vmul.f32 %v6186_v11, %v6178_v50 }
0x197c   :  { %v2286_v15 = vpack.c.bf16 %v2282_v14, %v2282_v14  ;;  %v2441_v14 = vperm.slane %v7116_v42, 7 }
0x197e   :  { %5393 = vmatmul.msk.bf16.vlgmr.msra.gmra.mxu3 %vm1702_vm13, %v2286_v15 }
0x19bf   :  { %v2349_v23 = vpop.f32.mrf.mxu1 }
0x19c0   :  { %2379 = vrot.lane.b32.xlu1 %v2349_v23, %s6295_s17 }
0x19c7   :  { %v2351_v20 = vpop.f32.mrf.mxu1 }
0x19c8   :  { %2391 = vrot.lane.b32.xlu1 %v7102_v36, %s6294_s4  ;;  %v2328_v17 = vpop.f32.mrf.mxu0 }
0x19c9   :  { %2375 = vrot.lane.b32.xlu2 %v2328_v17, %s6296_s0 }
0x19cf   :  { %v2370_v19 = vpop.f32.mrf.mxu2 }
0x19d0   :  { %2467 = vrot.lane.b32.xlu1 %v7188_v5, %s6292_s28  ;;  %v2330_v54 = vpop.f32.mrf.mxu0 }
0x19d1   :  { %2383 = vrot.lane.b32.xlu2 %v2370_v19, %s6297_s18  ;;  %v5426_v54 = vld [vmem:[%s8062_s8 + $0x38] sm:$0xf] }
0x19d7   :  { %v2372_v22 = vpop.f32.mrf.mxu2 }
0x19d8   :  { %v2461_v31 = vpop.f32.mrf.mxu0  ;;  %v5923_v22 = vld [vmem:[%s8062_s8 + $0x40] sm:$0xf0] }
0x19d9   :  { %2469 = vrot.lane.b32.xlu2 %v7177_v58, %s6292_s28  ;;  %v2462_v16 = vadd.f32 %v2461_v31, %v2443_v40  ;;  %v5427_v31 = vor.u32 %v5923_v22, %v5426_v54  ;;  %v5932_v40 = vld [vmem:[%s8066_s9 + $0x68] sm:$0xff]  ;;  %v5477_v22 = vld [vmem:[%s8062_s8 + $0x60] sm:$0xf] }
0x19db   :  { %v2465_v45 = vpack.c.bf16 %v2462_v16, %v2462_v16 }
0x19e0   :  { %v2463_v8 = vpop.f32.mrf.mxu0 }
0x1a01   :  { %v2307_v62 = vpop.f32.mrf.mxu3 }
0x1a09   :  { %v2309_v36 = vpop.f32.mrf.mxu3 }
0x1a23   :  { %v2376_v26 = vpop.permute.xlu2 %2375 }
0x1a24   :  { %v2386_v21 = vsel %vm260_vm2, %v2307_v62, %v2376_v26 }
0x1a2b   :  { %v2384_v46 = vpop.permute.xlu2 %2383 }
0x1a32   :  { %v2380_v27 = vpop.permute.xlu1 %2379 }
0x1a33   :  { %v2470_v61 = vpop.permute.xlu2 %2469  ;;  %v2387_v30 = vsel %vm595_vm6, %v2386_v21, %v2380_v27 }
0x1a34   :  { %2482 = vmatpush.bf16.msra.mxu1 %v2470_v61  ;;  %v2388_v12 = vsel %vm598_vm7, %v2387_v30, %v2384_v46  ;;  %v5934_v30 = vld [vmem:[%s8066_s9 + $0x78] sm:$0xff] }
0x1a35   :  { %v2389_v41 = vpack.c.bf16 %v2388_v12, %v2388_v12 }
0x1a3a   :  { %v2392_v38 = vpop.permute.xlu1 %2391 }
0x1a3b   :  { %2407 = vmatpush.bf16.msrb.mxu3 %v2392_v38  ;;  %v5933_v38 = vld [vmem:[%s8066_s9 + $0x70] sm:$0xff] }
0x1a3e   :  { %5397 = vmatmul.msk.bf16.vlgmr.msrb.gmra.mxu3 %vm207_vm1, %v2389_v41  ;;  %v5931_v41 = vld [vmem:[%s8066_s9 + $0x60] sm:$0xff] }
0x1a3f   :  { %2629 = vmatpush.bf16.msra.mxu3 %v5934_v30 }
0x1a42   :  { %v2468_v43 = vpop.permute.xlu1 %2467 }
0x1a43   :  { %2483 = vmatpush.bf16.msra.mxu1 %v2468_v43  ;;  %2630 = vmatpush.bf16.msra.mxu3 %v5933_v38 }
0x1a46   :  { %5407 = vmatmul.msk.bf16.vlgmr.msra.gmra.mxu1 %vm207_vm1, %v2465_v45  ;;  %v5930_v45 = vld [vmem:[%s8066_s9 + $0x58] sm:$0xff] }
0x1a47   :  { %2631 = vmatpush.bf16.msra.mxu3 %v5932_v40 }
0x1a4b   :  { %2632 = vmatpush.bf16.msra.mxu3 %v5931_v41 }
0x1a4f   :  { %2633 = vmatpush.bf16.msra.mxu3 %v5930_v45  ;;  %v7311_v45 = vld [vmem:[%s8063_s10 + $0x20] sm:$0xff] }
0x1ac1   :  { %v2409_v44 = vpop.f32.mrf.mxu3 }
0x1ac2   :  { %v2410_v47 = vadd.f32 %v2409_v44, %v2390_v13 }
0x1ac3   :  { %v2485_v48 = vpop.f32.mrf.mxu1 }
0x1ac4   :  { %v2414_v50 = vrot.slane %v2410_v47, 6  ;;  %v2486_v33 = vadd.f32 %v2485_v48, %v2466_v2  ;;  %v7262_v47 = vld [vmem:[%s8063_s10 + $0x18] sm:$0xf] }
0x1ac5   :  { %v2668_v30 = vperm.slane %v7262_v47, 2  ;;  %v2670_v38 = vperm.slane %v7262_v47, 3 }
0x1ac6   :  { %v2416_v35 = vadd.f32 %v2414_v50, %v7108_v39  ;;  %v2490_v23 = vrot.slane %v2486_v33, 6 }
0x1ac8   :  { %v2417_v37 = vsel %vm1828_vm10, %v2416_v35, 0.0 }
0x1ac9   :  { %v2411_v53 = vpop.f32.mrf.mxu3  ;;  %2418 = vadd.xlane.f32.xlu2 %v2417_v37 }
0x1acb   :  { %v2487_v1 = vpop.f32.mrf.mxu1 }
0x1acc   :  { %v2515_v1 = vperm.slane %v7262_v47, 0 }
0x1ae1   :  { %2556 = vrot.lane.b32.xlu2 %v5431_v7, %s6293_s2 }
0x1b3c   :  { %v2419_v18 = vpop.xlane.xlu2 %2418 }
0x1b3d   :  { %v2420_v10 = vmul.f32 %v2419_v18, %v6584_v32 }
0x1b3f   :  { %v2421_v34 = vsub.f32 %v2416_v35, %v2420_v10  ;;  %v5929_v35 = vld [vmem:[%s8066_s9 + $0x50] sm:$0xff]  ;;  %v2517_v10 = vperm.slane %v7262_v47, 1 }
0x1b40   :  { %2634 = vmatpush.bf16.msra.mxu3 %v5929_v35 }
0x1b41   :  { %v2422_v24 = vmul.f32 %v2421_v34, %v2421_v34 }
0x1b43   :  { %v2423_v49 = vsel %vm1828_vm10, %v2422_v24, 0.0 }
0x1b44   :  { %2424 = vadd.xlane.f32.xlu1 %v2423_v49 }
0x1b5d   :  { %2552 = vrot.lane.b32.xlu1 %v5427_v31, %s6293_s2  ;;  %v5936_v31 = vld [vmem:[%s8062_s8 + $0x68] sm:$0xf0] }
0x1bb7   :  { %v2425_v55 = vpop.xlane.xlu1 %2424 }
0x1bb8   :  { %v2426_v57 = vmul.f32 %v2425_v55, %v6584_v32 }
0x1bba   :  { %v2427_v52 = vadd.f32 1e-05, %v2426_v57 }
0x1bbc   :  { %6187 = vrsqrt.f32 %v2427_v52  ;;  %vm2434_vm5 = vweird.f32 %v2427_v52 }
0x1bc2   :  { %v6188_v59 = vpop.eup %6187 }
0x1bc3   :  { %v2429_v39 = vmul.f32 %v6188_v59, %v2427_v52  ;;  %vm2435_vm4 = vweird.f32 %v6188_v59  ;;  %v5928_v52 = vld [vmem:[%s8066_s9 + $0x48] sm:$0xff] }
0x1bc4   :  { %vm2436_vm8 = vmor %vm2434_vm5, %vm2435_vm4  ;;  %2635 = vmatpush.bf16.msra.mxu3 %v5928_v52 }
0x1bc5   :  { %v2430_v56 = vmul.f32 %v6188_v59, %v2429_v39  ;;  %v2537_v39 = vperm.slane %v7116_v42, 4  ;;  %v5481_v42 = vld [vmem:[%s8062_s8 + $0x78] sm:$0xf] }
0x1bc7   :  { %v2431_v51 = vmul.f32 0.5, %v2430_v56 }
0x1bc9   :  { %v2432_v3 = vsub.f32 1.5, %v2431_v51 }
0x1bcb   :  { %v2433_v4 = vmul.f32 %v6188_v59, %v2432_v3 }
0x1bcd   :  { %v2437_v9 = vsel %vm2436_vm8, %v6188_v59, %v2433_v4  ;;  %v5927_v59 = vld [vmem:[%s8066_s9 + $0x40] sm:$0xff] }
0x1bce   :  { %v2438_v11 = vmul.f32 %v2437_v9, %v2421_v34  ;;  %2636 = vmatpush.bf16.msra.mxu3 %v5927_v59 }
0x1bcf   :  { %v2553_v44 = vpop.permute.xlu1 %2552 }
0x1bd0   :  { %v2440_v15 = vmul.f32 %v2439_v6, %v2438_v11 }
0x1bd2   :  { %v2442_v20 = vadd.f32 %v2441_v14, %v2440_v15 }
0x1bd4   :  { %v2492_v17 = vadd.f32 %v2490_v23, %v2442_v20 }
0x1bd6   :  { %v2493_v19 = vsel %vm1828_vm10, %v2492_v17, 0.0 }
0x1bd7   :  { %2494 = vadd.xlane.f32.xlu0 %v2493_v19  ;;  %v5939_v19 = vld [vmem:[%s8062_s8 + $0x80] sm:$0xf0] }
0x1bd8   :  { %v7288_v54 = vor.u32 %v5939_v19, %v5481_v42 }
0x1bda   :  { %2709 = vmatpush.bf16.msrb.mxu0 %v7288_v54 }
0x1beb   :  { %2554 = vrot.lane.b32.xlu0 %v7177_v58, %s6293_s2  ;;  %v2557_v58 = vpop.permute.xlu2 %2556 }
0x1c4a   :  { %v2495_v8 = vpop.xlane.xlu0 %2494 }
0x1c4b   :  { %v2496_v62 = vmul.f32 %v2495_v8, %v6584_v32  ;;  %v7297_v8 = vor.u32 %v5936_v31, %v5477_v22 }
0x1c4d   :  { %v2497_v0 = vsub.f32 %v2492_v17, %v2496_v62  ;;  %2710 = vmatpush.bf16.msrb.mxu0 %v7297_v8 }
0x1c4f   :  { %v2498_v36 = vmul.f32 %v2497_v0, %v2497_v0 }
0x1c51   :  { %v2499_v26 = vsel %vm1828_vm10, %v2498_v36, 0.0 }
0x1c52   :  { %2500 = vadd.xlane.f32.xlu0 %v2499_v26 }
0x1c5d   :  { %v2555_v46 = vpop.permute.xlu0 %2554 }
0x1c5e   :  { %v2559_v27 = vsel %vm156_vm0, %v2555_v46, %v2557_v58 }
0x1c5f   :  { %2571 = vmatpush.bf16.msra.mxu2 %v2559_v27 }
0x1c66   :  { %2550 = vrot.lane.b32.xlu0 %v7188_v5, %s6293_s2 }
0x1cc5   :  { %v2501_v61 = vpop.xlane.xlu0 %2500 }
0x1cc6   :  { %v2502_v21 = vmul.f32 %v2501_v61, %v6584_v32 }
0x1cc8   :  { %v2503_v12 = vadd.f32 1e-05, %v2502_v21 }
0x1cca   :  { %6189 = vrsqrt.f32 %v2503_v12  ;;  %vm2510_vm9 = vweird.f32 %v2503_v12 }
0x1cd0   :  { %v6190_v5 = vpop.eup %6189 }
0x1cd1   :  { %v2505_v16 = vmul.f32 %v6190_v5, %v2503_v12  ;;  %vm2511_vm15 = vweird.f32 %v6190_v5 }
0x1cd2   :  { %vm2512_vm11 = vmor %vm2510_vm9, %vm2511_vm15 }
0x1cd3   :  { %v2506_v43 = vmul.f32 %v6190_v5, %v2505_v16 }
0x1cd5   :  { %v2507_v13 = vmul.f32 0.5, %v2506_v43 }
0x1cd7   :  { %v2508_v48 = vsub.f32 1.5, %v2507_v13  ;;  %v2685_v13 = vperm.slane %v7311_v45, 0 }
0x1cd8   :  { %v2551_v50 = vpop.permute.xlu0 %2550 }
0x1cd9   :  { %v2509_v37 = vmul.f32 %v6190_v5, %v2508_v48  ;;  %v2558_v53 = vsel %vm156_vm0, %v2551_v50, %v2553_v44 }
0x1cda   :  { %2572 = vmatpush.bf16.msra.mxu2 %v2558_v53 }
0x1cdb   :  { %v2513_v18 = vsel %vm2512_vm11, %v6190_v5, %v2509_v37 }
0x1cdc   :  { %v2514_v34 = vmul.f32 %v2513_v18, %v2497_v0 }
0x1cde   :  { %v2516_v24 = vmul.f32 %v2515_v1, %v2514_v34 }
0x1ce0   :  { %v2518_v49 = vadd.f32 %v2517_v10, %v2516_v24 }
0x1ce2   :  { %v2536_v55 = vpack.c.bf16 %v2518_v49, %v2518_v49 }
0x1ce4   :  { %v2539_v57 = vrot.slane %v2536_v55, 1 }
0x1ce6   :  { %5432 = vmatmul.msk.bf16.vlgmr.msra.gmra.mxu2 %vm207_vm1, %v2539_v57 }
0x1d69   :  { %v2574_v56 = vpop.f32.mrf.mxu2 }
0x1d6a   :  { %v2575_v51 = vadd.f32 %v2574_v56, %v2537_v39 }
0x1d6c   :  { %v2578_v3 = vmax.f32 %v2575_v51, 0.0 }
0x1d6e   :  { %v2579_v2 = vpack.c.bf16 %v2578_v3, %v2578_v3 }
0x1d70   :  { %2637 = vmatmul.bf16.vlgmr.msra.gmra.mxu3 %v2579_v2 }
0x1d71   :  { %v2576_v4 = vpop.f32.mrf.mxu2 }
0x1df3   :  { %v2638_v63 = vpop.f32.mrf.mxu3 }
0x1df4   :  { %v2639_v6 = vadd.f32 %v2638_v63, %v2580_v29 }
0x1df6   :  { %v2643_v7 = vrot.slane %v2639_v6, 6 }
0x1df8   :  { %v2645_v9 = vadd.f32 %v2643_v7, %v2518_v49 }
0x1dfa   :  { %v2646_v33 = vsel %vm1828_vm10, %v2645_v9, 0.0 }
0x1dfb   :  { %v2640_v11 = vpop.f32.mrf.mxu3  ;;  %2647 = vadd.xlane.f32.xlu0 %v2646_v33 }
0x1e6e   :  { %v2648_v14 = vpop.xlane.xlu0 %2647 }
0x1e6f   :  { %v2649_v15 = vmul.f32 %v2648_v14, %v6584_v32 }
0x1e71   :  { %v2650_v23 = vsub.f32 %v2645_v9, %v2649_v15 }
0x1e73   :  { %v2651_v20 = vmul.f32 %v2650_v23, %v2650_v23 }
0x1e75   :  { %v2652_v17 = vsel %vm1828_vm10, %v2651_v20, 0.0 }
0x1e76   :  { %2653 = vadd.xlane.f32.xlu2 %v2652_v17 }
0x1ee9   :  { %v2654_v62 = vpop.xlane.xlu2 %2653 }
0x1eea   :  { %v2655_v0 = vmul.f32 %v2654_v62, %v6584_v32 }
0x1eec   :  { %v2656_v36 = vadd.f32 1e-05, %v2655_v0 }
0x1eee   :  { %6191 = vrsqrt.f32 %v2656_v36  ;;  %vm2663_vm4 = vweird.f32 %v2656_v36 }
0x1ef4   :  { %v6192_v26 = vpop.eup %6191 }
0x1ef5   :  { %v2658_v58 = vmul.f32 %v6192_v26, %v2656_v36  ;;  %vm2664_vm14 = vweird.f32 %v6192_v26 }
0x1ef6   :  { %vm2665_vm5 = vmor %vm2663_vm4, %vm2664_vm14 }
0x1ef7   :  { %v2659_v46 = vmul.f32 %v6192_v26, %v2658_v58 }
0x1ef9   :  { %v2660_v27 = vmul.f32 0.5, %v2659_v46 }
0x1efb   :  { %v2661_v61 = vsub.f32 1.5, %v2660_v27 }
0x1efd   :  { %v2662_v21 = vmul.f32 %v6192_v26, %v2661_v61 }
0x1eff   :  { %v2666_v12 = vsel %vm2665_vm5, %v6192_v26, %v2662_v21 }
0x1f00   :  { %v2667_v40 = vmul.f32 %v2666_v12, %v2650_v23 }
0x1f02   :  { %v2669_v5 = vmul.f32 %v2668_v30, %v2667_v40 }
0x1f04   :  { %v7303_v41 = vadd.f32 %v2670_v38, %v2669_v5 }
0x1f06   :  { %v2684_v16 = vpack.c.bf16 %v7303_v41, %v7303_v41 }
0x1f08   :  { %v2687_v43 = vrot.slane %v2684_v16, 1 }
0x1f0a   :  { %5483 = vmatmul.msk.bf16.vlgmr.msrb.gmra.mxu0 %vm207_vm1, %v2687_v43 }
0x1f87   :  { %v2712_v44 = vpop.f32.mrf.mxu0 }
0x1f88   :  { %v2713_v48 = vadd.f32 %v2712_v44, %v2685_v13 }
0x1f8a   :  { %2717 = vrot.lane.b32.xlu1 %v2713_v48, %s6290_s26  ;;  %v2726_v47 = vpack.c.bf16 %v2713_v48, %v2713_v48 }
0x1f8c   :  { %v2731_v50 = vunpack.c.l.b16 %v2726_v47 }
0x1f8e   :  { %v7315_v35 = vpack.c.b16 %v2731_v50, %v2731_v50 }
0x1f8f   :  { %v2714_v37 = vpop.f32.mrf.mxu0 }
0x1f90   :  { %2733 = vrot.lane.b32.xlu0 %v7315_v35, %s6292_s28 }
0x1f92   :  { %2720 = vrot.lane.b32.xlu1 %v2713_v48, %s6291_s27 }
0x1f9a   :  { %2723 = vrot.lane.b32.xlu1 %v2713_v48, %s6289_s25 }
0x1ffc   :  { %v2718_v53 = vpop.permute.xlu1 %2717 }
0x1ffd   :  { %v2727_v1 = vpack.c.bf16 %v2718_v53, %v2718_v53 }
0x1fff   :  { %v2755_v18 = vunpack.c.l.b16 %v2727_v1 }
0x2001   :  { %v2756_v10 = vpack.c.b16 %v2755_v18, %v2755_v18 }
0x2002   :  { %v2734_v34 = vpop.permute.xlu0 %2733 }
0x2003   :  { %v2739_v24 = vsel %vm260_vm2, %v2734_v34, 0  ;;  %2757 = vrot.lane.b32.xlu1 %v2756_v10, %s6292_s28  ;;  %v5938_v34 = vld [vmem:[%s8062_s8 + $0x7c] sm:$0xf] }
0x2004   :  { %v2721_v49 = vpop.permute.xlu1 %2720  ;;  %2748 = vmatpush.bf16.xpose.msrb.mxu1 %v2739_v24  ;;  %v5497_v24 = vld [vmem:[%s8062_s8 + $0x84] sm:$0xf0] }
0x2005   :  { %v2728_v55 = vpack.c.bf16 %v2721_v49, %v2721_v49  ;;  %v7363_v49 = vor.u32 %v5938_v34, %v5497_v24 }
0x2007   :  { %v2779_v57 = vunpack.c.l.b16 %v2728_v55 }
0x2009   :  { %v7323_v52 = vpack.c.b16 %v2779_v57, %v2779_v57 }
0x200b   :  { %2781 = vrot.lane.b32.xlu1 %v7323_v52, %s6292_s28  ;;  %5484 = vmatmul.msk.bf16.vlgmr.msrb.gmra.mxu1 %vm260_vm2, %v2726_v47 }
0x200c   :  { %v2724_v59 = vpop.permute.xlu1 %2723 }
0x200d   :  { %v2729_v39 = vpack.c.bf16 %v2724_v59, %v2724_v59 }
0x200f   :  { %v2803_v56 = vunpack.c.l.b16 %v2729_v39 }
0x2011   :  { %v2804_v51 = vpack.c.b16 %v2803_v56, %v2803_v56 }
0x2013   :  { %2805 = vrot.lane.b32.xlu2 %v2804_v51, %s6292_s28 }
0x206d   :  { %v2806_v3 = vpop.permute.xlu2 %2805 }
0x206e   :  { %v2811_v2 = vsel %vm260_vm2, %v2806_v3, 0 }
0x206f   :  { %2820 = vmatpush.bf16.xpose.msra.mxu1 %v2811_v2 }
0x2075   :  { %v2758_v4 = vpop.permute.xlu1 %2757 }
0x2076   :  { %v2763_v29 = vsel %vm260_vm2, %v2758_v4, 0  ;;  %5487 = vmatmul.msk.bf16.vlgmr.msra.gmra.mxu1 %vm260_vm2, %v2729_v39 }
0x2077   :  { %2772 = vmatpush.bf16.xpose.msrb.mxu2 %v2763_v29 }
0x207d   :  { %v2782_v63 = vpop.permute.xlu1 %2781 }
0x207e   :  { %v2787_v6 = vsel %vm260_vm2, %v2782_v63, 0  ;;  %5485 = vmatmul.msk.bf16.vlgmr.msrb.gmra.mxu2 %vm260_vm2, %v2727_v1 }
0x207f   :  { %2796 = vmatpush.bf16.xpose.msra.mxu0 %v2787_v6 }
0x2086   :  { %5486 = vmatmul.msk.bf16.vlgmr.msra.gmra.mxu0 %vm260_vm2, %v2728_v55  ;;  %v5493_v55 = vld [vmem:[%s8062_s8 + $0x6c] sm:$0xf0] }
0x2088   :  { %v2750_v7 = vpop.f32.mrf.mxu1 }
0x2089   :  { %v2751_v9 = vadd.f32 %v7150_v60, %v2750_v7 }
0x208b   :  { %v2826_v33 = vsel %vm1651_vm3, %v2751_v9, -inf }
0x208c   :  { %2827 = vmax.xlane.f32.xlu1 %v2826_v33 }
0x2090   :  { %v2752_v11 = vpop.f32.mrf.mxu1 }
0x20f3   :  { %v2822_v14 = vpop.f32.mrf.mxu1 }
0x20f4   :  { %v2823_v15 = vadd.f32 %v7150_v60, %v2822_v14 }
0x20f6   :  { %v2835_v23 = vsel %vm1651_vm3, %v2823_v15, -inf }
0x20f7   :  { %2836 = vmax.xlane.f32.xlu2 %v2835_v23 }
0x20fb   :  { %v2824_v20 = vpop.f32.mrf.mxu1 }
0x2101   :  { %v2774_v17 = vpop.f32.mrf.mxu2 }
0x2102   :  { %v2775_v42 = vadd.f32 %v7150_v60, %v2774_v17 }
0x2103   :  { %v2798_v19 = vpop.f32.mrf.mxu0 }
0x2104   :  { %v2799_v22 = vadd.f32 %v7150_v60, %v2798_v19  ;;  %v2829_v31 = vsel %vm1651_vm3, %v2775_v42, -inf  ;;  %v2828_v60 = vpop.xlane.xlu1 %2827 }
0x2105   :  { %2830 = vmax.xlane.f32.xlu1 %v2829_v31  ;;  %v2838_v37 = vsub.f32 %v2751_v9, %v2828_v60 }
0x2106   :  { %v2832_v62 = vsel %vm1651_vm3, %v2799_v22, -inf }
0x2107   :  { %2833 = vmax.xlane.f32.xlu0 %v2832_v62  ;;  %v2842_v53 = vmul.f32 1.442695, %v2838_v37 }
0x2109   :  { %v2776_v0 = vpop.f32.mrf.mxu2 }
0x210b   :  { %v2800_v36 = vpop.f32.mrf.mxu0 }
0x210f   :  { %2937 = vrot.lane.b32.xlu2 %v2804_v51, %s6293_s2 }
0x2117   :  { %2977 = vrot.lane.b32.xlu2 %v7288_v54, %s6294_s4 }
0x211e   :  { %2895 = vrot.lane.b32.xlu1 %v2756_v10, %s6293_s2 }
0x216a   :  { %v2837_v26 = vpop.xlane.xlu2 %2836 }
0x216b   :  { %v2841_v58 = vsub.f32 %v2823_v15, %v2837_v26 }
0x216d   :  { %v2848_v46 = vmul.f32 1.442695, %v2841_v58 }
0x216f   :  { %6193 = vpow2.f32 %v2848_v46 }
0x2172   :  { %v2938_v27 = vpop.permute.xlu2 %2937 }
0x2173   :  { %v2943_v61 = vsel %vm1497_vm12, %v2938_v27, 0 }
0x2174   :  { %2952 = vmatpush.bf16.msrb.mxu1 %v2943_v61 }
0x2175   :  { %v6194_v21 = vpop.eup %6193 }
0x2176   :  { %v2859_v30 = vsel %vm1651_vm3, %v6194_v21, 0.0 }
0x2177   :  { %2860 = vadd.xlane.f32.xlu0 %v2859_v30 }
0x2178   :  { %v2831_v12 = vpop.xlane.xlu1 %2830 }
0x2179   :  { %v2839_v38 = vsub.f32 %v2775_v42, %v2831_v12 }
0x217a   :  { %v2834_v40 = vpop.xlane.xlu0 %2833  ;;  %v2978_v26 = vpop.permute.xlu2 %2977 }
0x217b   :  { %v2844_v5 = vmul.f32 1.442695, %v2839_v38  ;;  %v2840_v54 = vsub.f32 %v2799_v22, %v2834_v40  ;;  %v3027_v40 = vperm.slane %v7311_v45, 2 }
0x217d   :  { %6195 = vpow2.f32 %v2844_v5  ;;  %v2846_v16 = vmul.f32 1.442695, %v2840_v54 }
0x217f   :  { %6197 = vpow2.f32 %v2846_v16 }
0x2180   :  { %6199 = vpow2.f32 %v2842_v53 }
0x2183   :  { %v6196_v43 = vpop.eup %6195 }
0x2184   :  { %v2853_v13 = vsel %vm1651_vm3, %v6196_v43, 0.0 }
0x2185   :  { %v6198_v44 = vpop.eup %6197  ;;  %2854 = vadd.xlane.f32.xlu0 %v2853_v13  ;;  %v2974_v13 = vperm.slane %v7311_v45, 1 }
0x2186   :  { %v2856_v48 = vsel %vm1651_vm3, %v6198_v44, 0.0  ;;  %v6200_v1 = vpop.eup %6199 }
0x2187   :  { %2857 = vadd.xlane.f32.xlu1 %v2856_v48  ;;  %v2850_v18 = vsel %vm1651_vm3, %v6200_v1, 0.0 }
0x2190   :  { %v2896_v47 = vpop.permute.xlu1 %2895 }
0x2191   :  { %v2901_v50 = vsel %vm1497_vm12, %v2896_v47, 0 }
0x2192   :  { %2910 = vmatpush.bf16.msrb.mxu3 %v2901_v50 }
0x2196   :  { %3042 = vmatpush.bf16.msra.mxu3 %v7363_v49 }
0x2199   :  { %2916 = vrot.lane.b32.xlu0 %v7323_v52, %s6293_s2 }
0x21a0   :  { %2874 = vrot.lane.b32.xlu1 %v7315_v35, %s6293_s2  ;;  %v5935_v35 = vld [vmem:[%s8062_s8 + $0x64] sm:$0xf] }
0x21a1   :  { %v7372_v52 = vor.u32 %v5935_v35, %v5493_v55 }
0x21a3   :  { %3043 = vmatpush.bf16.msra.mxu3 %v7372_v52 }
0x21c3   :  { %2851 = vadd.xlane.f32.xlu0 %v2850_v18 }
0x21ea   :  { %v2861_v10 = vpop.xlane.xlu0 %2860 }
0x21eb   :  { %6201 = vrcp.f32 %v2861_v10 }
0x21f1   :  { %v6202_v57 = vpop.eup %6201 }
0x21f2   :  { %v2869_v59 = vmul.f32 %v6202_v57, %v6194_v21 }
0x21f4   :  { %v2873_v39 = vpack.c.bf16 %v2869_v59, %v2869_v59  ;;  %v5525_v59 = vld [vmem:[%s8062_s8 + $0x80] sm:$0xf] }
0x21f6   :  { %5491 = vmatmul.msk.bf16.vlgmr.msrb.gmra.mxu1 %vm1702_vm13, %v2873_v39 }
0x21f8   :  { %v2855_v56 = vpop.xlane.xlu0 %2854 }
0x21f9   :  { %6203 = vrcp.f32 %v2855_v56 }
0x21fa   :  { %v2858_v51 = vpop.xlane.xlu1 %2857 }
0x21fb   :  { %6205 = vrcp.f32 %v2858_v51 }
0x21ff   :  { %v6204_v3 = vpop.eup %6203 }
0x2200   :  { %v2867_v2 = vmul.f32 %v6204_v3, %v6196_v43 }
0x2201   :  { %v6206_v29 = vpop.eup %6205 }
0x2202   :  { %v2871_v4 = vpack.c.bf16 %v2867_v2, %v2867_v2  ;;  %v2868_v63 = vmul.f32 %v6206_v29, %v6198_v44 }
0x2204   :  { %5489 = vmatmul.msk.bf16.vlgmr.msrb.gmra.mxu3 %vm1702_vm13, %v2871_v4  ;;  %v2872_v9 = vpack.c.bf16 %v2868_v63, %v2868_v63 }
0x220b   :  { %v2917_v6 = vpop.permute.xlu0 %2916 }
0x220c   :  { %v2922_v7 = vsel %vm1497_vm12, %v2917_v6, 0  ;;  %v3050_v6 = vperm.slane %v7311_v45, 3 }
0x220d   :  { %2931 = vmatpush.bf16.msrb.mxu0 %v2922_v7 }
0x2210   :  { %5490 = vmatmul.msk.bf16.vlgmr.msrb.gmra.mxu0 %vm1702_vm13, %v2872_v9  ;;  %v3023_v9 = vperm.slane %v7311_v45, 6 }
0x2212   :  { %v2875_v33 = vpop.permute.xlu1 %2874 }
0x2213   :  { %v2880_v11 = vsel %vm1497_vm12, %v2875_v33, 0 }
0x2214   :  { %2889 = vmatpush.bf16.msra.mxu2 %v2880_v11  ;;  %5501 = vmatmul.msk.bf16.vlgmr.msra.gmra.mxu3 %vm207_vm1, %v7011_v28 }
0x2218   :  { %2990 = vmatpush.bf16.msrb.mxu2 %v2978_v26 }
0x2236   :  { %v2852_v14 = vpop.xlane.xlu0 %2851 }
0x2237   :  { %6207 = vrcp.f32 %v2852_v14 }
0x223d   :  { %v6208_v15 = vpop.eup %6207 }
0x223e   :  { %v2866_v23 = vmul.f32 %v6208_v15, %v6200_v1  ;;  %v3025_v15 = vperm.slane %v7311_v45, 7 }
0x2240   :  { %v2870_v20 = vpack.c.bf16 %v2866_v23, %v2866_v23 }
0x2242   :  { %5488 = vmatmul.msk.bf16.vlgmr.msra.gmra.mxu2 %vm1702_vm13, %v2870_v20 }
0x2273   :  { %v2954_v17 = vpop.f32.mrf.mxu1 }
0x227b   :  { %v2956_v42 = vpop.f32.mrf.mxu1 }
0x2287   :  { %v2912_v19 = vpop.f32.mrf.mxu3 }
0x2288   :  { %2959 = vrot.lane.b32.xlu1 %v2912_v19, %s6296_s0 }
0x228d   :  { %v2933_v22 = vpop.f32.mrf.mxu0 }
0x228e   :  { %2963 = vrot.lane.b32.xlu2 %v2933_v22, %s6295_s17  ;;  %v5521_v22 = vld [vmem:[%s8062_s8 + $0x68] sm:$0xf] }
0x228f   :  { %v2914_v31 = vpop.f32.mrf.mxu3 }
0x2290   :  { %2967 = vrot.lane.b32.xlu1 %v2954_v17, %s6297_s18  ;;  %v5937_v31 = vld [vmem:[%s8062_s8 + $0x70] sm:$0xf0] }
0x2295   :  { %v2935_v62 = vpop.f32.mrf.mxu0 }
0x2296   :  { %2975 = vrot.lane.b32.xlu2 %v7297_v8, %s6294_s4  ;;  %v5522_v62 = vor.u32 %v5937_v31, %v5521_v22  ;;  %v5572_v22 = vld [vmem:[%s8062_s8 + $0x90] sm:$0xf]  ;;  %v5950_v31 = vld [vmem:[%s8062_s8 + $0x98] sm:$0xf0] }
0x2297   :  { %v3045_v0 = vpop.f32.mrf.mxu3 }
0x2298   :  { %3053 = vrot.lane.b32.xlu1 %v7363_v49, %s6292_s28  ;;  %v3046_v54 = vadd.f32 %v3045_v0, %v3027_v40  ;;  %v5945_v40 = vld [vmem:[%s8066_s9 + $0xa0] sm:$0xff] }
0x229a   :  { %v3049_v43 = vpack.c.bf16 %v3046_v54, %v3046_v54 }
0x229e   :  { %3051 = vrot.lane.b32.xlu2 %v7372_v52, %s6292_s28 }
0x229f   :  { %v3047_v36 = vpop.f32.mrf.mxu3 }
0x22c5   :  { %v2891_v58 = vpop.f32.mrf.mxu2 }
0x22cd   :  { %v2893_v46 = vpop.f32.mrf.mxu2 }
0x22e8   :  { %v2964_v60 = vpop.permute.xlu2 %2963 }
0x22f0   :  { %v2976_v27 = vpop.permute.xlu2 %2975 }
0x22f1   :  { %2991 = vmatpush.bf16.msrb.mxu2 %v2976_v27 }
0x22f8   :  { %v3052_v16 = vpop.permute.xlu2 %3051 }
0x22fa   :  { %v2960_v61 = vpop.permute.xlu1 %2959 }
0x22fb   :  { %v2970_v21 = vsel %vm260_vm2, %v2891_v58, %v2960_v61 }
0x22fc   :  { %v2971_v8 = vsel %vm595_vm6, %v2970_v21, %v2964_v60 }
0x2302   :  { %v2968_v30 = vpop.permute.xlu1 %2967 }
0x2303   :  { %v2972_v12 = vsel %vm598_vm7, %v2971_v8, %v2968_v30  ;;  %v5948_v30 = vld [vmem:[%s8066_s9 + $0xb8] sm:$0xff] }
0x2304   :  { %v2973_v38 = vpack.c.bf16 %v2972_v12, %v2972_v12  ;;  %3213 = vmatpush.bf16.msra.mxu2 %v5948_v30  ;;  %v5947_v12 = vld [vmem:[%s8066_s9 + $0xb0] sm:$0xff] }
0x2306   :  { %5492 = vmatmul.msk.bf16.vlgmr.msrb.gmra.mxu2 %vm207_vm1, %v2973_v38  ;;  %v5946_v38 = vld [vmem:[%s8066_s9 + $0xa8] sm:$0xff] }
0x2308   :  { %3214 = vmatpush.bf16.msra.mxu2 %v5947_v12 }
0x230a   :  { %v3054_v5 = vpop.permute.xlu1 %3053 }
0x230b   :  { %3066 = vmatpush.bf16.msra.mxu0 %v3054_v5 }
0x230c   :  { %3215 = vmatpush.bf16.msra.mxu2 %v5946_v38 }
0x230f   :  { %3067 = vmatpush.bf16.msra.mxu0 %v3052_v16  ;;  %v5944_v16 = vld [vmem:[%s8066_s9 + $0x98] sm:$0xff] }
0x2310   :  { %3216 = vmatpush.bf16.msra.mxu2 %v5945_v40 }
0x2312   :  { %5502 = vmatmul.msk.bf16.vlgmr.msra.gmra.mxu0 %vm207_vm1, %v3049_v43 }
0x2314   :  { %3217 = vmatpush.bf16.msra.mxu2 %v5944_v16 }
0x2389   :  { %v2993_v44 = vpop.f32.mrf.mxu2 }
0x238a   :  { %v2994_v48 = vadd.f32 %v2993_v44, %v2974_v13  ;;  %v7448_v44 = vld [vmem:[%s8063_s10 + $0x28] sm:$0xf] }
0x238c   :  { %v2998_v47 = vrot.slane %v2994_v48, 6 }
0x238e   :  { %v3000_v50 = vadd.f32 %v2998_v47, %v7303_v41  ;;  %v5940_v41 = vld [vmem:[%s8062_s8 + $0x88] sm:$0xf0] }
0x238f   :  { %v3069_v37 = vpop.f32.mrf.mxu0  ;;  %v5526_v56 = vor.u32 %v5940_v41, %v5525_v59  ;;  %v5942_v59 = vld [vmem:[%s8066_s9 + $0x88] sm:$0xff]  ;;  %v5941_v41 = vld [vmem:[%s8066_s9 + $0x80] sm:$0xff] }
0x2390   :  { %v3001_v53 = vsel %vm1828_vm10, %v3000_v50, 0.0  ;;  %v3070_v11 = vadd.f32 %v3069_v37, %v3050_v6 }
0x2391   :  { %v2995_v1 = vpop.f32.mrf.mxu2  ;;  %3002 = vadd.xlane.f32.xlu1 %v3001_v53 }
0x2392   :  { %v3074_v20 = vrot.slane %v3070_v11, 6  ;;  %v3099_v1 = vperm.slane %v7448_v44, 0 }
0x2397   :  { %v3071_v18 = vpop.f32.mrf.mxu0 }
0x23aa   :  { %3140 = vrot.lane.b32.xlu1 %v5526_v56, %s6293_s2 }
0x2404   :  { %v3003_v10 = vpop.xlane.xlu1 %3002 }
0x2405   :  { %v3004_v34 = vmul.f32 %v3003_v10, %v6584_v32  ;;  %v3101_v10 = vperm.slane %v7448_v44, 1 }
0x2407   :  { %v3005_v24 = vsub.f32 %v3000_v50, %v3004_v34  ;;  %v5943_v50 = vld [vmem:[%s8066_s9 + $0x90] sm:$0xff] }
0x2408   :  { %3218 = vmatpush.bf16.msra.mxu2 %v5943_v50 }
0x2409   :  { %v3006_v35 = vmul.f32 %v3005_v24, %v3005_v24 }
0x240b   :  { %v3007_v55 = vsel %vm1828_vm10, %v3006_v35, 0.0 }
0x240c   :  { %3008 = vadd.xlane.f32.xlu2 %v3007_v55  ;;  %3219 = vmatpush.bf16.msra.mxu2 %v5942_v59 }
0x2410   :  { %3220 = vmatpush.bf16.msra.mxu2 %v5941_v41 }
0x2424   :  { %3136 = vrot.lane.b32.xlu2 %v5522_v62, %s6293_s2  ;;  %v7483_v62 = vor.u32 %v5950_v31, %v5572_v22 }
0x247f   :  { %v3009_v57 = vpop.xlane.xlu2 %3008 }
0x2480   :  { %v3010_v39 = vmul.f32 %v3009_v57, %v6584_v32 }
0x2482   :  { %v3011_v51 = vadd.f32 1e-05, %v3010_v39  ;;  %v3121_v39 = vperm.slane %v7311_v45, 4 }
0x2484   :  { %6209 = vrsqrt.f32 %v3011_v51  ;;  %vm3018_vm15 = vweird.f32 %v3011_v51 }
0x2487   :  { %v3137_v13 = vpop.permute.xlu2 %3136 }
0x248a   :  { %v6210_v3 = vpop.eup %6209 }
0x248b   :  { %v3013_v2 = vmul.f32 %v6210_v3, %v3011_v51  ;;  %vm3019_vm8 = vweird.f32 %v6210_v3 }
0x248c   :  { %vm3020_vm9 = vmor %vm3018_vm15, %vm3019_vm8 }
0x248d   :  { %v3014_v4 = vmul.f32 %v6210_v3, %v3013_v2 }
0x248f   :  { %v3015_v29 = vmul.f32 0.5, %v3014_v4 }
0x2491   :  { %v3016_v63 = vsub.f32 1.5, %v3015_v29  ;;  %v3164_v29 = vperm.slane %v7311_v45, 5  ;;  %v5576_v45 = vld [vmem:[%s8062_s8 + $0xa8] sm:$0xf] }
0x2493   :  { %v3017_v7 = vmul.f32 %v6210_v3, %v3016_v63 }
0x2495   :  { %v3021_v33 = vsel %vm3020_vm9, %v6210_v3, %v3017_v7 }
0x2496   :  { %v3022_v14 = vmul.f32 %v3021_v33, %v3005_v24 }
0x2498   :  { %v3024_v23 = vmul.f32 %v3023_v9, %v3022_v14 }
0x249a   :  { %v3026_v17 = vadd.f32 %v3025_v15, %v3024_v23 }
0x249c   :  { %v3076_v42 = vadd.f32 %v3074_v20, %v3026_v17 }
0x249e   :  { %v3077_v19 = vsel %vm1828_vm10, %v3076_v42, 0.0 }
0x249f   :  { %3078 = vadd.xlane.f32.xlu0 %v3077_v19 }
0x24b3   :  { %3138 = vrot.lane.b32.xlu0 %v7363_v49, %s6293_s2  ;;  %v3141_v49 = vpop.permute.xlu1 %3140 }
0x2512   :  { %v3079_v0 = vpop.xlane.xlu0 %3078 }
0x2513   :  { %v3080_v36 = vmul.f32 %v3079_v0, %v6584_v32 }
0x2515   :  { %v3081_v26 = vsub.f32 %v3076_v42, %v3080_v36  ;;  %v5953_v42 = vld [vmem:[%s8062_s8 + $0xb0] sm:$0xf0] }
0x2516   :  { %v7474_v19 = vor.u32 %v5953_v42, %v5576_v45 }
0x2517   :  { %v3082_v58 = vmul.f32 %v3081_v26, %v3081_v26 }
0x2518   :  { %3293 = vmatpush.bf16.msrb.mxu3 %v7474_v19 }
0x2519   :  { %v3083_v46 = vsel %vm1828_vm10, %v3082_v58, 0.0 }
0x251a   :  { %3084 = vadd.xlane.f32.xlu0 %v3083_v46 }
0x251c   :  { %3294 = vmatpush.bf16.msrb.mxu3 %v7483_v62 }
0x2525   :  { %v3139_v60 = vpop.permute.xlu0 %3138 }
0x2526   :  { %v3143_v27 = vsel %vm156_vm0, %v3139_v60, %v3141_v49 }
0x2527   :  { %3155 = vmatpush.bf16.msra.mxu1 %v3143_v27 }
0x252e   :  { %3134 = vrot.lane.b32.xlu0 %v7372_v52, %s6293_s2 }
0x258d   :  { %v3085_v61 = vpop.xlane.xlu0 %3084 }
0x258e   :  { %v3086_v21 = vmul.f32 %v3085_v61, %v6584_v32 }
0x2590   :  { %v3087_v8 = vadd.f32 1e-05, %v3086_v21  ;;  %v3252_v21 = vperm.slane %v7448_v44, 2 }
0x2592   :  { %6211 = vrsqrt.f32 %v3087_v8  ;;  %vm3094_vm14 = vweird.f32 %v3087_v8 }
0x2598   :  { %v6212_v52 = vpop.eup %6211 }
0x2599   :  { %v3089_v5 = vmul.f32 %v6212_v52, %v3087_v8  ;;  %vm3095_vm11 = vweird.f32 %v6212_v52  ;;  %v3254_v8 = vperm.slane %v7448_v44, 3 }
0x259a   :  { %vm3096_vm4 = vmor %vm3094_vm14, %vm3095_vm11 }
0x259b   :  { %v3090_v54 = vmul.f32 %v6212_v52, %v3089_v5 }
0x259d   :  { %v3091_v43 = vmul.f32 0.5, %v3090_v54  ;;  %v7497_v54 = vld [vmem:[%s8063_s10 + $0x30] sm:$0xff] }
0x259e   :  { %v3269_v16 = vperm.slane %v7497_v54, 0 }
0x259f   :  { %v3092_v48 = vsub.f32 1.5, %v3091_v43 }
0x25a0   :  { %v3135_v47 = vpop.permute.xlu0 %3134 }
0x25a1   :  { %v3093_v37 = vmul.f32 %v6212_v52, %v3092_v48  ;;  %v3142_v53 = vsel %vm156_vm0, %v3135_v47, %v3137_v13 }
0x25a2   :  { %3156 = vmatpush.bf16.msra.mxu1 %v3142_v53 }
0x25a3   :  { %v3097_v18 = vsel %vm3096_vm4, %v6212_v52, %v3093_v37 }
0x25a4   :  { %v3098_v34 = vmul.f32 %v3097_v18, %v3081_v26 }
0x25a6   :  { %v3100_v24 = vmul.f32 %v3099_v1, %v3098_v34 }
0x25a8   :  { %v3102_v35 = vadd.f32 %v3101_v10, %v3100_v24 }
0x25aa   :  { %v3120_v55 = vpack.c.bf16 %v3102_v35, %v3102_v35 }
0x25ac   :  { %v3123_v57 = vrot.slane %v3120_v55, 1 }
0x25ae   :  { %5527 = vmatmul.msk.bf16.vlgmr.msra.gmra.mxu1 %vm207_vm1, %v3123_v57 }
0x262b   :  { %v3158_v56 = vpop.f32.mrf.mxu1 }
0x262c   :  { %v3159_v51 = vadd.f32 %v3158_v56, %v3121_v39 }
0x262e   :  { %v3162_v3 = vmax.f32 %v3159_v51, 0.0 }
0x2630   :  { %v3163_v2 = vpack.c.bf16 %v3162_v3, %v3162_v3 }
0x2632   :  { %3221 = vmatmul.bf16.vlgmr.msra.gmra.mxu2 %v3163_v2 }
0x2633   :  { %v3160_v4 = vpop.f32.mrf.mxu1 }
0x26b5   :  { %v3222_v63 = vpop.f32.mrf.mxu2 }
0x26b6   :  { %v3223_v6 = vadd.f32 %v3222_v63, %v3164_v29 }
0x26b8   :  { %v3227_v7 = vrot.slane %v3223_v6, 6 }
0x26ba   :  { %v3229_v9 = vadd.f32 %v3227_v7, %v3102_v35 }
0x26bc   :  { %v3230_v33 = vsel %vm1828_vm10, %v3229_v9, 0.0 }
0x26bd   :  { %v3224_v11 = vpop.f32.mrf.mxu2  ;;  %3231 = vadd.xlane.f32.xlu0 %v3230_v33  ;;  %v7521_v33 = vld [vmem:[%s8064_s3] sm:$0xf] }
0x2730   :  { %v3232_v14 = vpop.xlane.xlu0 %3231 }
0x2731   :  { %v3233_v15 = vmul.f32 %v3232_v14, %v6584_v32 }
0x2733   :  { %v3234_v23 = vsub.f32 %v3229_v9, %v3233_v15 }
0x2735   :  { %v3235_v20 = vmul.f32 %v3234_v23, %v3234_v23 }
0x2737   :  { %v3236_v17 = vsel %vm1828_vm10, %v3235_v20, 0.0 }
0x2738   :  { %3237 = vadd.xlane.f32.xlu1 %v3236_v17 }
0x27ab   :  { %v3238_v0 = vpop.xlane.xlu1 %3237 }
0x27ac   :  { %v3239_v36 = vmul.f32 %v3238_v0, %v6584_v32 }
0x27ae   :  { %v3240_v26 = vadd.f32 1e-05, %v3239_v36 }
0x27b0   :  { %6213 = vrsqrt.f32 %v3240_v26  ;;  %vm3247_vm8 = vweird.f32 %v3240_v26 }
0x27b6   :  { %v6214_v58 = vpop.eup %6213 }
0x27b7   :  { %v3242_v46 = vmul.f32 %v6214_v58, %v3240_v26  ;;  %vm3248_vm5 = vweird.f32 %v6214_v58 }
0x27b8   :  { %vm3249_vm15 = vmor %vm3247_vm8, %vm3248_vm5 }
0x27b9   :  { %v3243_v49 = vmul.f32 %v6214_v58, %v3242_v46 }
0x27bb   :  { %v3244_v60 = vmul.f32 0.5, %v3243_v49 }
0x27bd   :  { %v3245_v27 = vsub.f32 1.5, %v3244_v60 }
0x27bf   :  { %v3246_v61 = vmul.f32 %v6214_v58, %v3245_v27 }
0x27c1   :  { %v3250_v30 = vsel %vm3249_vm15, %v6214_v58, %v3246_v61 }
0x27c2   :  { %v3251_v12 = vmul.f32 %v3250_v30, %v3234_v23 }
0x27c4   :  { %v3253_v38 = vmul.f32 %v3252_v21, %v3251_v12 }
0x27c6   :  { %v7489_v52 = vadd.f32 %v3254_v8, %v3253_v38 }
0x27c8   :  { %v3268_v40 = vpack.c.bf16 %v7489_v52, %v7489_v52 }
0x27ca   :  { %v3271_v5 = vrot.slane %v3268_v40, 1 }
0x27cc   :  { %5578 = vmatmul.msk.bf16.vlgmr.msrb.gmra.mxu3 %vm207_vm1, %v3271_v5 }
0x284f   :  { %v3296_v43 = vpop.f32.mrf.mxu3 }
0x2850   :  { %v3297_v13 = vadd.f32 %v3296_v43, %v3269_v16 }
0x2852   :  { %3304 = vrot.lane.b32.xlu2 %v3297_v13, %s6291_s27  ;;  %v3310_v48 = vpack.c.bf16 %v3297_v13, %v3297_v13 }
0x2854   :  { %v3315_v47 = vunpack.c.l.b16 %v3310_v48 }
0x2856   :  { %v3316_v50 = vpack.c.b16 %v3315_v47, %v3315_v47 }
0x2857   :  { %v3298_v44 = vpop.f32.mrf.mxu3 }
0x285a   :  { %3301 = vrot.lane.b32.xlu2 %v3297_v13, %s6290_s26 }
0x2862   :  { %3307 = vrot.lane.b32.xlu2 %v3297_v13, %s6289_s25 }
0x286a   :  { %3317 = vrot.lane.b32.xlu2 %v3316_v50, %s6292_s28 }
0x28ac   :  { %v3305_v37 = vpop.permute.xlu2 %3304 }
0x28ad   :  { %v3312_v53 = vpack.c.bf16 %v3305_v37, %v3305_v37 }
0x28af   :  { %v3363_v1 = vunpack.c.l.b16 %v3312_v53 }
0x28b1   :  { %v3364_v18 = vpack.c.b16 %v3363_v1, %v3363_v1 }
0x28b3   :  { %3365 = vrot.lane.b32.xlu0 %v3364_v18, %s6292_s28 }
0x28b4   :  { %v3302_v10 = vpop.permute.xlu2 %3301 }
0x28b5   :  { %v3311_v34 = vpack.c.bf16 %v3302_v10, %v3302_v10 }
0x28b7   :  { %v3339_v24 = vunpack.c.l.b16 %v3311_v34 }
0x28b9   :  { %v7505_v35 = vpack.c.b16 %v3339_v24, %v3339_v24 }
0x28bb   :  { %3341 = vrot.lane.b32.xlu2 %v7505_v35, %s6292_s28 }
0x28bc   :  { %v3308_v55 = vpop.permute.xlu2 %3307 }
0x28bd   :  { %v3313_v57 = vpack.c.bf16 %v3308_v55, %v3308_v55 }
0x28bf   :  { %v3387_v59 = vunpack.c.l.b16 %v3313_v57 }
0x28c1   :  { %v3388_v41 = vpack.c.b16 %v3387_v59, %v3387_v59 }
0x28c3   :  { %3389 = vrot.lane.b32.xlu2 %v3388_v41, %s6292_s28 }
0x28c4   :  { %v3318_v39 = vpop.permute.xlu2 %3317 }
0x28c5   :  { %v3323_v56 = vsel %vm260_vm2, %v3318_v39, 0 }
0x28c6   :  { %3332 = vmatpush.bf16.xpose.msrb.mxu0 %v3323_v56 }
0x28cd   :  { %5579 = vmatmul.msk.bf16.vlgmr.msrb.gmra.mxu0 %vm260_vm2, %v3310_v48 }
0x2915   :  { %v3342_v51 = vpop.permute.xlu2 %3341 }
0x2916   :  { %v3347_v3 = vsel %vm260_vm2, %v3342_v51, 0 }
0x2917   :  { %3356 = vmatpush.bf16.xpose.msrb.mxu1 %v3347_v3  ;;  %v5952_v3 = vld [vmem:[%s8062_s8 + $0xac] sm:$0xf] }
0x291d   :  { %v3390_v2 = vpop.permute.xlu2 %3389 }
0x291e   :  { %v3395_v4 = vsel %vm260_vm2, %v3390_v2, 0  ;;  %5580 = vmatmul.msk.bf16.vlgmr.msrb.gmra.mxu1 %vm260_vm2, %v3311_v34  ;;  %v5592_v2 = vld [vmem:[%s8062_s8 + $0xb4] sm:$0xf0] }
0x291f   :  { %3404 = vmatpush.bf16.xpose.msra.mxu0 %v3395_v4 }
0x2925   :  { %v3366_v29 = vpop.permute.xlu0 %3365 }
0x2926   :  { %v3371_v63 = vsel %vm260_vm2, %v3366_v29, 0  ;;  %5582 = vmatmul.msk.bf16.vlgmr.msra.gmra.mxu0 %vm260_vm2, %v3313_v57  ;;  %v7553_v29 = vor.u32 %v5952_v3, %v5592_v2 }
0x2927   :  { %3380 = vmatpush.bf16.xpose.msra.mxu3 %v3371_v63 }
0x292e   :  { %5581 = vmatmul.msk.bf16.vlgmr.msra.gmra.mxu3 %vm260_vm2, %v3312_v53 }
0x294a   :  { %v3334_v6 = vpop.f32.mrf.mxu0 }
0x294b   :  { %v3335_v15 = vadd.f32 %v7521_v33, %v3334_v6  ;;  %v5949_v6 = vld [vmem:[%s8062_s8 + $0x94] sm:$0xf] }
0x294d   :  { %v3410_v45 = vsel %vm1651_vm3, %v3335_v15, -inf }
0x2952   :  { %v3336_v7 = vpop.f32.mrf.mxu0 }
0x2953   :  { %v5588_v7 = vld [vmem:[%s8062_s8 + $0x9c] sm:$0xf0] }
0x299b   :  { %v3358_v9 = vpop.f32.mrf.mxu1 }
0x299c   :  { %v3359_v11 = vadd.f32 %v7521_v33, %v3358_v9 }
0x299e   :  { %v3413_v14 = vsel %vm1651_vm3, %v3359_v11, -inf }
0x299f   :  { %3414 = vmax.xlane.f32.xlu1 %v3413_v14  ;;  %v5591_v14 = vor.u32 %v5949_v6, %v5588_v7  ;;  %v3634_v6 = vperm.slane %v7497_v54, 3 }
0x29a3   :  { %v3360_v23 = vpop.f32.mrf.mxu1  ;;  %v3406_v20 = vpop.f32.mrf.mxu0 }
0x29a4   :  { %v3407_v17 = vadd.f32 %v7521_v33, %v3406_v20 }
0x29a6   :  { %v3419_v42 = vsel %vm1651_vm3, %v3407_v17, -inf }
0x29a7   :  { %3411 = vmax.xlane.f32.xlu1 %v3410_v45  ;;  %3420 = vmax.xlane.f32.xlu2 %v3419_v42 }
0x29ab   :  { %v3408_v22 = vpop.f32.mrf.mxu0 }
0x29b1   :  { %v3382_v31 = vpop.f32.mrf.mxu3 }
0x29b2   :  { %v3383_v0 = vadd.f32 %v7521_v33, %v3382_v31 }
0x29b4   :  { %v3416_v36 = vsel %vm1651_vm3, %v3383_v0, -inf }
0x29b5   :  { %3417 = vmax.xlane.f32.xlu0 %v3416_v36 }
0x29b9   :  { %v3384_v26 = vpop.f32.mrf.mxu3 }
0x29bf   :  { %3521 = vrot.lane.b32.xlu2 %v3388_v41, %s6293_s2 }
0x29c7   :  { %3561 = vrot.lane.b32.xlu2 %v7474_v19, %s6294_s4 }
0x29c9   :  { %3500 = vrot.lane.b32.xlu0 %v3364_v18, %s6293_s2 }
0x29d1   :  { %3458 = vrot.lane.b32.xlu0 %v3316_v50, %s6293_s2 }
0x2a12   :  { %v3415_v58 = vpop.xlane.xlu1 %3414 }
0x2a13   :  { %v3423_v46 = vsub.f32 %v3359_v11, %v3415_v58 }
0x2a15   :  { %v3428_v49 = vmul.f32 1.442695, %v3423_v46 }
0x2a17   :  { %6215 = vpow2.f32 %v3428_v49 }
0x2a1a   :  { %v3421_v60 = vpop.xlane.xlu2 %3420  ;;  %v3412_v37 = vpop.xlane.xlu1 %3411 }
0x2a1b   :  { %v3425_v27 = vsub.f32 %v3407_v17, %v3421_v60  ;;  %v3422_v53 = vsub.f32 %v3335_v15, %v3412_v37 }
0x2a1d   :  { %v6216_v61 = vpop.eup %6215  ;;  %v3432_v21 = vmul.f32 1.442695, %v3425_v27  ;;  %v3426_v1 = vmul.f32 1.442695, %v3422_v53 }
0x2a1e   :  { %v3437_v30 = vsel %vm1651_vm3, %v6216_v61, 0.0 }
0x2a1f   :  { %3438 = vadd.xlane.f32.xlu1 %v3437_v30  ;;  %6217 = vpow2.f32 %v3432_v21 }
0x2a22   :  { %v3522_v8 = vpop.permute.xlu2 %3521 }
0x2a23   :  { %v3527_v12 = vsel %vm1497_vm12, %v3522_v8, 0 }
0x2a24   :  { %3536 = vmatpush.bf16.msrb.mxu0 %v3527_v12 }
0x2a25   :  { %v6218_v19 = vpop.eup %6217 }
0x2a26   :  { %v3443_v38 = vsel %vm1651_vm3, %v6218_v19, 0.0 }
0x2a27   :  { %3444 = vadd.xlane.f32.xlu1 %v3443_v38  ;;  %v3611_v38 = vperm.slane %v7497_v54, 2 }
0x2a28   :  { %v3418_v40 = vpop.xlane.xlu0 %3417 }
0x2a29   :  { %v3424_v5 = vsub.f32 %v3383_v0, %v3418_v40 }
0x2a2a   :  { %v3562_v58 = vpop.permute.xlu2 %3561 }
0x2a2b   :  { %v3430_v16 = vmul.f32 1.442695, %v3424_v5 }
0x2a2d   :  { %6219 = vpow2.f32 %v3430_v16 }
0x2a2e   :  { %6221 = vpow2.f32 %v3426_v1 }
0x2a33   :  { %v6220_v43 = vpop.eup %6219 }
0x2a34   :  { %v3440_v13 = vsel %vm1651_vm3, %v6220_v43, 0.0  ;;  %v6222_v18 = vpop.eup %6221 }
0x2a35   :  { %3441 = vadd.xlane.f32.xlu1 %v3440_v13  ;;  %v3434_v10 = vsel %vm1651_vm3, %v6222_v18, 0.0  ;;  %v3558_v13 = vperm.slane %v7497_v54, 1 }
0x2a3b   :  { %v3501_v44 = vpop.permute.xlu0 %3500 }
0x2a3c   :  { %v3506_v48 = vsel %vm1497_vm12, %v3501_v44, 0 }
0x2a3d   :  { %3515 = vmatpush.bf16.msrb.mxu3 %v3506_v48 }
0x2a43   :  { %v3459_v47 = vpop.permute.xlu0 %3458 }
0x2a44   :  { %v3464_v50 = vsel %vm1497_vm12, %v3459_v47, 0 }
0x2a45   :  { %3473 = vmatpush.bf16.msra.mxu1 %v3464_v50 }
0x2a49   :  { %3574 = vmatpush.bf16.msrb.mxu1 %v3562_v58 }
0x2a4e   :  { %3479 = vrot.lane.b32.xlu1 %v7505_v35, %s6293_s2 }
0x2a78   :  { %3435 = vadd.xlane.f32.xlu1 %v3434_v10 }
0x2a92   :  { %v3439_v34 = vpop.xlane.xlu1 %3438 }
0x2a9a   :  { %v3445_v24 = vpop.xlane.xlu1 %3444 }
0x2a9b   :  { %6223 = vrcp.f32 %v3445_v24 }
0x2aa1   :  { %v6224_v55 = vpop.eup %6223 }
0x2aa2   :  { %v3453_v57 = vmul.f32 %v6224_v55, %v6218_v19 }
0x2aa4   :  { %v3457_v59 = vpack.c.bf16 %v3453_v57, %v3453_v57 }
0x2aa6   :  { %5586 = vmatmul.msk.bf16.vlgmr.msrb.gmra.mxu0 %vm1702_vm13, %v3457_v59 }
0x2aa8   :  { %v3442_v41 = vpop.xlane.xlu1 %3441 }
0x2aa9   :  { %6225 = vrcp.f32 %v3442_v41  ;;  %v5954_v41 = vld [vmem:[%s8062_s8 + $0xb8] sm:$0xf0] }
0x2aaa   :  { %6227 = vrcp.f32 %v3439_v34 }
0x2aaf   :  { %v6226_v39 = vpop.eup %6225 }
0x2ab0   :  { %v3452_v35 = vmul.f32 %v6226_v39, %v6220_v43  ;;  %v6228_v51 = vpop.eup %6227 }
0x2ab1   :  { %v3451_v4 = vmul.f32 %v6228_v51, %v6216_v61 }
0x2ab2   :  { %v3456_v56 = vpack.c.bf16 %v3452_v35, %v3452_v35 }
0x2ab3   :  { %v3455_v11 = vpack.c.bf16 %v3451_v4, %v3451_v4 }
0x2ab4   :  { %5585 = vmatmul.msk.bf16.vlgmr.msrb.gmra.mxu3 %vm1702_vm13, %v3456_v56 }
0x2ac0   :  { %v3480_v63 = vpop.permute.xlu1 %3479 }
0x2ac1   :  { %v3485_v9 = vsel %vm1497_vm12, %v3480_v63, 0 }
0x2ac2   :  { %3494 = vmatpush.bf16.msrb.mxu2 %v3485_v9  ;;  %v3607_v9 = vperm.slane %v7497_v54, 6 }
0x2ac5   :  { %5584 = vmatmul.msk.bf16.vlgmr.msrb.gmra.mxu2 %vm1702_vm13, %v3455_v11 }
0x2ac6   :  { %3626 = vmatpush.bf16.msra.mxu2 %v7553_v29 }
0x2aca   :  { %3627 = vmatpush.bf16.msra.mxu2 %v5591_v14 }
0x2ad5   :  { %5596 = vmatmul.msk.bf16.vlgmr.msra.gmra.mxu2 %vm207_vm1, %v7011_v28 }
0x2aeb   :  { %v3436_v15 = vpop.xlane.xlu1 %3435 }
0x2aec   :  { %6229 = vrcp.f32 %v3436_v15 }
0x2af2   :  { %v6230_v23 = vpop.eup %6229 }
0x2af3   :  { %v3450_v20 = vmul.f32 %v6230_v23, %v6222_v18  ;;  %v3609_v23 = vperm.slane %v7497_v54, 7 }
0x2af5   :  { %v3454_v17 = vpack.c.bf16 %v3450_v20, %v3450_v20 }
0x2af7   :  { %5583 = vmatmul.msk.bf16.vlgmr.msra.gmra.mxu1 %vm1702_vm13, %v3454_v17 }
0x2b23   :  { %v3538_v45 = vpop.f32.mrf.mxu0 }
0x2b2b   :  { %v3540_v42 = vpop.f32.mrf.mxu0 }
0x2b37   :  { %v3517_v22 = vpop.f32.mrf.mxu3 }
0x2b38   :  { %3547 = vrot.lane.b32.xlu2 %v3517_v22, %s6295_s17 }
0x2b3f   :  { %v3519_v31 = vpop.f32.mrf.mxu3 }
0x2b40   :  { %3559 = vrot.lane.b32.xlu2 %v7483_v62, %s6294_s4 }
0x2b48   :  { %v3496_v0 = vpop.f32.mrf.mxu2  ;;  %3635 = vrot.lane.b32.xlu2 %v5591_v14, %s6292_s28 }
0x2b49   :  { %3543 = vrot.lane.b32.xlu0 %v3496_v0, %s6296_s0 }
0x2b50   :  { %v3498_v36 = vpop.f32.mrf.mxu2 }
0x2b51   :  { %3551 = vrot.lane.b32.xlu0 %v3538_v45, %s6297_s18 }
0x2b58   :  { %v3629_v26 = vpop.f32.mrf.mxu2 }
0x2b59   :  { %3637 = vrot.lane.b32.xlu0 %v7553_v29, %s6292_s28  ;;  %v3630_v5 = vadd.f32 %v3629_v26, %v3611_v38 }
0x2b5b   :  { %v3633_v43 = vpack.c.bf16 %v3630_v5, %v3630_v5 }
0x2b60   :  { %v3631_v46 = vpop.f32.mrf.mxu2 }
0x2b74   :  { %v3475_v49 = vpop.f32.mrf.mxu1 }
0x2b7c   :  { %v3477_v60 = vpop.f32.mrf.mxu1 }
0x2b92   :  { %v3548_v27 = vpop.permute.xlu2 %3547 }
0x2b9a   :  { %v3560_v61 = vpop.permute.xlu2 %3559 }
0x2b9b   :  { %3575 = vmatpush.bf16.msrb.mxu1 %v3560_v61 }
0x2ba2   :  { %v3636_v16 = vpop.permute.xlu2 %3635 }
0x2bbb   :  { %v3544_v62 = vpop.permute.xlu0 %3543 }
0x2bbc   :  { %v3554_v21 = vsel %vm260_vm2, %v3475_v49, %v3544_v62 }
0x2bbd   :  { %v3555_v8 = vsel %vm595_vm6, %v3554_v21, %v3548_v27  ;;  %v5616_v27 = vld [vmem:[%s8062_s8 + $0x98] sm:$0xf] }
0x2bc3   :  { %v3552_v30 = vpop.permute.xlu0 %3551 }
0x2bc4   :  { %v3556_v12 = vsel %vm598_vm7, %v3555_v8, %v3552_v30  ;;  %v5962_v30 = vld [vmem:[%s8066_s9 + $0xf8] sm:$0xff] }
0x2bc5   :  { %v3557_v19 = vpack.c.bf16 %v3556_v12, %v3556_v12  ;;  %3797 = vmatpush.bf16.msra.mxu1 %v5962_v30  ;;  %v5961_v12 = vld [vmem:[%s8066_s9 + $0xf0] sm:$0xff] }
0x2bc7   :  { %5587 = vmatmul.msk.bf16.vlgmr.msrb.gmra.mxu1 %vm207_vm1, %v3557_v19  ;;  %v5960_v19 = vld [vmem:[%s8066_s9 + $0xe8] sm:$0xff] }
0x2bc9   :  { %3798 = vmatpush.bf16.msra.mxu1 %v5961_v12 }
0x2bcb   :  { %v3638_v40 = vpop.permute.xlu0 %3637 }
0x2bcc   :  { %3650 = vmatpush.bf16.msra.mxu3 %v3638_v40  ;;  %v5959_v40 = vld [vmem:[%s8066_s9 + $0xe0] sm:$0xff] }
0x2bcd   :  { %3799 = vmatpush.bf16.msra.mxu1 %v5960_v19 }
0x2bd0   :  { %3651 = vmatpush.bf16.msra.mxu3 %v3636_v16 }
0x2bd1   :  { %3800 = vmatpush.bf16.msra.mxu1 %v5959_v40 }
0x2bd3   :  { %5597 = vmatmul.msk.bf16.vlgmr.msra.gmra.mxu3 %vm207_vm1, %v3633_v43  ;;  %v5958_v43 = vld [vmem:[%s8066_s9 + $0xd8] sm:$0xff] }
0x2bd5   :  { %3801 = vmatpush.bf16.msra.mxu1 %v5958_v43  ;;  %v7679_v43 = vld [vmem:[%s8063_s10 + $0x40] sm:$0xff] }
0x2c44   :  { %v3577_v44 = vpop.f32.mrf.mxu1 }
0x2c45   :  { %v3578_v48 = vadd.f32 %v3577_v44, %v3558_v13  ;;  %v7630_v44 = vld [vmem:[%s8063_s10 + $0x38] sm:$0xf] }
0x2c46   :  { %v3836_v30 = vperm.slane %v7630_v44, 2  ;;  %v3838_v12 = vperm.slane %v7630_v44, 3 }
0x2c47   :  { %v3582_v47 = vrot.slane %v3578_v48, 6 }
0x2c49   :  { %v3584_v50 = vadd.f32 %v3582_v47, %v7489_v52  ;;  %v5620_v52 = vld [vmem:[%s8062_s8 + $0xb0] sm:$0xf] }
0x2c4a   :  { %v5621_v35 = vor.u32 %v5954_v41, %v5620_v52  ;;  %v5957_v47 = vld [vmem:[%s8066_s9 + $0xd0] sm:$0xff]  ;;  %v5956_v41 = vld [vmem:[%s8066_s9 + $0xc8] sm:$0xff] }
0x2c4b   :  { %v3585_v37 = vsel %vm1828_vm10, %v3584_v50, 0.0  ;;  %3802 = vmatpush.bf16.msra.mxu1 %v5957_v47 }
0x2c4c   :  { %v3579_v53 = vpop.f32.mrf.mxu1  ;;  %3586 = vadd.xlane.f32.xlu0 %v3585_v37  ;;  %v3683_v37 = vperm.slane %v7630_v44, 0 }
0x2c4f   :  { %3803 = vmatpush.bf16.msra.mxu1 %v5956_v41 }
0x2c56   :  { %v3653_v1 = vpop.f32.mrf.mxu3 }
0x2c5e   :  { %v3655_v18 = vpop.f32.mrf.mxu3 }
0x2c5f   :  { %v3685_v18 = vperm.slane %v7630_v44, 1 }
0x2c60   :  { %3724 = vrot.lane.b32.xlu0 %v5621_v35, %s6293_s2  ;;  %v3705_v35 = vperm.slane %v7497_v54, 4 }
0x2cbf   :  { %v3587_v10 = vpop.xlane.xlu0 %3586 }
0x2cc0   :  { %v3588_v34 = vmul.f32 %v3587_v10, %v6584_v32 }
0x2cc2   :  { %v3589_v24 = vsub.f32 %v3584_v50, %v3588_v34 }
0x2cc4   :  { %v3590_v55 = vmul.f32 %v3589_v24, %v3589_v24 }
0x2cc6   :  { %v3591_v57 = vsel %vm1828_vm10, %v3590_v55, 0.0 }
0x2cc7   :  { %3592 = vadd.xlane.f32.xlu2 %v3591_v57 }
0x2cd2   :  { %v3725_v46 = vpop.permute.xlu0 %3724 }
0x2cdf   :  { %3718 = vrot.lane.b32.xlu2 %v5591_v14, %s6293_s2  ;;  %v3654_v14 = vadd.f32 %v3653_v1, %v3634_v6 }
0x2ce1   :  { %v3658_v17 = vrot.slane %v3654_v14, 6 }
0x2d3a   :  { %v3593_v59 = vpop.xlane.xlu2 %3592 }
0x2d3b   :  { %v3594_v39 = vmul.f32 %v3593_v59, %v6584_v32 }
0x2d3d   :  { %v3595_v56 = vadd.f32 1e-05, %v3594_v39  ;;  %v5955_v39 = vld [vmem:[%s8066_s9 + $0xc0] sm:$0xff] }
0x2d3e   :  { %3804 = vmatpush.bf16.msra.mxu1 %v5955_v39 }
0x2d3f   :  { %6231 = vrsqrt.f32 %v3595_v56  ;;  %vm3602_vm11 = vweird.f32 %v3595_v56 }
0x2d42   :  { %v3719_v1 = vpop.permute.xlu2 %3718 }
0x2d45   :  { %v6232_v51 = vpop.eup %6231 }
0x2d46   :  { %v3597_v3 = vmul.f32 %v6232_v51, %v3595_v56  ;;  %vm3603_vm9 = vweird.f32 %v6232_v51 }
0x2d47   :  { %vm3604_vm14 = vmor %vm3602_vm11, %vm3603_vm9 }
0x2d48   :  { %v3598_v2 = vmul.f32 %v6232_v51, %v3597_v3 }
0x2d4a   :  { %v3599_v4 = vmul.f32 0.5, %v3598_v2 }
0x2d4c   :  { %v3600_v63 = vsub.f32 1.5, %v3599_v4 }
0x2d4e   :  { %v3601_v7 = vmul.f32 %v6232_v51, %v3600_v63  ;;  %v3748_v63 = vperm.slane %v7497_v54, 5  ;;  %v5671_v54 = vld [vmem:[%s8062_s8 + $0xd8] sm:$0xf] }
0x2d50   :  { %v3605_v11 = vsel %vm3604_vm14, %v6232_v51, %v3601_v7 }
0x2d51   :  { %v3606_v15 = vmul.f32 %v3605_v11, %v3589_v24 }
0x2d53   :  { %v3608_v20 = vmul.f32 %v3607_v9, %v3606_v15 }
0x2d55   :  { %v3610_v45 = vadd.f32 %v3609_v23, %v3608_v20 }
0x2d57   :  { %v3660_v42 = vadd.f32 %v3658_v17, %v3610_v45 }
0x2d59   :  { %v3661_v22 = vsel %vm1828_vm10, %v3660_v42, 0.0 }
0x2d5a   :  { %3662 = vadd.xlane.f32.xlu1 %v3661_v22  ;;  %v5967_v22 = vld [vmem:[%s8062_s8 + $0xe0] sm:$0xf0] }
0x2d73   :  { %3722 = vrot.lane.b32.xlu1 %v7553_v29, %s6293_s2  ;;  %v5951_v29 = vld [vmem:[%s8062_s8 + $0xa0] sm:$0xf0] }
0x2d74   :  { %v5617_v61 = vor.u32 %v5951_v29, %v5616_v27 }
0x2dcd   :  { %v3663_v31 = vpop.xlane.xlu1 %3662 }
0x2dce   :  { %v3664_v0 = vmul.f32 %v3663_v31, %v6584_v32  ;;  %v7656_v31 = vor.u32 %v5967_v22, %v5671_v54 }
0x2dd0   :  { %v3665_v36 = vsub.f32 %v3660_v42, %v3664_v0  ;;  %3877 = vmatpush.bf16.msrb.mxu2 %v7656_v31  ;;  %v5667_v0 = vld [vmem:[%s8062_s8 + $0xc0] sm:$0xf] }
0x2dd2   :  { %v3666_v26 = vmul.f32 %v3665_v36, %v3665_v36 }
0x2dd4   :  { %v3667_v58 = vsel %vm1828_vm10, %v3666_v26, 0.0 }
0x2dd5   :  { %3668 = vadd.xlane.f32.xlu1 %v3667_v58 }
0x2de5   :  { %v3723_v49 = vpop.permute.xlu1 %3722 }
0x2de6   :  { %v3727_v60 = vsel %vm156_vm0, %v3723_v49, %v3725_v46 }
0x2de7   :  { %3739 = vmatpush.bf16.msra.mxu0 %v3727_v60 }
0x2dee   :  { %3720 = vrot.lane.b32.xlu1 %v5617_v61, %s6293_s2 }
0x2e48   :  { %v3669_v62 = vpop.xlane.xlu1 %3668 }
0x2e49   :  { %v3670_v21 = vmul.f32 %v3669_v62, %v6584_v32 }
0x2e4b   :  { %v3671_v8 = vadd.f32 1e-05, %v3670_v21 }
0x2e4d   :  { %6233 = vrsqrt.f32 %v3671_v8  ;;  %vm3678_vm5 = vweird.f32 %v3671_v8 }
0x2e53   :  { %v6234_v38 = vpop.eup %6233 }
0x2e54   :  { %v3673_v5 = vmul.f32 %v6234_v38, %v3671_v8  ;;  %vm3679_vm4 = vweird.f32 %v6234_v38 }
0x2e55   :  { %vm3680_vm8 = vmor %vm3678_vm5, %vm3679_vm4 }
0x2e56   :  { %v3674_v16 = vmul.f32 %v6234_v38, %v3673_v5 }
0x2e58   :  { %v3675_v13 = vmul.f32 0.5, %v3674_v16 }
0x2e5a   :  { %v3676_v48 = vsub.f32 1.5, %v3675_v13  ;;  %v3853_v13 = vperm.slane %v7679_v43, 0 }
0x2e5c   :  { %v3677_v50 = vmul.f32 %v6234_v38, %v3676_v48 }
0x2e5e   :  { %v3681_v53 = vsel %vm3680_vm8, %v6234_v38, %v3677_v50 }
0x2e5f   :  { %v3682_v10 = vmul.f32 %v3681_v53, %v3665_v36  ;;  %v5964_v36 = vld [vmem:[%s8062_s8 + $0xc8] sm:$0xf0] }
0x2e60   :  { %v3721_v34 = vpop.permute.xlu1 %3720  ;;  %v7665_v26 = vor.u32 %v5964_v36, %v5667_v0 }
0x2e61   :  { %v3684_v24 = vmul.f32 %v3683_v37, %v3682_v10  ;;  %v3726_v55 = vsel %vm156_vm0, %v3719_v1, %v3721_v34 }
0x2e62   :  { %3740 = vmatpush.bf16.msra.mxu0 %v3726_v55  ;;  %3878 = vmatpush.bf16.msrb.mxu2 %v7665_v26 }
0x2e63   :  { %v3686_v57 = vadd.f32 %v3685_v18, %v3684_v24 }
0x2e65   :  { %v3704_v59 = vpack.c.bf16 %v3686_v57, %v3686_v57 }
0x2e67   :  { %v3707_v52 = vrot.slane %v3704_v59, 1 }
0x2e69   :  { %5622 = vmatmul.msk.bf16.vlgmr.msra.gmra.mxu0 %vm207_vm1, %v3707_v52 }
0x2ee6   :  { %v3742_v56 = vpop.f32.mrf.mxu0 }
0x2ee7   :  { %v3743_v51 = vadd.f32 %v3742_v56, %v3705_v35 }
0x2ee9   :  { %v3746_v3 = vmax.f32 %v3743_v51, 0.0 }
0x2eeb   :  { %v3747_v2 = vpack.c.bf16 %v3746_v3, %v3746_v3 }
0x2eed   :  { %3805 = vmatmul.bf16.vlgmr.msra.gmra.mxu1 %v3747_v2 }
0x2eee   :  { %v3744_v4 = vpop.f32.mrf.mxu0 }
0x2f6a   :  { %v3806_v6 = vpop.f32.mrf.mxu1 }
0x2f6b   :  { %v3807_v7 = vadd.f32 %v3806_v6, %v3748_v63 }
0x2f6d   :  { %v3811_v9 = vrot.slane %v3807_v7, 6 }
0x2f6f   :  { %v3813_v11 = vadd.f32 %v3811_v9, %v3686_v57 }
0x2f71   :  { %v3814_v14 = vsel %vm1828_vm10, %v3813_v11, 0.0 }
0x2f72   :  { %v3808_v15 = vpop.f32.mrf.mxu1  ;;  %3815 = vadd.xlane.f32.xlu1 %v3814_v14 }
0x2fe5   :  { %v3816_v23 = vpop.xlane.xlu1 %3815 }
0x2fe6   :  { %v3817_v20 = vmul.f32 %v3816_v23, %v6584_v32 }
0x2fe8   :  { %v3818_v17 = vsub.f32 %v3813_v11, %v3817_v20 }
0x2fea   :  { %v3819_v45 = vmul.f32 %v3818_v17, %v3818_v17 }
0x2fec   :  { %v3820_v42 = vsel %vm1828_vm10, %v3819_v45, 0.0 }
0x2fed   :  { %3821 = vadd.xlane.f32.xlu0 %v3820_v42 }
0x3060   :  { %v3822_v58 = vpop.xlane.xlu0 %3821 }
0x3061   :  { %v3823_v46 = vmul.f32 %v3822_v58, %v6584_v32 }
0x3063   :  { %v3824_v49 = vadd.f32 1e-05, %v3823_v46 }
0x3065   :  { %6235 = vrsqrt.f32 %v3824_v49  ;;  %vm3831_vm9 = vweird.f32 %v3824_v49 }
0x306b   :  { %v6236_v60 = vpop.eup %6235 }
0x306c   :  { %v3826_v27 = vmul.f32 %v6236_v60, %v3824_v49  ;;  %vm3832_vm15 = vweird.f32 %v6236_v60 }
0x306d   :  { %vm3833_vm11 = vmor %vm3831_vm9, %vm3832_vm15 }
0x306e   :  { %v3827_v29 = vmul.f32 %v6236_v60, %v3826_v27 }
0x3070   :  { %v3828_v61 = vmul.f32 0.5, %v3827_v29 }
0x3072   :  { %v3829_v62 = vsub.f32 1.5, %v3828_v61 }
0x3074   :  { %v3830_v21 = vmul.f32 %v6236_v60, %v3829_v62 }
0x3076   :  { %v3834_v8 = vsel %vm3833_vm11, %v6236_v60, %v3830_v21 }
0x3077   :  { %v3835_v19 = vmul.f32 %v3834_v8, %v3818_v17 }
0x3079   :  { %v3837_v38 = vmul.f32 %v3836_v30, %v3835_v19 }
0x307b   :  { %v7671_v40 = vadd.f32 %v3838_v12, %v3837_v38 }
0x307d   :  { %v3852_v5 = vpack.c.bf16 %v7671_v40, %v7671_v40 }
0x307f   :  { %v3855_v16 = vrot.slane %v3852_v5, 1 }
0x3081   :  { %5673 = vmatmul.msk.bf16.vlgmr.msrb.gmra.mxu2 %vm207_vm1, %v3855_v16 }
0x3104   :  { %v3880_v48 = vpop.f32.mrf.mxu2 }
0x3105   :  { %v3881_v47 = vadd.f32 %v3880_v48, %v3853_v13 }
0x3107   :  { %3888 = vrot.lane.b32.xlu2 %v3881_v47, %s6291_s27  ;;  %v3894_v50 = vpack.c.bf16 %v3881_v47, %v3881_v47 }
0x3109   :  { %v3899_v37 = vunpack.c.l.b16 %v3894_v50 }
0x310b   :  { %v7685_v53 = vpack.c.b16 %v3899_v37, %v3899_v37 }
0x310c   :  { %v3882_v44 = vpop.f32.mrf.mxu2 }
0x310f   :  { %3891 = vrot.lane.b32.xlu2 %v3881_v47, %s6289_s25 }
0x3117   :  { %3885 = vrot.lane.b32.xlu2 %v3881_v47, %s6290_s26 }
0x311f   :  { %3901 = vrot.lane.b32.xlu2 %v7685_v53, %s6292_s28 }
0x3161   :  { %v3889_v1 = vpop.permute.xlu2 %3888 }
0x3162   :  { %v3896_v18 = vpack.c.bf16 %v3889_v1, %v3889_v1 }
0x3164   :  { %v3947_v10 = vunpack.c.l.b16 %v3896_v18 }
0x3166   :  { %v7689_v34 = vpack.c.b16 %v3947_v10, %v3947_v10 }
0x3168   :  { %3949 = vrot.lane.b32.xlu1 %v7689_v34, %s6292_s28 }
0x3169   :  { %v3892_v24 = vpop.permute.xlu2 %3891 }
0x316a   :  { %v3897_v55 = vpack.c.bf16 %v3892_v24, %v3892_v24 }
0x316c   :  { %v3971_v57 = vunpack.c.l.b16 %v3897_v55 }
0x316e   :  { %v3972_v59 = vpack.c.b16 %v3971_v57, %v3971_v57 }
0x3170   :  { %3973 = vrot.lane.b32.xlu2 %v3972_v59, %s6292_s28 }
0x3171   :  { %v3886_v52 = vpop.permute.xlu2 %3885 }
0x3172   :  { %v3895_v41 = vpack.c.bf16 %v3886_v52, %v3886_v52 }
0x3174   :  { %v3923_v39 = vunpack.c.l.b16 %v3895_v41 }
0x3176   :  { %v3924_v35 = vpack.c.b16 %v3923_v39, %v3923_v39 }
0x3178   :  { %3925 = vrot.lane.b32.xlu0 %v3924_v35, %s6292_s28 }
0x3179   :  { %v3902_v56 = vpop.permute.xlu2 %3901 }
0x317a   :  { %v3907_v51 = vsel %vm260_vm2, %v3902_v56, 0 }
0x317b   :  { %3916 = vmatpush.bf16.xpose.msrb.mxu3 %v3907_v51 }
0x3182   :  { %5674 = vmatmul.msk.bf16.vlgmr.msrb.gmra.mxu3 %vm260_vm2, %v3894_v50 }
0x31ca   :  { %v3974_v3 = vpop.permute.xlu2 %3973 }
0x31cb   :  { %v3979_v2 = vsel %vm260_vm2, %v3974_v3, 0  ;;  %v5966_v3 = vld [vmem:[%s8062_s8 + $0xdc] sm:$0xf] }
0x31cc   :  { %3988 = vmatpush.bf16.xpose.msra.mxu3 %v3979_v2  ;;  %v5687_v2 = vld [vmem:[%s8062_s8 + $0xe4] sm:$0xf0] }
0x31d3   :  { %5677 = vmatmul.msk.bf16.vlgmr.msra.gmra.mxu3 %vm260_vm2, %v3897_v55 }
0x31da   :  { %v3950_v4 = vpop.permute.xlu1 %3949 }
0x31db   :  { %v3955_v63 = vsel %vm260_vm2, %v3950_v4, 0 }
0x31dc   :  { %3964 = vmatpush.bf16.xpose.msra.mxu2 %v3955_v63  ;;  %v7734_v63 = vor.u32 %v5966_v3, %v5687_v2 }
0x31e3   :  { %5676 = vmatmul.msk.bf16.vlgmr.msra.gmra.mxu2 %vm260_vm2, %v3896_v18 }
0x31ea   :  { %v3926_v6 = vpop.permute.xlu0 %3925 }
0x31eb   :  { %v3931_v7 = vsel %vm260_vm2, %v3926_v6, 0 }
0x31ec   :  { %3940 = vmatpush.bf16.xpose.msrb.mxu0 %v3931_v7  ;;  %v5963_v7 = vld [vmem:[%s8062_s8 + $0xc4] sm:$0xf] }
0x31f3   :  { %5675 = vmatmul.msk.bf16.vlgmr.msrb.gmra.mxu0 %vm260_vm2, %v3895_v41 }
0x3205   :  { %v3918_v9 = vpop.f32.mrf.mxu3 }
0x3206   :  { %v3919_v54 = vadd.f32 %v7521_v33, %v3918_v9  ;;  %v5683_v9 = vld [vmem:[%s8062_s8 + $0xcc] sm:$0xf0] }
0x3208   :  { %v3994_v58 = vsel %vm1651_vm3, %v3919_v54, -inf }
0x320d   :  { %v3920_v11 = vpop.f32.mrf.mxu3 }
0x3256   :  { %v3990_v14 = vpop.f32.mrf.mxu3 }
0x3257   :  { %v3991_v15 = vadd.f32 %v7521_v33, %v3990_v14 }
0x3259   :  { %v4003_v23 = vsel %vm1651_vm3, %v3991_v15, -inf }
0x325a   :  { %4004 = vmax.xlane.f32.xlu0 %v4003_v23 }
0x325e   :  { %v3992_v20 = vpop.f32.mrf.mxu3 }
0x3266   :  { %v3966_v17 = vpop.f32.mrf.mxu2 }
0x3267   :  { %v3967_v45 = vadd.f32 %v7521_v33, %v3966_v17 }
0x3269   :  { %v4000_v42 = vsel %vm1651_vm3, %v3967_v45, -inf }
0x326a   :  { %4001 = vmax.xlane.f32.xlu2 %v4000_v42 }
0x326e   :  { %v3968_v22 = vpop.f32.mrf.mxu2 }
0x3270   :  { %v3942_v0 = vpop.f32.mrf.mxu0 }
0x3271   :  { %v3943_v36 = vadd.f32 %v7521_v33, %v3942_v0 }
0x3272   :  { %3995 = vmax.xlane.f32.xlu2 %v3994_v58 }
0x3273   :  { %v3997_v46 = vsel %vm1651_vm3, %v3943_v36, -inf }
0x3274   :  { %3998 = vmax.xlane.f32.xlu1 %v3997_v46 }
0x3278   :  { %v3944_v49 = vpop.f32.mrf.mxu0 }
0x32cd   :  { %v4005_v60 = vpop.xlane.xlu0 %4004 }
0x32ce   :  { %v4009_v27 = vsub.f32 %v3991_v15, %v4005_v60  ;;  %v7744_v15 = vor.u32 %v5963_v7, %v5683_v9  ;;  %v4191_v9 = vperm.slane %v7679_v43, 6 }
0x32d0   :  { %v4016_v29 = vmul.f32 1.442695, %v4009_v27 }
0x32d2   :  { %6237 = vpow2.f32 %v4016_v29 }
0x32d8   :  { %v6238_v61 = vpop.eup %6237 }
0x32d9   :  { %v4027_v62 = vsel %vm1651_vm3, %v6238_v61, 0.0 }
0x32da   :  { %4028 = vadd.xlane.f32.xlu0 %v4027_v62 }
0x32dd   :  { %v4002_v21 = vpop.xlane.xlu2 %4001 }
0x32de   :  { %v4008_v30 = vsub.f32 %v3967_v45, %v4002_v21 }
0x32e0   :  { %v4014_v8 = vmul.f32 1.442695, %v4008_v30 }
0x32e2   :  { %6239 = vpow2.f32 %v4014_v8 }
0x32e5   :  { %v3996_v48 = vpop.xlane.xlu2 %3995 }
0x32e6   :  { %v4006_v47 = vsub.f32 %v3919_v54, %v3996_v48  ;;  %v4142_v48 = vperm.slane %v7679_v43, 1 }
0x32e7   :  { %v3999_v33 = vpop.xlane.xlu1 %3998 }
0x32e8   :  { %v6240_v12 = vpop.eup %6239  ;;  %v4007_v19 = vsub.f32 %v3943_v36, %v3999_v33  ;;  %v4010_v44 = vmul.f32 1.442695, %v4006_v47 }
0x32e9   :  { %v4024_v38 = vsel %vm1651_vm3, %v6240_v12, 0.0 }
0x32ea   :  { %v4012_v5 = vmul.f32 1.442695, %v4007_v19  ;;  %4025 = vadd.xlane.f32.xlu2 %v4024_v38  ;;  %v4195_v19 = vperm.slane %v7679_v43, 2 }
0x32ec   :  { %6241 = vpow2.f32 %v4012_v5 }
0x32ed   :  { %6243 = vpow2.f32 %v4010_v44 }
0x32ee   :  { %4105 = vrot.lane.b32.xlu0 %v3972_v59, %s6293_s2 }
0x32f2   :  { %v6242_v16 = vpop.eup %6241 }
0x32f3   :  { %v4021_v13 = vsel %vm1651_vm3, %v6242_v16, 0.0  ;;  %v6244_v50 = vpop.eup %6243 }
0x32f4   :  { %4022 = vadd.xlane.f32.xlu1 %v4021_v13  ;;  %v4018_v37 = vsel %vm1651_vm3, %v6244_v50, 0.0 }
0x32f6   :  { %4042 = vrot.lane.b32.xlu0 %v7685_v53, %s6293_s2 }
0x3302   :  { %4084 = vrot.lane.b32.xlu2 %v7689_v34, %s6293_s2 }
0x330d   :  { %4063 = vrot.lane.b32.xlu1 %v3924_v35, %s6293_s2 }
0x3315   :  { %4145 = vrot.lane.b32.xlu1 %v7656_v31, %s6294_s4 }
0x332b   :  { %4019 = vadd.xlane.f32.xlu2 %v4018_v37 }
0x334d   :  { %v4029_v1 = vpop.xlane.xlu0 %4028 }
0x334e   :  { %6245 = vrcp.f32 %v4029_v1 }
0x3354   :  { %v6246_v18 = vpop.eup %6245 }
0x3355   :  { %v4037_v10 = vmul.f32 %v6246_v18, %v6238_v61 }
0x3357   :  { %v4041_v55 = vpack.c.bf16 %v4037_v10, %v4037_v10 }
0x335d   :  { %v4026_v53 = vpop.xlane.xlu2 %4025 }
0x335e   :  { %6247 = vrcp.f32 %v4026_v53 }
0x3360   :  { %v4106_v34 = vpop.permute.xlu0 %4105 }
0x3361   :  { %v4111_v24 = vsel %vm1497_vm12, %v4106_v34, 0 }
0x3362   :  { %4120 = vmatpush.bf16.msrb.mxu3 %v4111_v24 }
0x3364   :  { %v6248_v31 = vpop.eup %6247 }
0x3365   :  { %v4036_v57 = vmul.f32 %v6248_v31, %v6240_v12  ;;  %5681 = vmatmul.msk.bf16.vlgmr.msrb.gmra.mxu3 %vm1702_vm13, %v4041_v55  ;;  %v4085_v59 = vpop.permute.xlu2 %4084 }
0x3366   :  { %v4090_v52 = vsel %vm1497_vm12, %v4085_v59, 0 }
0x3367   :  { %v4040_v41 = vpack.c.bf16 %v4036_v57, %v4036_v57  ;;  %4099 = vmatpush.bf16.msrb.mxu2 %v4090_v52  ;;  %v4023_v56 = vpop.xlane.xlu1 %4022  ;;  %v5715_v52 = vld [vmem:[%s8062_s8 + $0xe0] sm:$0xf] }
0x3368   :  { %v4043_v39 = vpop.permute.xlu0 %4042  ;;  %6249 = vrcp.f32 %v4023_v56 }
0x3369   :  { %v4048_v35 = vsel %vm1497_vm12, %v4043_v39, 0 }
0x336a   :  { %4057 = vmatpush.bf16.msra.mxu0 %v4048_v35  ;;  %5680 = vmatmul.msk.bf16.vlgmr.msrb.gmra.mxu2 %vm1702_vm13, %v4040_v41 }
0x336e   :  { %v6250_v51 = vpop.eup %6249 }
0x336f   :  { %v4035_v4 = vmul.f32 %v6250_v51, %v6242_v16 }
0x3371   :  { %v4039_v14 = vpack.c.bf16 %v4035_v4, %v4035_v4 }
0x337f   :  { %v4064_v6 = vpop.permute.xlu1 %4063 }
0x3380   :  { %v4069_v11 = vsel %vm1497_vm12, %v4064_v6, 0  ;;  %v4218_v6 = vperm.slane %v7679_v43, 3 }
0x3381   :  { %4078 = vmatpush.bf16.msrb.mxu1 %v4069_v11 }
0x3384   :  { %5679 = vmatmul.msk.bf16.vlgmr.msrb.gmra.mxu1 %vm1702_vm13, %v4039_v14 }
0x3385   :  { %4210 = vmatpush.bf16.msra.mxu1 %v7734_v63 }
0x3387   :  { %v4146_v46 = vpop.permute.xlu1 %4145 }
0x3388   :  { %4158 = vmatpush.bf16.msrb.mxu0 %v4146_v46 }
0x3389   :  { %4211 = vmatpush.bf16.msra.mxu1 %v7744_v15 }
0x3394   :  { %5691 = vmatmul.msk.bf16.vlgmr.msra.gmra.mxu1 %vm207_vm1, %v7011_v28 }
0x339e   :  { %v4020_v23 = vpop.xlane.xlu2 %4019 }
0x339f   :  { %6251 = vrcp.f32 %v4020_v23 }
0x33a5   :  { %v6252_v20 = vpop.eup %6251 }
0x33a6   :  { %v4034_v17 = vmul.f32 %v6252_v20, %v6244_v50  ;;  %v4193_v20 = vperm.slane %v7679_v43, 7 }
0x33a8   :  { %v4038_v45 = vpack.c.bf16 %v4034_v17, %v4034_v17 }
0x33aa   :  { %5678 = vmatmul.msk.bf16.vlgmr.msra.gmra.mxu0 %vm1702_vm13, %v4038_v45 }
0x33e8   :  { %v4122_v42 = vpop.f32.mrf.mxu3 }
0x33ed   :  { %v4101_v54 = vpop.f32.mrf.mxu2 }
0x33ee   :  { %4131 = vrot.lane.b32.xlu1 %v4101_v54, %s6295_s17 }
0x33f0   :  { %v4124_v22 = vpop.f32.mrf.mxu3 }
0x33f5   :  { %v4103_v0 = vpop.f32.mrf.mxu2 }
0x33f6   :  { %4143 = vrot.lane.b32.xlu1 %v7665_v26, %s6294_s4  ;;  %v5711_v0 = vld [vmem:[%s8062_s8 + $0xc8] sm:$0xf] }
0x33fe   :  { %4219 = vrot.lane.b32.xlu1 %v7744_v15, %s6292_s28 }
0x3401   :  { %v4080_v36 = vpop.f32.mrf.mxu1 }
0x3402   :  { %4127 = vrot.lane.b32.xlu0 %v4080_v36, %s6296_s0  ;;  %v5965_v36 = vld [vmem:[%s8062_s8 + $0xd0] sm:$0xf0] }
0x3409   :  { %v4082_v58 = vpop.f32.mrf.mxu1 }
0x340a   :  { %4135 = vrot.lane.b32.xlu0 %v4122_v42, %s6297_s18  ;;  %v5712_v58 = vor.u32 %v5965_v36, %v5711_v0  ;;  %v5762_v0 = vld [vmem:[%s8062_s8 + $0xf0] sm:$0xf]  ;;  %v5978_v36 = vld [vmem:[%s8062_s8 + $0xf8] sm:$0xf0] }
0x3411   :  { %v4213_v49 = vpop.f32.mrf.mxu1 }
0x3412   :  { %4221 = vrot.lane.b32.xlu0 %v7734_v63, %s6292_s28  ;;  %v4214_v5 = vadd.f32 %v4213_v49, %v4195_v19 }
0x3414   :  { %v4217_v13 = vpack.c.bf16 %v4214_v5, %v4214_v5 }
0x3419   :  { %v4215_v60 = vpop.f32.mrf.mxu1 }
0x3427   :  { %v4059_v27 = vpop.f32.mrf.mxu0 }
0x342f   :  { %v4061_v29 = vpop.f32.mrf.mxu0 }
0x3460   :  { %v4132_v61 = vpop.permute.xlu1 %4131 }
0x3468   :  { %v4144_v26 = vpop.permute.xlu1 %4143 }
0x3469   :  { %4159 = vmatpush.bf16.msrb.mxu0 %v4144_v26 }
0x3470   :  { %v4220_v16 = vpop.permute.xlu1 %4219 }
0x3474   :  { %v4128_v62 = vpop.permute.xlu0 %4127 }
0x3475   :  { %v4138_v21 = vsel %vm260_vm2, %v4059_v27, %v4128_v62 }
0x3476   :  { %v4139_v8 = vsel %vm595_vm6, %v4138_v21, %v4132_v61 }
0x347c   :  { %v4136_v30 = vpop.permute.xlu0 %4135 }
0x347d   :  { %v4140_v33 = vsel %vm598_vm7, %v4139_v8, %v4136_v30  ;;  %v5976_v30 = vld [vmem:[%s8066_s9 + $0x138] sm:$0xff] }
0x347e   :  { %v4141_v12 = vpack.c.bf16 %v4140_v33, %v4140_v33  ;;  %4381 = vmatpush.bf16.msra.mxu0 %v5976_v30  ;;  %v5975_v33 = vld [vmem:[%s8066_s9 + $0x130] sm:$0xff] }
0x3480   :  { %5682 = vmatmul.msk.bf16.vlgmr.msrb.gmra.mxu0 %vm207_vm1, %v4141_v12 }
0x3482   :  { %4382 = vmatpush.bf16.msra.mxu0 %v5975_v33 }
0x3484   :  { %v4222_v38 = vpop.permute.xlu0 %4221 }
0x3485   :  { %4234 = vmatpush.bf16.msra.mxu2 %v4222_v38 }
0x3489   :  { %4235 = vmatpush.bf16.msra.mxu2 %v4220_v16  ;;  %v5973_v16 = vld [vmem:[%s8066_s9 + $0x120] sm:$0xff] }
0x348c   :  { %5692 = vmatmul.msk.bf16.vlgmr.msra.gmra.mxu2 %vm207_vm1, %v4217_v13 }
0x34fd   :  { %v4161_v47 = vpop.f32.mrf.mxu0 }
0x34fe   :  { %v4162_v44 = vadd.f32 %v4161_v47, %v4142_v48  ;;  %v5972_v47 = vld [vmem:[%s8066_s9 + $0x118] sm:$0xff] }
0x3500   :  { %v4166_v50 = vrot.slane %v4162_v44, 6 }
0x3502   :  { %v4168_v37 = vadd.f32 %v4166_v50, %v7671_v40  ;;  %v5968_v40 = vld [vmem:[%s8062_s8 + $0xe8] sm:$0xf0]  ;;  %v7817_v50 = vld [vmem:[%s8063_s10 + $0x48] sm:$0xf] }
0x3503   :  { %v5716_v39 = vor.u32 %v5968_v40, %v5715_v52  ;;  %v5970_v52 = vld [vmem:[%s8066_s9 + $0x108] sm:$0xff]  ;;  %v5969_v40 = vld [vmem:[%s8066_s9 + $0x100] sm:$0xff] }
0x3504   :  { %v4169_v1 = vsel %vm1828_vm10, %v4168_v37, 0.0 }
0x3505   :  { %v4163_v18 = vpop.f32.mrf.mxu0  ;;  %4170 = vadd.xlane.f32.xlu0 %v4169_v1  ;;  %v5971_v1 = vld [vmem:[%s8066_s9 + $0x110] sm:$0xff] }
0x350f   :  { %v4237_v53 = vpop.f32.mrf.mxu2 }
0x3510   :  { %v4238_v14 = vadd.f32 %v4237_v53, %v4218_v6  ;;  %v4267_v53 = vperm.slane %v7817_v50, 0 }
0x3512   :  { %v4242_v45 = vrot.slane %v4238_v14, 6 }
0x3517   :  { %v4239_v10 = vpop.f32.mrf.mxu2 }
0x3519   :  { %4308 = vrot.lane.b32.xlu0 %v5716_v39, %s6293_s2 }
0x3578   :  { %v4171_v34 = vpop.xlane.xlu0 %4170 }
0x3579   :  { %v4172_v24 = vmul.f32 %v4171_v34, %v6584_v32  ;;  %v4269_v34 = vperm.slane %v7817_v50, 1 }
0x357b   :  { %v4173_v55 = vsub.f32 %v4168_v37, %v4172_v24 }
0x357d   :  { %v4174_v31 = vmul.f32 %v4173_v55, %v4173_v55 }
0x357f   :  { %v4175_v57 = vsel %vm1828_vm10, %v4174_v31, 0.0 }
0x3580   :  { %4176 = vadd.xlane.f32.xlu1 %v4175_v57 }
0x358b   :  { %v4309_v29 = vpop.permute.xlu0 %4308 }
0x3599   :  { %4304 = vrot.lane.b32.xlu1 %v5712_v58, %s6293_s2  ;;  %v7851_v58 = vor.u32 %v5978_v36, %v5762_v0 }
0x35f3   :  { %v4177_v59 = vpop.xlane.xlu1 %4176 }
0x35f4   :  { %v4178_v41 = vmul.f32 %v4177_v59, %v6584_v32 }
0x35f6   :  { %v4179_v35 = vadd.f32 1e-05, %v4178_v41  ;;  %v4289_v41 = vperm.slane %v7679_v43, 4 }
0x35f8   :  { %6253 = vrsqrt.f32 %v4179_v35  ;;  %vm4186_vm4 = vweird.f32 %v4179_v35 }
0x35fe   :  { %v6254_v56 = vpop.eup %6253 }
0x35ff   :  { %v4181_v51 = vmul.f32 %v6254_v56, %v4179_v35  ;;  %vm4187_vm14 = vweird.f32 %v6254_v56 }
0x3600   :  { %vm4188_vm5 = vmor %vm4186_vm4, %vm4187_vm14 }
0x3601   :  { %v4182_v3 = vmul.f32 %v6254_v56, %v4181_v51 }
0x3603   :  { %v4183_v2 = vmul.f32 0.5, %v4182_v3 }
0x3605   :  { %v4184_v4 = vsub.f32 1.5, %v4183_v2  ;;  %v4332_v2 = vperm.slane %v7679_v43, 5  ;;  %v5766_v43 = vld [vmem:[%s8062_s8 + $0x108] sm:$0xf] }
0x3607   :  { %v4185_v7 = vmul.f32 %v6254_v56, %v4184_v4 }
0x3609   :  { %v4189_v11 = vsel %vm4188_vm5, %v6254_v56, %v4185_v7 }
0x360a   :  { %v4190_v23 = vmul.f32 %v4189_v11, %v4173_v55 }
0x360b   :  { %v4305_v12 = vpop.permute.xlu1 %4304 }
0x360c   :  { %v4192_v17 = vmul.f32 %v4191_v9, %v4190_v23 }
0x360e   :  { %v4194_v42 = vadd.f32 %v4193_v20, %v4192_v17 }
0x3610   :  { %v4244_v54 = vadd.f32 %v4242_v45, %v4194_v42 }
0x3612   :  { %v4245_v22 = vsel %vm1828_vm10, %v4244_v54, 0.0 }
0x3613   :  { %4246 = vadd.xlane.f32.xlu2 %v4245_v22 }
0x362b   :  { %4306 = vrot.lane.b32.xlu2 %v7734_v63, %s6293_s2 }
0x3686   :  { %v4247_v46 = vpop.xlane.xlu2 %4246 }
0x3687   :  { %v4248_v49 = vmul.f32 %v4247_v46, %v6584_v32 }
0x3689   :  { %v4249_v60 = vsub.f32 %v4244_v54, %v4248_v49  ;;  %v5981_v54 = vld [vmem:[%s8062_s8 + $0x110] sm:$0xf0] }
0x368a   :  { %v7842_v22 = vor.u32 %v5981_v54, %v5766_v43 }
0x368b   :  { %v4250_v27 = vmul.f32 %v4249_v60, %v4249_v60 }
0x368c   :  { %4461 = vmatpush.bf16.msrb.mxu1 %v7842_v22 }
0x368d   :  { %v4251_v61 = vsel %vm1828_vm10, %v4250_v27, 0.0 }
0x368e   :  { %4252 = vadd.xlane.f32.xlu2 %v4251_v61  ;;  %v4307_v63 = vpop.permute.xlu2 %4306 }
0x368f   :  { %v4311_v26 = vsel %vm156_vm0, %v4307_v63, %v4309_v29 }
0x3690   :  { %4323 = vmatpush.bf16.msra.mxu3 %v4311_v26  ;;  %4462 = vmatpush.bf16.msrb.mxu1 %v7851_v58 }
0x36a6   :  { %4302 = vrot.lane.b32.xlu2 %v7744_v15, %s6293_s2  ;;  %v5974_v15 = vld [vmem:[%s8066_s9 + $0x128] sm:$0xff] }
0x36a7   :  { %4383 = vmatpush.bf16.msra.mxu0 %v5974_v15 }
0x36ab   :  { %4384 = vmatpush.bf16.msra.mxu0 %v5973_v16 }
0x36af   :  { %4385 = vmatpush.bf16.msra.mxu0 %v5972_v47 }
0x36b3   :  { %4386 = vmatpush.bf16.msra.mxu0 %v5971_v1 }
0x36b7   :  { %4387 = vmatpush.bf16.msra.mxu0 %v5970_v52 }
0x36bb   :  { %4388 = vmatpush.bf16.msra.mxu0 %v5969_v40 }
0x3701   :  { %v4253_v62 = vpop.xlane.xlu2 %4252 }
0x3702   :  { %v4254_v21 = vmul.f32 %v4253_v62, %v6584_v32 }
0x3704   :  { %v4255_v8 = vadd.f32 1e-05, %v4254_v21  ;;  %v4420_v21 = vperm.slane %v7817_v50, 2 }
0x3706   :  { %6255 = vrsqrt.f32 %v4255_v8  ;;  %vm4262_vm15 = vweird.f32 %v4255_v8 }
0x3709   :  { %v4303_v19 = vpop.permute.xlu2 %4302 }
0x370a   :  { %v4310_v38 = vsel %vm156_vm0, %v4303_v19, %v4305_v12 }
0x370b   :  { %4324 = vmatpush.bf16.msra.mxu3 %v4310_v38 }
0x370c   :  { %v6256_v5 = vpop.eup %6255 }
0x370d   :  { %v4257_v13 = vmul.f32 %v6256_v5, %v4255_v8  ;;  %vm4263_vm8 = vweird.f32 %v6256_v5  ;;  %v4422_v8 = vperm.slane %v7817_v50, 3 }
0x370e   :  { %vm4264_vm9 = vmor %vm4262_vm15, %vm4263_vm8 }
0x370f   :  { %v4258_v48 = vmul.f32 %v6256_v5, %v4257_v13 }
0x3711   :  { %v4259_v44 = vmul.f32 0.5, %v4258_v48 }
0x3713   :  { %v4260_v37 = vsub.f32 1.5, %v4259_v44 }
0x3715   :  { %v4261_v18 = vmul.f32 %v6256_v5, %v4260_v37 }
0x3717   :  { %v4265_v10 = vsel %vm4264_vm9, %v6256_v5, %v4261_v18  ;;  %v7865_v5 = vld [vmem:[%s8063_s10 + $0x50] sm:$0xff] }
0x3718   :  { %v4266_v24 = vmul.f32 %v4265_v10, %v4249_v60  ;;  %v4437_v16 = vperm.slane %v7865_v5, 0 }
0x371a   :  { %v4268_v55 = vmul.f32 %v4267_v53, %v4266_v24 }
0x371c   :  { %v4270_v31 = vadd.f32 %v4269_v34, %v4268_v55 }
0x371e   :  { %v4288_v57 = vpack.c.bf16 %v4270_v31, %v4270_v31 }
0x3720   :  { %v4291_v59 = vrot.slane %v4288_v57, 1 }
0x3722   :  { %5717 = vmatmul.msk.bf16.vlgmr.msra.gmra.mxu3 %vm207_vm1, %v4291_v59 }
0x37a5   :  { %v4326_v39 = vpop.f32.mrf.mxu3 }
0x37a6   :  { %v4327_v35 = vadd.f32 %v4326_v39, %v4289_v41 }
0x37a8   :  { %v4330_v56 = vmax.f32 %v4327_v35, 0.0 }
0x37aa   :  { %v4331_v51 = vpack.c.bf16 %v4330_v56, %v4330_v56 }
0x37ac   :  { %4389 = vmatmul.bf16.vlgmr.msra.gmra.mxu0 %v4331_v51 }
0x37ad   :  { %v4328_v3 = vpop.f32.mrf.mxu3 }
0x3829   :  { %v4390_v4 = vpop.f32.mrf.mxu0 }
0x382a   :  { %v4391_v6 = vadd.f32 %v4390_v4, %v4332_v2 }
0x382c   :  { %v4395_v7 = vrot.slane %v4391_v6, 6 }
0x382e   :  { %v4397_v9 = vadd.f32 %v4395_v7, %v4270_v31 }
0x3830   :  { %v4398_v11 = vsel %vm1828_vm10, %v4397_v9, 0.0 }
0x3831   :  { %v4392_v14 = vpop.f32.mrf.mxu0  ;;  %4399 = vadd.xlane.f32.xlu2 %v4398_v11  ;;  %v6287_v11 = vld [vmem:[%s8064_s3] sm:$0xf] }
0x38a4   :  { %v4400_v23 = vpop.xlane.xlu2 %4399 }
0x38a5   :  { %v4401_v20 = vmul.f32 %v4400_v23, %v6584_v32 }
0x38a7   :  { %v4402_v17 = vsub.f32 %v4397_v9, %v4401_v20 }
0x38a9   :  { %v4403_v45 = vmul.f32 %v4402_v17, %v4402_v17 }
0x38ab   :  { %v4404_v42 = vsel %vm1828_vm10, %v4403_v45, 0.0 }
0x38ac   :  { %4405 = vadd.xlane.f32.xlu0 %v4404_v42 }
0x391f   :  { %v4406_v46 = vpop.xlane.xlu0 %4405 }
0x3920   :  { %v4407_v49 = vmul.f32 %v4406_v46, %v6584_v32 }
0x3922   :  { %v4408_v60 = vadd.f32 1e-05, %v4407_v49 }
0x3924   :  { %6257 = vrsqrt.f32 %v4408_v60  ;;  %vm4415_vm14 = vweird.f32 %v4408_v60 }
0x392a   :  { %v6258_v27 = vpop.eup %6257 }
0x392b   :  { %v4410_v29 = vmul.f32 %v6258_v27, %v4408_v60  ;;  %vm4416_vm11 = vweird.f32 %v6258_v27 }
0x392c   :  { %vm4417_vm4 = vmor %vm4415_vm14, %vm4416_vm11 }
0x392d   :  { %v4411_v61 = vmul.f32 %v6258_v27, %v4410_v29 }
0x392f   :  { %v4412_v63 = vmul.f32 0.5, %v4411_v61 }
0x3931   :  { %v4413_v26 = vsub.f32 1.5, %v4412_v63 }
0x3933   :  { %v4414_v62 = vmul.f32 %v6258_v27, %v4413_v26 }
0x3935   :  { %v4418_v30 = vsel %vm4417_vm4, %v6258_v27, %v4414_v62 }
0x3936   :  { %v4419_v33 = vmul.f32 %v4418_v30, %v4402_v17 }
0x3938   :  { %v4421_v12 = vmul.f32 %v4420_v21, %v4419_v33 }
0x393a   :  { %v7857_v15 = vadd.f32 %v4422_v8, %v4421_v12 }
0x393c   :  { %v4436_v19 = vpack.c.bf16 %v7857_v15, %v7857_v15 }
0x393e   :  { %v4439_v38 = vrot.slane %v4436_v19, 1 }
0x3940   :  { %5768 = vmatmul.msk.bf16.vlgmr.msrb.gmra.mxu1 %vm207_vm1, %v4439_v38 }
0x39bd   :  { %v4464_v13 = vpop.f32.mrf.mxu1 }
0x39be   :  { %v4465_v48 = vadd.f32 %v4464_v13, %v4437_v16 }
0x39c0   :  { %v4478_v47 = vpack.c.bf16 %v4465_v48, %v4465_v48  ;;  %4475 = vrot.lane.b32.xlu1 %v4465_v48, %s6289_s25 }
0x39c2   :  { %v4483_v44 = vunpack.c.l.b16 %v4478_v47 }
0x39c4   :  { %v7869_v50 = vpack.c.b16 %v4483_v44, %v4483_v44 }
0x39c5   :  { %v4466_v37 = vpop.f32.mrf.mxu1 }
0x39c6   :  { %4485 = vrot.lane.b32.xlu2 %v7869_v50, %s6292_s28 }
0x39c8   :  { %4469 = vrot.lane.b32.xlu1 %v4465_v48, %s6290_s26 }
0x39d0   :  { %4472 = vrot.lane.b32.xlu1 %v4465_v48, %s6291_s27 }
0x3a20   :  { %v4486_v1 = vpop.permute.xlu2 %4485 }
0x3a21   :  { %v4491_v18 = vsel %vm260_vm2, %v4486_v1, 0 }
0x3a22   :  { %4500 = vmatpush.bf16.xpose.msrb.mxu2 %v4491_v18 }
0x3a29   :  { %5769 = vmatmul.msk.bf16.vlgmr.msrb.gmra.mxu2 %vm260_vm2, %v4478_v47 }
0x3a32   :  { %v4476_v53 = vpop.permute.xlu1 %4475 }
0x3a33   :  { %v4481_v10 = vpack.c.bf16 %v4476_v53, %v4476_v53 }
0x3a35   :  { %v4555_v34 = vunpack.c.l.b16 %v4481_v10 }
0x3a37   :  { %v7877_v24 = vpack.c.b16 %v4555_v34, %v4555_v34 }
0x3a39   :  { %4557 = vrot.lane.b32.xlu1 %v7877_v24, %s6292_s28 }
0x3a3a   :  { %v4470_v55 = vpop.permute.xlu1 %4469 }
0x3a3b   :  { %v4479_v31 = vpack.c.bf16 %v4470_v55, %v4470_v55 }
0x3a3d   :  { %v4507_v57 = vunpack.c.l.b16 %v4479_v31 }
0x3a3f   :  { %v4508_v59 = vpack.c.b16 %v4507_v57, %v4507_v57 }
0x3a41   :  { %4509 = vrot.lane.b32.xlu0 %v4508_v59, %s6292_s28 }
0x3a42   :  { %v4473_v52 = vpop.permute.xlu1 %4472 }
0x3a43   :  { %v4480_v40 = vpack.c.bf16 %v4473_v52, %v4473_v52 }
0x3a45   :  { %v4531_v41 = vunpack.c.l.b16 %v4480_v40 }
0x3a47   :  { %v4532_v39 = vpack.c.b16 %v4531_v41, %v4531_v41  ;;  %v5782_v41 = vld [vmem:[%s8062_s8 + $0x114] sm:$0xf0] }
0x3a49   :  { %4533 = vrot.lane.b32.xlu1 %v4532_v39, %s6292_s28 }
0x3aab   :  { %v4558_v35 = vpop.permute.xlu1 %4557 }
0x3aac   :  { %v4563_v56 = vsel %vm260_vm2, %v4558_v35, 0  ;;  %v4502_v51 = vpop.f32.mrf.mxu2 }
0x3aad   :  { %4572 = vmatpush.bf16.xpose.msra.mxu2 %v4563_v56  ;;  %v4503_v20 = vadd.f32 %v6287_v11, %v4502_v51 }
0x3aaf   :  { %v4578_v36 = vsel %vm1651_vm3, %v4503_v20, -inf }
0x3ab3   :  { %v4510_v3 = vpop.permute.xlu0 %4509 }
0x3ab4   :  { %v4515_v2 = vsel %vm260_vm2, %v4510_v3, 0  ;;  %v4504_v4 = vpop.f32.mrf.mxu2  ;;  %5772 = vmatmul.msk.bf16.vlgmr.msra.gmra.mxu2 %vm260_vm2, %v4481_v10 }
0x3ab5   :  { %4524 = vmatpush.bf16.xpose.msrb.mxu3 %v4515_v2  ;;  %v5977_v2 = vld [vmem:[%s8062_s8 + $0xf4] sm:$0xf]  ;;  %v5778_v4 = vld [vmem:[%s8062_s8 + $0xfc] sm:$0xf0] }
0x3abb   :  { %v4534_v6 = vpop.permute.xlu1 %4533 }
0x3abc   :  { %v4539_v7 = vsel %vm260_vm2, %v4534_v6, 0  ;;  %5770 = vmatmul.msk.bf16.vlgmr.msrb.gmra.mxu3 %vm260_vm2, %v4479_v31 }
0x3abd   :  { %4548 = vmatpush.bf16.xpose.msra.mxu1 %v4539_v7 }
0x3ac4   :  { %5771 = vmatmul.msk.bf16.vlgmr.msra.gmra.mxu1 %vm260_vm2, %v4480_v40  ;;  %v5980_v40 = vld [vmem:[%s8062_s8 + $0x10c] sm:$0xf] }
0x3ac5   :  { %v7917_v51 = vor.u32 %v5980_v40, %v5782_v41 }
0x3b37   :  { %v4574_v9 = vpop.f32.mrf.mxu2 }
0x3b38   :  { %v4575_v14 = vadd.f32 %v6287_v11, %v4574_v9  ;;  %v7928_v9 = vor.u32 %v5977_v2, %v5778_v4  ;;  %v4802_v2 = vperm.slane %v7865_v5, 3 }
0x3b3a   :  { %v4587_v23 = vsel %vm1651_vm3, %v4575_v14, -inf }
0x3b3b   :  { %4588 = vmax.xlane.f32.xlu1 %v4587_v23 }
0x3b3f   :  { %v4526_v17 = vpop.f32.mrf.mxu3  ;;  %v4576_v45 = vpop.f32.mrf.mxu2 }
0x3b40   :  { %v4527_v42 = vadd.f32 %v6287_v11, %v4526_v17 }
0x3b41   :  { %v4550_v43 = vpop.f32.mrf.mxu1 }
0x3b42   :  { %v4551_v54 = vadd.f32 %v6287_v11, %v4550_v43  ;;  %v4581_v0 = vsel %vm1651_vm3, %v4527_v42, -inf }
0x3b43   :  { %4582 = vmax.xlane.f32.xlu2 %v4581_v0  ;;  %4579 = vmax.xlane.f32.xlu1 %v4578_v36 }
0x3b44   :  { %v4584_v46 = vsel %vm1651_vm3, %v4551_v54, -inf }
0x3b45   :  { %4585 = vmax.xlane.f32.xlu0 %v4584_v46 }
0x3b47   :  { %v4528_v49 = vpop.f32.mrf.mxu3 }
0x3b49   :  { %v4552_v60 = vpop.f32.mrf.mxu1 }
0x3bae   :  { %v4589_v27 = vpop.xlane.xlu1 %4588 }
0x3baf   :  { %v4593_v29 = vsub.f32 %v4575_v14, %v4589_v27 }
0x3bb1   :  { %v4600_v61 = vmul.f32 1.442695, %v4593_v29 }
0x3bb3   :  { %6259 = vpow2.f32 %v4600_v61 }
0x3bb6   :  { %v4583_v63 = vpop.xlane.xlu2 %4582  ;;  %v4580_v48 = vpop.xlane.xlu1 %4579 }
0x3bb7   :  { %v4591_v26 = vsub.f32 %v4527_v42, %v4583_v63  ;;  %v4590_v47 = vsub.f32 %v4503_v20, %v4580_v48 }
0x3bb8   :  { %v4586_v62 = vpop.xlane.xlu0 %4585 }
0x3bb9   :  { %v6260_v21 = vpop.eup %6259  ;;  %v4596_v30 = vmul.f32 1.442695, %v4591_v26  ;;  %v4592_v8 = vsub.f32 %v4551_v54, %v4586_v62  ;;  %v4594_v44 = vmul.f32 1.442695, %v4590_v47 }
0x3bba   :  { %v4611_v33 = vsel %vm1651_vm3, %v6260_v21, 0.0 }
0x3bbb   :  { %v4598_v12 = vmul.f32 1.442695, %v4592_v8  ;;  %4612 = vadd.xlane.f32.xlu2 %v4611_v33  ;;  %6261 = vpow2.f32 %v4596_v30  ;;  %v4779_v33 = vperm.slane %v7865_v5, 2 }
0x3bbd   :  { %6263 = vpow2.f32 %v4598_v12 }
0x3bbe   :  { %6265 = vpow2.f32 %v4594_v44 }
0x3bc1   :  { %v6262_v19 = vpop.eup %6261 }
0x3bc2   :  { %v4605_v16 = vsel %vm1651_vm3, %v6262_v19, 0.0 }
0x3bc3   :  { %v6264_v38 = vpop.eup %6263  ;;  %4606 = vadd.xlane.f32.xlu1 %v4605_v16 }
0x3bc4   :  { %v4608_v13 = vsel %vm1651_vm3, %v6264_v38, 0.0  ;;  %v6266_v37 = vpop.eup %6265 }
0x3bc5   :  { %4609 = vadd.xlane.f32.xlu0 %v4608_v13  ;;  %v4602_v1 = vsel %vm1651_vm3, %v6266_v37, 0.0  ;;  %v4726_v13 = vperm.slane %v7865_v5, 1 }
0x3bd3   :  { %4689 = vrot.lane.b32.xlu2 %v7877_v24, %s6293_s2 }
0x3bd9   :  { %4668 = vrot.lane.b32.xlu0 %v4532_v39, %s6293_s2 }
0x3bdc   :  { %4647 = vrot.lane.b32.xlu1 %v4508_v59, %s6293_s2 }
0x3be1   :  { %4626 = vrot.lane.b32.xlu0 %v7869_v50, %s6293_s2 }
0x3be4   :  { %4729 = vrot.lane.b32.xlu1 %v7842_v22, %s6294_s4 }
0x3bfc   :  { %4603 = vadd.xlane.f32.xlu2 %v4602_v1 }
0x3c2e   :  { %v4613_v18 = vpop.xlane.xlu2 %4612 }
0x3c2f   :  { %6267 = vrcp.f32 %v4613_v18 }
0x3c35   :  { %v6268_v53 = vpop.eup %6267 }
0x3c36   :  { %v4621_v10 = vmul.f32 %v6268_v53, %v6260_v21  ;;  %v4690_v34 = vpop.permute.xlu2 %4689  ;;  %v4607_v50 = vpop.xlane.xlu1 %4606 }
0x3c37   :  { %v4695_v24 = vsel %vm1497_vm12, %v4690_v34, 0 }
0x3c38   :  { %v4625_v55 = vpack.c.bf16 %v4621_v10, %v4621_v10  ;;  %4704 = vmatpush.bf16.msrb.mxu2 %v4695_v24  ;;  %v4610_v22 = vpop.xlane.xlu0 %4609 }
0x3c39   :  { %6269 = vrcp.f32 %v4610_v22 }
0x3c3a   :  { %6271 = vrcp.f32 %v4607_v50 }
0x3c3b   :  { %5776 = vmatmul.msk.bf16.vlgmr.msrb.gmra.mxu2 %vm1702_vm13, %v4625_v55 }
0x3c3f   :  { %v6270_v31 = vpop.eup %6269 }
0x3c40   :  { %v4620_v57 = vmul.f32 %v6270_v31, %v6264_v38  ;;  %v6272_v59 = vpop.eup %6271 }
0x3c41   :  { %v4619_v35 = vmul.f32 %v6272_v59, %v6262_v19 }
0x3c42   :  { %v4624_v56 = vpack.c.bf16 %v4620_v57, %v4620_v57  ;;  %v5982_v57 = vld [vmem:[%s8062_s8 + $0x118] sm:$0xf0] }
0x3c43   :  { %v4623_v7 = vpack.c.bf16 %v4619_v35, %v4619_v35 }
0x3c4b   :  { %v4669_v52 = vpop.permute.xlu0 %4668 }
0x3c4c   :  { %v4674_v39 = vsel %vm1497_vm12, %v4669_v52, 0 }
0x3c4d   :  { %4683 = vmatpush.bf16.msrb.mxu1 %v4674_v39 }
0x3c4e   :  { %v4648_v3 = vpop.permute.xlu1 %4647 }
0x3c4f   :  { %v4653_v6 = vsel %vm1497_vm12, %v4648_v3, 0 }
0x3c50   :  { %5775 = vmatmul.msk.bf16.vlgmr.msrb.gmra.mxu1 %vm1702_vm13, %v4624_v56  ;;  %4662 = vmatpush.bf16.msrb.mxu0 %v4653_v6  ;;  %v4775_v6 = vperm.slane %v7865_v5, 6 }
0x3c53   :  { %v4627_v11 = vpop.permute.xlu0 %4626  ;;  %5774 = vmatmul.msk.bf16.vlgmr.msrb.gmra.mxu0 %vm1702_vm13, %v4623_v7 }
0x3c54   :  { %4794 = vmatpush.bf16.msra.mxu0 %v7917_v51  ;;  %v4632_v14 = vsel %vm1497_vm12, %v4627_v11, 0 }
0x3c55   :  { %4641 = vmatpush.bf16.msra.mxu3 %v4632_v14  ;;  %v4777_v14 = vperm.slane %v7865_v5, 7 }
0x3c56   :  { %v4730_v49 = vpop.permute.xlu1 %4729 }
0x3c58   :  { %4795 = vmatpush.bf16.msra.mxu0 %v7928_v9 }
0x3c59   :  { %4742 = vmatpush.bf16.msrb.mxu3 %v4730_v49 }
0x3c63   :  { %5786 = vmatmul.msk.bf16.vlgmr.msra.gmra.mxu0 %vm207_vm1, %v7011_v28 }
0x3c6f   :  { %v4604_v23 = vpop.xlane.xlu2 %4603 }
0x3c70   :  { %6273 = vrcp.f32 %v4604_v23 }
0x3c76   :  { %v6274_v20 = vpop.eup %6273 }
0x3c77   :  { %v4618_v17 = vmul.f32 %v6274_v20, %v6266_v37 }
0x3c79   :  { %v4622_v45 = vpack.c.bf16 %v4618_v17, %v4618_v17 }
0x3c7b   :  { %5773 = vmatmul.msk.bf16.vlgmr.msra.gmra.mxu3 %vm1702_vm13, %v4622_v45 }
0x3cbe   :  { %v4706_v42 = vpop.f32.mrf.mxu2 }
0x3cc6   :  { %v4708_v43 = vpop.f32.mrf.mxu2 }
0x3ccd   :  { %v4685_v54 = vpop.f32.mrf.mxu1 }
0x3cce   :  { %4715 = vrot.lane.b32.xlu1 %v4685_v54, %s6295_s17 }
0x3cd0   :  { %v4664_v0 = vpop.f32.mrf.mxu0 }
0x3cd1   :  { %4711 = vrot.lane.b32.xlu0 %v4664_v0, %s6296_s0 }
0x3cd5   :  { %v4687_v36 = vpop.f32.mrf.mxu1 }
0x3cd6   :  { %4727 = vrot.lane.b32.xlu1 %v7851_v58, %s6294_s4 }
0x3cd8   :  { %v4666_v28 = vpop.f32.mrf.mxu0 }
0x3cd9   :  { %4719 = vrot.lane.b32.xlu0 %v4706_v42, %s6297_s18 }
0x3cde   :  { %4803 = vrot.lane.b32.xlu1 %v7928_v9, %s6292_s28 }
0x3ce0   :  { %v4797_v46 = vpop.f32.mrf.mxu0 }
0x3ce1   :  { %4805 = vrot.lane.b32.xlu0 %v7917_v51, %s6292_s28  ;;  %v4798_v19 = vadd.f32 %v4797_v46, %v4779_v33 }
0x3ce3   :  { %v4801_v16 = vpack.c.bf16 %v4798_v19, %v4798_v19  ;;  %v5987_v19 = vld [vmem:[%s8066_s9 + $0x160] sm:$0xff] }
0x3ce8   :  { %v4799_v60 = vpop.f32.mrf.mxu0 }
0x3cfe   :  { %v4643_v27 = vpop.f32.mrf.mxu3 }
0x3d06   :  { %v4645_v29 = vpop.f32.mrf.mxu3 }
0x3d40   :  { %v4716_v61 = vpop.permute.xlu1 %4715 }
0x3d43   :  { %v4712_v63 = vpop.permute.xlu0 %4711 }
0x3d44   :  { %v4722_v58 = vsel %vm260_vm2, %v4643_v27, %v4712_v63  ;;  %v5806_v27 = vld [vmem:[%s8062_s8 + $0xf8] sm:$0xf] }
0x3d45   :  { %v4723_v21 = vsel %vm595_vm6, %v4722_v58, %v4716_v61 }
0x3d48   :  { %v4728_v26 = vpop.permute.xlu1 %4727 }
0x3d49   :  { %4743 = vmatpush.bf16.msrb.mxu3 %v4728_v26  ;;  %v5990_v26 = vld [vmem:[%s8066_s9 + $0x178] sm:$0xff] }
0x3d4b   :  { %v4720_v62 = vpop.permute.xlu0 %4719 }
0x3d4c   :  { %v4724_v30 = vsel %vm598_vm7, %v4723_v21, %v4720_v62  ;;  %v5989_v62 = vld [vmem:[%s8066_s9 + $0x170] sm:$0xff] }
0x3d4d   :  { %v4725_v8 = vpack.c.bf16 %v4724_v30, %v4724_v30  ;;  %4965 = vmatpush.bf16.msra.mxu3 %v5990_v26  ;;  %v5988_v30 = vld [vmem:[%s8066_s9 + $0x168] sm:$0xff] }
0x3d4f   :  { %5777 = vmatmul.msk.bf16.vlgmr.msrb.gmra.mxu3 %vm207_vm1, %v4725_v8 }
0x3d50   :  { %v4804_v38 = vpop.permute.xlu1 %4803 }
0x3d51   :  { %4966 = vmatpush.bf16.msra.mxu3 %v5989_v62 }
0x3d53   :  { %v4806_v12 = vpop.permute.xlu0 %4805 }
0x3d54   :  { %4818 = vmatpush.bf16.msra.mxu1 %v4806_v12 }
0x3d55   :  { %4967 = vmatpush.bf16.msra.mxu3 %v5988_v30  ;;  %v5993_v30 = vld [vmem:[%s8068_s12] sm:$0xff] }
0x3d58   :  { %4819 = vmatpush.bf16.msra.mxu1 %v4804_v38 }
0x3d59   :  { %4968 = vmatpush.bf16.msra.mxu3 %v5987_v19 }
0x3d5b   :  { %5787 = vmatmul.msk.bf16.vlgmr.msra.gmra.mxu1 %vm207_vm1, %v4801_v16 }
0x3dd2   :  { %v4745_v48 = vpop.f32.mrf.mxu3 }
0x3dd3   :  { %v4746_v47 = vadd.f32 %v4745_v48, %v4726_v13  ;;  %v5986_v13 = vld [vmem:[%s8066_s9 + $0x158] sm:$0xff] }
0x3dd4   :  { %4969 = vmatpush.bf16.msra.mxu3 %v5986_v13 }
0x3dd5   :  { %v4750_v44 = vrot.slane %v4746_v47, 6  ;;  %v8002_v47 = vld [vmem:[%s8063_s10 + $0x58] sm:$0xf] }
0x3dd7   :  { %v4752_v37 = vadd.f32 %v4750_v44, %v7857_v15  ;;  %v5810_v15 = vld [vmem:[%s8062_s8 + $0x110] sm:$0xf] }
0x3dd8   :  { %v4821_v1 = vpop.f32.mrf.mxu1  ;;  %v5811_v52 = vor.u32 %v5982_v57, %v5810_v15  ;;  %v5983_v15 = vld [vmem:[%s8066_s9 + $0x140] sm:$0xff]  ;;  %v4873_v57 = vperm.slane %v7865_v5, 4 }
0x3dd9   :  { %v4753_v18 = vsel %vm1828_vm10, %v4752_v37, 0.0 }
0x3dda   :  { %v4747_v53 = vpop.f32.mrf.mxu3  ;;  %4754 = vadd.xlane.f32.xlu0 %v4753_v18  ;;  %v4851_v18 = vperm.slane %v8002_v47, 0 }
0x3de0   :  { %v4823_v10 = vpop.f32.mrf.mxu1 }
0x3de1   :  { %v4853_v10 = vperm.slane %v8002_v47, 1 }
0x3dee   :  { %4892 = vrot.lane.b32.xlu0 %v5811_v52, %s6293_s2 }
0x3e4d   :  { %v4755_v34 = vpop.xlane.xlu0 %4754 }
0x3e4e   :  { %v4756_v24 = vmul.f32 %v4755_v34, %v6584_v32 }
0x3e50   :  { %v4757_v55 = vsub.f32 %v4752_v37, %v4756_v24  ;;  %v5985_v37 = vld [vmem:[%s8066_s9 + $0x150] sm:$0xff] }
0x3e51   :  { %4970 = vmatpush.bf16.msra.mxu3 %v5985_v37 }
0x3e52   :  { %v4758_v22 = vmul.f32 %v4757_v55, %v4757_v55 }
0x3e54   :  { %v4759_v50 = vsel %vm1828_vm10, %v4758_v22, 0.0 }
0x3e55   :  { %4760 = vadd.xlane.f32.xlu1 %v4759_v50 }
0x3e60   :  { %v4893_v28 = vpop.permute.xlu0 %4892 }
0x3e6e   :  { %4886 = vrot.lane.b32.xlu1 %v7928_v9, %s6293_s2  ;;  %v4822_v9 = vadd.f32 %v4821_v1, %v4802_v2 }
0x3e70   :  { %v4826_v20 = vrot.slane %v4822_v9, 6 }
0x3ec8   :  { %v4761_v31 = vpop.xlane.xlu1 %4760 }
0x3ec9   :  { %v4762_v59 = vmul.f32 %v4761_v31, %v6584_v32  ;;  %v5984_v31 = vld [vmem:[%s8066_s9 + $0x148] sm:$0xff] }
0x3eca   :  { %4971 = vmatpush.bf16.msra.mxu3 %v5984_v31 }
0x3ecb   :  { %v4763_v40 = vadd.f32 1e-05, %v4762_v59 }
0x3ecd   :  { %6275 = vrsqrt.f32 %v4763_v40  ;;  %vm4770_vm6 = vweird.f32 %v4763_v40 }
0x3ece   :  { %4972 = vmatpush.bf16.msra.mxu3 %v5983_v15 }
0x3ed3   :  { %v6276_v41 = vpop.eup %6275 }
0x3ed4   :  { %v4765_v39 = vmul.f32 %v6276_v41, %v4763_v40  ;;  %vm4771_vm2 = vweird.f32 %v6276_v41 }
0x3ed5   :  { %vm4772_vm7 = vmor %vm4770_vm6, %vm4771_vm2 }
0x3ed6   :  { %v4766_v35 = vmul.f32 %v6276_v41, %v4765_v39 }
0x3ed8   :  { %v4767_v56 = vmul.f32 0.5, %v4766_v35  ;;  %v4916_v35 = vperm.slane %v7865_v5, 5  ;;  %v5992_v5 = vld [vmem:[%s8067_s11 + $0x8] sm:$0xff] }
0x3ed9   :  { %5037 = vmatpush.bf16.msrb.mxu0 %v5992_v5 }
0x3eda   :  { %v4768_v3 = vsub.f32 1.5, %v4767_v56 }
0x3edc   :  { %v4769_v4 = vmul.f32 %v6276_v41, %v4768_v3 }
0x3ede   :  { %v4773_v7 = vsel %vm4772_vm7, %v6276_v41, %v4769_v4 }
0x3edf   :  { %v4774_v11 = vmul.f32 %v4773_v7, %v4757_v55 }
0x3ee0   :  { %v4887_v21 = vpop.permute.xlu1 %4886 }
0x3ee1   :  { %v4776_v23 = vmul.f32 %v4775_v6, %v4774_v11 }
0x3ee3   :  { %v4778_v17 = vadd.f32 %v4777_v14, %v4776_v23 }
0x3ee5   :  { %v4828_v45 = vadd.f32 %v4826_v20, %v4778_v17  ;;  %v5991_v17 = vld [vmem:[%s8067_s11] sm:$0xff] }
0x3ee6   :  { %5038 = vmatpush.bf16.msrb.mxu0 %v5991_v17 }
0x3ee7   :  { %v4829_v42 = vsel %vm1828_vm10, %v4828_v45, 0.0 }
0x3ee8   :  { %4830 = vadd.xlane.f32.xlu2 %v4829_v42 }
0x3f00   :  { %4890 = vrot.lane.b32.xlu2 %v7917_v51, %s6293_s2  ;;  %v5979_v51 = vld [vmem:[%s8062_s8 + $0x100] sm:$0xf0] }
0x3f01   :  { %v5807_v29 = vor.u32 %v5979_v51, %v5806_v27 }
0x3f5b   :  { %v4831_v43 = vpop.xlane.xlu2 %4830 }
0x3f5c   :  { %v4832_v54 = vmul.f32 %v4831_v43, %v6584_v32  ;;  %v5996_v43 = vld [vmem:[%s8068_s12 + $0x18] sm:$0xff] }
0x3f5d   :  { %5086 = vmatpush.bf16.msrb.mxu1 %v5996_v43 }
0x3f5e   :  { %v4833_v0 = vsub.f32 %v4828_v45, %v4832_v54 }
0x3f60   :  { %v4834_v36 = vmul.f32 %v4833_v0, %v4833_v0 }
0x3f62   :  { %v4835_v46 = vsel %vm1828_vm10, %v4834_v36, 0.0 }
0x3f63   :  { %4836 = vadd.xlane.f32.xlu2 %v4835_v46  ;;  %v4891_v49 = vpop.permute.xlu2 %4890 }
0x3f64   :  { %v4895_v60 = vsel %vm156_vm0, %v4891_v49, %v4893_v28 }
0x3f65   :  { %4907 = vmatpush.bf16.msra.mxu2 %v4895_v60 }
0x3f7b   :  { %4888 = vrot.lane.b32.xlu2 %v5807_v29, %s6293_s2  ;;  %v5006_v29 = vperm.slane %v8002_v47, 3 }
0x3fd6   :  { %v4837_v61 = vpop.xlane.xlu2 %4836 }
0x3fd7   :  { %v4838_v63 = vmul.f32 %v4837_v61, %v6584_v32 }
0x3fd9   :  { %v4839_v58 = vadd.f32 1e-05, %v4838_v63 }
0x3fdb   :  { %6277 = vrsqrt.f32 %v4839_v58  ;;  %vm4846_vm13 = vweird.f32 %v4839_v58 }
0x3fde   :  { %v4889_v8 = vpop.permute.xlu2 %4888 }
0x3fdf   :  { %v4894_v33 = vsel %vm156_vm0, %v4887_v21, %v4889_v8  ;;  %v5994_v21 = vld [vmem:[%s8068_s12 + $0x8] sm:$0xff]  ;;  %v6288_v8 = vld [vmem:[%s8065_s13] sm:$0xf] }
0x3fe0   :  { %4908 = vmatpush.bf16.msra.mxu2 %v4894_v33  ;;  %v5013_v33 = vperm.slane %v6288_v8, 2 }
0x3fe1   :  { %v6278_v12 = vpop.eup %6277 }
0x3fe2   :  { %v4841_v38 = vmul.f32 %v6278_v12, %v4839_v58  ;;  %vm4847_vm3 = vweird.f32 %v6278_v12 }
0x3fe3   :  { %vm4848_vm5 = vmor %vm4846_vm13, %vm4847_vm3 }
0x3fe4   :  { %v4842_v16 = vmul.f32 %v6278_v12, %v4841_v38 }
0x3fe6   :  { %v4843_v48 = vmul.f32 0.5, %v4842_v16 }
0x3fe8   :  { %v4844_v44 = vsub.f32 1.5, %v4843_v48  ;;  %v5054_v48 = vperm.slane %v6288_v8, 3 }
0x3fea   :  { %v4845_v1 = vmul.f32 %v6278_v12, %v4844_v44 }
0x3fec   :  { %v4849_v53 = vsel %vm4848_vm5, %v6278_v12, %v4845_v1 }
0x3fed   :  { %v4850_v34 = vmul.f32 %v4849_v53, %v4833_v0  ;;  %v5995_v0 = vld [vmem:[%s8068_s12 + $0x10] sm:$0xff]  ;;  %v5102_v53 = vsel %vm207_vm1, %v7005_v25, 0.0 }
0x3fee   :  { %5087 = vmatpush.bf16.msrb.mxu1 %v5995_v0 }
0x3fef   :  { %v4852_v24 = vmul.f32 %v4851_v18, %v4850_v34 }
0x3ff1   :  { %v4854_v55 = vadd.f32 %v4853_v10, %v4852_v24  ;;  %v5105_v10 = vrot.slane %v5102_v53, 6 }
0x3ff2   :  { %5088 = vmatpush.bf16.msrb.mxu1 %v5994_v21 }
0x3ff3   :  { %v4872_v22 = vpack.c.bf16 %v4854_v55, %v4854_v55 }
0x3ff5   :  { %v4875_v50 = vrot.slane %v4872_v22, 1 }
0x3ff6   :  { %5089 = vmatpush.bf16.msrb.mxu1 %v5993_v30 }
0x3ff7   :  { %5812 = vmatmul.msk.bf16.vlgmr.msra.gmra.mxu2 %vm207_vm1, %v4875_v50 }
0x407a   :  { %v4910_v59 = vpop.f32.mrf.mxu2 }
0x407b   :  { %v4911_v52 = vadd.f32 %v4910_v59, %v4873_v57 }
0x407d   :  { %v4914_v40 = vmax.f32 %v4911_v52, 0.0 }
0x407f   :  { %v4915_v41 = vpack.c.bf16 %v4914_v40, %v4914_v40 }
0x4081   :  { %4973 = vmatmul.bf16.vlgmr.msra.gmra.mxu3 %v4915_v41 }
0x4082   :  { %v4912_v39 = vpop.f32.mrf.mxu2 }
0x4104   :  { %v4974_v56 = vpop.f32.mrf.mxu3 }
0x4105   :  { %v4975_v3 = vadd.f32 %v4974_v56, %v4916_v35 }
0x4107   :  { %v4979_v2 = vrot.slane %v4975_v3, 6 }
0x4109   :  { %v4981_v4 = vadd.f32 %v4979_v2, %v4854_v55 }
0x410b   :  { %v4982_v6 = vsel %vm1828_vm10, %v4981_v4, 0.0 }
0x410c   :  { %v4976_v7 = vpop.f32.mrf.mxu3  ;;  %4983 = vadd.xlane.f32.xlu2 %v4982_v6 }
0x417f   :  { %v4984_v9 = vpop.xlane.xlu2 %4983 }
0x4180   :  { %v4985_v11 = vmul.f32 %v4984_v9, %v6584_v32 }
0x4182   :  { %v4986_v14 = vsub.f32 %v4981_v4, %v4985_v11 }
0x4184   :  { %v4987_v23 = vmul.f32 %v4986_v14, %v4986_v14 }
0x4186   :  { %v4988_v20 = vsel %vm1828_vm10, %v4987_v23, 0.0 }
0x4187   :  { %4989 = vadd.xlane.f32.xlu0 %v4988_v20 }
0x41fa   :  { %v4990_v45 = vpop.xlane.xlu0 %4989 }
0x41fb   :  { %v4991_v42 = vmul.f32 %v4990_v45, %v6584_v32  ;;  %v5004_v32 = vperm.slane %v8002_v47, 2 }
0x41fd   :  { %v4992_v54 = vadd.f32 1e-05, %v4991_v42 }
0x41ff   :  { %6279 = vrsqrt.f32 %v4992_v54  ;;  %vm4999_vm8 = vweird.f32 %v4992_v54 }
0x4205   :  { %v6280_v36 = vpop.eup %6279 }
0x4206   :  { %v4994_v28 = vmul.f32 %v6280_v36, %v4992_v54  ;;  %vm5000_vm10 = vweird.f32 %v6280_v36 }
0x4207   :  { %vm5001_vm15 = vmor %vm4999_vm8, %vm5000_vm10 }
0x4208   :  { %v4995_v46 = vmul.f32 %v6280_v36, %v4994_v28 }
0x420a   :  { %v4996_v49 = vmul.f32 0.5, %v4995_v46 }
0x420c   :  { %v4997_v60 = vsub.f32 1.5, %v4996_v49 }
0x420e   :  { %v4998_v27 = vmul.f32 %v6280_v36, %v4997_v60 }
0x4210   :  { %v5002_v51 = vsel %vm5001_vm15, %v6280_v36, %v4998_v27 }
0x4211   :  { %v5003_v61 = vmul.f32 %v5002_v51, %v4986_v14 }
0x4213   :  { %v5005_v63 = vmul.f32 %v5004_v32, %v5003_v61 }
0x4215   :  { %v5007_v26 = vadd.f32 %v5006_v29, %v5005_v63 }
0x4217   :  { %v5012_v58 = vpack.c.bf16 %v5007_v26, %v5007_v26 }
0x4219   :  { %v5015_v62 = vrot.slane %v5012_v58, 1 }
0x421b   :  { %5853 = vmatmul.msk.bf16.vlgmr.msrb.gmra.mxu0 %vm207_vm1, %v5015_v62 }
0x4298   :  { %v5040_v12 = vpop.f32.mrf.mxu0 }
0x4299   :  { %v5041_v19 = vadd.f32 %v5040_v12, %v5013_v33 }
0x429b   :  { %v5044_v38 = vmax.f32 %v5041_v19, 0.0 }
0x429d   :  { %v5053_v16 = vpack.c.bf16 %v5044_v38, %v5044_v38 }
0x429f   :  { %5870 = vmatmul.msk.bf16.vlgmr.msrb.gmra.mxu1 %vm156_vm0, %v5053_v16 }
0x42a0   :  { %v5042_v13 = vpop.f32.mrf.mxu0 }
0x431c   :  { %v5091_v47 = vpop.f32.mrf.mxu1 }
0x431d   :  { %v5092_v44 = vadd.f32 %v5091_v47, %v5054_v48 }
0x431f   :  { %6281 = vtanh.f32 %v5092_v44 }
0x4324   :  { %v5093_v37 = vpop.f32.mrf.mxu1 }
0x4325   :  { %v6282_v1 = vpop.eup %6281 }
0x4326   :  { %v5097_v18 = vrot.slane %v6282_v1, 2 }
0x4328   :  { %5098 = vrot.lane.b32.xlu1 %v5097_v18, %s6293_s2 }
0x439a   :  { %v5099_v34 = vpop.permute.xlu1 %5098 }
0x439b   :  { %v5101_v24 = vsel %vm156_vm0, %v6282_v1, %v5099_v34 }
0x439c   :  { %v5106_v55 = vsel %vm1497_vm12, %v5101_v24, %v5105_v10 }
0x439d   :  { %5108 = vst [vmem:[%s8069_s14] sm:$0xf] %v5106_v55 }

</bundles_post_ra>
